<compile_context>
chip_gen: v7x
topology: tpu7x:2x2x1
jax: 0.10.0
libtpu: 0.0.40
codegen_flags: <defaults>
</compile_context>

<pallas_src>
import functools

import jax
import jax.numpy as jnp
from jax.experimental import pallas as pl
from jax.experimental.pallas import tpu as pltpu


# -----------------------------------------------------------------------------
# Fused kernel: pads + convs + BN + attention + projection, one grid step.
# -----------------------------------------------------------------------------
def _conv_attention_fused_kernel(x_ref, w1_ref, w2_ref, wp_ref, bp_ref,
                                 o_ref, pad1_ref, pad2_ref,
                                 *, B, L, W, C, K1, K2, scale):
    """Shapes:
      x_ref   : (B, L, W, C)          f32   input image (NHWC)
      w1_ref  : (K1, K1, C, 3C)       bf16  conv1 weights, q|k|v concat on Cout
      w2_ref  : (K2, K2, 3C, 3C)      bf16  conv2 weights, block-diagonal q|k|v
      wp_ref  : (C, Dpad)             bf16  linear weight^T, lane-padded to 128
      bp_ref  : (1, Dpad)             f32   linear bias, lane-padded
      o_ref   : (B*N, Dpad)           f32   lane-dense output slab
      pad1_ref: (B, L+2, W+2, C)      f32   scratch: padded input
      pad2_ref: (B, Ho1+3, Wo1+3, 3C) f32   scratch: padded BN output
    """
    C3 = 3 * C
    Ho1, Wo1 = (L + 2) - K1 + 1, (W + 2) - K1 + 1
    Ho2, Wo2 = (Ho1 + 3) - K2 + 1, (Wo1 + 3) - K2 + 1
    N = Ho2 * Wo2
    M1 = B * Ho1 * Wo1
    M2 = B * N

    # ---- pad #1: sf.pad(x, (0, 2, 2, 0)) -> 2 zero rows on top, 2 zero cols right
    pad1_ref[...] = jnp.zeros_like(pad1_ref)
    pad1_ref[:, 2:L + 2, 0:W, :] = x_ref[...]
    xp1 = pad1_ref[...]

    # ---- conv1 (5x5, stride 1, no bias): q/k/v in one pass (Cout = 3C) ------
    acc1 = jnp.zeros((M1, C3), jnp.float32)
    for ky in range(K1):
        for kx in range(K1):
            patch = xp1[:, ky:ky + Ho1, kx:kx + Wo1, :].reshape(M1, C)
            acc1 = acc1 + jnp.dot(patch.astype(jnp.bfloat16), w1_ref[ky, kx],
                                  preferred_element_type=jnp.float32)

    # ---- BatchNorm2d (fresh module -> training mode: biased batch stats,
    #      gamma=1, beta=0); identical per-channel stats as per-branch BN.
    mean = jnp.mean(acc1, axis=0, keepdims=True)
    var = jnp.mean(jnp.square(acc1 - mean), axis=0, keepdims=True)
    h1 = (acc1 - mean) * jax.lax.rsqrt(var + 1e-5)

    # ---- pad #2: sf.pad(x, (0, 3, 3, 0)) -> 3 zero rows on top, 3 zero cols right
    pad2_ref[...] = jnp.zeros_like(pad2_ref)
    pad2_ref[:, 3:Ho1 + 3, 0:Wo1, :] = h1.reshape(B, Ho1, Wo1, C3)
    xp2 = pad2_ref[...]

    # ---- conv2 (2x2, stride 1, no bias): block-diag weight keeps q/k/v separate
    acc2 = jnp.zeros((M2, C3), jnp.float32)
    for ky in range(K2):
        for kx in range(K2):
            patch = xp2[:, ky:ky + Ho2, kx:kx + Wo2, :].reshape(M2, C3)
            acc2 = acc2 + jnp.dot(patch.astype(jnp.bfloat16), w2_ref[ky, kx],
                                  preferred_element_type=jnp.float32)

    # ---- split q / k / v; fold the softmax scale into q ---------------------
    h2 = acc2.reshape(B, N, C3)
    q = (h2[:, :, 0:C] * scale).astype(jnp.bfloat16)
    k = h2[:, :, C:2 * C].astype(jnp.bfloat16)
    v = h2[:, :, 2 * C:3 * C].astype(jnp.bfloat16)

    # ---- attention: QK^T -> softmax (f32) -> @V -----------------------------
    dots = jnp.einsum('bid,bjd->bij', q, k, preferred_element_type=jnp.float32)
    dots = dots - jnp.max(dots, axis=-1, keepdims=True)
    e = jnp.exp(dots)
    attn = e * pl.reciprocal(jnp.sum(e, axis=-1, keepdims=True), approx=True)
    out = jnp.einsum('bij,bjd->bid', attn.astype(jnp.bfloat16), v,
                     preferred_element_type=jnp.float32)          # (B, N, C) f32

    # ---- linear projection into a lane-dense (Dpad-wide) output slab --------
    out2 = out.reshape(M2, C).astype(jnp.bfloat16)
    proj = jnp.dot(out2, wp_ref[...], preferred_element_type=jnp.float32) + bp_ref[...]
    o_ref[...] = proj.astype(o_ref.dtype)


# -----------------------------------------------------------------------------
# Wrapper: weight packing (q|k|v concat, block-diag, lane padding) + one call.
# -----------------------------------------------------------------------------
def _prepare_weights(params, inner_dim, project_out):
    C = params["q_w1"].shape[2]
    C3 = 3 * C
    # q/k/v conv1 weights concatenated along Cout -> one conv pass for all three.
    w1 = jnp.concatenate([params["q_w1"], params["k_w1"], params["v_w1"]],
                         axis=-1)                                  # (5,5,C,3C)
    # Block-diagonal conv2 weight: each branch only sees its own 50 channels.
    K2 = params["q_w2"].shape[0]
    w2 = jnp.zeros((K2, K2, C3, C3), jnp.float32)
    w2 = w2.at[:, :, 0:C, 0:C].set(params["q_w2"])
    w2 = w2.at[:, :, C:2 * C, C:2 * C].set(params["k_w2"])
    w2 = w2.at[:, :, 2 * C:, 2 * C:].set(params["v_w2"])
    if project_out:
        wlin_t = params["lin_w"].T                                 # (inner, dim)
        blin = params["lin_b"]
    else:                                                          # nn.Identity()
        wlin_t = jnp.eye(inner_dim, dtype=jnp.float32)
        blin = jnp.zeros((inner_dim,), jnp.float32)
    dout = wlin_t.shape[1]
    dpad = 128 * ((dout + 127) // 128)    # lane-dense output (avoid vst.msk)
    wp = jnp.zeros((inner_dim, dpad), jnp.float32).at[:, :dout].set(wlin_t)
    bp = jnp.zeros((1, dpad), jnp.float32).at[:, :dout].set(blin.reshape(1, -1))
    return (w1.astype(jnp.bfloat16), w2.astype(jnp.bfloat16),
            wp.astype(jnp.bfloat16), bp, dout, dpad)


@functools.partial(jax.jit, static_argnames=("img_size", "dim_head", "project_out"))
def conv_attention_forward(x, params, *, img_size, dim_head, project_out):
    B, N, dim = x.shape
    L = W = img_size
    assert N == L * W
    C = params["q_w1"].shape[2]            # snn.Convolution(50, 50, ...) -> 50
    assert dim == C, "ConvAttention requires dim == conv channel count (50)"
    inner_dim = dim_head * 1               # self.heads is forced to 1
    assert inner_dim == params["q_w1"].shape[3]
    scale = float(dim_head) ** -0.5

    w1, w2, wp, bp, dout, dpad = _prepare_weights(params, inner_dim, project_out)

    K1, K2 = w1.shape[0], w2.shape[0]
    Ho1, Wo1 = (L + 2) - K1 + 1, (W + 2) - K1 + 1
    Ho2, Wo2 = (Ho1 + 3) - K2 + 1, (Wo1 + 3) - K2 + 1
    assert Ho2 * Wo2 == N                  # conv stack preserves the token count

    xh = x.reshape(B, L, W, dim)           # 'b (l w) n -> b n l w' kept as NHWC

    kernel = functools.partial(
        _conv_attention_fused_kernel,
        B=B, L=L, W=W, C=C, K1=K1, K2=K2, scale=scale)

    vmem = pl.BlockSpec(memory_space=pltpu.MemorySpace.VMEM)
    out_pad = pl.pallas_call(
        kernel,
        out_shape=jax.ShapeDtypeStruct((B * N, dpad), jnp.float32),
        in_specs=[vmem, vmem, vmem, vmem, vmem],
        out_specs=vmem,
        scratch_shapes=[
            pltpu.VMEM((B, L + 2, W + 2, C), jnp.float32),         # padded input
            pltpu.VMEM((B, Ho1 + 3, Wo1 + 3, 3 * C), jnp.float32), # padded BN out
        ],
    )(xh, w1, w2, wp, bp)

    return out_pad[:, :dout].reshape(B, N, dout)


# -----------------------------------------------------------------------------
# Deterministic parameter init matching the module's __init__ shapes
# -----------------------------------------------------------------------------
def init_params(key, dim, dim_head):
    C = 50                                # snn.Convolution(50, 50, ...) hardcodes 50
    inner_dim = dim_head * 1              # self.heads is forced to 1
    ks = jax.random.split(key, 8)

    def snn_w(k, ksize):                  # N(mean=0.8, std=0.05), HWIO, no bias
        return 0.8 + 0.05 * jax.random.normal(k, (ksize, ksize, C, C), jnp.float32)

    bound = 1.0 / (inner_dim ** 0.5)      # nn.Linear default init range
    return {
        "q_w1": snn_w(ks[0], 5), "q_w2": snn_w(ks[1], 2),
        "k_w1": snn_w(ks[2], 5), "k_w2": snn_w(ks[3], 2),
        "v_w1": snn_w(ks[4], 5), "v_w2": snn_w(ks[5], 2),
        "lin_w": jax.random.uniform(ks[6], (dim, inner_dim), jnp.float32,
                                    minval=-bound, maxval=bound),
        "lin_b": jax.random.uniform(ks[7], (dim,), jnp.float32,
                                    minval=-bound, maxval=bound),
    }


if __name__ == "__main__":
    # ConvAttention(dim=50, img_size=8, heads=2, dim_head=50, dropout=0.5)
    dim = 50
    img_size = 8
    heads_ctor = 2          # constructor arg (self.heads is overwritten to 1)
    dim_head = 50
    project_out = not (heads_ctor == 1 and dim_head == dim)   # -> True

    B = 2
    N = img_size * img_size

    key = jax.random.PRNGKey(0)
    key_x, key_p = jax.random.split(key)
    x = jax.random.normal(key_x, (B, N, dim), jnp.float32)
    params = init_params(key_p, dim, dim_head)

    out = conv_attention_forward(x, params, img_size=img_size,
                                 dim_head=dim_head, project_out=project_out)
    out = jax.block_until_ready(out)

    assert out.shape == (B, N, dim), out.shape
    assert bool(jnp.all(jnp.isfinite(out)))
    print("KERNEL_OK")
</pallas_src>

<mosaic_0001>
module attributes {stable_mosaic.version = 11 : i64} {
  func.func @_conv_attention_fused_kernel(%arg0: memref<2x8x8x50xf32, #tpu.memory_space<vmem>>, %arg1: memref<5x5x50x150xbf16, #tpu.memory_space<vmem>>, %arg2: memref<2x2x150x150xbf16, #tpu.memory_space<vmem>>, %arg3: memref<50x128xbf16, #tpu.memory_space<vmem>>, %arg4: memref<1x128xf32, #tpu.memory_space<vmem>>, %arg5: memref<128x128xf32, #tpu.memory_space<vmem>>, %arg6: memref<2x10x10x50xf32, #tpu.memory_space<vmem>>, %arg7: memref<2x9x9x150xf32, #tpu.memory_space<vmem>>) attributes {dimension_semantics = [], scalar_prefetch = 0 : i64, scratch_operands = 2 : i64, tpu.core_type = #tpu.core_type<tc>} {
    %cst = arith.constant 0.000000e+00 : f32
    %0 = vector.broadcast %cst : f32 to vector<2x10x10x50xf32>
    %c0 = arith.constant 0 : index
    %c0_0 = arith.constant 0 : index
    %c0_1 = arith.constant 0 : index
    %c0_2 = arith.constant 0 : index
    %1 = vector.load %arg6[%c0, %c0_0, %c0_1, %c0_2] : memref<2x10x10x50xf32, #tpu.memory_space<vmem>>, vector<2x10x10x50xf32>
    tpu.vector_store %arg6[%c0, %c0_0, %c0_1, %c0_2], %0 {strides = array<i32>} : memref<2x10x10x50xf32, #tpu.memory_space<vmem>>, vector<2x10x10x50xf32>,
    %c0_3 = arith.constant 0 : index
    %c0_4 = arith.constant 0 : index
    %c0_5 = arith.constant 0 : index
    %c0_6 = arith.constant 0 : index
    %2 = vector.load %arg0[%c0_3, %c0_4, %c0_5, %c0_6] : memref<2x8x8x50xf32, #tpu.memory_space<vmem>>, vector<2x8x8x50xf32>
    %c0_7 = arith.constant 0 : index
    %c2 = arith.constant 2 : index
    %c0_8 = arith.constant 0 : index
    %c0_9 = arith.constant 0 : index
    %3 = vector.load %arg6[%c0_7, %c2, %c0_8, %c0_9] : memref<2x10x10x50xf32, #tpu.memory_space<vmem>>, vector<2x8x8x50xf32>
    tpu.vector_store %arg6[%c0_7, %c2, %c0_8, %c0_9], %2 {strides = array<i32>} : memref<2x10x10x50xf32, #tpu.memory_space<vmem>>, vector<2x8x8x50xf32>,
    %c0_10 = arith.constant 0 : index
    %c0_11 = arith.constant 0 : index
    %c0_12 = arith.constant 0 : index
    %c0_13 = arith.constant 0 : index
    %4 = vector.load %arg6[%c0_10, %c0_11, %c0_12, %c0_13] : memref<2x10x10x50xf32, #tpu.memory_space<vmem>>, vector<2x10x10x50xf32>
    %cst_14 = arith.constant 0.000000e+00 : f32
    %5 = vector.broadcast %cst_14 : f32 to vector<72x150xf32>
    %6 = vector.extract_strided_slice %4 {offsets = [0, 0, 0, 0], sizes = [2, 6, 6, 50], strides = [1, 1, 1, 1]} : vector<2x10x10x50xf32> to vector<2x6x6x50xf32>
    %7 = vector.shape_cast %6 : vector<2x6x6x50xf32> to vector<72x50xf32>
    %8 = arith.truncf %7 : vector<72x50xf32> to vector<72x50xbf16>
    %c0_15 = arith.constant 0 : index
    %c0_16 = arith.constant 0 : index
    %c0_17 = arith.constant 0 : index
    %c0_18 = arith.constant 0 : index
    %9 = vector.load %arg1[%c0_15, %c0_16, %c0_17, %c0_18] : memref<5x5x50x150xbf16, #tpu.memory_space<vmem>>, vector<1x1x50x150xbf16>
    %10 = vector.shape_cast %9 : vector<1x1x50x150xbf16> to vector<50x150xbf16>
    %cst_19 = arith.constant dense<0.000000e+00> : vector<72x150xf32>
    %11 = tpu.matmul %8, %10, %cst_19 {dimension_numbers = #tpu.dot_dimension_numbers<[1], [0], [0], [1], [0, 0, 1, 1], [], []>} : vector<72x50xbf16>, vector<50x150xbf16>, vector<72x150xf32> -> vector<72x150xf32>
    %12 = arith.addf %5, %11 : vector<72x150xf32>
    %13 = vector.extract_strided_slice %4 {offsets = [0, 0, 1, 0], sizes = [2, 6, 6, 50], strides = [1, 1, 1, 1]} : vector<2x10x10x50xf32> to vector<2x6x6x50xf32>
    %14 = vector.shape_cast %13 : vector<2x6x6x50xf32> to vector<72x50xf32>
    %15 = arith.truncf %14 : vector<72x50xf32> to vector<72x50xbf16>
    %c0_20 = arith.constant 0 : index
    %c1 = arith.constant 1 : index
    %c0_21 = arith.constant 0 : index
    %c0_22 = arith.constant 0 : index
    %16 = vector.load %arg1[%c0_20, %c1, %c0_21, %c0_22] : memref<5x5x50x150xbf16, #tpu.memory_space<vmem>>, vector<1x1x50x150xbf16>
    %17 = vector.shape_cast %16 : vector<1x1x50x150xbf16> to vector<50x150xbf16>
    %cst_23 = arith.constant dense<0.000000e+00> : vector<72x150xf32>
    %18 = tpu.matmul %15, %17, %cst_23 {dimension_numbers = #tpu.dot_dimension_numbers<[1], [0], [0], [1], [0, 0, 1, 1], [], []>} : vector<72x50xbf16>, vector<50x150xbf16>, vector<72x150xf32> -> vector<72x150xf32>
    %19 = arith.addf %12, %18 : vector<72x150xf32>
    %20 = vector.extract_strided_slice %4 {offsets = [0, 0, 2, 0], sizes = [2, 6, 6, 50], strides = [1, 1, 1, 1]} : vector<2x10x10x50xf32> to vector<2x6x6x50xf32>
    %21 = vector.shape_cast %20 : vector<2x6x6x50xf32> to vector<72x50xf32>
    %22 = arith.truncf %21 : vector<72x50xf32> to vector<72x50xbf16>
    %c0_24 = arith.constant 0 : index
    %c2_25 = arith.constant 2 : index
    %c0_26 = arith.constant 0 : index
    %c0_27 = arith.constant 0 : index
    %23 = vector.load %arg1[%c0_24, %c2_25, %c0_26, %c0_27] : memref<5x5x50x150xbf16, #tpu.memory_space<vmem>>, vector<1x1x50x150xbf16>
    %24 = vector.shape_cast %23 : vector<1x1x50x150xbf16> to vector<50x150xbf16>
    %cst_28 = arith.constant dense<0.000000e+00> : vector<72x150xf32>
    %25 = tpu.matmul %22, %24, %cst_28 {dimension_numbers = #tpu.dot_dimension_numbers<[1], [0], [0], [1], [0, 0, 1, 1], [], []>} : vector<72x50xbf16>, vector<50x150xbf16>, vector<72x150xf32> -> vector<72x150xf32>
    %26 = arith.addf %19, %25 : vector<72x150xf32>
    %27 = vector.extract_strided_slice %4 {offsets = [0, 0, 3, 0], sizes = [2, 6, 6, 50], strides = [1, 1, 1, 1]} : vector<2x10x10x50xf32> to vector<2x6x6x50xf32>
    %28 = vector.shape_cast %27 : vector<2x6x6x50xf32> to vector<72x50xf32>
    %29 = arith.truncf %28 : vector<72x50xf32> to vector<72x50xbf16>
    %c0_29 = arith.constant 0 : index
    %c3 = arith.constant 3 : index
    %c0_30 = arith.constant 0 : index
    %c0_31 = arith.constant 0 : index
    %30 = vector.load %arg1[%c0_29, %c3, %c0_30, %c0_31] : memref<5x5x50x150xbf16, #tpu.memory_space<vmem>>, vector<1x1x50x150xbf16>
    %31 = vector.shape_cast %30 : vector<1x1x50x150xbf16> to vector<50x150xbf16>
    %cst_32 = arith.constant dense<0.000000e+00> : vector<72x150xf32>
    %32 = tpu.matmul %29, %31, %cst_32 {dimension_numbers = #tpu.dot_dimension_numbers<[1], [0], [0], [1], [0, 0, 1, 1], [], []>} : vector<72x50xbf16>, vector<50x150xbf16>, vector<72x150xf32> -> vector<72x150xf32>
    %33 = arith.addf %26, %32 : vector<72x150xf32>
    %34 = vector.extract_strided_slice %4 {offsets = [0, 0, 4, 0], sizes = [2, 6, 6, 50], strides = [1, 1, 1, 1]} : vector<2x10x10x50xf32> to vector<2x6x6x50xf32>
    %35 = vector.shape_cast %34 : vector<2x6x6x50xf32> to vector<72x50xf32>
    %36 = arith.truncf %35 : vector<72x50xf32> to vector<72x50xbf16>
    %c0_33 = arith.constant 0 : index
    %c4 = arith.constant 4 : index
    %c0_34 = arith.constant 0 : index
    %c0_35 = arith.constant 0 : index
    %37 = vector.load %arg1[%c0_33, %c4, %c0_34, %c0_35] : memref<5x5x50x150xbf16, #tpu.memory_space<vmem>>, vector<1x1x50x150xbf16>
    %38 = vector.shape_cast %37 : vector<1x1x50x150xbf16> to vector<50x150xbf16>
    %cst_36 = arith.constant dense<0.000000e+00> : vector<72x150xf32>
    %39 = tpu.matmul %36, %38, %cst_36 {dimension_numbers = #tpu.dot_dimension_numbers<[1], [0], [0], [1], [0, 0, 1, 1], [], []>} : vector<72x50xbf16>, vector<50x150xbf16>, vector<72x150xf32> -> vector<72x150xf32>
    %40 = arith.addf %33, %39 : vector<72x150xf32>
    %41 = vector.extract_strided_slice %4 {offsets = [0, 1, 0, 0], sizes = [2, 6, 6, 50], strides = [1, 1, 1, 1]} : vector<2x10x10x50xf32> to vector<2x6x6x50xf32>
    %42 = vector.shape_cast %41 : vector<2x6x6x50xf32> to vector<72x50xf32>
    %43 = arith.truncf %42 : vector<72x50xf32> to vector<72x50xbf16>
    %c1_37 = arith.constant 1 : index
    %c0_38 = arith.constant 0 : index
    %c0_39 = arith.constant 0 : index
    %c0_40 = arith.constant 0 : index
    %44 = vector.load %arg1[%c1_37, %c0_38, %c0_39, %c0_40] : memref<5x5x50x150xbf16, #tpu.memory_space<vmem>>, vector<1x1x50x150xbf16>
    %45 = vector.shape_cast %44 : vector<1x1x50x150xbf16> to vector<50x150xbf16>
    %cst_41 = arith.constant dense<0.000000e+00> : vector<72x150xf32>
    %46 = tpu.matmul %43, %45, %cst_41 {dimension_numbers = #tpu.dot_dimension_numbers<[1], [0], [0], [1], [0, 0, 1, 1], [], []>} : vector<72x50xbf16>, vector<50x150xbf16>, vector<72x150xf32> -> vector<72x150xf32>
    %47 = arith.addf %40, %46 : vector<72x150xf32>
    %48 = vector.extract_strided_slice %4 {offsets = [0, 1, 1, 0], sizes = [2, 6, 6, 50], strides = [1, 1, 1, 1]} : vector<2x10x10x50xf32> to vector<2x6x6x50xf32>
    %49 = vector.shape_cast %48 : vector<2x6x6x50xf32> to vector<72x50xf32>
    %50 = arith.truncf %49 : vector<72x50xf32> to vector<72x50xbf16>
    %c1_42 = arith.constant 1 : index
    %c1_43 = arith.constant 1 : index
    %c0_44 = arith.constant 0 : index
    %c0_45 = arith.constant 0 : index
    %51 = vector.load %arg1[%c1_42, %c1_43, %c0_44, %c0_45] : memref<5x5x50x150xbf16, #tpu.memory_space<vmem>>, vector<1x1x50x150xbf16>
    %52 = vector.shape_cast %51 : vector<1x1x50x150xbf16> to vector<50x150xbf16>
    %cst_46 = arith.constant dense<0.000000e+00> : vector<72x150xf32>
    %53 = tpu.matmul %50, %52, %cst_46 {dimension_numbers = #tpu.dot_dimension_numbers<[1], [0], [0], [1], [0, 0, 1, 1], [], []>} : vector<72x50xbf16>, vector<50x150xbf16>, vector<72x150xf32> -> vector<72x150xf32>
    %54 = arith.addf %47, %53 : vector<72x150xf32>
    %55 = vector.extract_strided_slice %4 {offsets = [0, 1, 2, 0], sizes = [2, 6, 6, 50], strides = [1, 1, 1, 1]} : vector<2x10x10x50xf32> to vector<2x6x6x50xf32>
    %56 = vector.shape_cast %55 : vector<2x6x6x50xf32> to vector<72x50xf32>
    %57 = arith.truncf %56 : vector<72x50xf32> to vector<72x50xbf16>
    %c1_47 = arith.constant 1 : index
    %c2_48 = arith.constant 2 : index
    %c0_49 = arith.constant 0 : index
    %c0_50 = arith.constant 0 : index
    %58 = vector.load %arg1[%c1_47, %c2_48, %c0_49, %c0_50] : memref<5x5x50x150xbf16, #tpu.memory_space<vmem>>, vector<1x1x50x150xbf16>
    %59 = vector.shape_cast %58 : vector<1x1x50x150xbf16> to vector<50x150xbf16>
    %cst_51 = arith.constant dense<0.000000e+00> : vector<72x150xf32>
    %60 = tpu.matmul %57, %59, %cst_51 {dimension_numbers = #tpu.dot_dimension_numbers<[1], [0], [0], [1], [0, 0, 1, 1], [], []>} : vector<72x50xbf16>, vector<50x150xbf16>, vector<72x150xf32> -> vector<72x150xf32>
    %61 = arith.addf %54, %60 : vector<72x150xf32>
    %62 = vector.extract_strided_slice %4 {offsets = [0, 1, 3, 0], sizes = [2, 6, 6, 50], strides = [1, 1, 1, 1]} : vector<2x10x10x50xf32> to vector<2x6x6x50xf32>
    %63 = vector.shape_cast %62 : vector<2x6x6x50xf32> to vector<72x50xf32>
    %64 = arith.truncf %63 : vector<72x50xf32> to vector<72x50xbf16>
    %c1_52 = arith.constant 1 : index
    %c3_53 = arith.constant 3 : index
    %c0_54 = arith.constant 0 : index
    %c0_55 = arith.constant 0 : index
    %65 = vector.load %arg1[%c1_52, %c3_53, %c0_54, %c0_55] : memref<5x5x50x150xbf16, #tpu.memory_space<vmem>>, vector<1x1x50x150xbf16>
    %66 = vector.shape_cast %65 : vector<1x1x50x150xbf16> to vector<50x150xbf16>
    %cst_56 = arith.constant dense<0.000000e+00> : vector<72x150xf32>
    %67 = tpu.matmul %64, %66, %cst_56 {dimension_numbers = #tpu.dot_dimension_numbers<[1], [0], [0], [1], [0, 0, 1, 1], [], []>} : vector<72x50xbf16>, vector<50x150xbf16>, vector<72x150xf32> -> vector<72x150xf32>
    %68 = arith.addf %61, %67 : vector<72x150xf32>
    %69 = vector.extract_strided_slice %4 {offsets = [0, 1, 4, 0], sizes = [2, 6, 6, 50], strides = [1, 1, 1, 1]} : vector<2x10x10x50xf32> to vector<2x6x6x50xf32>
    %70 = vector.shape_cast %69 : vector<2x6x6x50xf32> to vector<72x50xf32>
    %71 = arith.truncf %70 : vector<72x50xf32> to vector<72x50xbf16>
    %c1_57 = arith.constant 1 : index
    %c4_58 = arith.constant 4 : index
    %c0_59 = arith.constant 0 : index
    %c0_60 = arith.constant 0 : index
    %72 = vector.load %arg1[%c1_57, %c4_58, %c0_59, %c0_60] : memref<5x5x50x150xbf16, #tpu.memory_space<vmem>>, vector<1x1x50x150xbf16>
    %73 = vector.shape_cast %72 : vector<1x1x50x150xbf16> to vector<50x150xbf16>
    %cst_61 = arith.constant dense<0.000000e+00> : vector<72x150xf32>
    %74 = tpu.matmul %71, %73, %cst_61 {dimension_numbers = #tpu.dot_dimension_numbers<[1], [0], [0], [1], [0, 0, 1, 1], [], []>} : vector<72x50xbf16>, vector<50x150xbf16>, vector<72x150xf32> -> vector<72x150xf32>
    %75 = arith.addf %68, %74 : vector<72x150xf32>
    %76 = vector.extract_strided_slice %4 {offsets = [0, 2, 0, 0], sizes = [2, 6, 6, 50], strides = [1, 1, 1, 1]} : vector<2x10x10x50xf32> to vector<2x6x6x50xf32>
    %77 = vector.shape_cast %76 : vector<2x6x6x50xf32> to vector<72x50xf32>
    %78 = arith.truncf %77 : vector<72x50xf32> to vector<72x50xbf16>
    %c2_62 = arith.constant 2 : index
    %c0_63 = arith.constant 0 : index
    %c0_64 = arith.constant 0 : index
    %c0_65 = arith.constant 0 : index
    %79 = vector.load %arg1[%c2_62, %c0_63, %c0_64, %c0_65] : memref<5x5x50x150xbf16, #tpu.memory_space<vmem>>, vector<1x1x50x150xbf16>
    %80 = vector.shape_cast %79 : vector<1x1x50x150xbf16> to vector<50x150xbf16>
    %cst_66 = arith.constant dense<0.000000e+00> : vector<72x150xf32>
    %81 = tpu.matmul %78, %80, %cst_66 {dimension_numbers = #tpu.dot_dimension_numbers<[1], [0], [0], [1], [0, 0, 1, 1], [], []>} : vector<72x50xbf16>, vector<50x150xbf16>, vector<72x150xf32> -> vector<72x150xf32>
    %82 = arith.addf %75, %81 : vector<72x150xf32>
    %83 = vector.extract_strided_slice %4 {offsets = [0, 2, 1, 0], sizes = [2, 6, 6, 50], strides = [1, 1, 1, 1]} : vector<2x10x10x50xf32> to vector<2x6x6x50xf32>
    %84 = vector.shape_cast %83 : vector<2x6x6x50xf32> to vector<72x50xf32>
    %85 = arith.truncf %84 : vector<72x50xf32> to vector<72x50xbf16>
    %c2_67 = arith.constant 2 : index
    %c1_68 = arith.constant 1 : index
    %c0_69 = arith.constant 0 : index
    %c0_70 = arith.constant 0 : index
    %86 = vector.load %arg1[%c2_67, %c1_68, %c0_69, %c0_70] : memref<5x5x50x150xbf16, #tpu.memory_space<vmem>>, vector<1x1x50x150xbf16>
    %87 = vector.shape_cast %86 : vector<1x1x50x150xbf16> to vector<50x150xbf16>
    %cst_71 = arith.constant dense<0.000000e+00> : vector<72x150xf32>
    %88 = tpu.matmul %85, %87, %cst_71 {dimension_numbers = #tpu.dot_dimension_numbers<[1], [0], [0], [1], [0, 0, 1, 1], [], []>} : vector<72x50xbf16>, vector<50x150xbf16>, vector<72x150xf32> -> vector<72x150xf32>
    %89 = arith.addf %82, %88 : vector<72x150xf32>
    %90 = vector.extract_strided_slice %4 {offsets = [0, 2, 2, 0], sizes = [2, 6, 6, 50], strides = [1, 1, 1, 1]} : vector<2x10x10x50xf32> to vector<2x6x6x50xf32>
    %91 = vector.shape_cast %90 : vector<2x6x6x50xf32> to vector<72x50xf32>
    %92 = arith.truncf %91 : vector<72x50xf32> to vector<72x50xbf16>
    %c2_72 = arith.constant 2 : index
    %c2_73 = arith.constant 2 : index
    %c0_74 = arith.constant 0 : index
    %c0_75 = arith.constant 0 : index
    %93 = vector.load %arg1[%c2_72, %c2_73, %c0_74, %c0_75] : memref<5x5x50x150xbf16, #tpu.memory_space<vmem>>, vector<1x1x50x150xbf16>
    %94 = vector.shape_cast %93 : vector<1x1x50x150xbf16> to vector<50x150xbf16>
    %cst_76 = arith.constant dense<0.000000e+00> : vector<72x150xf32>
    %95 = tpu.matmul %92, %94, %cst_76 {dimension_numbers = #tpu.dot_dimension_numbers<[1], [0], [0], [1], [0, 0, 1, 1], [], []>} : vector<72x50xbf16>, vector<50x150xbf16>, vector<72x150xf32> -> vector<72x150xf32>
    %96 = arith.addf %89, %95 : vector<72x150xf32>
    %97 = vector.extract_strided_slice %4 {offsets = [0, 2, 3, 0], sizes = [2, 6, 6, 50], strides = [1, 1, 1, 1]} : vector<2x10x10x50xf32> to vector<2x6x6x50xf32>
    %98 = vector.shape_cast %97 : vector<2x6x6x50xf32> to vector<72x50xf32>
    %99 = arith.truncf %98 : vector<72x50xf32> to vector<72x50xbf16>
    %c2_77 = arith.constant 2 : index
    %c3_78 = arith.constant 3 : index
    %c0_79 = arith.constant 0 : index
    %c0_80 = arith.constant 0 : index
    %100 = vector.load %arg1[%c2_77, %c3_78, %c0_79, %c0_80] : memref<5x5x50x150xbf16, #tpu.memory_space<vmem>>, vector<1x1x50x150xbf16>
    %101 = vector.shape_cast %100 : vector<1x1x50x150xbf16> to vector<50x150xbf16>
    %cst_81 = arith.constant dense<0.000000e+00> : vector<72x150xf32>
    %102 = tpu.matmul %99, %101, %cst_81 {dimension_numbers = #tpu.dot_dimension_numbers<[1], [0], [0], [1], [0, 0, 1, 1], [], []>} : vector<72x50xbf16>, vector<50x150xbf16>, vector<72x150xf32> -> vector<72x150xf32>
    %103 = arith.addf %96, %102 : vector<72x150xf32>
    %104 = vector.extract_strided_slice %4 {offsets = [0, 2, 4, 0], sizes = [2, 6, 6, 50], strides = [1, 1, 1, 1]} : vector<2x10x10x50xf32> to vector<2x6x6x50xf32>
    %105 = vector.shape_cast %104 : vector<2x6x6x50xf32> to vector<72x50xf32>
    %106 = arith.truncf %105 : vector<72x50xf32> to vector<72x50xbf16>
    %c2_82 = arith.constant 2 : index
    %c4_83 = arith.constant 4 : index
    %c0_84 = arith.constant 0 : index
    %c0_85 = arith.constant 0 : index
    %107 = vector.load %arg1[%c2_82, %c4_83, %c0_84, %c0_85] : memref<5x5x50x150xbf16, #tpu.memory_space<vmem>>, vector<1x1x50x150xbf16>
    %108 = vector.shape_cast %107 : vector<1x1x50x150xbf16> to vector<50x150xbf16>
    %cst_86 = arith.constant dense<0.000000e+00> : vector<72x150xf32>
    %109 = tpu.matmul %106, %108, %cst_86 {dimension_numbers = #tpu.dot_dimension_numbers<[1], [0], [0], [1], [0, 0, 1, 1], [], []>} : vector<72x50xbf16>, vector<50x150xbf16>, vector<72x150xf32> -> vector<72x150xf32>
    %110 = arith.addf %103, %109 : vector<72x150xf32>
    %111 = vector.extract_strided_slice %4 {offsets = [0, 3, 0, 0], sizes = [2, 6, 6, 50], strides = [1, 1, 1, 1]} : vector<2x10x10x50xf32> to vector<2x6x6x50xf32>
    %112 = vector.shape_cast %111 : vector<2x6x6x50xf32> to vector<72x50xf32>
    %113 = arith.truncf %112 : vector<72x50xf32> to vector<72x50xbf16>
    %c3_87 = arith.constant 3 : index
    %c0_88 = arith.constant 0 : index
    %c0_89 = arith.constant 0 : index
    %c0_90 = arith.constant 0 : index
    %114 = vector.load %arg1[%c3_87, %c0_88, %c0_89, %c0_90] : memref<5x5x50x150xbf16, #tpu.memory_space<vmem>>, vector<1x1x50x150xbf16>
    %115 = vector.shape_cast %114 : vector<1x1x50x150xbf16> to vector<50x150xbf16>
    %cst_91 = arith.constant dense<0.000000e+00> : vector<72x150xf32>
    %116 = tpu.matmul %113, %115, %cst_91 {dimension_numbers = #tpu.dot_dimension_numbers<[1], [0], [0], [1], [0, 0, 1, 1], [], []>} : vector<72x50xbf16>, vector<50x150xbf16>, vector<72x150xf32> -> vector<72x150xf32>
    %117 = arith.addf %110, %116 : vector<72x150xf32>
    %118 = vector.extract_strided_slice %4 {offsets = [0, 3, 1, 0], sizes = [2, 6, 6, 50], strides = [1, 1, 1, 1]} : vector<2x10x10x50xf32> to vector<2x6x6x50xf32>
    %119 = vector.shape_cast %118 : vector<2x6x6x50xf32> to vector<72x50xf32>
    %120 = arith.truncf %119 : vector<72x50xf32> to vector<72x50xbf16>
    %c3_92 = arith.constant 3 : index
    %c1_93 = arith.constant 1 : index
    %c0_94 = arith.constant 0 : index
    %c0_95 = arith.constant 0 : index
    %121 = vector.load %arg1[%c3_92, %c1_93, %c0_94, %c0_95] : memref<5x5x50x150xbf16, #tpu.memory_space<vmem>>, vector<1x1x50x150xbf16>
    %122 = vector.shape_cast %121 : vector<1x1x50x150xbf16> to vector<50x150xbf16>
    %cst_96 = arith.constant dense<0.000000e+00> : vector<72x150xf32>
    %123 = tpu.matmul %120, %122, %cst_96 {dimension_numbers = #tpu.dot_dimension_numbers<[1], [0], [0], [1], [0, 0, 1, 1], [], []>} : vector<72x50xbf16>, vector<50x150xbf16>, vector<72x150xf32> -> vector<72x150xf32>
    %124 = arith.addf %117, %123 : vector<72x150xf32>
    %125 = vector.extract_strided_slice %4 {offsets = [0, 3, 2, 0], sizes = [2, 6, 6, 50], strides = [1, 1, 1, 1]} : vector<2x10x10x50xf32> to vector<2x6x6x50xf32>
    %126 = vector.shape_cast %125 : vector<2x6x6x50xf32> to vector<72x50xf32>
    %127 = arith.truncf %126 : vector<72x50xf32> to vector<72x50xbf16>
    %c3_97 = arith.constant 3 : index
    %c2_98 = arith.constant 2 : index
    %c0_99 = arith.constant 0 : index
    %c0_100 = arith.constant 0 : index
    %128 = vector.load %arg1[%c3_97, %c2_98, %c0_99, %c0_100] : memref<5x5x50x150xbf16, #tpu.memory_space<vmem>>, vector<1x1x50x150xbf16>
    %129 = vector.shape_cast %128 : vector<1x1x50x150xbf16> to vector<50x150xbf16>
    %cst_101 = arith.constant dense<0.000000e+00> : vector<72x150xf32>
    %130 = tpu.matmul %127, %129, %cst_101 {dimension_numbers = #tpu.dot_dimension_numbers<[1], [0], [0], [1], [0, 0, 1, 1], [], []>} : vector<72x50xbf16>, vector<50x150xbf16>, vector<72x150xf32> -> vector<72x150xf32>
    %131 = arith.addf %124, %130 : vector<72x150xf32>
    %132 = vector.extract_strided_slice %4 {offsets = [0, 3, 3, 0], sizes = [2, 6, 6, 50], strides = [1, 1, 1, 1]} : vector<2x10x10x50xf32> to vector<2x6x6x50xf32>
    %133 = vector.shape_cast %132 : vector<2x6x6x50xf32> to vector<72x50xf32>
    %134 = arith.truncf %133 : vector<72x50xf32> to vector<72x50xbf16>
    %c3_102 = arith.constant 3 : index
    %c3_103 = arith.constant 3 : index
    %c0_104 = arith.constant 0 : index
    %c0_105 = arith.constant 0 : index
    %135 = vector.load %arg1[%c3_102, %c3_103, %c0_104, %c0_105] : memref<5x5x50x150xbf16, #tpu.memory_space<vmem>>, vector<1x1x50x150xbf16>
    %136 = vector.shape_cast %135 : vector<1x1x50x150xbf16> to vector<50x150xbf16>
    %cst_106 = arith.constant dense<0.000000e+00> : vector<72x150xf32>
    %137 = tpu.matmul %134, %136, %cst_106 {dimension_numbers = #tpu.dot_dimension_numbers<[1], [0], [0], [1], [0, 0, 1, 1], [], []>} : vector<72x50xbf16>, vector<50x150xbf16>, vector<72x150xf32> -> vector<72x150xf32>
    %138 = arith.addf %131, %137 : vector<72x150xf32>
    %139 = vector.extract_strided_slice %4 {offsets = [0, 3, 4, 0], sizes = [2, 6, 6, 50], strides = [1, 1, 1, 1]} : vector<2x10x10x50xf32> to vector<2x6x6x50xf32>
    %140 = vector.shape_cast %139 : vector<2x6x6x50xf32> to vector<72x50xf32>
    %141 = arith.truncf %140 : vector<72x50xf32> to vector<72x50xbf16>
    %c3_107 = arith.constant 3 : index
    %c4_108 = arith.constant 4 : index
    %c0_109 = arith.constant 0 : index
    %c0_110 = arith.constant 0 : index
    %142 = vector.load %arg1[%c3_107, %c4_108, %c0_109, %c0_110] : memref<5x5x50x150xbf16, #tpu.memory_space<vmem>>, vector<1x1x50x150xbf16>
    %143 = vector.shape_cast %142 : vector<1x1x50x150xbf16> to vector<50x150xbf16>
    %cst_111 = arith.constant dense<0.000000e+00> : vector<72x150xf32>
    %144 = tpu.matmul %141, %143, %cst_111 {dimension_numbers = #tpu.dot_dimension_numbers<[1], [0], [0], [1], [0, 0, 1, 1], [], []>} : vector<72x50xbf16>, vector<50x150xbf16>, vector<72x150xf32> -> vector<72x150xf32>
    %145 = arith.addf %138, %144 : vector<72x150xf32>
    %146 = vector.extract_strided_slice %4 {offsets = [0, 4, 0, 0], sizes = [2, 6, 6, 50], strides = [1, 1, 1, 1]} : vector<2x10x10x50xf32> to vector<2x6x6x50xf32>
    %147 = vector.shape_cast %146 : vector<2x6x6x50xf32> to vector<72x50xf32>
    %148 = arith.truncf %147 : vector<72x50xf32> to vector<72x50xbf16>
    %c4_112 = arith.constant 4 : index
    %c0_113 = arith.constant 0 : index
    %c0_114 = arith.constant 0 : index
    %c0_115 = arith.constant 0 : index
    %149 = vector.load %arg1[%c4_112, %c0_113, %c0_114, %c0_115] : memref<5x5x50x150xbf16, #tpu.memory_space<vmem>>, vector<1x1x50x150xbf16>
    %150 = vector.shape_cast %149 : vector<1x1x50x150xbf16> to vector<50x150xbf16>
    %cst_116 = arith.constant dense<0.000000e+00> : vector<72x150xf32>
    %151 = tpu.matmul %148, %150, %cst_116 {dimension_numbers = #tpu.dot_dimension_numbers<[1], [0], [0], [1], [0, 0, 1, 1], [], []>} : vector<72x50xbf16>, vector<50x150xbf16>, vector<72x150xf32> -> vector<72x150xf32>
    %152 = arith.addf %145, %151 : vector<72x150xf32>
    %153 = vector.extract_strided_slice %4 {offsets = [0, 4, 1, 0], sizes = [2, 6, 6, 50], strides = [1, 1, 1, 1]} : vector<2x10x10x50xf32> to vector<2x6x6x50xf32>
    %154 = vector.shape_cast %153 : vector<2x6x6x50xf32> to vector<72x50xf32>
    %155 = arith.truncf %154 : vector<72x50xf32> to vector<72x50xbf16>
    %c4_117 = arith.constant 4 : index
    %c1_118 = arith.constant 1 : index
    %c0_119 = arith.constant 0 : index
    %c0_120 = arith.constant 0 : index
    %156 = vector.load %arg1[%c4_117, %c1_118, %c0_119, %c0_120] : memref<5x5x50x150xbf16, #tpu.memory_space<vmem>>, vector<1x1x50x150xbf16>
    %157 = vector.shape_cast %156 : vector<1x1x50x150xbf16> to vector<50x150xbf16>
    %cst_121 = arith.constant dense<0.000000e+00> : vector<72x150xf32>
    %158 = tpu.matmul %155, %157, %cst_121 {dimension_numbers = #tpu.dot_dimension_numbers<[1], [0], [0], [1], [0, 0, 1, 1], [], []>} : vector<72x50xbf16>, vector<50x150xbf16>, vector<72x150xf32> -> vector<72x150xf32>
    %159 = arith.addf %152, %158 : vector<72x150xf32>
    %160 = vector.extract_strided_slice %4 {offsets = [0, 4, 2, 0], sizes = [2, 6, 6, 50], strides = [1, 1, 1, 1]} : vector<2x10x10x50xf32> to vector<2x6x6x50xf32>
    %161 = vector.shape_cast %160 : vector<2x6x6x50xf32> to vector<72x50xf32>
    %162 = arith.truncf %161 : vector<72x50xf32> to vector<72x50xbf16>
    %c4_122 = arith.constant 4 : index
    %c2_123 = arith.constant 2 : index
    %c0_124 = arith.constant 0 : index
    %c0_125 = arith.constant 0 : index
    %163 = vector.load %arg1[%c4_122, %c2_123, %c0_124, %c0_125] : memref<5x5x50x150xbf16, #tpu.memory_space<vmem>>, vector<1x1x50x150xbf16>
    %164 = vector.shape_cast %163 : vector<1x1x50x150xbf16> to vector<50x150xbf16>
    %cst_126 = arith.constant dense<0.000000e+00> : vector<72x150xf32>
    %165 = tpu.matmul %162, %164, %cst_126 {dimension_numbers = #tpu.dot_dimension_numbers<[1], [0], [0], [1], [0, 0, 1, 1], [], []>} : vector<72x50xbf16>, vector<50x150xbf16>, vector<72x150xf32> -> vector<72x150xf32>
    %166 = arith.addf %159, %165 : vector<72x150xf32>
    %167 = vector.extract_strided_slice %4 {offsets = [0, 4, 3, 0], sizes = [2, 6, 6, 50], strides = [1, 1, 1, 1]} : vector<2x10x10x50xf32> to vector<2x6x6x50xf32>
    %168 = vector.shape_cast %167 : vector<2x6x6x50xf32> to vector<72x50xf32>
    %169 = arith.truncf %168 : vector<72x50xf32> to vector<72x50xbf16>
    %c4_127 = arith.constant 4 : index
    %c3_128 = arith.constant 3 : index
    %c0_129 = arith.constant 0 : index
    %c0_130 = arith.constant 0 : index
    %170 = vector.load %arg1[%c4_127, %c3_128, %c0_129, %c0_130] : memref<5x5x50x150xbf16, #tpu.memory_space<vmem>>, vector<1x1x50x150xbf16>
    %171 = vector.shape_cast %170 : vector<1x1x50x150xbf16> to vector<50x150xbf16>
    %cst_131 = arith.constant dense<0.000000e+00> : vector<72x150xf32>
    %172 = tpu.matmul %169, %171, %cst_131 {dimension_numbers = #tpu.dot_dimension_numbers<[1], [0], [0], [1], [0, 0, 1, 1], [], []>} : vector<72x50xbf16>, vector<50x150xbf16>, vector<72x150xf32> -> vector<72x150xf32>
    %173 = arith.addf %166, %172 : vector<72x150xf32>
    %174 = vector.extract_strided_slice %4 {offsets = [0, 4, 4, 0], sizes = [2, 6, 6, 50], strides = [1, 1, 1, 1]} : vector<2x10x10x50xf32> to vector<2x6x6x50xf32>
    %175 = vector.shape_cast %174 : vector<2x6x6x50xf32> to vector<72x50xf32>
    %176 = arith.truncf %175 : vector<72x50xf32> to vector<72x50xbf16>
    %c4_132 = arith.constant 4 : index
    %c4_133 = arith.constant 4 : index
    %c0_134 = arith.constant 0 : index
    %c0_135 = arith.constant 0 : index
    %177 = vector.load %arg1[%c4_132, %c4_133, %c0_134, %c0_135] : memref<5x5x50x150xbf16, #tpu.memory_space<vmem>>, vector<1x1x50x150xbf16>
    %178 = vector.shape_cast %177 : vector<1x1x50x150xbf16> to vector<50x150xbf16>
    %cst_136 = arith.constant dense<0.000000e+00> : vector<72x150xf32>
    %179 = tpu.matmul %176, %178, %cst_136 {dimension_numbers = #tpu.dot_dimension_numbers<[1], [0], [0], [1], [0, 0, 1, 1], [], []>} : vector<72x50xbf16>, vector<50x150xbf16>, vector<72x150xf32> -> vector<72x150xf32>
    %180 = arith.addf %173, %179 : vector<72x150xf32>
    %cst_137 = arith.constant dense<0.000000e+00> : vector<150xf32>
    %181 = vector.multi_reduction <add>, %180, %cst_137 [0] : vector<72x150xf32> to vector<150xf32>
    %182 = vector.shape_cast %181 : vector<150xf32> to vector<1x150xf32>
    %cst_138 = arith.constant 7.200000e+01 : f32
    %183 = vector.broadcast %cst_138 : f32 to vector<1x150xf32>
    %184 = arith.divf %182, %183 : vector<1x150xf32>
    %185 = vector.broadcast %184 : vector<1x150xf32> to vector<72x150xf32>
    %186 = arith.subf %180, %185 : vector<72x150xf32>
    %187 = arith.mulf %186, %186 : vector<72x150xf32>
    %cst_139 = arith.constant dense<0.000000e+00> : vector<150xf32>
    %188 = vector.multi_reduction <add>, %187, %cst_139 [0] : vector<72x150xf32> to vector<150xf32>
    %189 = vector.shape_cast %188 : vector<150xf32> to vector<1x150xf32>
    %cst_140 = arith.constant 7.200000e+01 : f32
    %190 = vector.broadcast %cst_140 : f32 to vector<1x150xf32>
    %191 = arith.divf %189, %190 : vector<1x150xf32>
    %192 = vector.broadcast %184 : vector<1x150xf32> to vector<72x150xf32>
    %193 = arith.subf %180, %192 : vector<72x150xf32>
    %cst_141 = arith.constant 9.99999974E-6 : f32
    %194 = vector.broadcast %cst_141 : f32 to vector<1x150xf32>
    %195 = arith.addf %191, %194 : vector<1x150xf32>
    %196 = math.rsqrt %195 : vector<1x150xf32>
    %197 = vector.broadcast %196 : vector<1x150xf32> to vector<72x150xf32>
    %198 = arith.mulf %193, %197 : vector<72x150xf32>
    %cst_142 = arith.constant 0.000000e+00 : f32
    %199 = vector.broadcast %cst_142 : f32 to vector<2x9x9x150xf32>
    %c0_143 = arith.constant 0 : index
    %c0_144 = arith.constant 0 : index
    %c0_145 = arith.constant 0 : index
    %c0_146 = arith.constant 0 : index
    %200 = vector.load %arg7[%c0_143, %c0_144, %c0_145, %c0_146] : memref<2x9x9x150xf32, #tpu.memory_space<vmem>>, vector<2x9x9x150xf32>
    tpu.vector_store %arg7[%c0_143, %c0_144, %c0_145, %c0_146], %199 {strides = array<i32>} : memref<2x9x9x150xf32, #tpu.memory_space<vmem>>, vector<2x9x9x150xf32>,
    %201 = vector.shape_cast %198 : vector<72x150xf32> to vector<2x6x6x150xf32>
    %c0_147 = arith.constant 0 : index
    %c3_148 = arith.constant 3 : index
    %c0_149 = arith.constant 0 : index
    %c0_150 = arith.constant 0 : index
    %202 = vector.load %arg7[%c0_147, %c3_148, %c0_149, %c0_150] : memref<2x9x9x150xf32, #tpu.memory_space<vmem>>, vector<2x6x6x150xf32>
    tpu.vector_store %arg7[%c0_147, %c3_148, %c0_149, %c0_150], %201 {strides = array<i32>} : memref<2x9x9x150xf32, #tpu.memory_space<vmem>>, vector<2x6x6x150xf32>,
    %c0_151 = arith.constant 0 : index
    %c0_152 = arith.constant 0 : index
    %c0_153 = arith.constant 0 : index
    %c0_154 = arith.constant 0 : index
    %203 = vector.load %arg7[%c0_151, %c0_152, %c0_153, %c0_154] : memref<2x9x9x150xf32, #tpu.memory_space<vmem>>, vector<2x9x9x150xf32>
    %cst_155 = arith.constant 0.000000e+00 : f32
    %204 = vector.broadcast %cst_155 : f32 to vector<128x150xf32>
    %205 = vector.extract_strided_slice %203 {offsets = [0, 0, 0, 0], sizes = [2, 8, 8, 150], strides = [1, 1, 1, 1]} : vector<2x9x9x150xf32> to vector<2x8x8x150xf32>
    %206 = vector.shape_cast %205 : vector<2x8x8x150xf32> to vector<128x150xf32>
    %207 = arith.truncf %206 : vector<128x150xf32> to vector<128x150xbf16>
    %c0_156 = arith.constant 0 : index
    %c0_157 = arith.constant 0 : index
    %c0_158 = arith.constant 0 : index
    %c0_159 = arith.constant 0 : index
    %208 = vector.load %arg2[%c0_156, %c0_157, %c0_158, %c0_159] : memref<2x2x150x150xbf16, #tpu.memory_space<vmem>>, vector<1x1x150x150xbf16>
    %209 = vector.shape_cast %208 : vector<1x1x150x150xbf16> to vector<150x150xbf16>
    %cst_160 = arith.constant dense<0.000000e+00> : vector<128x150xf32>
    %210 = tpu.matmul %207, %209, %cst_160 {dimension_numbers = #tpu.dot_dimension_numbers<[1], [0], [0], [1], [0, 0, 1, 1], [], []>} : vector<128x150xbf16>, vector<150x150xbf16>, vector<128x150xf32> -> vector<128x150xf32>
    %211 = arith.addf %204, %210 : vector<128x150xf32>
    %212 = vector.extract_strided_slice %203 {offsets = [0, 0, 1, 0], sizes = [2, 8, 8, 150], strides = [1, 1, 1, 1]} : vector<2x9x9x150xf32> to vector<2x8x8x150xf32>
    %213 = vector.shape_cast %212 : vector<2x8x8x150xf32> to vector<128x150xf32>
    %214 = arith.truncf %213 : vector<128x150xf32> to vector<128x150xbf16>
    %c0_161 = arith.constant 0 : index
    %c1_162 = arith.constant 1 : index
    %c0_163 = arith.constant 0 : index
    %c0_164 = arith.constant 0 : index
    %215 = vector.load %arg2[%c0_161, %c1_162, %c0_163, %c0_164] : memref<2x2x150x150xbf16, #tpu.memory_space<vmem>>, vector<1x1x150x150xbf16>
    %216 = vector.shape_cast %215 : vector<1x1x150x150xbf16> to vector<150x150xbf16>
    %cst_165 = arith.constant dense<0.000000e+00> : vector<128x150xf32>
    %217 = tpu.matmul %214, %216, %cst_165 {dimension_numbers = #tpu.dot_dimension_numbers<[1], [0], [0], [1], [0, 0, 1, 1], [], []>} : vector<128x150xbf16>, vector<150x150xbf16>, vector<128x150xf32> -> vector<128x150xf32>
    %218 = arith.addf %211, %217 : vector<128x150xf32>
    %219 = vector.extract_strided_slice %203 {offsets = [0, 1, 0, 0], sizes = [2, 8, 8, 150], strides = [1, 1, 1, 1]} : vector<2x9x9x150xf32> to vector<2x8x8x150xf32>
    %220 = vector.shape_cast %219 : vector<2x8x8x150xf32> to vector<128x150xf32>
    %221 = arith.truncf %220 : vector<128x150xf32> to vector<128x150xbf16>
    %c1_166 = arith.constant 1 : index
    %c0_167 = arith.constant 0 : index
    %c0_168 = arith.constant 0 : index
    %c0_169 = arith.constant 0 : index
    %222 = vector.load %arg2[%c1_166, %c0_167, %c0_168, %c0_169] : memref<2x2x150x150xbf16, #tpu.memory_space<vmem>>, vector<1x1x150x150xbf16>
    %223 = vector.shape_cast %222 : vector<1x1x150x150xbf16> to vector<150x150xbf16>
    %cst_170 = arith.constant dense<0.000000e+00> : vector<128x150xf32>
    %224 = tpu.matmul %221, %223, %cst_170 {dimension_numbers = #tpu.dot_dimension_numbers<[1], [0], [0], [1], [0, 0, 1, 1], [], []>} : vector<128x150xbf16>, vector<150x150xbf16>, vector<128x150xf32> -> vector<128x150xf32>
    %225 = arith.addf %218, %224 : vector<128x150xf32>
    %226 = vector.extract_strided_slice %203 {offsets = [0, 1, 1, 0], sizes = [2, 8, 8, 150], strides = [1, 1, 1, 1]} : vector<2x9x9x150xf32> to vector<2x8x8x150xf32>
    %227 = vector.shape_cast %226 : vector<2x8x8x150xf32> to vector<128x150xf32>
    %228 = arith.truncf %227 : vector<128x150xf32> to vector<128x150xbf16>
    %c1_171 = arith.constant 1 : index
    %c1_172 = arith.constant 1 : index
    %c0_173 = arith.constant 0 : index
    %c0_174 = arith.constant 0 : index
    %229 = vector.load %arg2[%c1_171, %c1_172, %c0_173, %c0_174] : memref<2x2x150x150xbf16, #tpu.memory_space<vmem>>, vector<1x1x150x150xbf16>
    %230 = vector.shape_cast %229 : vector<1x1x150x150xbf16> to vector<150x150xbf16>
    %cst_175 = arith.constant dense<0.000000e+00> : vector<128x150xf32>
    %231 = tpu.matmul %228, %230, %cst_175 {dimension_numbers = #tpu.dot_dimension_numbers<[1], [0], [0], [1], [0, 0, 1, 1], [], []>} : vector<128x150xbf16>, vector<150x150xbf16>, vector<128x150xf32> -> vector<128x150xf32>
    %232 = arith.addf %225, %231 : vector<128x150xf32>
    %233 = vector.shape_cast %232 : vector<128x150xf32> to vector<2x64x150xf32>
    %234 = vector.extract_strided_slice %233 {offsets = [0, 0, 0], sizes = [2, 64, 50], strides = [1, 1, 1]} : vector<2x64x150xf32> to vector<2x64x50xf32>
    %cst_176 = arith.constant 0.141421363 : f32
    %235 = vector.broadcast %cst_176 : f32 to vector<2x64x50xf32>
    %236 = arith.mulf %234, %235 : vector<2x64x50xf32>
    %237 = arith.truncf %236 : vector<2x64x50xf32> to vector<2x64x50xbf16>
    %238 = vector.extract_strided_slice %233 {offsets = [0, 0, 50], sizes = [2, 64, 50], strides = [1, 1, 1]} : vector<2x64x150xf32> to vector<2x64x50xf32>
    %239 = arith.truncf %238 : vector<2x64x50xf32> to vector<2x64x50xbf16>
    %240 = vector.extract_strided_slice %233 {offsets = [0, 0, 100], sizes = [2, 64, 50], strides = [1, 1, 1]} : vector<2x64x150xf32> to vector<2x64x50xf32>
    %241 = arith.truncf %240 : vector<2x64x50xf32> to vector<2x64x50xbf16>
    "tpu.trace_start"() <{level = 10 : i32, message = "bid,bjd->bij"}> : () -> ()
    %cst_177 = arith.constant dense<0.000000e+00> : vector<2x64x64xf32>
    %242 = tpu.matmul %237, %239, %cst_177 {dimension_numbers = #tpu.dot_dimension_numbers<[2], [2], [1], [1], [0, 0, 0, 1, 1, 1], [0], [0]>} : vector<2x64x50xbf16>, vector<2x64x50xbf16>, vector<2x64x64xf32> -> vector<2x64x64xf32>
    "tpu.trace_stop"() : () -> ()
    %cst_178 = arith.constant dense<0xFF800000> : vector<2x64xf32>
    %243 = vector.multi_reduction <maximumf>, %242, %cst_178 [2] : vector<2x64x64xf32> to vector<2x64xf32>
    %244 = vector.shape_cast %243 : vector<2x64xf32> to vector<2x64x1xf32>
    %245 = vector.broadcast %244 : vector<2x64x1xf32> to vector<2x64x64xf32>
    %246 = arith.subf %242, %245 : vector<2x64x64xf32>
    %247 = math.exp %246 : vector<2x64x64xf32>
    %cst_179 = arith.constant dense<0.000000e+00> : vector<2x64xf32>
    %248 = vector.multi_reduction <add>, %247, %cst_179 [2] : vector<2x64x64xf32> to vector<2x64xf32>
    %249 = vector.shape_cast %248 : vector<2x64xf32> to vector<2x64x1xf32>
    %250 = tpu.reciprocal %249 {approx = true} : vector<2x64x1xf32> -> vector<2x64x1xf32>
    %251 = vector.broadcast %250 : vector<2x64x1xf32> to vector<2x64x64xf32>
    %252 = arith.mulf %247, %251 : vector<2x64x64xf32>
    %253 = arith.truncf %252 : vector<2x64x64xf32> to vector<2x64x64xbf16>
    "tpu.trace_start"() <{level = 10 : i32, message = "bij,bjd->bid"}> : () -> ()
    %cst_180 = arith.constant dense<0.000000e+00> : vector<2x64x50xf32>
    %254 = tpu.matmul %253, %241, %cst_180 {dimension_numbers = #tpu.dot_dimension_numbers<[2], [1], [1], [2], [0, 0, 0, 1, 1, 2], [0], [0]>} : vector<2x64x64xbf16>, vector<2x64x50xbf16>, vector<2x64x50xf32> -> vector<2x64x50xf32>
    "tpu.trace_stop"() : () -> ()
    %255 = vector.shape_cast %254 : vector<2x64x50xf32> to vector<128x50xf32>
    %256 = arith.truncf %255 : vector<128x50xf32> to vector<128x50xbf16>
    %c0_181 = arith.constant 0 : index
    %c0_182 = arith.constant 0 : index
    %257 = vector.load %arg3[%c0_181, %c0_182] : memref<50x128xbf16, #tpu.memory_space<vmem>>, vector<50x128xbf16>
    %cst_183 = arith.constant dense<0.000000e+00> : vector<128x128xf32>
    %258 = tpu.matmul %256, %257, %cst_183 {dimension_numbers = #tpu.dot_dimension_numbers<[1], [0], [0], [1], [0, 0, 1, 1], [], []>} : vector<128x50xbf16>, vector<50x128xbf16>, vector<128x128xf32> -> vector<128x128xf32>
    %c0_184 = arith.constant 0 : index
    %c0_185 = arith.constant 0 : index
    %259 = vector.load %arg4[%c0_184, %c0_185] : memref<1x128xf32, #tpu.memory_space<vmem>>, vector<1x128xf32>
    %260 = vector.broadcast %259 : vector<1x128xf32> to vector<128x128xf32>
    %261 = arith.addf %258, %260 : vector<128x128xf32>
    %c0_186 = arith.constant 0 : index
    %c0_187 = arith.constant 0 : index
    %262 = vector.load %arg5[%c0_186, %c0_187] : memref<128x128xf32, #tpu.memory_space<vmem>>, vector<128x128xf32>
    tpu.vector_store %arg5[%c0_186, %c0_187], %261 {strides = array<i32>} : memref<128x128xf32, #tpu.memory_space<vmem>>, vector<128x128xf32>,
    return
  }
}

</mosaic_0001>

<bundles_post_ra>
// kernel: conv_attention_forward.1
= control target key start
LH: loop header
LB: loop body
LE: loop exit
PB: predicated region body
PF: predicated region fallthrough
CT: control target
= control target key end

     0   :  { %vm21_vm0 = vcmask 408576   ;;  %v16883_v1 = vmov 0   ;;  %v12211_v2 = vmov 0.0   ;;  %vm23_vm1 = vcmask 402432   ;;  %s12214_s12 = smov 28   ;;  %s16872_s1 = inlined_call_operand.vmem [shape: bf16[5,5,50,150], index: 1, kind: input, shape index: {}]   ;;  %s16873_s0 = inlined_call_operand.vmem [shape: f32[2,8,8,50], index: 0, kind: input, shape index: {}]   ;;  %s16874_s2 = inlined_call_operand.vmem [shape: bf16[2,2,150,150], index: 2, kind: input, shape index: {}]   ;;  %s16875_s3 = inlined_call_operand.vmem [shape: bf16[50,128], index: 3, kind: input, shape index: {}]   ;;  %s16876_s4 = inlined_call_operand.vmem [shape: f32[1,128], index: 4, kind: input, shape index: {}]   ;;  %s16877_s5 = inlined_call_operand.vmem [shape: f32[128,128], index: 5, kind: output, shape index: {}]  }
   0x1   :  { %v12248_v0 = vld [vmem:[%s16872_s1 + $0x1c4] ss:$8 sps:$4 sm:$0xff]   ;;  %3363 = vmatprep.mubr.bf16.mxu0 %v16883_v1  ;;  %22 = vst.msk [vmem:[#allocation2] sm:$0xff] %vm21_vm0, %v12211_v2  ;;  %25 = vst.msk [vmem:[#allocation2 + $0x10] sm:$0xff] %vm21_vm0, %v12211_v2  ;;  %v152_v3 = vlaneseq  ;;  %916 = vmatprep.mubr.bf16.mxu1 %v16883_v1  ;;  %v11711_v4 = vld [vmem:[%s16872_s1 + $0x1c0] ss:$8 sps:$4 sm:$0xff]  }
   0x2   :  { %27 = vst.msk [vmem:[#allocation2 + $0x20] sm:$0xff] %vm21_vm0, %v12211_v2  ;;  %29 = vst.msk [vmem:[#allocation2 + $0x30] sm:$0xff] %vm21_vm0, %v12211_v2  ;;  %3331 = vmatprep.subr.bf16.mxu0 %v12248_v0  ;;  %v11712_v5 = vld [vmem:[%s16872_s1 + $0x1d4] ss:$8 sps:$4 sm:$0xff]   ;;  %v12212_v6 = vmov 1983009808  }
   0x3   :  { %31 = vst.msk [vmem:[#allocation2 + $0x40] sm:$0xff] %vm21_vm0, %v12211_v2  ;;  %33 = vst.msk [vmem:[#allocation2 + $0x50] sm:$0xff] %vm21_vm0, %v12211_v2  ;;  %v150_v7 = vunpack.c.l.s4 %v12212_v6  ;;  %v153_v8 = vshrl.u32 %v152_v3, 7  ;;  %3332 = vmatpush1.bf16.msra.mxu0 %v11711_v4  ;;  %v11714_v9 = vld [vmem:[%s16872_s1 + $0x1d0] ss:$8 sps:$4 sm:$0xff]   ;;  %vm526_vm2 = vcmask 1040384  }
   0x4   :  { %35 = vst.msk [vmem:[#allocation2 + $0x60] sm:$0xff] %vm21_vm0, %v12211_v2  ;;  %37 = vst.msk [vmem:[#allocation2 + $0x70] sm:$0xff] %vm21_vm0, %v12211_v2  ;;  %3333 = vmatprep.subr.bf16.mxu0 %v11712_v5  ;;  %v11715_v10 = vld [vmem:[%s16872_s1 + $0x1e4] ss:$8 sps:$4 sm:$0xff]   ;;  %vm527_vm3 = vcmask 1042434   ;;  %v65_v15 = vld [vmem:[%s16873_s0 + $0x10] sm:$0xff] }
   0x5   :  { %39 = vst.msk [vmem:[#allocation2 + $0x80] sm:$0xff] %vm21_vm0, %v12211_v2  ;;  %41 = vst.msk [vmem:[#allocation2 + $0x90] sm:$0xff] %vm21_vm0, %v12211_v2  ;;  %v63_v11 = vld [vmem:[%s16873_s0] sm:$0xff]  ;;  %v64_v12 = vld [vmem:[%s16873_s0 + $0x8] sm:$0xff]  ;;  %v151_v13 = vunpack.c.0.s8 %v150_v7  ;;  %vm529_vm5 = vcmask 1044484   ;;  %vm531_vm7 = vcmask 1046534  }
   0x6   :  { %43 = vst.msk [vmem:[#allocation2 + $0xa0] sm:$0xff] %vm21_vm0, %v12211_v2  ;;  %45 = vst.msk [vmem:[#allocation2 + $0xb0] sm:$0xff] %vm21_vm0, %v12211_v2  ;;  %v10418_v14 = vld [vmem:[%s16872_s1 + $0x1f0] sm:$0x11]  ;;  %v66_v16 = vld [vmem:[%s16873_s0 + $0x18] sm:$0xff]  ;;  %vm7306_vm9 = vcmask 179200  }
   0x7   :  { %47 = vst.msk [vmem:[#allocation2 + $0xc0] sm:$0xff] %vm21_vm0, %v12211_v2  ;;  %49 = vst.msk [vmem:[#allocation2 + $0xd0] sm:$0xff] %vm21_vm0, %v12211_v2  ;;  %v12394_v17 = vsub.s32 %v151_v13, %v153_v8  ;;  %v67_v18 = vld [vmem:[%s16873_s0 + $0x20] sm:$0xff]  ;;  %3334 = vmatpush1.bf16.msra.mxu0 %v11714_v9  ;;  %v10426_v22 = vcombine.high %v10418_v14, %v10418_v14  ;;  %v10425_v23 = vcombine.low %v10418_v14, %v10418_v14  ;;  %v72_v26 = vld [vmem:[%s16873_s0 + $0x48] sm:$0xff]  ;;  %vm7433_vm10 = vcmask 172032  }
   0x8   :  { %51 = vst.msk [vmem:[#allocation2 + $0xe0] sm:$0xff] %vm21_vm0, %v12211_v2  ;;  %53 = vst.msk [vmem:[#allocation2 + $0xf0] sm:$0xff] %vm21_vm0, %v12211_v2  ;;  %v71_v19 = vld [vmem:[%s16873_s0 + $0x40] sm:$0xff]  ;;  %v98_v21 = vld [vmem:[#allocation2 + $0x10] sm:$0xff]  ;;  %3335 = vmatprep.subr.bf16.mxu0 %v11715_v10  ;;  %vm8392_vm11 = vcmask 1042432   ;;  %vm8108_vm12 = vcmask 1046528  }
   0x9   :  { %55 = vst.msk [vmem:[#allocation2 + $0x100] sm:$0xff] %vm21_vm0, %v12211_v2  ;;  %57 = vst.msk [vmem:[#allocation2 + $0x110] sm:$0xff] %vm21_vm0, %v12211_v2  ;;  %v11717_v20 = vld [vmem:[%s16872_s1 + $0x1e0] ss:$8 sps:$4 sm:$0xff]   ;;  %v164_v24 = vcombine.high %v98_v21, %v98_v21  ;;  %v12411_v25 = vrot.slane %v98_v21, %v12394_v17  ;;  %v73_v27 = vld [vmem:[%s16873_s0 + $0x50] sm:$0xff]  ;;  %v3326_v32 = vsel %vm526_vm2, %v10425_v23, 0 }
   0xa   :  { %59 = vst.msk [vmem:[#allocation2 + $0x120] sm:$0xff] %vm21_vm0, %v12211_v2  ;;  %61 = vst.msk [vmem:[#allocation2 + $0x130] sm:$0xff] %vm21_vm0, %v12211_v2  ;;  %v74_v31 = vld [vmem:[%s16873_s0 + $0x58] sm:$0xff]  ;;  %vm7913_vm13 = vcmask 177152   ;;  %vm9833_vm14 = vcmask 228352   ;;  %vm9628_vm15 = vcmask 523264  }
   0xb   :  { %7430 = vst [vmem:[#allocation3] sm:$0xff] %v12211_v2  ;;  %7432 = vst [vmem:[#allocation3 + $0x10] sm:$0x1] %v12211_v2  ;;  %v12421_v28 = vrot.slane %v164_v24, %v12394_v17  ;;  %v12425_v29 = vcombine.high %v12411_v25, %v12411_v25  ;;  %3336 = vmatpush1.bf16.msra.mxu0 %v11717_v20  ;;  %v11734_v14 = vld [vmem:[%s16872_s1 + $0x1fc] ss:$8 sps:$4 sm:$0xff]  }
   0xc   :  { %7437 = vst [vmem:[#allocation3 + $0x30] sm:$0x1] %v12211_v2  ;;  %7441 = vst [vmem:[#allocation3 + $0x50] sm:$0x1] %v12211_v2  ;;  %10427 = vmatprep.subr.msk.bf16.mxu0 %vm526_vm2, %v10426_v22  ;;  %v75_v22 = vld [vmem:[%s16873_s0 + $0x60] sm:$0xff] }
   0xd   :  { %7443 = vst [vmem:[#allocation3 + $0x60] sm:$0xff] %v12211_v2  ;;  %7445 = vst [vmem:[#allocation3 + $0x70] sm:$0x1] %v12211_v2  ;;  %v12440_v35 = vcombine.high %v12421_v28, %v12421_v28  ;;  %v16882_v36 = vrot.slane %v12425_v29, 7  ;;  %v548_v37 = vrot.slane %v12421_v28, 7  ;;  %v12542_v21 = vld [vmem:[#allocation2 + $0xb0] sm:$0xff] }
   0xe   :  { %7447 = vst [vmem:[#allocation3 + $0x80] sm:$0xff] %v12211_v2  ;;  %7449 = vst [vmem:[#allocation3 + $0x90] sm:$0x1] %v12211_v2 }
   0xf   :  { %7451 = vst [vmem:[#allocation3 + $0xa0] sm:$0xff] %v12211_v2  ;;  %7453 = vst [vmem:[#allocation3 + $0xb0] sm:$0x1] %v12211_v2  ;;  %v547_v44 = vrot.slane %v16882_v36, 2  ;;  %v550_v45 = vrot.slane %v548_v37, 2  ;;  %v551_v46 = vrot.slane %v12440_v35, 7  ;;  %3338 = vmatpush1.bf16.msra.mxu0 %v3326_v32 }
  0x10   :  { %7455 = vst [vmem:[#allocation3 + $0xc0] sm:$0xff] %v12211_v2  ;;  %7457 = vst [vmem:[#allocation3 + $0xd0] sm:$0x1] %v12211_v2  ;;  %3613 = vmatprep.subr.bf16.mxu0 %v11734_v14 }
  0x11   :  { %7459 = vst [vmem:[#allocation3 + $0xe0] sm:$0xff] %v12211_v2  ;;  %7461 = vst [vmem:[#allocation3 + $0xf0] sm:$0x1] %v12211_v2  ;;  %v1531_v54 = vrot.slane %v551_v46, 2 }
  0x12   :  { %7463 = vst [vmem:[#allocation3 + $0x100] sm:$0xff] %v12211_v2  ;;  %7465 = vst [vmem:[#allocation3 + $0x110] sm:$0x1] %v12211_v2 }
  0x13   :  { %7469 = vst [vmem:[#allocation3 + $0x130] sm:$0x1] %v12211_v2  ;;  %7473 = vst [vmem:[#allocation3 + $0x150] sm:$0x1] %v12211_v2 }
  0x14   :  { %7477 = vst [vmem:[#allocation3 + $0x170] sm:$0x1] %v12211_v2  ;;  %7479 = vst [vmem:[#allocation3 + $0x180] sm:$0xff] %v12211_v2 }
  0x15   :  { %7481 = vst [vmem:[#allocation3 + $0x190] sm:$0x1] %v12211_v2  ;;  %7483 = vst [vmem:[#allocation3 + $0x1a0] sm:$0xff] %v12211_v2 }
  0x16   :  { %7485 = vst [vmem:[#allocation3 + $0x1b0] sm:$0x1] %v12211_v2  ;;  %7487 = vst [vmem:[#allocation3 + $0x1c0] sm:$0xff] %v12211_v2 }
  0x17   :  { %7489 = vst [vmem:[#allocation3 + $0x1d0] sm:$0x1] %v12211_v2  ;;  %7491 = vst [vmem:[#allocation3 + $0x1e0] sm:$0xff] %v12211_v2 }
  0x18   :  { %7493 = vst [vmem:[#allocation3 + $0x1f0] sm:$0x1] %v12211_v2  ;;  %7495 = vst [vmem:[#allocation3 + $0x200] sm:$0xff] %v12211_v2 }
  0x19   :  { %7497 = vst [vmem:[#allocation3 + $0x210] sm:$0x1] %v12211_v2  ;;  %7499 = vst [vmem:[#allocation3 + $0x220] sm:$0xff] %v12211_v2 }
  0x1a   :  { %7501 = vst [vmem:[#allocation3 + $0x230] sm:$0x1] %v12211_v2  ;;  %24 = vst.msk [vmem:[#allocation2 + $0x8] sm:$0x3] %vm23_vm1, %v12211_v2 }
  0x1b   :  { %26 = vst.msk [vmem:[#allocation2 + $0x18] sm:$0x3] %vm23_vm1, %v12211_v2  ;;  %28 = vst.msk [vmem:[#allocation2 + $0x28] sm:$0x3] %vm23_vm1, %v12211_v2 }
  0x1c   :  { %30 = vst.msk [vmem:[#allocation2 + $0x38] sm:$0x3] %vm23_vm1, %v12211_v2  ;;  %32 = vst.msk [vmem:[#allocation2 + $0x48] sm:$0x3] %vm23_vm1, %v12211_v2 }
  0x1d   :  { %34 = vst.msk [vmem:[#allocation2 + $0x58] sm:$0x3] %vm23_vm1, %v12211_v2  ;;  %36 = vst.msk [vmem:[#allocation2 + $0x68] sm:$0x3] %vm23_vm1, %v12211_v2 }
  0x1e   :  { %38 = vst.msk [vmem:[#allocation2 + $0x78] sm:$0x3] %vm23_vm1, %v12211_v2  ;;  %40 = vst.msk [vmem:[#allocation2 + $0x88] sm:$0x3] %vm23_vm1, %v12211_v2 }
  0x1f   :  { %42 = vst.msk [vmem:[#allocation2 + $0x98] sm:$0x3] %vm23_vm1, %v12211_v2  ;;  %44 = vst.msk [vmem:[#allocation2 + $0xa8] sm:$0x3] %vm23_vm1, %v12211_v2 }
  0x20   :  { %46 = vst.msk [vmem:[#allocation2 + $0xb8] sm:$0x3] %vm23_vm1, %v12211_v2  ;;  %48 = vst.msk [vmem:[#allocation2 + $0xc8] sm:$0x3] %vm23_vm1, %v12211_v2 }
  0x21   :  { %50 = vst.msk [vmem:[#allocation2 + $0xd8] sm:$0x3] %vm23_vm1, %v12211_v2  ;;  %52 = vst.msk [vmem:[#allocation2 + $0xe8] sm:$0x3] %vm23_vm1, %v12211_v2 }
  0x22   :  { %54 = vst.msk [vmem:[#allocation2 + $0xf8] sm:$0x3] %vm23_vm1, %v12211_v2  ;;  %56 = vst.msk [vmem:[#allocation2 + $0x108] sm:$0x3] %vm23_vm1, %v12211_v2 }
  0x23   :  { %58 = vst.msk [vmem:[#allocation2 + $0x118] sm:$0x3] %vm23_vm1, %v12211_v2  ;;  %60 = vst.msk [vmem:[#allocation2 + $0x128] sm:$0x3] %vm23_vm1, %v12211_v2 }
  0x24   :  { %62 = vst.msk [vmem:[#allocation2 + $0x138] sm:$0x3] %vm23_vm1, %v12211_v2  ;;  %vm528_vm4 = vmor %vm526_vm2, %vm527_vm3  ;;  %v12444_v38 = vld.sshfl [vmem:[#allocation2 + $0x18] sm:$0x3 pattern:$0x76325410] }
  0x25   :  { %80 = vst.msk [vmem:[#allocation2 + $0x20] sm:$0xff] %vm21_vm0, %v63_v11  ;;  %81 = vst.msk [vmem:[#allocation2 + $0x30] sm:$0xff] %vm21_vm0, %v64_v12  ;;  %v12462_v47 = vld.sshfl [vmem:[#allocation2 + $0x28] sm:$0x3 pattern:$0x76325410] }
  0x26   :  { %82 = vst.msk [vmem:[#allocation2 + $0x40] sm:$0xff] %vm21_vm0, %v65_v15  ;;  %83 = vst.msk [vmem:[#allocation2 + $0x50] sm:$0xff] %vm21_vm0, %v66_v16  ;;  %v1532_v55 = vrot.slane %v12444_v38, 7  ;;  %v1535_v63 = vrot.slane %v12462_v47, 7 }
  0x27   :  { %84 = vst.msk [vmem:[#allocation2 + $0x60] sm:$0xff] %vm21_vm0, %v67_v18  ;;  %88 = vst.msk [vmem:[#allocation2 + $0xc0] sm:$0xff] %vm21_vm0, %v71_v19 }
  0x28   :  { %17156 = vst [vmem:[#allocation4_spill] sm:$0xff] %v12411_v25  ;;  %89 = vst.msk [vmem:[#allocation2 + $0xd0] sm:$0xff] %vm21_vm0, %v72_v26 }
  0x29   :  { %17157 = vst [vmem:[#allocation5_spill] sm:$0xff] %v12421_v28  ;;  %17158 = vst [vmem:[#allocation6_spill] sm:$0xff] %v12425_v29 }
  0x2a   :  { %vm12427_vm6 = vmor %vm528_vm4, %vm529_vm5  ;;  %90 = vst.msk [vmem:[#allocation2 + $0xe0] sm:$0xff] %vm21_vm0, %v73_v27  ;;  %v12554_v27 = vld.sshfl [vmem:[#allocation2 + $0x38] sm:$0x3 pattern:$0x76325410] }
  0x2b   :  { %91 = vst.msk [vmem:[#allocation2 + $0xf0] sm:$0xff] %vm21_vm0, %v74_v31  ;;  %17161 = vst [vmem:[#allocation7_spill] sm:$0xff] %v12440_v35 }
  0x2c   :  { %v100_v33 = vld [vmem:[#allocation2 + $0x20] sm:$0xff]  ;;  %v102_v34 = vld [vmem:[#allocation2 + $0x30] sm:$0xff]  ;;  %vm12455_vm8 = vmor %vm12427_vm6, %vm531_vm7  ;;  %92 = vst.msk [vmem:[#allocation2 + $0x100] sm:$0xff] %vm21_vm0, %v75_v22 }
  0x2d   :  { %v180_v39 = vcombine.high %v100_v33, %v100_v33  ;;  %v12447_v40 = vrot.slane %v100_v33, %v12394_v17  ;;  %v196_v41 = vcombine.high %v102_v34, %v102_v34  ;;  %v12450_v42 = vrot.slane %v102_v34, %v12394_v17  ;;  %v104_v11 = vld [vmem:[#allocation2 + $0x40] sm:$0xff]  ;;  %v106_v20 = vld [vmem:[#allocation2 + $0x50] sm:$0xff]  ;;  %v12560_v33 = vld.sshfl [vmem:[#allocation2 + $0x48] sm:$0x3 pattern:$0x76325410] }
  0x2e   :  { %v12480_v52 = vsel %vm12455_vm8, %v547_v44, %v548_v37  ;;  %v12484_v53 = vsel %vm12455_vm8, %v550_v45, %v551_v46  ;;  %v12510_v7 = vsel %vm12455_vm8, %v1531_v54, %v1532_v55  ;;  %v212_v30 = vcombine.high %v104_v11, %v104_v11  ;;  %v11744_v54 = vld [vmem:[%s16872_s1 + $0x3c] ss:$8 sps:$4 sm:$0xff]   ;;  %v11746_v55 = vld [vmem:[%s16872_s1 + $0x38] ss:$8 sps:$4 sm:$0xff]  }
  0x2f   :  { %17162 = vst [vmem:[#allocation8_spill] sm:$0xff] %v12447_v40  ;;  %17163 = vst [vmem:[#allocation9_spill] sm:$0xff] %v12450_v42  ;;  %v12465_v48 = vrot.slane %v180_v39, %v12394_v17  ;;  %v12469_v49 = vcombine.high %v12447_v40, %v12447_v40  ;;  %v12472_v50 = vrot.slane %v196_v41, %v12394_v17  ;;  %884 = vmatprep.subr.bf16.mxu1 %v11744_v54  ;;  %v108_v54 = vld [vmem:[#allocation2 + $0x60] sm:$0xff] }
  0x30   :  { %v12476_v51 = vcombine.high %v12450_v42, %v12450_v42  ;;  %17170 = vst [vmem:[#allocation14_spill] sm:$0xff] %v12480_v52  ;;  %17171 = vst [vmem:[#allocation15_spill] sm:$0xff] %v12484_v53  ;;  %v670_v62 = vcombine.low %v12480_v52, %v12484_v53  ;;  %v12557_v31 = vrot.slane %v104_v11, %v12394_v17  ;;  %885 = vmatpush1.bf16.msra.mxu1 %v11746_v55 }
  0x31   :  { %17166 = vst [vmem:[#allocation10_spill] sm:$0xff] %v12465_v48  ;;  %17167 = vst [vmem:[#allocation11_spill] sm:$0xff] %v12469_v49  ;;  %v12489_v56 = vcombine.high %v12465_v48, %v12465_v48  ;;  %v12493_v57 = vcombine.high %v12472_v50, %v12472_v50  ;;  %v16881_v58 = vrot.slane %v12469_v49, 7  ;;  %v558_v59 = vrot.slane %v12465_v48, 7 }
  0x32   :  { %17168 = vst [vmem:[#allocation12_spill] sm:$0xff] %v12472_v50  ;;  %17169 = vst [vmem:[#allocation13_spill] sm:$0xff] %v12476_v51  ;;  %v16880_v60 = vrot.slane %v12476_v51, 7  ;;  %v568_v61 = vrot.slane %v12472_v50, 7  ;;  %v12532_v15 = vrot.slane %v670_v62, %v12394_v17  ;;  %v228_v34 = vcombine.high %v106_v20, %v106_v20 }
  0x33   :  { %17172 = vst [vmem:[#allocation16_spill] sm:$0xff] %v12489_v56  ;;  %17173 = vst [vmem:[#allocation17_spill] sm:$0xff] %v12493_v57  ;;  %v557_v0 = vrot.slane %v16881_v58, 2  ;;  %v560_v2 = vrot.slane %v558_v59, 2  ;;  %v561_v3 = vrot.slane %v12489_v56, 7  ;;  %v571_v4 = vrot.slane %v12493_v57, 7 }
  0x34   :  { %v567_v5 = vrot.slane %v16880_v60, 2  ;;  %v570_v6 = vrot.slane %v568_v61, 2  ;;  %17174 = vst [vmem:[#allocation18_spill] sm:$0xff] %v12510_v7  ;;  %17181 = vst [vmem:[#allocation25_spill] sm:$0xff] %v12557_v31  ;;  %v12563_v37 = vrot.slane %v106_v20, %v12394_v17  ;;  %v260_v39 = vcombine.high %v12542_v21, %v12542_v21 }
  0x35   :  { %v12514_v8 = vsel %vm12455_vm8, %v557_v0, %v558_v59  ;;  %v12518_v9 = vsel %vm12455_vm8, %v560_v2, %v561_v3  ;;  %v1534_v10 = vrot.slane %v561_v3, 2  ;;  %v12569_v44 = vrot.slane %v212_v30, %v12394_v17  ;;  %v11732_v0 = vld [vmem:[%s16872_s1 + $0x1f8] ss:$8 sps:$4 sm:$0xff]   ;;  %v11752_v30 = vld [vmem:[%s16872_s1 + $0x48] ss:$8 sps:$4 sm:$0xff]  }
  0x36   :  { %17175 = vst [vmem:[#allocation19_spill] sm:$0xff] %v12514_v8  ;;  %17176 = vst [vmem:[#allocation20_spill] sm:$0xff] %v12518_v9  ;;  %v12522_v12 = vsel %vm12455_vm8, %v567_v5, %v568_v61  ;;  %v12526_v13 = vsel %vm12455_vm8, %v570_v6, %v571_v4  ;;  %v3148_v19 = vcombine.low %v12510_v7, %v12514_v8  ;;  %v1538_v6 = vrot.slane %v12554_v27, 7 }
  0x37   :  { %17177 = vst [vmem:[#allocation21_spill] sm:$0xff] %v12522_v12  ;;  %17178 = vst [vmem:[#allocation22_spill] sm:$0xff] %v12526_v13  ;;  %v688_v16 = vcombine.low %v12522_v12, %v12526_v13  ;;  %v12538_v18 = vsel %vm12455_vm8, %v1534_v10, %v1535_v63  ;;  %v12573_v45 = vcombine.high %v12557_v31, %v12557_v31  ;;  %v1537_v63 = vrot.slane %v571_v4, 2  ;;  %v11737_v10 = vld [vmem:[%s16872_s1 + $0x20c] ss:$8 sps:$4 sm:$0xff]  }
  0x38   :  { %17179 = vst [vmem:[#allocation23_spill] sm:$0xff] %v12538_v18  ;;  %v3157_v23 = vcombine.low %v12518_v9, %v12538_v18  ;;  %v3155_v26 = vrot.slane %v3148_v19, %v12394_v17  ;;  %17182 = vst [vmem:[#allocation26_spill] sm:$0xff] %v12563_v37  ;;  %v12577_v46 = vrot.slane %v12542_v21, %v12394_v17  ;;  %v578_v5 = vrot.slane %v12569_v44, 7  ;;  %v11750_v19 = vld [vmem:[%s16872_s1 + $0x4c] ss:$8 sps:$4 sm:$0xff]  }
  0x39   :  { %v12551_v24 = vrot.slane %v688_v16, %v12394_v17  ;;  %17183 = vst [vmem:[#allocation27_spill] sm:$0xff] %v12569_v44  ;;  %17184 = vst [vmem:[#allocation28_spill] sm:$0xff] %v12573_v45  ;;  %v12587_v61 = vrot.slane %v228_v34, %v12394_v17  ;;  %v12591_v62 = vcombine.high %v12563_v37, %v12563_v37  ;;  %v16878_v3 = vrot.slane %v12573_v45, 7 }
  0x3a   :  { %v3164_v32 = vrot.slane %v3157_v23, %v12394_v17  ;;  %v3156_v41 = vcombine.low %v12532_v15, %v3155_v26  ;;  %17185 = vst [vmem:[#allocation29_spill] sm:$0xff] %v12577_v46  ;;  %v12598_v2 = vcombine.high %v12569_v44, %v12569_v44  ;;  %v12615_v20 = vld.sshfl [vmem:[#allocation2 + $0x58] sm:$0x3 pattern:$0x76325410]  ;;  %v580_v22 = vrot.slane %v578_v5, 2  ;;  %886 = vmatprep.subr.bf16.mxu1 %v11750_v19 }
  0x3b   :  { %17180 = vst [vmem:[#allocation24_spill] sm:$0xff] %v12551_v24  ;;  %17186 = vst [vmem:[#allocation30_spill] sm:$0xff] %v12587_v61  ;;  %v12608_v11 = vcombine.high %v12587_v61, %v12587_v61  ;;  %v16879_v14 = vrot.slane %v12591_v62, 7  ;;  %v588_v16 = vrot.slane %v12587_v61, 7  ;;  %v577_v21 = vrot.slane %v16878_v3, 2  ;;  %887 = vmatpush1.bf16.msra.mxu1 %v11752_v30 }
  0x3c   :  { %v3165_v59 = vcombine.low %v3164_v32, %v12551_v24  ;;  %17187 = vst [vmem:[#allocation31_spill] sm:$0xff] %v12591_v62  ;;  %17188 = vst [vmem:[#allocation32_spill] sm:$0xff] %v12598_v2  ;;  %v581_v23 = vrot.slane %v12598_v2, 7  ;;  %v1541_v26 = vrot.slane %v12560_v33, 7  ;;  %v1544_v30 = vrot.slane %v12615_v20, 7 }
  0x3d   :  { %17189 = vst [vmem:[#allocation33_spill] sm:$0xff] %v12608_v11  ;;  %v587_v32 = vrot.slane %v16879_v14, 2  ;;  %v590_v34 = vrot.slane %v588_v16, 2  ;;  %v12631_v55 = vsel %vm12455_vm8, %v577_v21, %v578_v5  ;;  %v120_v21 = vld [vmem:[#allocation2 + $0xc0] sm:$0xff] }
  0x3e   :  { %v3262_v4 = vpack.c.bf16 %v3165_v59, %v3156_v41  ;;  %v591_v41 = vrot.slane %v12608_v11, 7  ;;  %17190 = vst [vmem:[#allocation34_spill] sm:$0xff] %v12631_v55  ;;  %v12635_v59 = vsel %vm12455_vm8, %v1537_v63, %v1538_v6  ;;  %v1540_v3 = vrot.slane %v581_v23, 2  ;;  %v11741_v63 = vld [vmem:[%s16872_s1 + $0x21c] ss:$8 sps:$4 sm:$0xff]  }
  0x3f   :  { %17191 = vst [vmem:[#allocation35_spill] sm:$0xff] %v12635_v59  ;;  %v12642_v19 = vsel %vm12455_vm8, %v580_v22, %v581_v23  ;;  %v12646_v14 = vsel %vm12455_vm8, %v587_v32, %v588_v16  ;;  %v12665_v22 = vrot.slane %v260_v39, %v12394_v17  ;;  %v11758_v23 = vld [vmem:[%s16872_s1 + $0x58] ss:$8 sps:$4 sm:$0xff]   ;;  %v2226_v32 = vcombine.high %v108_v54, %v108_v54  ;;  %v68_v39 = vld [vmem:[%s16873_s0 + $0x28] sm:$0xff] }
  0x40   :  { %10428 = vmatmul.mubr.msk.bf16.vlgmr.msra.gmra.mrb[0].mxu0 %vm21_vm0, %v3262_v4  ;;  %v11735_v4 = vld [vmem:[%s16872_s1 + $0x208] ss:$8 sps:$4 sm:$0xff]   ;;  %17192 = vst [vmem:[#allocation36_spill] sm:$0xff] %v12642_v19  ;;  %17193 = vst [vmem:[#allocation37_spill] sm:$0xff] %v12646_v14  ;;  %v12650_v5 = vsel %vm12455_vm8, %v590_v34, %v591_v41  ;;  %v12662_v16 = vsel %vm12455_vm8, %v1540_v3, %v1541_v26  ;;  %v12676_v34 = vrot.slane %v108_v54, %v12394_v17  ;;  %v11739_v54 = vld [vmem:[%s16872_s1 + $0x218] ss:$8 sps:$4 sm:$0xff]  }
  0x41   :  { %3373 = vmatprep.mubr.bf16.mxu0 %v16883_v1  ;;  %3614 = vmatpush1.bf16.msra.mxu0 %v11732_v0  ;;  %17194 = vst [vmem:[#allocation38_spill] sm:$0xff] %v12650_v5  ;;  %v11756_v0 = vld [vmem:[%s16872_s1 + $0x5c] ss:$8 sps:$4 sm:$0xff]   ;;  %v721_v6 = vcombine.low %v12646_v14, %v12650_v5  ;;  %17195 = vst [vmem:[#allocation39_spill] sm:$0xff] %v12662_v16  ;;  %v1543_v26 = vrot.slane %v591_v41, 2  ;;  %v3166_v60 = vcombine.low %v12635_v59, %v12631_v55 }
  0x42   :  { %3615 = vmatprep.subr.bf16.mxu0 %v11737_v10  ;;  %17196 = vst [vmem:[#allocation40_spill] sm:$0xff] %v12665_v22  ;;  %v12669_v10 = vcombine.high %v12577_v46, %v12577_v46  ;;  %17198 = vst [vmem:[#allocation42_spill] sm:$0xff] %v12676_v34  ;;  %888 = vmatprep.subr.bf16.mxu1 %v11756_v0  ;;  %v3167_v58 = vcombine.low %v12642_v19, %v12662_v16  ;;  %v12704_v16 = vld.sshfl [vmem:[#allocation2 + $0xb8] sm:$0x3 pattern:$0x76325410] }
  0x43   :  { %v12682_v3 = vrot.slane %v721_v6, %v12394_v17  ;;  %85 = vst.msk [vmem:[#allocation2 + $0x70] sm:$0xff] %vm21_vm0, %v68_v39  ;;  %v12693_v0 = vrot.slane %v2226_v32, %v12394_v17  ;;  %v12697_v6 = vcombine.high %v12676_v34, %v12676_v34  ;;  %v276_v41 = vcombine.high %v120_v21, %v120_v21 }
  0x44   :  { %17197 = vst [vmem:[#allocation41_spill] sm:$0xff] %v12669_v10  ;;  %v12700_v36 = vrot.slane %v120_v21, %v12394_v17  ;;  %v3181_v1 = vrot.slane %v3167_v58, %v12394_v17  ;;  %v12708_v39 = vcombine.high %v12665_v22, %v12665_v22  ;;  %889 = vmatpush1.bf16.msra.mxu1 %v11758_v23  ;;  %v12726_v23 = vld.sshfl [vmem:[#allocation2 + $0xc8] sm:$0x3 pattern:$0x76325410]  ;;  %v17206_v14 = vrot.slane %v12669_v10, 7 }
  0x45   :  { %17199 = vst [vmem:[#allocation43_spill] sm:$0xff] %v12682_v3  ;;  %3616 = vmatpush1.bf16.msra.mxu0 %v11735_v4  ;;  %17200 = vst [vmem:[#allocation44_spill] sm:$0xff] %v12697_v6  ;;  %v3174_v4 = vrot.slane %v3166_v60, %v12394_v17  ;;  %v2563_v5 = vrot.slane %v12693_v0, 7  ;;  %v12714_v21 = vrot.slane %v276_v41, %v12394_v17  ;;  %v17207_v41 = vrot.slane %v12697_v6, 7 }
  0x46   :  { %17201 = vst [vmem:[#allocation45_spill] sm:$0xff] %v12700_v36  ;;  %3617 = vmatprep.subr.bf16.mxu0 %v11741_v63  ;;  %17202 = vst [vmem:[#allocation46_spill] sm:$0xff] %v12708_v39  ;;  %v12718_v60 = vcombine.high %v12700_v36, %v12700_v36  ;;  %v12722_v58 = vsel %vm12455_vm8, %v1543_v26, %v1544_v30  ;;  %v5677_v32 = vcombine.low %v3181_v1, %v12682_v3 }
  0x47   :  { %17203 = vst [vmem:[#allocation47_spill] sm:$0xff] %v12714_v21  ;;  %17205 = vst [vmem:[#allocation49_spill] sm:$0xff] %v12722_v58  ;;  %v5676_v63 = vcombine.low %v12551_v24, %v3174_v4  ;;  %v607_v13 = vrot.slane %v17206_v14, 2  ;;  %v2562_v59 = vrot.slane %v17207_v41, 2  ;;  %v12734_v18 = vcombine.high %v12714_v21, %v12714_v21 }
  0x48   :  { %17204 = vst [vmem:[#allocation48_spill] sm:$0xff] %v12718_v60  ;;  %v608_v30 = vrot.slane %v12665_v22, 7  ;;  %v611_v26 = vrot.slane %v12708_v39, 7  ;;  %v618_v7 = vrot.slane %v12714_v21, 7  ;;  %v1550_v14 = vrot.slane %v12704_v16, 7 }
  0x49   :  { %3618 = vmatpush1.bf16.msra.mxu0 %v11739_v54  ;;  %17208 = vst [vmem:[#allocation50_spill] sm:$0xff] %v12734_v18  ;;  %v12738_v12 = vpack.c.bf16 %v5677_v32, %v5676_v63  ;;  %v12745_v54 = vsel %vm12455_vm8, %v2562_v59, %v2563_v5  ;;  %v12747_v41 = vld.sshfl [vmem:[#allocation2 + $0x68] sm:$0x3 pattern:$0x76325410]  ;;  %v621_v32 = vrot.slane %v12734_v18, 7  ;;  %v12769_v6 = vcombine.high %v12693_v0, %v12693_v0 }
  0x4a   :  { %17210 = vst [vmem:[#allocation52_spill] sm:$0xff] %v12745_v54  ;;  %v12751_v52 = vsel %vm12455_vm8, %v607_v13, %v608_v30  ;;  %v610_v10 = vrot.slane %v608_v30, 2  ;;  %v76_v63 = vld [vmem:[%s16873_s0 + $0x68] sm:$0xff]  ;;  %v3183_v53 = vcombine.low %v12722_v58, %v12745_v54  ;;  %v620_v36 = vrot.slane %v618_v7, 2 }
  0x4b   :  { %17209 = vst [vmem:[#allocation51_spill] sm:$0xff] %v12738_v12  ;;  %17211 = vst [vmem:[#allocation53_spill] sm:$0xff] %v12751_v52  ;;  %v17212_v12 = vrot.slane %v12718_v60, 7  ;;  %v1549_v46 = vrot.slane %v611_v26, 2  ;;  %v1552_v30 = vrot.slane %v621_v32, 2  ;;  %v1553_v24 = vrot.slane %v12726_v23, 7 }
  0x4c   :  { %93 = vst.msk [vmem:[#allocation2 + $0x110] sm:$0xff] %vm21_vm0, %v76_v63  ;;  %v12764_v13 = vsel %vm12455_vm8, %v610_v10, %v611_v26  ;;  %17214 = vst [vmem:[#allocation55_spill] sm:$0xff] %v12769_v6  ;;  %v3182_v19 = vcombine.low %v3174_v4, %v3181_v1  ;;  %v12772_v58 = vrot.slane %v3183_v53, %v12394_v17  ;;  %v122_v10 = vld [vmem:[#allocation2 + $0xd0] sm:$0xff]  ;;  %v124_v26 = vld [vmem:[#allocation2 + $0xe0] sm:$0xff]  ;;  %v2565_v53 = vrot.slane %v2563_v5, 2 }
  0x4d   :  { %v617_v59 = vrot.slane %v17212_v12, 2  ;;  %17213 = vst [vmem:[#allocation54_spill] sm:$0xff] %v12764_v13  ;;  %v12780_v63 = vsel %vm12455_vm8, %v620_v36, %v621_v32  ;;  %v12784_v60 = vsel %vm12455_vm8, %v1549_v46, %v1550_v14  ;;  %v12788_v1 = vsel %vm12455_vm8, %v1552_v30, %v1553_v24  ;;  %v126_v46 = vld [vmem:[#allocation2 + $0xf0] sm:$0xff] }
  0x4e   :  { %17215 = vst [vmem:[#allocation56_spill] sm:$0xff] %v12772_v58  ;;  %17217 = vst [vmem:[#allocation58_spill] sm:$0xff] %v12780_v63  ;;  %v2566_v4 = vrot.slane %v12769_v6, 7  ;;  %v739_v36 = vcombine.low %v12751_v52, %v12764_v13  ;;  %v3143_v32 = vrot.slane %v12747_v41, 7  ;;  %v3202_v5 = vcombine.low %v12780_v63, %v12788_v1 }
  0x4f   :  { %v12776_v12 = vsel %vm12455_vm8, %v617_v59, %v618_v7  ;;  %17218 = vst [vmem:[#allocation59_spill] sm:$0xff] %v12784_v60  ;;  %17219 = vst [vmem:[#allocation60_spill] sm:$0xff] %v12788_v1  ;;  %v3191_v7 = vcombine.low %v12682_v3, %v12772_v58  ;;  %v292_v30 = vcombine.high %v122_v10, %v122_v10 }
  0x50   :  { %17216 = vst [vmem:[#allocation57_spill] sm:$0xff] %v12776_v12  ;;  %v3201_v59 = vcombine.low %v12784_v60, %v12776_v12  ;;  %v12800_v14 = vsel %vm12455_vm8, %v2565_v53, %v2566_v4  ;;  %v3142_v24 = vrot.slane %v2566_v4, 2  ;;  %v12806_v13 = vrot.slane %v122_v10, %v12394_v17 }
  0x51   :  { %17220 = vst [vmem:[#allocation61_spill] sm:$0xff] %v12800_v14  ;;  %v3263_v54 = vpack.c.bf16 %v3191_v7, %v3182_v19  ;;  %v3216_v60 = vrot.slane %v3202_v5, %v12394_v17  ;;  %v12814_v53 = vrot.slane %v292_v30, %v12394_v17  ;;  %v308_v4 = vcombine.high %v124_v26, %v124_v26 }
  0x52   :  { %v3209_v58 = vrot.slane %v3201_v59, %v12394_v17  ;;  %17221 = vst [vmem:[#allocation62_spill] sm:$0xff] %v12806_v13  ;;  %v12810_v52 = vsel %vm12455_vm8, %v3142_v24, %v3143_v32  ;;  %v12818_v1 = vrot.slane %v739_v36, %v12394_v17  ;;  %v12824_v10 = vcombine.high %v12806_v13, %v12806_v13 }
  0x53   :  { %17222 = vst [vmem:[#allocation63_spill] sm:$0xff] %v12810_v52  ;;  %17223 = vst [vmem:[#allocation64_spill] sm:$0xff] %v12814_v53  ;;  %10429 = vmatmul.mubr.msk.bf16.gmra.mrb[4].mxu0 %vm21_vm0, %v3263_v54  ;;  %v3192_v19 = vcombine.low %v12800_v14, %v12810_v52  ;;  %v12827_v7 = vrot.slane %v124_v26, %v12394_v17  ;;  %v17227_v32 = vmov 0   ;;  %v12831_v24 = vrot.slane %v308_v4, %v12394_v17 }
  0x54   :  { %17224 = vst [vmem:[#allocation65_spill] sm:$0xff] %v12818_v1  ;;  %17225 = vst [vmem:[#allocation66_spill] sm:$0xff] %v12824_v10  ;;  %3383 = vmatprep.mubr.bf16.mxu0 %v17227_v32  ;;  %v3217_v59 = vcombine.low %v3209_v58, %v3216_v60  ;;  %v324_v54 = vcombine.high %v126_v46, %v126_v46  ;;  %v12834_v36 = vrot.slane %v126_v46, %v12394_v17  ;;  %v12862_v14 = vld.sshfl [vmem:[#allocation2 + $0xd8] sm:$0x3 pattern:$0x76325410] }
  0x55   :  { %17226 = vst [vmem:[#allocation67_spill] sm:$0xff] %v12827_v7  ;;  %v12837_v5 = vrot.slane %v3192_v19, %v12394_v17  ;;  %v12841_v30 = vcombine.high %v12827_v7, %v12827_v7  ;;  %v12845_v26 = vcombine.high %v12814_v53, %v12814_v53  ;;  %v16944_v60 = vrot.slane %v12824_v10, 7 }
  0x56   :  { %17228 = vst [vmem:[#allocation68_spill] sm:$0xff] %v12834_v36  ;;  %v12849_v58 = vrot.slane %v324_v54, %v12394_v17  ;;  %v12853_v46 = vcombine.high %v12834_v36, %v12834_v36  ;;  %v12857_v4 = vcombine.high %v12831_v24, %v12831_v24  ;;  %v628_v19 = vrot.slane %v12814_v53, 7  ;;  %v12868_v36 = vld.sshfl [vmem:[#allocation2 + $0xe8] sm:$0x3 pattern:$0x76325410] }
  0x57   :  { %17229 = vst [vmem:[#allocation69_spill] sm:$0xff] %v12837_v5  ;;  %17230 = vst [vmem:[#allocation70_spill] sm:$0xff] %v12841_v30  ;;  %v3200_v52 = vcombine.low %v12837_v5, %v12818_v1  ;;  %v627_v63 = vrot.slane %v16944_v60, 2  ;;  %v631_v54 = vrot.slane %v12845_v26, 7  ;;  %v16955_v12 = vrot.slane %v12841_v30, 7 }
  0x58   :  { %17231 = vst [vmem:[#allocation71_spill] sm:$0xff] %v12845_v26  ;;  %17232 = vst [vmem:[#allocation72_spill] sm:$0xff] %v12849_v58  ;;  %v12872_v7 = vcombine.high %v12849_v58, %v12849_v58  ;;  %v630_v13 = vrot.slane %v628_v19, 2  ;;  %v638_v3 = vrot.slane %v12831_v24, 7  ;;  %v641_v5 = vrot.slane %v12857_v4, 7 }
  0x59   :  { %17233 = vst [vmem:[#allocation73_spill] sm:$0xff] %v12853_v46  ;;  %17234 = vst [vmem:[#allocation74_spill] sm:$0xff] %v12857_v4  ;;  %v3264_v1 = vpack.c.bf16 %v3217_v59, %v3200_v52  ;;  %v12878_v10 = vsel %vm12455_vm8, %v627_v63, %v628_v19  ;;  %v637_v60 = vrot.slane %v16955_v12, 2  ;;  %v16960_v55 = vrot.slane %v12853_v46, 7 }
  0x5a   :  { %17235 = vst [vmem:[#allocation75_spill] sm:$0xff] %v12868_v36  ;;  %17236 = vst [vmem:[#allocation76_spill] sm:$0xff] %v12872_v7  ;;  %v12885_v62 = vsel %vm12455_vm8, %v630_v13, %v631_v54  ;;  %v640_v45 = vrot.slane %v638_v3, 2  ;;  %v648_v34 = vrot.slane %v12849_v58, 7  ;;  %v651_v9 = vrot.slane %v12872_v7, 7  ;;  %v128_v13 = vld [vmem:[#allocation2 + $0x100] sm:$0xff] }
  0x5b   :  { %17237 = vst [vmem:[#allocation77_spill] sm:$0xff] %v12878_v10  ;;  %17238 = vst [vmem:[#allocation78_spill] sm:$0xff] %v12885_v62  ;;  %10430 = vmatmul.mubr.msk.bf16.gmra.mrb[8].mxu0 %vm21_vm0, %v3264_v1  ;;  %v12892_v52 = vsel %vm12455_vm8, %v637_v60, %v638_v3  ;;  %v647_v63 = vrot.slane %v16960_v55, 2  ;;  %v772_v59 = vcombine.low %v12878_v10, %v12885_v62  ;;  %v1555_v19 = vrot.slane %v631_v54, 2  ;;  %v10439_v60 = vld [vmem:[%s16872_s1 + $0x228] sm:$0x11] }
  0x5c   :  { %17239 = vst [vmem:[#allocation79_spill] sm:$0xff] %v12892_v52  ;;  %3393 = vmatprep.mubr.bf16.mxu0 %v17227_v32  ;;  %v12901_v12 = vsel %vm12455_vm8, %v640_v45, %v641_v5  ;;  %v650_v30 = vrot.slane %v648_v34, 2  ;;  %v1556_v1 = vrot.slane %v12862_v14, 7  ;;  %v1558_v4 = vrot.slane %v641_v5, 2 }
  0x5d   :  { %17240 = vst [vmem:[#allocation80_spill] sm:$0xff] %v12901_v12  ;;  %v12904_v3 = vld.sshfl [vmem:[#allocation2 + $0xf8] sm:$0x3 pattern:$0x76325410]  ;;  %v12911_v54 = vsel %vm12455_vm8, %v647_v63, %v648_v34  ;;  %v1559_v55 = vrot.slane %v12868_v36, 7  ;;  %v12925_v10 = vrot.slane %v772_v59, %v12394_v17  ;;  %v2242_v36 = vcombine.high %v128_v13, %v128_v13 }
  0x5e   :  { %17241 = vst [vmem:[#allocation81_spill] sm:$0xff] %v12904_v3  ;;  %17242 = vst [vmem:[#allocation82_spill] sm:$0xff] %v12911_v54  ;;  %v12918_v62 = vsel %vm12455_vm8, %v650_v30, %v651_v9  ;;  %v12922_v5 = vsel %vm12455_vm8, %v1555_v19, %v1556_v1  ;;  %v1561_v46 = vrot.slane %v651_v9, 2  ;;  %v12938_v19 = vrot.slane %v128_v13, %v12394_v17 }
  0x5f   :  { %17243 = vst [vmem:[#allocation83_spill] sm:$0xff] %v12918_v62  ;;  %17244 = vst [vmem:[#allocation84_spill] sm:$0xff] %v12922_v5  ;;  %v790_v34 = vcombine.low %v12911_v54, %v12918_v62  ;;  %v12931_v63 = vsel %vm12455_vm8, %v1558_v4, %v1559_v55  ;;  %v3218_v45 = vcombine.low %v12922_v5, %v12892_v52  ;;  %v1562_v55 = vrot.slane %v12904_v3, 7 }
  0x60   :  { %17245 = vst [vmem:[#allocation85_spill] sm:$0xff] %v12925_v10  ;;  %17246 = vst [vmem:[#allocation86_spill] sm:$0xff] %v12931_v63  ;;  %v3227_v30 = vcombine.low %v12901_v12, %v12931_v63  ;;  %v10447_v4 = vcombine.high %v10439_v60, %v10439_v60  ;;  %v12950_v54 = vld.sshfl [vmem:[#allocation2 + $0x108] sm:$0x3 pattern:$0x76325410]  ;;  %v12953_v9 = vrot.slane %v2242_v36, %v12394_v17 }
  0x61   :  { %17247 = vst [vmem:[#allocation87_spill] sm:$0xff] %v12938_v19  ;;  %v12941_v59 = vrot.slane %v790_v34, %v12394_v17  ;;  %v12944_v1 = vrot.slane %v3218_v45, %v12394_v17  ;;  %v12957_v13 = vcombine.high %v12938_v19, %v12938_v19  ;;  %v10446_v34 = vcombine.low %v10439_v60, %v10439_v60  ;;  %v96_v63 = vld [vmem:[#allocation2] sm:$0xff] }
  0x62   :  { %v12948_v62 = vrot.slane %v3227_v30, %v12394_v17  ;;  %17251 = vst [vmem:[#allocation91_spill] sm:$0xff] %v12953_v9  ;;  %10448 = vmatprep.subr.msk.bf16.mxu0 %vm526_vm2, %v10447_v4  ;;  %v11749_v30 = vld [vmem:[%s16872_s1 + $0x234] ss:$8 sps:$4 sm:$0xff]   ;;  %v12969_v36 = vcombine.high %v12953_v9, %v12953_v9  ;;  %v2573_v60 = vrot.slane %v12953_v9, 7  ;;  %v3146_v4 = vrot.slane %v12950_v54, 7 }
  0x63   :  { %17248 = vst [vmem:[#allocation88_spill] sm:$0xff] %v12941_v59  ;;  %17249 = vst [vmem:[#allocation89_spill] sm:$0xff] %v12944_v1  ;;  %v3226_v45 = vcombine.low %v12925_v10, %v12944_v1  ;;  %v16989_v19 = vrot.slane %v12957_v13, 7  ;;  %v12975_v1 = vsel %vm12455_vm8, %v1561_v46, %v1562_v55  ;;  %v3608_v10 = vsel %vm526_vm2, %v10446_v34, 0 }
  0x64   :  { %17250 = vst [vmem:[#allocation90_spill] sm:$0xff] %v12948_v62  ;;  %v3235_v5 = vcombine.low %v12948_v62, %v12941_v59  ;;  %17252 = vst [vmem:[#allocation92_spill] sm:$0xff] %v12969_v36  ;;  %v1137_v12 = vcombine.low %v12472_v50, %v12493_v57  ;;  %v2575_v52 = vrot.slane %v2573_v60, 2  ;;  %v2576_v3 = vrot.slane %v12969_v36, 7  ;;  %3620 = vmatpush1.bf16.msra.mxu0 %v3608_v10 }
  0x65   :  { %17253 = vst [vmem:[#allocation93_spill] sm:$0xff] %v12975_v1  ;;  %v2572_v59 = vrot.slane %v16989_v19, 2  ;;  %v148_v9 = vcombine.high %v96_v63, %v96_v63  ;;  %v1170_v46 = vcombine.low %v12587_v61, %v12608_v11  ;;  %v3448_v55 = vcombine.low %v12554_v27, %v12569_v44  ;;  %3881 = vmatprep.subr.bf16.mxu0 %v11749_v30 }
  0x66   :  { %v3265_v62 = vpack.c.bf16 %v3235_v5, %v3226_v45  ;;  %v12995_v34 = vsel %vm12455_vm8, %v2575_v52, %v2576_v3  ;;  %v3145_v45 = vrot.slane %v2576_v3, 2  ;;  %v3449_v10 = vcombine.low %v12598_v2, %v12560_v33 }
  0x67   :  { %v12991_v5 = vsel %vm12455_vm8, %v2572_v59, %v2573_v60  ;;  %17255 = vst [vmem:[#allocation95_spill] sm:$0xff] %v12995_v34  ;;  %v13005_v30 = vrot.slane %v1137_v12, %v12394_v17  ;;  %v13012_v52 = vrot.slane %v1170_v46, %v12394_v17  ;;  %v13015_v33 = vrot.slane %v3448_v55, %v12394_v17 }
  0x68   :  { %10431 = vmatmul.mubr.msk.bf16.gmra.mrb[12].mxu0 %vm21_vm0, %v3265_v62  ;;  %17254 = vst [vmem:[#allocation94_spill] sm:$0xff] %v12991_v5  ;;  %v3236_v27 = vcombine.low %v12975_v1, %v12991_v5  ;;  %v1119_v62 = vcombine.low %v12421_v28, %v12440_v35  ;;  %v13009_v59 = vsel %vm12455_vm8, %v3145_v45, %v3146_v4  ;;  %v17268_v2 = vrot.slane %v12469_v49, 7  ;;  %v17285_v5 = vld [vmem:[#allocation75_spill] sm:$0xff] }
  0x69   :  { %3403 = vmatprep.mubr.bf16.mxu0 %v17227_v32  ;;  %17256 = vst [vmem:[#allocation96_spill] sm:$0xff] %v13005_v30  ;;  %17257 = vst [vmem:[#allocation97_spill] sm:$0xff] %v13009_v59  ;;  %v13018_v3 = vrot.slane %v3449_v10, %v12394_v17  ;;  %v3237_v60 = vcombine.low %v12995_v34, %v13009_v59  ;;  %v3430_v12 = vcombine.low %v12444_v38, %v12465_v48  ;;  %v10229_v38 = vld [vmem:[%s16872_s1 + $0x68] sm:$0x11] }
  0x6a   :  { %17258 = vst [vmem:[#allocation98_spill] sm:$0xff] %v13012_v52  ;;  %v13023_v19 = vrot.slane %v3236_v27, %v12394_v17  ;;  %v3439_v4 = vcombine.low %v12489_v56, %v12462_v47  ;;  %v13030_v46 = vrot.slane %v148_v9, %v12394_v17  ;;  %v5894_v55 = vcombine.low %v13005_v30, %v13015_v33 }
  0x6b   :  { %v5895_v45 = vcombine.low %v13018_v3, %v13012_v52  ;;  %v13037_v10 = vrot.slane %v3237_v60, %v12394_v17  ;;  %v13040_v27 = vrot.slane %v96_v63, %v12394_v17  ;;  %v13050_v9 = vrot.slane %v1119_v62, %v12394_v17 }
  0x6c   :  { %17259 = vst [vmem:[#allocation99_spill] sm:$0xff] %v13023_v19  ;;  %17260 = vst [vmem:[#allocation100_spill] sm:$0xff] %v13030_v46  ;;  %v3437_v57 = vrot.slane %v3430_v12, %v12394_v17  ;;  %v3446_v60 = vrot.slane %v3439_v4, %v12394_v17  ;;  %v13056_v63 = vcombine.high %v13030_v46, %v13030_v46 }
  0x6d   :  { %17261 = vst [vmem:[#allocation101_spill] sm:$0xff] %v13037_v10  ;;  %v13042_v59 = vpack.c.bf16 %v5895_v45, %v5894_v55  ;;  %v3252_v47 = vcombine.low %v13023_v19, %v13037_v10  ;;  %17263 = vst [vmem:[#allocation103_spill] sm:$0xff] %v13050_v9  ;;  %v13060_v45 = vcombine.high %v13040_v27, %v13040_v27  ;;  %v10211_v35 = vrot.slane %v13040_v27, 9 }
  0x6e   :  { %17264 = vst [vmem:[#allocation104_spill] sm:$0xff] %v13056_v63  ;;  %v3465_v62 = vcombine.low %v12615_v20, %v12693_v0  ;;  %v3438_v12 = vcombine.low %v13050_v9, %v3437_v57  ;;  %v3447_v4 = vcombine.low %v3446_v60, %v13005_v30  ;;  %v10237_v10 = vcombine.high %v10229_v38, %v10229_v38  ;;  %v11747_v57 = vld [vmem:[%s16872_s1 + $0x230] ss:$8 sps:$4 sm:$0xff]  }
  0x6f   :  { %17262 = vst [vmem:[#allocation102_spill] sm:$0xff] %v13042_v59  ;;  %v3266_v55 = vpack.c.bf16 %v3252_v47, %v3252_v47  ;;  %v11770_v59 = vld [vmem:[%s16872_s1 + $0x4] ss:$8 sps:$4 sm:$0xff]   ;;  %v10236_v19 = vcombine.low %v10229_v38, %v10229_v38  ;;  %v535_v20 = vrot.slane %v13060_v45, 7  ;;  %v538_v38 = vrot.slane %v13030_v46, 7 }
  0x70   :  { %10238 = vmatprep.subr.msk.bf16.mxu1 %vm526_vm2, %v10237_v10  ;;  %v10212_v60 = vrot.slane %v12411_v25, 9  ;;  %v10213_v10 = vrot.slane %v12447_v40, 9  ;;  %v3544_v47 = vpack.c.bf16 %v3447_v4, %v3438_v12  ;;  %v17266_v30 = vrot.slane %v12425_v29, 7  ;;  %v11755_v4 = vld [vmem:[%s16872_s1 + $0x244] ss:$8 sps:$4 sm:$0xff]  }
  0x71   :  { %10432 = vmatmul.mubr.msk.bf16.gmra.mrb[16].mxu0 %vm21_vm0, %v3266_v55  ;;  %v879_v56 = vsel %vm526_vm2, %v10236_v19, 0  ;;  %v13077_v55 = vrot.slane %v3465_v62, %v12394_v17  ;;  %v536_v19 = vsel %vm12455_vm8, %v10211_v35, %v535_v20  ;;  %v537_v1 = vrot.slane %v535_v20, 2 }
  0x72   :  { %3645 = vmatprep.mubr.bf16.mxu0 %v17227_v32  ;;  %891 = vmatpush1.bf16.msra.mxu1 %v879_v56  ;;  %v1188_v62 = vcombine.low %v12665_v22, %v12708_v39  ;;  %v540_v11 = vrot.slane %v538_v38, 2  ;;  %v13093_v56 = vsel %vm12455_vm8, %v10212_v60, %v17266_v30  ;;  %v13099_v12 = vsel %vm12455_vm8, %v10213_v10, %v17268_v2 }
  0x73   :  { %17265 = vst [vmem:[#allocation105_spill] sm:$0xff] %v13077_v55  ;;  %1021 = vmatprep.subr.bf16.mxu1 %v11770_v59  ;;  %17267 = vst [vmem:[#allocation106_spill] sm:$0xff] %v13093_v56  ;;  %v3464_v35 = vcombine.low %v13015_v33, %v13018_v3  ;;  %v3474_v59 = vcombine.low %v12769_v6, %v12747_v41  ;;  %v13110_v30 = vsel %vm12455_vm8, %v537_v1, %v538_v38 }
  0x74   :  { %17269 = vst [vmem:[#allocation107_spill] sm:$0xff] %v13099_v12  ;;  %17270 = vst [vmem:[#allocation108_spill] sm:$0xff] %v13110_v30  ;;  %v671_v20 = vcombine.low %v13099_v12, %v12514_v8  ;;  %v3473_v2 = vcombine.low %v13012_v52, %v13077_v55  ;;  %v3483_v33 = vcombine.low %v12704_v16, %v12714_v21  ;;  %v17271_v3 = vrot.slane %v13056_v63, 7 }
  0x75   :  { %v653_v60 = vcombine.low %v536_v19, %v13110_v30  ;;  %v3484_v1 = vcombine.low %v12734_v18, %v12726_v23  ;;  %v10214_v19 = vrot.slane %v12450_v42, 9 }
  0x76   :  { %v13122_v41 = vsel %vm12455_vm8, %v540_v11, %v17271_v3  ;;  %v13131_v10 = vrot.slane %v671_v20, %v12394_v17  ;;  %v13137_v11 = vrot.slane %v1188_v62, %v12394_v17  ;;  %v13145_v20 = vrot.slane %v3474_v59, %v12394_v17  ;;  %v11761_v62 = vld [vmem:[%s16872_s1 + $0x254] ss:$8 sps:$4 sm:$0xff]  }
  0x77   :  { %17272 = vst [vmem:[#allocation109_spill] sm:$0xff] %v13122_v41  ;;  %v654_v38 = vcombine.low %v13122_v41, %v13093_v56  ;;  %v661_v23 = vrot.slane %v653_v60, %v12394_v17  ;;  %v1221_v3 = vcombine.low %v12814_v53, %v12845_v26  ;;  %v3545_v55 = vpack.c.bf16 %v3473_v2, %v3464_v35  ;;  %v11759_v35 = vld [vmem:[%s16872_s1 + $0x250] ss:$8 sps:$4 sm:$0xff]  }
  0x78   :  { %17273 = vst [vmem:[#allocation110_spill] sm:$0xff] %v13137_v11  ;;  %17274 = vst [vmem:[#allocation111_spill] sm:$0xff] %v13145_v20  ;;  %v686_v60 = vcombine.low %v12532_v15, %v13131_v10  ;;  %v3491_v59 = vrot.slane %v3483_v33, %v12394_v17  ;;  %v1239_v26 = vcombine.low %v12849_v58, %v12872_v7  ;;  %v10216_v56 = vrot.slane %v12563_v37, 9  ;;  %v17277_v33 = vld [vmem:[#allocation20_spill] sm:$0xff]  ;;  %v17286_v41 = vld [vmem:[#allocation74_spill] sm:$0xff] }
  0x79   :  { %10449 = vmatmul.mubr.msk.bf16.vlgmr.msra.gmra.mrb[0].mxu0 %vm21_vm0, %v3544_v47  ;;  %v11753_v47 = vld [vmem:[%s16872_s1 + $0x240] ss:$8 sps:$4 sm:$0xff]   ;;  %v668_v16 = vrot.slane %v654_v38, %v12394_v17  ;;  %v3498_v39 = vrot.slane %v3484_v1, %v12394_v17  ;;  %v10215_v38 = vrot.slane %v12557_v31, 9  ;;  %v3500_v15 = vcombine.low %v12862_v14, %v12831_v24  ;;  %v17282_v14 = vld [vmem:[#allocation31_spill] sm:$0xff] }
  0x7a   :  { %3655 = vmatprep.mubr.bf16.mxu0 %v17227_v32  ;;  %3882 = vmatpush1.bf16.msra.mxu0 %v11747_v57  ;;  %v10460_v57 = vld [vmem:[%s16872_s1 + $0x260] sm:$0x11] }
  0x7b   :  { %3883 = vmatprep.subr.bf16.mxu0 %v11755_v4  ;;  %v17275_v4 = vrot.slane %v12476_v51, 7  ;;  %v669_v12 = vcombine.low %v661_v23, %v668_v16  ;;  %v10468_v2 = vcombine.high %v10460_v57, %v10460_v57  ;;  %v10467_v16 = vcombine.low %v10460_v57, %v10460_v57  ;;  %v17279_v23 = vld [vmem:[#allocation28_spill] sm:$0xff] }
  0x7c   :  { %v17280_v6 = vrot.slane %v17279_v23, 7  ;;  %v17288_v57 = vld [vmem:[#allocation36_spill] sm:$0xff] }
  0x7d   :  { %v13165_v18 = vsel %vm12455_vm8, %v10214_v19, %v17275_v4  ;;  %v17278_v4 = vld [vmem:[#allocation42_spill] sm:$0xff]  ;;  %v815_v1 = vpack.c.bf16 %v686_v60, %v669_v12 }
  0x7e   :  { %17276 = vst [vmem:[#allocation112_spill] sm:$0xff] %v13165_v18  ;;  %3884 = vmatpush1.bf16.msra.mxu0 %v11753_v47  ;;  %v687_v19 = vcombine.low %v17277_v33, %v13165_v18  ;;  %v10360_v7 = vrot.slane %v17278_v4, 9  ;;  %v13182_v34 = vsel %vm12455_vm8, %v10215_v38, %v17280_v6  ;;  %v17283_v47 = vrot.slane %v17282_v14, 7  ;;  %v11768_v6 = vld [vmem:[%s16872_s1] ss:$8 sps:$4 sm:$0xff]  }
  0x7f   :  { %3885 = vmatprep.subr.bf16.mxu0 %v11761_v62  ;;  %17281 = vst [vmem:[#allocation113_spill] sm:$0xff] %v13182_v34  ;;  %v3509_v18 = vcombine.low %v17286_v41, %v17285_v5  ;;  %v17287_v62 = vld [vmem:[#allocation34_spill] sm:$0xff]  ;;  %v3499_v38 = vcombine.low %v3491_v59, %v3498_v39  ;;  %10239 = vmatmul.mubr.msk.bf16.vlgmr.msra.gmra.mrb[0].mxu1 %vm21_vm0, %v815_v1  ;;  %v17289_v5 = vld [vmem:[#allocation44_spill] sm:$0xff] }
  0x80   :  { %v13188_v9 = vsel %vm12455_vm8, %v10216_v56, %v17283_v47  ;;  %v695_v30 = vrot.slane %v687_v19, %v12394_v17  ;;  %v704_v12 = vcombine.low %v13182_v34, %v17287_v62  ;;  %v3482_v56 = vcombine.low %v13145_v20, %v13137_v11  ;;  %v11776_v41 = vld [vmem:[%s16872_s1 + $0x14] ss:$8 sps:$4 sm:$0xff]   ;;  %926 = vmatprep.mubr.bf16.mxu1 %v17227_v32  ;;  %v17295_v1 = vld [vmem:[#allocation24_spill] sm:$0xff] }
  0x81   :  { %17284 = vst [vmem:[#allocation114_spill] sm:$0xff] %v13188_v9  ;;  %v705_v60 = vcombine.low %v17288_v57, %v13188_v9  ;;  %10450 = vmatmul.mubr.msk.bf16.gmra.mrb[4].mxu0 %vm21_vm0, %v3545_v55  ;;  %v17290_v19 = vrot.slane %v17289_v5, 7  ;;  %v13215_v55 = vrot.slane %v1221_v3, %v12394_v17  ;;  %v13218_v20 = vrot.slane %v1239_v26, %v12394_v17  ;;  %v11773_v26 = vld [vmem:[%s16872_s1 + $0x26c] ss:$8 sps:$4 sm:$0xff]   ;;  %v116_v11 = vld [vmem:[#allocation2 + $0xa0] sm:$0xff] }
  0x82   :  { %3665 = vmatprep.mubr.bf16.mxu0 %v17227_v32  ;;  %3886 = vmatpush1.bf16.msra.mxu0 %v11759_v35  ;;  %v712_v39 = vrot.slane %v704_v12, %v12394_v17  ;;  %v13222_v59 = vrot.slane %v3500_v15, %v12394_v17  ;;  %v13235_v35 = vrot.slane %v3509_v18, %v12394_v17  ;;  %v17297_v12 = vld [vmem:[#allocation52_spill] sm:$0xff] }
  0x83   :  { %v13208_v47 = vsel %vm12455_vm8, %v10360_v7, %v17290_v19  ;;  %17292 = vst [vmem:[#allocation44_spill] sm:$0xff] %v13215_v55  ;;  %17293 = vst [vmem:[#allocation115_spill] sm:$0xff] %v13218_v20  ;;  %10469 = vmatprep.subr.msk.bf16.mxu0 %vm526_vm2, %v10468_v2  ;;  %v3876_v7 = vsel %vm526_vm2, %v10467_v16, 0  ;;  %v703_v19 = vcombine.low %v695_v30, %v17295_v1  ;;  %1022 = vmatpush1.bf16.msra.mxu1 %v11768_v6 }
  0x84   :  { %17291 = vst [vmem:[#allocation75_spill] sm:$0xff] %v13208_v47  ;;  %17294 = vst [vmem:[#allocation116_spill] sm:$0xff] %v13222_v59  ;;  %v13229_v3 = vrot.slane %v705_v60, %v12394_v17  ;;  %v4002_v15 = vcombine.low %v13131_v10, %v695_v30  ;;  %v4003_v2 = vcombine.low %v17295_v1, %v712_v39  ;;  %v11774_v60 = vld [vmem:[%s16872_s1 + $0x10] ss:$8 sps:$4 sm:$0xff]   ;;  %1023 = vmatprep.subr.bf16.mxu1 %v11776_v41  ;;  %v17300_v1 = vld [vmem:[#allocation81_spill] sm:$0xff] }
  0x85   :  { %17296 = vst [vmem:[#allocation24_spill] sm:$0xff] %v13235_v35  ;;  %v4005_v16 = vcombine.low %v13208_v47, %v17297_v12  ;;  %v3546_v9 = vpack.c.bf16 %v3499_v38, %v3482_v56  ;;  %v17299_v10 = vld [vmem:[#allocation91_spill] sm:$0xff]  ;;  %v3519_v6 = vcombine.low %v12969_v36, %v12950_v54  ;;  %v11782_v56 = vld [vmem:[%s16872_s1 + $0x24] ss:$8 sps:$4 sm:$0xff]   ;;  %v3508_v41 = vcombine.low %v13215_v55, %v13222_v59  ;;  %v11780_v54 = vld [vmem:[%s16872_s1 + $0x20] ss:$8 sps:$4 sm:$0xff]  }
  0x86   :  { %v720_v34 = vcombine.low %v712_v39, %v13229_v3  ;;  %3888 = vmatpush1.bf16.msra.mxu0 %v3876_v7  ;;  %v13248_v30 = vpack.c.bf16 %v4003_v2, %v4002_v15  ;;  %v3518_v62 = vcombine.low %v17300_v1, %v17299_v10  ;;  %v3517_v38 = vcombine.low %v13235_v35, %v13218_v20  ;;  %v17301_v39 = vld [vmem:[#allocation43_spill] sm:$0xff]  ;;  %v17303_v2 = vld [vmem:[#allocation29_spill] sm:$0xff]  ;;  %v17307_v59 = vld [vmem:[#allocation62_spill] sm:$0xff] }
  0x87   :  { %v13246_v18 = vrot.slane %v4005_v16, %v12394_v17  ;;  %4137 = vmatprep.subr.bf16.mxu0 %v11773_v26  ;;  %v244_v15 = vcombine.high %v116_v11, %v116_v11  ;;  %1024 = vmatpush1.bf16.msra.mxu1 %v11774_v60  ;;  %v10218_v16 = vrot.slane %v17303_v2, 9  ;;  %v10220_v35 = vrot.slane %v17307_v59, 9  ;;  %v17309_v20 = vld [vmem:[#allocation67_spill] sm:$0xff] }
  0x88   :  { %17298 = vst [vmem:[#allocation117_spill] sm:$0xff] %v13248_v30  ;;  %v816_v47 = vpack.c.bf16 %v720_v34, %v703_v19  ;;  %v13269_v19 = vrot.slane %v116_v11, %v12394_v17  ;;  %v13277_v60 = vrot.slane %v3518_v62, %v12394_v17  ;;  %1025 = vmatprep.subr.bf16.mxu1 %v11782_v56  ;;  %v10221_v55 = vrot.slane %v17309_v20, 9 }
  0x89   :  { %v6398_v7 = vcombine.low %v17301_v39, %v13246_v18  ;;  %10451 = vmatmul.mubr.msk.bf16.gmra.mrb[8].mxu0 %vm21_vm0, %v3546_v9  ;;  %v13280_v1 = vrot.slane %v244_v15, %v12394_v17  ;;  %v358_v56 = vcombine.low %v12447_v40, %v12469_v49 }
  0x8a   :  { %10240 = vmatmul.mubr.msk.bf16.gmra.mrb[4].mxu1 %vm21_vm0, %v816_v47  ;;  %3675 = vmatprep.mubr.bf16.mxu0 %v17227_v32  ;;  %17304 = vst [vmem:[#allocation43_spill] sm:$0xff] %v13277_v60  ;;  %v13284_v9 = vcombine.high %v13269_v19, %v13269_v19  ;;  %v10217_v11 = vrot.slane %v13269_v19, 9  ;;  %v3547_v47 = vpack.c.bf16 %v3517_v38, %v3508_v41  ;;  %v17310_v38 = vld [vmem:[#allocation41_spill] sm:$0xff] }
  0x8b   :  { %v13272_v26 = vpack.c.bf16 %v6398_v7, %v720_v34  ;;  %936 = vmatprep.mubr.bf16.mxu1 %v17227_v32  ;;  %v13288_v34 = vrot.slane %v3519_v6, %v12394_v17  ;;  %v17306_v7 = vld [vmem:[#allocation45_spill] sm:$0xff]  ;;  %1026 = vmatpush1.bf16.msra.mxu1 %v11780_v54  ;;  %v13294_v62 = vcombine.high %v13280_v1, %v13280_v1  ;;  %v598_v36 = vrot.slane %v13280_v1, 7 }
  0x8c   :  { %v595_v15 = vrot.slane %v13284_v9, 7  ;;  %v374_v6 = vcombine.low %v12465_v48, %v12450_v42  ;;  %v375_v41 = vcombine.low %v12476_v51, %v12472_v50  ;;  %v17311_v54 = vrot.slane %v17310_v38, 7  ;;  %v17313_v51 = vld [vmem:[#allocation48_spill] sm:$0xff] }
  0x8d   :  { %17302 = vst [vmem:[#allocation81_spill] sm:$0xff] %v13272_v26  ;;  %17305 = vst [vmem:[#allocation29_spill] sm:$0xff] %v13288_v34  ;;  %v10219_v26 = vrot.slane %v17306_v7, 9  ;;  %v600_v8 = vrot.slane %v598_v36, 2  ;;  %v3534_v40 = vcombine.low %v13277_v60, %v13288_v34  ;;  %v391_v42 = vcombine.low %v12557_v31, %v17279_v23 }
  0x8e   :  { %17308 = vst [vmem:[#allocation118_spill] sm:$0xff] %v13294_v62  ;;  %v13309_v30 = vsel %vm12455_vm8, %v10218_v16, %v17311_v54  ;;  %v596_v12 = vsel %vm12455_vm8, %v10217_v11, %v595_v15  ;;  %v597_v57 = vrot.slane %v595_v15, 2  ;;  %v17314_v50 = vrot.slane %v17313_v51, 7  ;;  %v17316_v16 = vld [vmem:[#allocation66_spill] sm:$0xff] }
  0x8f   :  { %17312 = vst [vmem:[#allocation119_spill] sm:$0xff] %v13309_v30  ;;  %v17317_v54 = vrot.slane %v17316_v16, 7  ;;  %v110_v15 = vld [vmem:[#allocation2 + $0x70] sm:$0xff]  ;;  %v17320_v34 = vrot.slane %v13294_v62, 7  ;;  %v13359_v48 = vrot.slane %v374_v6, %v12394_v17  ;;  %v399_v62 = vrot.slane %v391_v42, %v12394_v17 }
  0x90   :  { %v13322_v49 = vsel %vm12455_vm8, %v10219_v26, %v17314_v50  ;;  %v13333_v33 = vsel %vm12455_vm8, %v597_v57, %v598_v36  ;;  %v17322_v50 = vld [vmem:[#allocation70_spill] sm:$0xff]  ;;  %v13351_v36 = vrot.slane %v358_v56, %v12394_v17 }
  0x91   :  { %17315 = vst [vmem:[#allocation120_spill] sm:$0xff] %v13322_v49  ;;  %v13328_v11 = vsel %vm12455_vm8, %v10220_v35, %v17317_v54  ;;  %10452 = vmatmul.mubr.msk.bf16.gmra.mrb[12].mxu0 %vm21_vm0, %v3547_v47  ;;  %17319 = vst [vmem:[#allocation122_spill] sm:$0xff] %v13333_v33  ;;  %v13339_v60 = vsel %vm12455_vm8, %v600_v8, %v17320_v34  ;;  %v17323_v26 = vrot.slane %v17322_v50, 7  ;;  %v17325_v35 = vld [vmem:[#allocation57_spill] sm:$0xff]  ;;  %v17326_v34 = vld [vmem:[#allocation58_spill] sm:$0xff] }
  0x92   :  { %17318 = vst [vmem:[#allocation121_spill] sm:$0xff] %v13328_v11  ;;  %17321 = vst [vmem:[#allocation123_spill] sm:$0xff] %v13339_v60  ;;  %v755_v47 = vcombine.low %v13322_v49, %v17325_v35  ;;  %3685 = vmatprep.mubr.bf16.mxu0 %v17227_v32  ;;  %v722_v57 = vcombine.low %v596_v12, %v13333_v33  ;;  %v738_v8 = vcombine.low %v13339_v60, %v13309_v30  ;;  %v17329_v35 = vld [vmem:[#allocation68_spill] sm:$0xff]  ;;  %v17331_v33 = vld [vmem:[#allocation65_spill] sm:$0xff] }
  0x93   :  { %v13345_v31 = vsel %vm12455_vm8, %v10221_v55, %v17323_v26  ;;  %v756_v54 = vcombine.low %v17326_v34, %v13328_v11  ;;  %v13362_v55 = vrot.slane %v375_v41, %v12394_v17  ;;  %v17328_v26 = vld [vmem:[#allocation79_spill] sm:$0xff]  ;;  %v10222_v56 = vrot.slane %v17329_v35, 9 }
  0x94   :  { %17324 = vst [vmem:[#allocation70_spill] sm:$0xff] %v13345_v31  ;;  %v773_v49 = vcombine.low %v13345_v31, %v17328_v26  ;;  %v13369_v12 = vrot.slane %v110_v15, %v12394_v17  ;;  %v736_v30 = vrot.slane %v722_v57, %v12394_v17  ;;  %v746_v11 = vrot.slane %v738_v8, %v12394_v17  ;;  %v513_v57 = vld [vmem:[%s16872_s1 + $0x30] sm:$0x11] }
  0x95   :  { %17327 = vst [vmem:[#allocation124_spill] sm:$0xff] %v13362_v55  ;;  %v3548_v34 = vpack.c.bf16 %v3534_v40, %v3534_v40  ;;  %v13374_v6 = vrot.slane %v755_v47, %v12394_v17  ;;  %v13379_v31 = vrot.slane %v756_v54, %v12394_v17  ;;  %v3746_v40 = vcombine.low %v13351_v36, %v13359_v48 }
  0x96   :  { %17330 = vst [vmem:[#allocation125_spill] sm:$0xff] %v13369_v12  ;;  %v737_v41 = vcombine.low %v17301_v39, %v736_v30  ;;  %v754_v60 = vcombine.low %v746_v11, %v17331_v33  ;;  %v13382_v42 = vrot.slane %v773_v49, %v12394_v17  ;;  %v392_v47 = vcombine.low %v12569_v44, %v12563_v37  ;;  %v17333_v33 = vld [vmem:[#allocation73_spill] sm:$0xff] }
  0x97   :  { %v408_v30 = vcombine.low %v17282_v14, %v12587_v61  ;;  %v17334_v11 = vrot.slane %v17333_v33, 7  ;;  %v3747_v49 = vcombine.low %v13362_v55, %v399_v62  ;;  %v3749_v54 = vcombine.low %v17278_v4, %v17289_v5  ;;  %v17336_v14 = vld [vmem:[#allocation80_spill] sm:$0xff] }
  0x98   :  { %17332 = vst [vmem:[#allocation65_spill] sm:$0xff] %v13382_v42  ;;  %v3750_v26 = vcombine.low %v12693_v0, %v13369_v12  ;;  %v817_v52 = vpack.c.bf16 %v754_v60, %v737_v41  ;;  %v3714_v37 = vcombine.high %v110_v15, %v110_v15  ;;  %v10251_v23 = vcombine.high %v513_v57, %v513_v57  ;;  %v17337_v60 = vld [vmem:[#allocation85_spill] sm:$0xff] }
  0x99   :  { %v13397_v8 = vsel %vm12455_vm8, %v10222_v56, %v17334_v11  ;;  %10453 = vmatmul.mubr.msk.bf16.gmra.mrb[16].mxu0 %vm21_vm0, %v3548_v34  ;;  %v10250_v44 = vcombine.low %v513_v57, %v513_v57  ;;  %v11793_v56 = vld [vmem:[%s16872_s1 + $0x74] ss:$8 sps:$4 sm:$0xff]   ;;  %v771_v11 = vcombine.low %v13374_v6, %v13379_v31  ;;  %v788_v34 = vcombine.low %v17337_v60, %v13382_v42 }
  0x9a   :  { %17335 = vst [vmem:[#allocation126_spill] sm:$0xff] %v13397_v8  ;;  %v789_v61 = vcombine.low %v17336_v14, %v13397_v8  ;;  %3913 = vmatprep.mubr.bf16.mxu0 %v17227_v32  ;;  %10241 = vmatmul.mubr.msk.bf16.gmra.mrb[8].mxu1 %vm21_vm0, %v817_v52  ;;  %v406_v15 = vrot.slane %v392_v47, %v12394_v17 }
  0x9b   :  { %v13418_v41 = vrot.slane %v408_v30, %v12394_v17  ;;  %946 = vmatprep.mubr.bf16.mxu1 %v17227_v32  ;;  %10252 = vmatprep.subr.msk.bf16.mxu1 %vm526_vm2, %v10251_v23  ;;  %v1016_v57 = vsel %vm526_vm2, %v10250_v44, 0  ;;  %v3757_v8 = vrot.slane %v3749_v54, %v12394_v17  ;;  %v13425_v52 = vrot.slane %v3750_v26, %v12394_v17 }
  0x9c   :  { %1028 = vmatpush1.bf16.msra.mxu1 %v1016_v57  ;;  %v3812_v4 = vpack.c.bf16 %v3747_v49, %v3746_v40  ;;  %v13428_v14 = vrot.slane %v3714_v37, %v12394_v17  ;;  %v13432_v47 = vcombine.high %v13369_v12, %v13369_v12  ;;  %v13435_v30 = vrot.slane %v789_v61, %v12394_v17  ;;  %v11771_v61 = vld [vmem:[%s16872_s1 + $0x268] ss:$8 sps:$4 sm:$0xff]  }
  0x9d   :  { %17338 = vst [vmem:[#allocation127_spill] sm:$0xff] %v13418_v41  ;;  %17339 = vst [vmem:[#allocation128_spill] sm:$0xff] %v13425_v52  ;;  %1333 = vmatprep.subr.bf16.mxu1 %v11793_v56  ;;  %v818_v23 = vpack.c.bf16 %v788_v34, %v771_v11  ;;  %v10475_v44 = vrot.slane %v13369_v12, 9  ;;  %v3748_v54 = vcombine.low %v406_v15, %v13418_v41  ;;  %v11779_v56 = vld [vmem:[%s16872_s1 + $0x27c] ss:$8 sps:$4 sm:$0xff]  }
  0x9e   :  { %17340 = vst [vmem:[#allocation129_spill] sm:$0xff] %v13432_v47  ;;  %v442_v26 = vcombine.low %v17306_v7, %v17313_v51  ;;  %v443_v37 = vcombine.low %v12714_v21, %v17307_v59  ;;  %v459_v40 = vcombine.low %v17316_v16, %v12814_v53  ;;  %v3765_v49 = vcombine.low %v3757_v8, %v13425_v52  ;;  %v17341_v53 = vld [vmem:[#allocation88_spill] sm:$0xff] }
  0x9f   :  { %v13452_v11 = vcombine.low %v399_v62, %v406_v15  ;;  %v6146_v34 = vcombine.low %v13418_v41, %v3757_v8  ;;  %v17072_v57 = vrot.slane %v13432_v47, 7  ;;  %v3766_v16 = vcombine.low %v13432_v47, %v13428_v14 }
  0xa0   :  { %v13461_v7 = vcombine.low %v13435_v30, %v17341_v53  ;;  %v340_v52 = vcombine.low %v13040_v27, %v13060_v45  ;;  %v341_v62 = vcombine.low %v13030_v46, %v12411_v25  ;;  %v13481_v27 = vrot.slane %v443_v37, %v12394_v17 }
  0xa1   :  { %10470 = vmatmul.mubr.msk.bf16.vlgmr.msra.gmra.mrb[0].mxu0 %vm21_vm0, %v3812_v4  ;;  %v357_v4 = vcombine.low %v12425_v29, %v12421_v28  ;;  %v13472_v8 = vpack.c.bf16 %v6146_v34, %v13452_v11  ;;  %v13478_v15 = vsel %vm12455_vm8, %v10475_v44, %v17072_v57  ;;  %v13484_v12 = vrot.slane %v459_v40, %v12394_v17  ;;  %v17346_v34 = vld [vmem:[#allocation61_spill] sm:$0xff] }
  0xa2   :  { %17342 = vst [vmem:[#allocation130_spill] sm:$0xff] %v13461_v7  ;;  %3923 = vmatprep.mubr.bf16.mxu0 %v17227_v32  ;;  %10242 = vmatmul.mubr.msk.bf16.gmra.mrb[12].mxu1 %vm21_vm0, %v818_v23  ;;  %17344 = vst [vmem:[#allocation132_spill] sm:$0xff] %v13478_v15  ;;  %v11777_v23 = vld [vmem:[%s16872_s1 + $0x278] ss:$8 sps:$4 sm:$0xff]   ;;  %v13493_v29 = vrot.slane %v442_v26, %v12394_v17  ;;  %v11786_v44 = vld [vmem:[%s16872_s1 + $0x28c] ss:$8 sps:$4 sm:$0xff]   ;;  %v3813_v37 = vpack.c.bf16 %v3765_v49, %v3748_v54 }
  0xa3   :  { %17343 = vst [vmem:[#allocation131_spill] sm:$0xff] %v13472_v8  ;;  %17345 = vst [vmem:[#allocation133_spill] sm:$0xff] %v13484_v12  ;;  %4138 = vmatpush1.bf16.msra.mxu0 %v11771_v61  ;;  %956 = vmatprep.mubr.bf16.mxu1 %v17227_v32  ;;  %v4006_v8 = vcombine.low %v17346_v34, %v13478_v15  ;;  %v13499_v40 = vrot.slane %v3766_v16, %v12394_v17  ;;  %v10483_v61 = vld [vmem:[%s16872_s1 + $0x298] sm:$0x11] }
  0xa4   :  { %4139 = vmatprep.subr.bf16.mxu0 %v11779_v56  ;;  %v4004_v57 = vcombine.low %v13229_v3, %v17301_v39  ;;  %v819_v26 = vpack.c.bf16 %v13461_v7, %v13461_v7  ;;  %v130_v56 = vld [vmem:[#allocation2 + $0x110] sm:$0xff]  ;;  %v348_v28 = vrot.slane %v340_v52, %v12394_v17  ;;  %v355_v54 = vrot.slane %v341_v62, %v12394_v17 }
  0xa5   :  { %17347 = vst [vmem:[#allocation61_spill] sm:$0xff] %v13499_v40  ;;  %v13507_v15 = vrot.slane %v4006_v8, %v12394_v17  ;;  %v13514_v16 = vrot.slane %v357_v4, %v12394_v17  ;;  %v3775_v49 = vcombine.low %v13481_v27, %v13484_v12  ;;  %v460_v3 = vcombine.low %v17309_v20, %v17322_v50  ;;  %v11784_v8 = vld [vmem:[%s16872_s1 + $0x288] ss:$8 sps:$4 sm:$0xff]   ;;  %v17350_v4 = vld [vmem:[#allocation87_spill] sm:$0xff] }
  0xa6   :  { %v476_v39 = vcombine.low %v12831_v24, %v17329_v35  ;;  %v477_v62 = vcombine.low %v17333_v33, %v12849_v58  ;;  %v3777_v7 = vcombine.low %v17350_v4, %v12957_v13  ;;  %v10491_v59 = vcombine.high %v10483_v61, %v10483_v61  ;;  %v17365_v58 = vld [vmem:[#allocation18_spill] sm:$0xff] }
  0xa7   :  { %17348 = vst [vmem:[#allocation134_spill] sm:$0xff] %v13507_v15  ;;  %17349 = vst [vmem:[#allocation135_spill] sm:$0xff] %v13514_v16  ;;  %4140 = vmatpush1.bf16.msra.mxu0 %v11777_v23  ;;  %v4021_v52 = vcombine.low %v13246_v18, %v13507_v15  ;;  %v10490_v20 = vcombine.low %v10483_v61, %v10483_v61  ;;  %v3774_v23 = vcombine.low %v13499_v40, %v13493_v29  ;;  %v13543_v61 = vld.sshfl [vmem:[#allocation2 + $0x8] sm:$0x3 pattern:$0x76325410] }
  0xa8   :  { %4141 = vmatprep.subr.bf16.mxu0 %v11786_v44  ;;  %v3730_v35 = vcombine.high %v130_v56, %v130_v56  ;;  %v13535_v51 = vrot.slane %v130_v56, %v12394_v17  ;;  %v356_v18 = vcombine.low %v348_v28, %v355_v54  ;;  %v373_v44 = vcombine.low %v13514_v16, %v13351_v36  ;;  %v11796_v36 = vld [vmem:[%s16872_s1 + $0x2a4] ss:$8 sps:$4 sm:$0xff]   ;;  %v17359_v40 = vld [vmem:[#allocation26_spill] sm:$0xff] }
  0xa9   :  { %10471 = vmatmul.mubr.msk.bf16.gmra.mrb[4].mxu0 %vm21_vm0, %v3813_v37  ;;  %v13537_v21 = vpack.c.bf16 %v4021_v52, %v4004_v57  ;;  %17351 = vst [vmem:[#allocation136_spill] sm:$0xff] %v13543_v61  ;;  %v13546_v37 = vrot.slane %v460_v3, %v12394_v17  ;;  %v13550_v56 = vrot.slane %v476_v39, %v12394_v17  ;;  %v4132_v28 = vsel %vm526_vm2, %v10490_v20, 0  ;;  %v11791_v20 = vld [vmem:[%s16872_s1 + $0x70] ss:$8 sps:$4 sm:$0xff]   ;;  %v17358_v15 = vld [vmem:[#allocation28_spill] sm:$0xff] }
  0xaa   :  { %3933 = vmatprep.mubr.bf16.mxu0 %v17227_v32  ;;  %10243 = vmatmul.mubr.msk.bf16.gmra.mrb[16].mxu1 %vm21_vm0, %v819_v26  ;;  %v13553_v57 = vrot.slane %v477_v62, %v12394_v17  ;;  %v13556_v26 = vrot.slane %v3777_v7, %v12394_v17  ;;  %v3814_v54 = vpack.c.bf16 %v3775_v49, %v3774_v23  ;;  %v1529_v7 = vrot.slane %v13543_v61, 7  ;;  %v11799_v23 = vld [vmem:[%s16872_s1 + $0x84] ss:$8 sps:$4 sm:$0xff]  }
  0xab   :  { %17352 = vst [vmem:[#allocation137_spill] sm:$0xff] %v13546_v37  ;;  %4142 = vmatpush1.bf16.msra.mxu0 %v11784_v8  ;;  %1053 = vmatprep.mubr.bf16.mxu1 %v17227_v32  ;;  %v13564_v3 = vrot.slane %v3730_v35, %v12394_v17  ;;  %v13568_v39 = vcombine.high %v13535_v51, %v13535_v51 }
  0xac   :  { %17353 = vst [vmem:[#allocation138_spill] sm:$0xff] %v13553_v57  ;;  %17354 = vst [vmem:[#allocation139_spill] sm:$0xff] %v13556_v26  ;;  %10492 = vmatprep.subr.msk.bf16.mxu0 %vm526_vm2, %v10491_v59  ;;  %v502_v8 = vpack.c.bf16 %v373_v44, %v356_v18  ;;  %v17356_v59 = vrot.slane %v13056_v63, 7  ;;  %v3776_v49 = vcombine.low %v13546_v37, %v13550_v56 }
  0xad   :  { %17355 = vst [vmem:[#allocation140_spill] sm:$0xff] %v13568_v39  ;;  %v3785_v35 = vcombine.low %v13553_v57, %v13556_v26  ;;  %v3786_v62 = vcombine.low %v17299_v10, %v13535_v51  ;;  %v3787_v18 = vcombine.low %v13568_v39, %v13564_v3  ;;  %v390_v44 = vcombine.low %v13359_v48, %v13362_v55  ;;  %v11797_v48 = vld [vmem:[%s16872_s1 + $0x80] ss:$8 sps:$4 sm:$0xff]   ;;  %v11805_v55 = vld [vmem:[%s16872_s1 + $0x94] ss:$8 sps:$4 sm:$0xff]  }
  0xae   :  { %v1528_v52 = vrot.slane %v17356_v59, 2  ;;  %v425_v59 = vcombine.low %v13280_v1, %v17303_v2  ;;  %v2310_v33 = vcombine.low %v17289_v5, %v12693_v0 }
  0xaf   :  { %4144 = vmatpush1.bf16.msra.mxu0 %v4132_v28  ;;  %v409_v28 = vcombine.low %v13269_v19, %v13284_v9 }
  0xb0   :  { %4355 = vmatprep.subr.bf16.mxu0 %v11796_v36  ;;  %v426_v36 = vcombine.low %v17310_v38, %v12665_v22  ;;  %v1530_v19 = vsel %vm12455_vm8, %v1528_v52, %v1529_v7  ;;  %v503_v7 = vpack.c.bf16 %v13452_v11, %v390_v44  ;;  %v11803_v11 = vld [vmem:[%s16872_s1 + $0x90] ss:$8 sps:$4 sm:$0xff]  }
  0xb1   :  { %10472 = vmatmul.mubr.msk.bf16.gmra.mrb[8].mxu0 %vm21_vm0, %v3814_v54  ;;  %v17357_v54 = vld [vmem:[#allocation27_spill] sm:$0xff]  ;;  %v423_v52 = vrot.slane %v409_v28, %v12394_v17  ;;  %v17363_v28 = vld [vmem:[#allocation98_spill] sm:$0xff] }
  0xb2   :  { %3943 = vmatprep.mubr.bf16.mxu0 %v17227_v32  ;;  %10253 = vmatmul.mubr.msk.bf16.vlgmr.msra.gmra.mrb[0].mxu1 %vm21_vm0, %v502_v8  ;;  %v1153_v26 = vcombine.low %v17358_v15, %v17357_v54  ;;  %v10260_v16 = vcombine.high %v17357_v54, %v17359_v40  ;;  %v3815_v8 = vpack.c.bf16 %v3785_v35, %v3776_v49  ;;  %v10270_v49 = vld [vmem:[%s16872_s1 + $0xa0] sm:$0x11]  ;;  %v17372_v22 = vld [vmem:[#allocation35_spill] sm:$0xff]  ;;  %v17373_v38 = vld [vmem:[#allocation22_spill] sm:$0xff] }
  0xb3   :  { %1063 = vmatprep.mubr.bf16.mxu1 %v17227_v32  ;;  %1334 = vmatpush1.bf16.msra.mxu1 %v11791_v20  ;;  %v13617_v20 = vrot.slane %v3786_v62, %v12394_v17  ;;  %v13620_v40 = vrot.slane %v3787_v18, %v12394_v17  ;;  %v13629_v35 = vrot.slane %v426_v36, %v12394_v17 }
  0xb4   :  { %1335 = vmatprep.subr.bf16.mxu1 %v11799_v23  ;;  %v13612_v15 = vrot.slane %v10260_v16, %v12394_v17  ;;  %v433_v16 = vrot.slane %v425_v59, %v12394_v17  ;;  %v13632_v5 = vrot.slane %v1153_v26, %v12394_v17  ;;  %v13635_v62 = vrot.slane %v2310_v33, %v12394_v17  ;;  %v17364_v26 = vld [vmem:[#allocation14_spill] sm:$0xff]  ;;  %v17366_v33 = vld [vmem:[#allocation15_spill] sm:$0xff] }
  0xb5   :  { %17360 = vst [vmem:[#allocation27_spill] sm:$0xff] %v13617_v20  ;;  %17361 = vst [vmem:[#allocation28_spill] sm:$0xff] %v13620_v40  ;;  %v10278_v23 = vcombine.high %v10270_v49, %v10270_v49  ;;  %v10277_v18 = vcombine.low %v10270_v49, %v10270_v49  ;;  %v1565_v36 = vcombine.low %v1530_v19, %v17364_v26  ;;  %v17368_v19 = vld [vmem:[#allocation20_spill] sm:$0xff]  ;;  %v17369_v26 = vld [vmem:[#allocation19_spill] sm:$0xff] }
  0xb6   :  { %17362 = vst [vmem:[#allocation141_spill] sm:$0xff] %v13629_v35  ;;  %v13642_v44 = vcombine.low %v13632_v5, %v13612_v15  ;;  %v6628_v59 = vcombine.low %v17363_v28, %v13635_v62  ;;  %v1581_v61 = vcombine.low %v17366_v33, %v17365_v58  ;;  %v441_v49 = vcombine.low %v433_v16, %v13629_v35  ;;  %v17370_v58 = vld [vmem:[#allocation21_spill] sm:$0xff]  ;;  %v17371_v33 = vld [vmem:[#allocation23_spill] sm:$0xff] }
  0xb7   :  { %1336 = vmatpush1.bf16.msra.mxu1 %v11797_v48  ;;  %v3802_v48 = vcombine.low %v13617_v20, %v13620_v40  ;;  %v1582_v10 = vcombine.low %v17369_v26, %v17368_v19  ;;  %v1599_v20 = vcombine.low %v17373_v38, %v17372_v22  ;;  %v17375_v40 = vld [vmem:[#allocation34_spill] sm:$0xff]  ;;  %v13670_v16 = vcombine.high %v13428_v14, %v13428_v14 }
  0xb8   :  { %1337 = vmatprep.subr.bf16.mxu1 %v11805_v55  ;;  %v424_v55 = vcombine.low %v13418_v41, %v423_v52  ;;  %v13657_v63 = vpack.c.bf16 %v6628_v59, %v13642_v44  ;;  %v3987_v59 = vrot.slane %v13428_v14, 7  ;;  %v1328_v26 = vsel %vm526_vm2, %v10277_v18, 0  ;;  %v11815_v22 = vld [vmem:[%s16872_s1 + $0xac] ss:$8 sps:$4 sm:$0xff]  }
  0xb9   :  { %10473 = vmatmul.mubr.msk.bf16.gmra.mrb[12].mxu0 %vm21_vm0, %v3815_v8  ;;  %v1598_v8 = vcombine.low %v17371_v33, %v17370_v58  ;;  %v3816_v33 = vpack.c.bf16 %v3802_v48, %v3802_v48  ;;  %v1589_v19 = vrot.slane %v1581_v61, %v12394_v17  ;;  %v13685_v38 = vrot.slane %v1582_v10, %v12394_v17  ;;  %v17379_v48 = vld [vmem:[#allocation52_spill] sm:$0xff]  ;;  %v13695_v61 = vld.sshfl [vmem:[#allocation2 + $0xa8] sm:$0x3 pattern:$0x76325410] }
  0xba   :  { %3953 = vmatprep.mubr.bf16.mxu0 %v17227_v32  ;;  %10254 = vmatmul.mubr.msk.bf16.gmra.mrb[4].mxu1 %vm21_vm0, %v503_v7  ;;  %17367 = vst [vmem:[#allocation98_spill] sm:$0xff] %v13657_v63  ;;  %v17374_v7 = vld [vmem:[#allocation36_spill] sm:$0xff]  ;;  %v504_v41 = vpack.c.bf16 %v441_v49, %v424_v55  ;;  %v13691_v18 = vrot.slane %v1599_v20, %v12394_v17  ;;  %17380 = vst [vmem:[#allocation18_spill] sm:$0xff] %v13695_v61  ;;  %v3989_v10 = vrot.slane %v3987_v59, 2 }
  0xbb   :  { %1073 = vmatprep.mubr.bf16.mxu1 %v17227_v32  ;;  %1338 = vmatpush1.bf16.msra.mxu1 %v11803_v11  ;;  %v1615_v52 = vcombine.low %v17375_v40, %v17374_v7  ;;  %v1579_v11 = vrot.slane %v1565_v36, %v12394_v17  ;;  %v17376_v40 = vld [vmem:[#allocation108_spill] sm:$0xff]  ;;  %v17377_v7 = vld [vmem:[#allocation109_spill] sm:$0xff]  ;;  %v2630_v36 = vcombine.low %v17379_v48, %v17346_v34  ;;  %v17106_v49 = vrot.slane %v13670_v16, 7 }
  0xbc   :  { %10279 = vmatprep.subr.msk.bf16.mxu1 %vm526_vm2, %v10278_v23  ;;  %v17378_v63 = vcombine.low %v17376_v40, %v17377_v7  ;;  %v13688_v23 = vrot.slane %v1598_v8, %v12394_v17  ;;  %v17382_v8 = vld [vmem:[#allocation49_spill] sm:$0xff]  ;;  %v17383_v40 = vld [vmem:[#allocation38_spill] sm:$0xff]  ;;  %v458_v34 = vcombine.low %v13493_v29, %v13481_v27  ;;  %v1597_v29 = vcombine.low %v1589_v19, %v13685_v38 }
  0xbd   :  { %v13698_v58 = vrot.slane %v1615_v52, %v12394_v17  ;;  %v1632_v20 = vcombine.low %v17383_v40, %v17382_v8  ;;  %v475_v52 = vcombine.low %v13484_v12, %v13546_v37  ;;  %v17384_v7 = vld [vmem:[#allocation118_spill] sm:$0xff]  ;;  %v13716_v8 = vrot.slane %v2630_v36, %v12394_v17  ;;  %v17387_v36 = vld [vmem:[#allocation37_spill] sm:$0xff] }
  0xbe   :  { %v1572_v35 = vrot.slane %v17378_v63, %v12394_v17  ;;  %v17381_v63 = vrot.slane %v13432_v47, 7  ;;  %v17385_v48 = vrot.slane %v17384_v7, 7  ;;  %v17390_v12 = vld [vmem:[#allocation122_spill] sm:$0xff]  ;;  %v17391_v47 = vld [vmem:[#allocation53_spill] sm:$0xff] }
  0xbf   :  { %1340 = vmatpush1.bf16.msra.mxu1 %v1328_v26  ;;  %v505_v37 = vpack.c.bf16 %v475_v52, %v458_v34  ;;  %v17395_v7 = vld [vmem:[#allocation117_spill] sm:$0xff] }
  0xc0   :  { %v3986_v55 = vrot.slane %v17381_v63, 2  ;;  %1795 = vmatprep.subr.bf16.mxu1 %v11815_v22  ;;  %v1580_v26 = vcombine.low %v1572_v35, %v1579_v11  ;;  %v1546_v63 = vrot.slane %v17385_v48, 2  ;;  %v1547_v22 = vrot.slane %v13695_v61, 7 }
  0xc1   :  { %10474 = vmatmul.mubr.msk.bf16.gmra.mrb[16].mxu0 %vm21_vm0, %v3816_v33  ;;  %v4476_v35 = vcombine.low %v13685_v38, %v13688_v23  ;;  %v4477_v33 = vcombine.low %v13691_v18, %v13698_v58  ;;  %v13741_v48 = vrot.slane %v1632_v20, %v12394_v17 }
  0xc2   :  { %4169 = vmatprep.mubr.bf16.mxu0 %v17227_v32  ;;  %10255 = vmatmul.mubr.msk.bf16.gmra.mrb[8].mxu1 %vm21_vm0, %v504_v41  ;;  %v13722_v27 = vsel %vm12455_vm8, %v3986_v55, %v3987_v59  ;;  %v13728_v41 = vsel %vm12455_vm8, %v3989_v10, %v17106_v49  ;;  %v13734_v11 = vpack.c.bf16 %v1597_v29, %v1580_v26  ;;  %v17388_v59 = vld [vmem:[#allocation39_spill] sm:$0xff]  ;;  %v11794_v26 = vld [vmem:[%s16872_s1 + $0x2a0] ss:$8 sps:$4 sm:$0xff]  }
  0xc3   :  { %1083 = vmatprep.mubr.bf16.mxu1 %v17227_v32  ;;  %17386 = vst [vmem:[#allocation20_spill] sm:$0xff] %v13728_v41  ;;  %v1616_v55 = vcombine.low %v17388_v59, %v17387_v36  ;;  %v13743_v10 = vpack.c.bf16 %v4477_v33, %v4476_v35  ;;  %v1548_v49 = vsel %vm12455_vm8, %v1546_v63, %v1547_v22  ;;  %v17389_v59 = vld [vmem:[#allocation123_spill] sm:$0xff]  ;;  %v10361_v63 = vrot.slane %v17350_v4, 9 }
  0xc4   :  { %v6864_v19 = vcombine.low %v13741_v48, %v13716_v8  ;;  %v1633_v20 = vcombine.low %v17390_v12, %v17389_v59  ;;  %v1649_v34 = vcombine.low %v1548_v49, %v17391_v47  ;;  %v4022_v52 = vcombine.low %v13722_v27, %v13728_v41  ;;  %v11802_v22 = vld [vmem:[%s16872_s1 + $0x2b4] ss:$8 sps:$4 sm:$0xff]  }
  0xc5   :  { %v13751_v29 = vrot.slane %v1616_v55, %v12394_v17  ;;  %v13766_v35 = vcombine.low %v13550_v56, %v13553_v57  ;;  %v17393_v33 = vld [vmem:[#allocation59_spill] sm:$0xff]  ;;  %v17394_v55 = vld [vmem:[#allocation54_spill] sm:$0xff]  ;;  %v1102_v12 = vcombine.low %v13060_v45, %v13030_v46  ;;  %v10258_v56 = vcombine.high %v13030_v46, %v12411_v25 }
  0xc6   :  { %v1650_v61 = vcombine.low %v17394_v55, %v17393_v33  ;;  %v1647_v59 = vrot.slane %v1633_v20, %v12394_v17  ;;  %v1657_v47 = vrot.slane %v1649_v34, %v12394_v17  ;;  %v17396_v33 = vld [vmem:[#allocation10_spill] sm:$0xff]  ;;  %v17399_v55 = vrot.slane %v12957_v13, 7 }
  0xc7   :  { %17392 = vst [vmem:[#allocation19_spill] sm:$0xff] %v13766_v35  ;;  %v13776_v49 = vcombine.low %v13698_v58, %v13751_v29  ;;  %v11800_v20 = vld [vmem:[%s16872_s1 + $0x2b0] ss:$8 sps:$4 sm:$0xff]   ;;  %v1117_v25 = vrot.slane %v10258_v56, %v12394_v17  ;;  %v10476_v56 = vrot.slane %v13535_v51, 9 }
  0xc8   :  { %v1664_v45 = vrot.slane %v1650_v61, %v12394_v17  ;;  %v13799_v4 = vsel %vm12455_vm8, %v10361_v63, %v17399_v55  ;;  %v13803_v61 = vcombine.high %v13564_v3, %v13564_v3  ;;  %v3997_v63 = vrot.slane %v13564_v3, 7 }
  0xc9   :  { %10493 = vmatmul.mubr.msk.bf16.vlgmr.msra.gmra.mrb[0].mxu0 %vm21_vm0, %v17395_v7  ;;  %v17397_v7 = vld [vmem:[#allocation11_spill] sm:$0xff]  ;;  %v13792_v34 = vpack.c.bf16 %v6864_v19, %v13776_v49  ;;  %17400 = vst [vmem:[#allocation35_spill] sm:$0xff] %v13799_v4  ;;  %v13809_v19 = vrot.slane %v4022_v52, %v12394_v17  ;;  %v1110_v55 = vrot.slane %v1102_v12, %v12394_v17 }
  0xca   :  { %4179 = vmatprep.mubr.bf16.mxu0 %v17227_v32  ;;  %10256 = vmatmul.mubr.msk.bf16.gmra.mrb[12].mxu1 %vm21_vm0, %v505_v37  ;;  %v1120_v57 = vcombine.low %v17397_v7, %v17396_v33  ;;  %v1648_v37 = vcombine.low %v13741_v48, %v1647_v59  ;;  %v1665_v7 = vcombine.low %v1657_v47, %v1664_v45  ;;  %v11806_v45 = vld [vmem:[%s16872_s1 + $0x2c0] ss:$8 sps:$4 sm:$0xff]  }
  0xcb   :  { %4356 = vmatpush1.bf16.msra.mxu0 %v11794_v26  ;;  %1093 = vmatprep.mubr.bf16.mxu1 %v17227_v32  ;;  %17398 = vst [vmem:[#allocation23_spill] sm:$0xff] %v13792_v34  ;;  %v11808_v26 = vld [vmem:[%s16872_s1 + $0x2c4] ss:$8 sps:$4 sm:$0xff]   ;;  %17401 = vst [vmem:[#allocation36_spill] sm:$0xff] %v13809_v19  ;;  %v506_v59 = vpack.c.bf16 %v13766_v35, %v13766_v35  ;;  %v3994_v34 = vrot.slane %v13568_v39, 7  ;;  %v17402_v35 = vld [vmem:[#allocation94_spill] sm:$0xff]  ;;  %v4031_v12 = vcombine.low %v13379_v31, %v17337_v60 }
  0xcc   :  { %4357 = vmatprep.subr.bf16.mxu0 %v11802_v22  ;;  %v10506_v22 = vld [vmem:[%s16872_s1 + $0x2d0] sm:$0x11]  ;;  %v13821_v47 = vrot.slane %v1120_v57, %v12394_v17  ;;  %v13823_v52 = vpack.c.bf16 %v1665_v7, %v1648_v37  ;;  %v4033_v39 = vcombine.low %v13799_v4, %v17402_v35  ;;  %v4030_v57 = vcombine.low %v13809_v19, %v13374_v6  ;;  %v17404_v6 = vld [vmem:[#allocation9_spill] sm:$0xff] }
  0xcd   :  { %v10514_v46 = vcombine.high %v10506_v22, %v10506_v22  ;;  %v10513_v41 = vcombine.low %v10506_v22, %v10506_v22  ;;  %v3996_v37 = vrot.slane %v3994_v34, 2  ;;  %v1118_v7 = vcombine.low %v1110_v55, %v1117_v25  ;;  %v17403_v22 = vld [vmem:[#allocation103_spill] sm:$0xff]  ;;  %v17417_v4 = vld [vmem:[#allocation110_spill] sm:$0xff] }
  0xce   :  { %v10259_v31 = vcombine.high %v17396_v33, %v17404_v6  ;;  %v13846_v60 = vrot.slane %v4033_v39, %v12394_v17  ;;  %v11818_v25 = vld [vmem:[%s16872_s1 + $0x2dc] ss:$8 sps:$4 sm:$0xff]   ;;  %v13855_v55 = vsel %vm12455_vm8, %v10476_v56, %v3994_v34  ;;  %v17407_v39 = vrot.slane %v13803_v61, 7  ;;  %v11813_v34 = vld [vmem:[%s16872_s1 + $0xa8] ss:$8 sps:$4 sm:$0xff]  }
  0xcf   :  { %4358 = vmatpush1.bf16.msra.mxu0 %v11800_v20  ;;  %v4350_v20 = vsel %vm526_vm2, %v10513_v41, 0  ;;  %17406 = vst [vmem:[#allocation108_spill] sm:$0xff] %v13855_v55 }
  0xd0   :  { %4359 = vmatprep.subr.bf16.mxu0 %v11808_v26  ;;  %v3999_v26 = vrot.slane %v3997_v63, 2  ;;  %17405 = vst [vmem:[#allocation34_spill] sm:$0xff] %v13846_v60 }
  0xd1   :  { %10494 = vmatmul.mubr.msk.bf16.gmra.mrb[4].mxu0 %vm21_vm0, %v13537_v21  ;;  %v1135_v21 = vcombine.low %v17403_v22, %v13821_v47  ;;  %v13868_v22 = vrot.slane %v10259_v31, %v12394_v17  ;;  %v12192_v31 = vld.sshfl [vmem:[#allocation2 + $0x48] sm:$0x3 pattern:$0x76325410] }
  0xd2   :  { %4189 = vmatprep.mubr.bf16.mxu0 %v17227_v32  ;;  %10257 = vmatmul.mubr.msk.bf16.gmra.mrb[16].mxu1 %vm21_vm0, %v506_v59  ;;  %v4070_v59 = vpack.c.bf16 %v4031_v12, %v4030_v57  ;;  %v4032_v57 = vcombine.low %v13382_v42, %v13435_v30  ;;  %v17408_v12 = vld [vmem:[#allocation95_spill] sm:$0xff]  ;;  %v17410_v30 = vld [vmem:[#allocation96_spill] sm:$0xff] }
  0xd3   :  { %4360 = vmatpush1.bf16.msra.mxu0 %v11806_v45  ;;  %1365 = vmatprep.mubr.bf16.mxu1 %v17227_v32  ;;  %v13859_v45 = vsel %vm12455_vm8, %v3996_v37, %v3997_v63  ;;  %v1264_v41 = vpack.c.bf16 %v1135_v21, %v1118_v7  ;;  %v4041_v63 = vcombine.low %v17341_v53, %v13846_v60  ;;  %v17409_v37 = vld [vmem:[#allocation32_spill] sm:$0xff] }
  0xd4   :  { %10515 = vmatprep.subr.msk.bf16.mxu0 %vm526_vm2, %v10514_v46  ;;  %v13865_v46 = vsel %vm12455_vm8, %v3999_v26, %v17407_v39  ;;  %v4042_v56 = vcombine.low %v17408_v12, %v13855_v55  ;;  %v1945_v26 = vcombine.low %v17357_v54, %v17409_v37  ;;  %v1152_v21 = vcombine.low %v13868_v22, %v17410_v30  ;;  %v17411_v39 = vld [vmem:[#allocation30_spill] sm:$0xff]  ;;  %v17412_v37 = vld [vmem:[#allocation33_spill] sm:$0xff] }
  0xd5   :  { %v4043_v7 = vcombine.low %v13859_v45, %v13865_v46  ;;  %v1946_v60 = vcombine.low %v12192_v31, %v17411_v39  ;;  %v10261_v54 = vcombine.high %v13280_v1, %v17303_v2  ;;  %v11819_v31 = vld [vmem:[%s16872_s1 + $0xb8] ss:$8 sps:$4 sm:$0xff]  }
  0xd6   :  { %v13907_v55 = vrot.slane %v4042_v56, %v12394_v17  ;;  %v1265_v56 = vpack.c.bf16 %v13642_v44, %v1152_v21 }
  0xd7   :  { %4362 = vmatpush1.bf16.msra.mxu0 %v4350_v20  ;;  %v11821_v20 = vld [vmem:[%s16872_s1 + $0xbc] ss:$8 sps:$4 sm:$0xff]   ;;  %v13902_v53 = vrot.slane %v1946_v60, %v12394_v17 }
  0xd8   :  { %4595 = vmatprep.subr.bf16.mxu0 %v11818_v25  ;;  %v1171_v25 = vcombine.low %v13284_v9, %v13280_v1  ;;  %v4071_v9 = vpack.c.bf16 %v4041_v63, %v4032_v57  ;;  %17414 = vst [vmem:[#allocation109_spill] sm:$0xff] %v13907_v55  ;;  %v10303_v60 = vld [vmem:[%s16872_s1 + $0xd8] sm:$0x11] }
  0xd9   :  { %10495 = vmatmul.mubr.msk.bf16.gmra.mrb[8].mxu0 %vm21_vm0, %v4070_v59  ;;  %v12193_v59 = vld.sshfl [vmem:[#allocation2 + $0x58] sm:$0x3 pattern:$0x76325410]  ;;  %v10310_v21 = vcombine.low %v10303_v60, %v10303_v60 }
  0xda   :  { %4199 = vmatprep.mubr.bf16.mxu0 %v17227_v32  ;;  %10280 = vmatmul.mubr.msk.bf16.vlgmr.msra.gmra.mrb[0].mxu1 %vm21_vm0, %v1264_v41  ;;  %v1962_v42 = vcombine.low %v17412_v37, %v12193_v59  ;;  %v17413_v41 = vld [vmem:[#allocation55_spill] sm:$0xff]  ;;  %v11827_v59 = vld [vmem:[%s16872_s1 + $0xcc] ss:$8 sps:$4 sm:$0xff]   ;;  %v13919_v37 = vrot.slane %v1945_v26, %v12394_v17  ;;  %v11825_v26 = vld [vmem:[%s16872_s1 + $0xc8] ss:$8 sps:$4 sm:$0xff]  }
  0xdb   :  { %1375 = vmatprep.mubr.bf16.mxu1 %v17227_v32  ;;  %1796 = vmatpush1.bf16.msra.mxu1 %v11813_v34  ;;  %v2904_v19 = vcombine.low %v12693_v0, %v17413_v41  ;;  %v13913_v34 = vrot.slane %v4043_v7, %v12394_v17  ;;  %v1195_v7 = vrot.slane %v10261_v54, %v12394_v17  ;;  %v69_v41 = vld [vmem:[%s16873_s0 + $0x30] sm:$0xff] }
  0xdc   :  { %1797 = vmatprep.subr.bf16.mxu1 %v11821_v20  ;;  %v13922_v57 = vrot.slane %v1962_v42, %v12394_v17  ;;  %v1185_v20 = vrot.slane %v1171_v25, %v12394_v17  ;;  %v13938_v42 = vcombine.low %v13919_v37, %v13902_v53  ;;  %86 = vst.msk [vmem:[#allocation2 + $0x80] sm:$0xff] %vm21_vm0, %v69_v41 }
  0xdd   :  { %17415 = vst [vmem:[#allocation52_spill] sm:$0xff] %v13913_v34  ;;  %v13925_v63 = vrot.slane %v2904_v19, %v12394_v17  ;;  %v10311_v19 = vcombine.high %v10303_v60, %v10303_v60  ;;  %v4058_v25 = vcombine.low %v13907_v55, %v13913_v34  ;;  %v1203_v39 = vcombine.low %v1195_v7, %v17417_v4  ;;  %v17419_v60 = vld [vmem:[#allocation48_spill] sm:$0xff]  ;;  %v17420_v55 = vld [vmem:[#allocation62_spill] sm:$0xff] }
  0xde   :  { %v11837_v4 = vld [vmem:[%s16872_s1 + $0xe4] ss:$8 sps:$4 sm:$0xff]  }
  0xdf   :  { %1798 = vmatpush1.bf16.msra.mxu1 %v11819_v31  ;;  %v7078_v44 = vcombine.low %v13922_v57, %v13925_v63  ;;  %v1186_v31 = vcombine.low %v17363_v28, %v1185_v20  ;;  %v4072_v20 = vpack.c.bf16 %v4058_v25, %v4058_v25 }
  0xe0   :  { %1799 = vmatprep.subr.bf16.mxu1 %v11827_v59  ;;  %v1222_v59 = vcombine.low %v17322_v50, %v12831_v24 }
  0xe1   :  { %10496 = vmatmul.mubr.msk.bf16.gmra.mrb[12].mxu0 %vm21_vm0, %v4071_v9  ;;  %v13947_v54 = vpack.c.bf16 %v7078_v44, %v13938_v42  ;;  %v17418_v9 = vld [vmem:[#allocation47_spill] sm:$0xff]  ;;  %v1266_v7 = vpack.c.bf16 %v1203_v39, %v1186_v31  ;;  %v17422_v31 = vld [vmem:[#allocation44_spill] sm:$0xff] }
  0xe2   :  { %4209 = vmatprep.mubr.bf16.mxu0 %v17227_v32  ;;  %10281 = vmatmul.mubr.msk.bf16.gmra.mrb[4].mxu1 %vm21_vm0, %v1265_v56  ;;  %v1204_v41 = vcombine.low %v17419_v60, %v17418_v9  ;;  %v10262_v44 = vcombine.high %v17418_v9, %v17420_v55  ;;  %v1790_v56 = vsel %vm526_vm2, %v10310_v21, 0  ;;  %v13966_v50 = vrot.slane %v1222_v59, %v12394_v17 }
  0xe3   :  { %17416 = vst [vmem:[#allocation49_spill] sm:$0xff] %v13947_v54  ;;  %1385 = vmatprep.mubr.bf16.mxu1 %v17227_v32  ;;  %1800 = vmatpush1.bf16.msra.mxu1 %v11825_v26  ;;  %v4237_v21 = vcombine.low %v17410_v30, %v13632_v5  ;;  %v17421_v54 = vld [vmem:[#allocation125_spill] sm:$0xff] }
  0xe4   :  { %10312 = vmatprep.subr.msk.bf16.mxu1 %vm526_vm2, %v10311_v19  ;;  %v1212_v26 = vrot.slane %v1204_v41, %v12394_v17  ;;  %v1219_v60 = vrot.slane %v10262_v44, %v12394_v17  ;;  %v4236_v19 = vcombine.low %v13821_v47, %v13868_v22  ;;  %v10498_v39 = vcombine.high %v12693_v0, %v17421_v54  ;;  %v17423_v41 = vld [vmem:[#allocation68_spill] sm:$0xff] }
  0xe5   :  { %v1237_v59 = vcombine.low %v17422_v31, %v13966_v50  ;;  %v10263_v44 = vcombine.high %v12831_v24, %v17423_v41  ;;  %v11816_v0 = vld [vmem:[%s16872_s1 + $0x2d8] ss:$8 sps:$4 sm:$0xff]  }
  0xe6   :  { %v1220_v25 = vcombine.low %v1212_v26, %v1219_v60  ;;  %v4286_v22 = vpack.c.bf16 %v4237_v21, %v4236_v19  ;;  %v4248_v21 = vcombine.low %v13428_v14, %v13670_v16  ;;  %v4257_v41 = vcombine.low %v1219_v60, %v17422_v31 }
  0xe7   :  { %1802 = vmatpush1.bf16.msra.mxu1 %v1790_v56  ;;  %v13985_v56 = vrot.slane %v10498_v39, %v12394_v17  ;;  %v17425_v39 = vld [vmem:[#allocation115_spill] sm:$0xff] }
  0xe8   :  { %2125 = vmatprep.subr.bf16.mxu1 %v11837_v4  ;;  %v1267_v30 = vpack.c.bf16 %v1237_v59, %v1220_v25  ;;  %v13991_v4 = vrot.slane %v10263_v44, %v12394_v17  ;;  %v17427_v59 = vld [vmem:[#allocation41_spill] sm:$0xff] }
  0xe9   :  { %10497 = vmatmul.mubr.msk.bf16.gmra.mrb[16].mxu0 %vm21_vm0, %v4072_v20  ;;  %17424 = vst [vmem:[#allocation38_spill] sm:$0xff] %v13985_v56  ;;  %v11824_v20 = vld [vmem:[%s16872_s1 + $0x2ec] ss:$8 sps:$4 sm:$0xff]   ;;  %v4247_v19 = vcombine.low %v13635_v62, %v13985_v56  ;;  %v2311_v44 = vcombine.low %v17303_v2, %v17427_v59  ;;  %v17429_v56 = vld [vmem:[#allocation40_spill] sm:$0xff]  ;;  %v14025_v59 = vrot.slane %v4248_v21, %v12394_v17 }
  0xea   :  { %4387 = vmatprep.mubr.bf16.mxu0 %v17227_v32  ;;  %10282 = vmatmul.mubr.msk.bf16.gmra.mrb[8].mxu1 %vm21_vm0, %v1266_v7  ;;  %v4238_v7 = vcombine.low %v13612_v15, %v17363_v28  ;;  %v14007_v25 = vcombine.low %v13991_v4, %v17425_v39  ;;  %v11822_v15 = vld [vmem:[%s16872_s1 + $0x2e8] ss:$8 sps:$4 sm:$0xff]   ;;  %v11830_v28 = vld [vmem:[%s16872_s1 + $0x2fc] ss:$8 sps:$4 sm:$0xff]  }
  0xeb   :  { %1395 = vmatprep.mubr.bf16.mxu1 %v17227_v32  ;;  %v77_v2 = vld [vmem:[%s16873_s0 + $0x70] sm:$0xff]  ;;  %17430 = vst [vmem:[#allocation39_spill] sm:$0xff] %v14025_v59 }
  0xec   :  { %17426 = vst [vmem:[#allocation37_spill] sm:$0xff] %v14007_v25  ;;  %94 = vst.msk [vmem:[#allocation2 + $0x120] sm:$0xff] %vm21_vm0, %v77_v2  ;;  %v4256_v2 = vcombine.low %v14025_v59, %v1212_v26 }
  0xee   :  { %v4288_v60 = vpack.c.bf16 %v4257_v41, %v4256_v2  ;;  %v11843_v41 = vld [vmem:[%s16872_s1 + $0xf4] ss:$8 sps:$4 sm:$0xff]   ;;  %v4258_v2 = vcombine.low %v13966_v50, %v13991_v4 }
  0xf1   :  { %10516 = vmatmul.mubr.msk.bf16.vlgmr.msra.gmra.mrb[0].mxu0 %vm21_vm0, %v4286_v22  ;;  %v2325_v22 = vrot.slane %v2311_v44, %v12394_v17  ;;  %v1268_v44 = vpack.c.bf16 %v14007_v25, %v14007_v25  ;;  %v17431_v25 = vld [vmem:[#allocation91_spill] sm:$0xff] }
  0xf2   :  { %4397 = vmatprep.mubr.bf16.mxu0 %v17227_v32  ;;  %10283 = vmatmul.mubr.msk.bf16.gmra.mrb[12].mxu1 %vm21_vm0, %v1267_v30  ;;  %v17428_v30 = vld [vmem:[#allocation45_spill] sm:$0xff] }
  0xf3   :  { %4596 = vmatpush1.bf16.msra.mxu0 %v11816_v0  ;;  %1405 = vmatprep.mubr.bf16.mxu1 %v17227_v32  ;;  %v2327_v34 = vcombine.low %v17429_v56, %v17428_v30  ;;  %v4287_v0 = vpack.c.bf16 %v4247_v19, %v4238_v7  ;;  %v2326_v54 = vcombine.low %v13635_v62, %v2325_v22  ;;  %v11828_v7 = vld [vmem:[%s16872_s1 + $0x2f8] ss:$8 sps:$4 sm:$0xff]  }
  0xf4   :  { %4597 = vmatprep.subr.bf16.mxu0 %v11824_v20  ;;  %v10529_v20 = vld [vmem:[%s16872_s1 + $0x308] sm:$0x11]  ;;  %v2363_v22 = vcombine.low %v12957_v13, %v17431_v25 }
  0xf5   :  { %v2334_v30 = vrot.slane %v2327_v34, %v12394_v17  ;;  %v10537_v19 = vcombine.high %v10529_v20, %v10529_v20  ;;  %v10536_v21 = vcombine.low %v10529_v20, %v10529_v20  ;;  %v17435_v20 = vld [vmem:[#allocation15_spill] sm:$0xff] }
  0xf6   :  { %v14054_v13 = vrot.slane %v2363_v22, %v12394_v17 }
  0xf7   :  { %4598 = vmatpush1.bf16.msra.mxu0 %v11822_v15  ;;  %v2335_v55 = vcombine.low %v2334_v30, %v1212_v26  ;;  %v4590_v15 = vsel %vm526_vm2, %v10536_v21, 0  ;;  %v11840_v26 = vld [vmem:[%s16872_s1 + $0x314] ss:$8 sps:$4 sm:$0xff]  }
  0xf8   :  { %4599 = vmatprep.subr.bf16.mxu0 %v11830_v28  ;;  %v17433_v28 = vld [vmem:[#allocation106_spill] sm:$0xff]  ;;  %v4259_v22 = vcombine.low %v17425_v39, %v14054_v13  ;;  %v14143_v39 = vld.sshfl [vmem:[#allocation2 + $0x78] sm:$0x3 pattern:$0x76325410] }
  0xf9   :  { %10517 = vmatmul.mubr.msk.bf16.gmra.mrb[4].mxu0 %vm21_vm0, %v4287_v0  ;;  %v14045_v34 = vpack.c.bf16 %v2335_v55, %v2326_v54  ;;  %v11835_v55 = vld [vmem:[%s16872_s1 + $0xe0] ss:$8 sps:$4 sm:$0xff]   ;;  %v17432_v54 = vld [vmem:[#allocation14_spill] sm:$0xff]  ;;  %v17434_v0 = vld [vmem:[#allocation107_spill] sm:$0xff] }
  0xfa   :  { %4407 = vmatprep.mubr.bf16.mxu0 %v17227_v32  ;;  %10284 = vmatmul.mubr.msk.bf16.gmra.mrb[16].mxu1 %vm21_vm0, %v1268_v44  ;;  %v2578_v30 = vcombine.low %v17433_v28, %v17432_v54  ;;  %v2579_v44 = vcombine.low %v17435_v20, %v17434_v0  ;;  %v4261_v54 = vcombine.low %v13564_v3, %v13803_v61  ;;  %v17438_v28 = vld [vmem:[#allocation113_spill] sm:$0xff]  ;;  %v11841_v20 = vld [vmem:[%s16872_s1 + $0xf0] ss:$8 sps:$4 sm:$0xff]  }
  0xfb   :  { %4600 = vmatpush1.bf16.msra.mxu0 %v11828_v7  ;;  %1827 = vmatprep.mubr.bf16.mxu1 %v17227_v32  ;;  %v17436_v7 = vld [vmem:[#allocation21_spill] sm:$0xff] }
  0xfc   :  { %10538 = vmatprep.subr.msk.bf16.mxu0 %vm526_vm2, %v10537_v19  ;;  %v17437_v19 = vld [vmem:[#allocation112_spill] sm:$0xff] }
  0xfd   :  { %v2595_v21 = vcombine.low %v17437_v19, %v17436_v7  ;;  %v2586_v7 = vrot.slane %v2578_v30, %v12394_v17  ;;  %v2593_v19 = vrot.slane %v2579_v44, %v12394_v17  ;;  %v10324_v30 = vld [vmem:[%s16872_s1 + $0x110] sm:$0x11] }
  0xff   :  { %4602 = vmatpush1.bf16.msra.mxu0 %v4590_v15  ;;  %v10499_v15 = vcombine.high %v17431_v25, %v13535_v51 }
 0x100   :  { %4813 = vmatprep.subr.bf16.mxu0 %v11840_v26  ;;  %v17439_v26 = vld [vmem:[#allocation22_spill] sm:$0xff] }
 0x101   :  { %10518 = vmatmul.mubr.msk.bf16.gmra.mrb[8].mxu0 %vm21_vm0, %v4288_v60  ;;  %v2604_v0 = vcombine.low %v17439_v26, %v17438_v28  ;;  %v17440_v60 = vld [vmem:[#allocation114_spill] sm:$0xff]  ;;  %v11849_v28 = vld [vmem:[%s16872_s1 + $0x104] ss:$8 sps:$4 sm:$0xff]   ;;  %v4289_v26 = vpack.c.bf16 %v4259_v22, %v4258_v2  ;;  %v11847_v2 = vld [vmem:[%s16872_s1 + $0x100] ss:$8 sps:$4 sm:$0xff]   ;;  %v10332_v22 = vcombine.high %v10324_v30, %v10324_v30 }
 0x102   :  { %4417 = vmatprep.mubr.bf16.mxu0 %v17227_v32  ;;  %10313 = vmatmul.mubr.msk.bf16.vlgmr.msra.gmra.mrb[0].mxu1 %vm21_vm0, %v13734_v11  ;;  %v2613_v4 = vcombine.low %v17440_v60, %v17387_v36  ;;  %v2602_v11 = vrot.slane %v2595_v21, %v12394_v17  ;;  %v14095_v36 = vrot.slane %v10499_v15, %v12394_v17 }
 0x103   :  { %1837 = vmatprep.mubr.bf16.mxu1 %v17227_v32  ;;  %2126 = vmatpush1.bf16.msra.mxu1 %v11835_v55  ;;  %v14098_v55 = vrot.slane %v4261_v54, %v12394_v17  ;;  %v2611_v44 = vrot.slane %v2604_v0, %v12394_v17  ;;  %v10331_v15 = vcombine.low %v10324_v30, %v10324_v30  ;;  %v17446_v30 = vld [vmem:[#allocation77_spill] sm:$0xff] }
 0x104   :  { %2127 = vmatprep.subr.bf16.mxu1 %v11843_v41  ;;  %17441 = vst [vmem:[#allocation123_spill] sm:$0xff] %v14095_v36  ;;  %v17443_v41 = vcombine.low %v13688_v23, %v13691_v18  ;;  %v2621_v21 = vrot.slane %v2613_v4, %v12394_v17  ;;  %v2594_v0 = vcombine.low %v2586_v7, %v2593_v19  ;;  %v17448_v19 = vld [vmem:[#allocation84_spill] sm:$0xff] }
 0x105   :  { %17442 = vst [vmem:[#allocation122_spill] sm:$0xff] %v14098_v55  ;;  %v4276_v54 = vcombine.low %v14095_v36, %v14098_v55  ;;  %v2603_v23 = vcombine.low %v13685_v38, %v2602_v11  ;;  %v5202_v18 = vcombine.low %v2602_v11, %v2611_v44  ;;  %v17449_v38 = vld [vmem:[#allocation78_spill] sm:$0xff]  ;;  %v2120_v11 = vsel %vm526_vm2, %v10331_v15, 0 }
 0x106   :  { %v1727_v60 = vpack.c.bf16 %v13776_v49, %v17443_v41  ;;  %v5203_v4 = vcombine.low %v13698_v58, %v2621_v21  ;;  %v17447_v41 = vld [vmem:[#allocation60_spill] sm:$0xff]  ;;  %v1683_v36 = vcombine.low %v17449_v38, %v17448_v19 }
 0x107   :  { %2128 = vmatpush1.bf16.msra.mxu1 %v11841_v20  ;;  %v14119_v49 = vpack.c.bf16 %v2603_v23, %v2594_v0  ;;  %v17444_v20 = vld [vmem:[#allocation58_spill] sm:$0xff]  ;;  %v1667_v7 = vcombine.low %v17447_v41, %v17446_v30  ;;  %v17451_v23 = vld [vmem:[#allocation79_spill] sm:$0xff] }
 0x108   :  { %2129 = vmatprep.subr.bf16.mxu1 %v11849_v28  ;;  %v17445_v28 = vld [vmem:[#allocation57_spill] sm:$0xff]  ;;  %v14133_v0 = vpack.c.bf16 %v5203_v4, %v5202_v18  ;;  %v17454_v41 = vld [vmem:[#allocation75_spill] sm:$0xff] }
 0x109   :  { %10519 = vmatmul.mubr.msk.bf16.gmra.mrb[12].mxu0 %vm21_vm0, %v4289_v26  ;;  %v1666_v26 = vcombine.low %v17445_v28, %v17444_v20  ;;  %v17452_v20 = vld [vmem:[#allocation80_spill] sm:$0xff]  ;;  %v2614_v19 = vcombine.low %v17383_v40, %v17454_v41  ;;  %v14149_v15 = vrot.slane %v1667_v7, %v12394_v17  ;;  %v17456_v40 = vld [vmem:[#allocation63_spill] sm:$0xff] }
 0x10a   :  { %4427 = vmatprep.mubr.bf16.mxu0 %v17227_v32  ;;  %10314 = vmatmul.mubr.msk.bf16.gmra.mrb[4].mxu1 %vm21_vm0, %v1727_v60  ;;  %v11859_v60 = vld [vmem:[%s16872_s1 + $0x11c] ss:$8 sps:$4 sm:$0xff]   ;;  %17450 = vst [vmem:[#allocation59_spill] sm:$0xff] %v14133_v0  ;;  %v17453_v28 = vcombine.low %v17451_v23, %v17452_v20  ;;  %v4479_v4 = vcombine.low %v17456_v40, %v13722_v27  ;;  %v17458_v20 = vld [vmem:[#allocation82_spill] sm:$0xff] }
 0x10b   :  { %1847 = vmatprep.mubr.bf16.mxu1 %v17227_v32  ;;  %2130 = vmatpush1.bf16.msra.mxu1 %v11847_v2  ;;  %v4290_v2 = vpack.c.bf16 %v4276_v54, %v4276_v54  ;;  %v14152_v54 = vrot.slane %v1683_v36, %v12394_v17  ;;  %v14155_v18 = vrot.slane %v2614_v19, %v12394_v17  ;;  %v4471_v36 = vrot.slane %v14143_v39, 7  ;;  %v17461_v41 = vld [vmem:[#allocation83_spill] sm:$0xff]  ;;  %v17471_v0 = vld [vmem:[#allocation16_spill] sm:$0xff] }
 0x10c   :  { %10333 = vmatprep.subr.msk.bf16.mxu1 %vm526_vm2, %v10332_v22  ;;  %v14139_v55 = vrot.slane %v17453_v28, %v12394_v17  ;;  %v14146_v22 = vrot.slane %v1666_v26, %v12394_v17  ;;  %v2612_v26 = vcombine.low %v2611_v44, %v13698_v58  ;;  %v17459_v28 = vld [vmem:[#allocation86_spill] sm:$0xff]  ;;  %v17460_v44 = vld [vmem:[#allocation93_spill] sm:$0xff] }
 0x10d   :  { %17455 = vst [vmem:[#allocation117_spill] sm:$0xff] %v14155_v18  ;;  %v1700_v58 = vcombine.low %v17459_v28, %v17458_v20  ;;  %v1701_v19 = vcombine.low %v17461_v41, %v17460_v44  ;;  %v11838_v28 = vld [vmem:[%s16872_s1 + $0x310] ss:$8 sps:$4 sm:$0xff]   ;;  %v17469_v44 = vld [vmem:[#allocation136_spill] sm:$0xff] }
 0x10e   :  { %v1682_v7 = vcombine.low %v14146_v22, %v14149_v15  ;;  %v12196_v41 = vld.sshfl [vmem:[#allocation2 + $0x38] sm:$0x3 pattern:$0x76325410] }
 0x10f   :  { %2132 = vmatpush1.bf16.msra.mxu1 %v2120_v11  ;;  %v17457_v11 = vrot.slane %v13670_v16, 7  ;;  %v14190_v59 = vrot.slane %v1701_v19, %v12394_v17  ;;  %v12194_v19 = vld.sshfl [vmem:[#allocation2 + $0x18] sm:$0x3 pattern:$0x76325410] }
 0x110   :  { %2457 = vmatprep.subr.bf16.mxu1 %v11859_v60  ;;  %v1699_v60 = vcombine.low %v14152_v54, %v14139_v55 }
 0x111   :  { %10520 = vmatmul.mubr.msk.bf16.gmra.mrb[16].mxu0 %vm21_vm0, %v4290_v2  ;;  %v4470_v23 = vrot.slane %v17457_v11, 2  ;;  %v2629_v2 = vcombine.low %v2621_v21, %v14155_v18  ;;  %v14187_v21 = vrot.slane %v1700_v58, %v12394_v17  ;;  %v17467_v58 = vld [vmem:[#allocation100_spill] sm:$0xff]  ;;  %v17470_v18 = vld [vmem:[#allocation7_spill] sm:$0xff] }
 0x112   :  { %4627 = vmatprep.mubr.bf16.mxu0 %v17227_v32  ;;  %10315 = vmatmul.mubr.msk.bf16.gmra.mrb[8].mxu1 %vm21_vm0, %v13823_v52  ;;  %v14180_v52 = vrot.slane %v4479_v4, %v12394_v17  ;;  %v1729_v31 = vpack.c.bf16 %v1699_v60, %v1682_v7  ;;  %v11846_v4 = vld [vmem:[%s16872_s1 + $0x324] ss:$8 sps:$4 sm:$0xff]  }
 0x113   :  { %1857 = vmatprep.mubr.bf16.mxu1 %v17227_v32  ;;  %v14177_v40 = vpack.c.bf16 %v2629_v2, %v2612_v26  ;;  %v14184_v11 = vsel %vm12455_vm8, %v4470_v23, %v4471_v36  ;;  %v4478_v26 = vcombine.low %v13751_v29, %v13741_v48  ;;  %v17464_v36 = vld [vmem:[#allocation20_spill] sm:$0xff]  ;;  %v14208_v60 = vcombine.low %v14187_v21, %v14190_v59  ;;  %v17468_v29 = vld [vmem:[#allocation5_spill] sm:$0xff] }
 0x114   :  { %17462 = vst [vmem:[#allocation10_spill] sm:$0xff] %v14180_v52  ;;  %17463 = vst [vmem:[#allocation11_spill] sm:$0xff] %v14184_v11  ;;  %v4487_v23 = vcombine.low %v13716_v8, %v14180_v52  ;;  %v4488_v7 = vcombine.low %v17464_v36, %v14184_v11  ;;  %v17466_v2 = vld [vmem:[#allocation104_spill] sm:$0xff]  ;;  %v1911_v52 = vcombine.low %v17470_v18, %v12194_v19 }
 0x115   :  { %17465 = vst [vmem:[#allocation94_spill] sm:$0xff] %v14208_v60  ;;  %v1894_v48 = vcombine.low %v17467_v58, %v17466_v2  ;;  %v1912_v11 = vcombine.low %v17396_v33, %v17471_v0  ;;  %v11844_v2 = vld [vmem:[%s16872_s1 + $0x320] ss:$8 sps:$4 sm:$0xff]   ;;  %v1730_v18 = vpack.c.bf16 %v14208_v60, %v14208_v60 }
 0x116   :  { %v4527_v58 = vpack.c.bf16 %v4487_v23, %v4478_v26  ;;  %v10550_v33 = vld [vmem:[%s16872_s1 + $0x340] sm:$0x11]  ;;  %v14240_v26 = vld.sshfl [vmem:[#allocation2 + $0x118] sm:$0x3 pattern:$0x76325410] }
 0x117   :  { %v1902_v0 = vrot.slane %v1894_v48, %v12394_v17  ;;  %v14238_v19 = vrot.slane %v1912_v11, %v12394_v17  ;;  %v11850_v23 = vld [vmem:[%s16872_s1 + $0x330] ss:$8 sps:$4 sm:$0xff]   ;;  %v10557_v60 = vcombine.low %v10550_v33, %v10550_v33  ;;  %v2683_v48 = vcombine.low %v17402_v35, %v17408_v12  ;;  %v12195_v12 = vld.sshfl [vmem:[#allocation2 + $0x28] sm:$0x3 pattern:$0x76325410] }
 0x118   :  { %v4497_v11 = vcombine.low %v14149_v15, %v14152_v54  ;;  %v17475_v15 = vld [vmem:[#allocation17_spill] sm:$0xff] }
 0x119   :  { %10539 = vmatmul.mubr.msk.bf16.vlgmr.msra.gmra.mrb[0].mxu0 %vm21_vm0, %v13743_v10  ;;  %v1895_v10 = vcombine.low %v17469_v44, %v17468_v29  ;;  %v14227_v44 = vrot.slane %v4488_v7, %v12394_v17  ;;  %v10558_v7 = vcombine.high %v10550_v33, %v10550_v33  ;;  %v1929_v54 = vcombine.low %v17475_v15, %v12196_v41  ;;  %v17478_v15 = vld [vmem:[#allocation18_spill] sm:$0xff] }
 0x11a   :  { %4637 = vmatprep.mubr.bf16.mxu0 %v17227_v32  ;;  %10316 = vmatmul.mubr.msk.bf16.gmra.mrb[12].mxu1 %vm21_vm0, %v1729_v31  ;;  %v11852_v31 = vld [vmem:[%s16872_s1 + $0x334] ss:$8 sps:$4 sm:$0xff]  }
 0x11b   :  { %4814 = vmatpush1.bf16.msra.mxu0 %v11838_v28  ;;  %1867 = vmatprep.mubr.bf16.mxu1 %v17227_v32  ;;  %17472 = vst [vmem:[#allocation103_spill] sm:$0xff] %v14227_v44  ;;  %v1909_v28 = vrot.slane %v1895_v10, %v12394_v17  ;;  %v17473_v10 = vrot.slane %v13803_v61, 7 }
 0x11c   :  { %4815 = vmatprep.subr.bf16.mxu0 %v11846_v4  ;;  %v1919_v4 = vrot.slane %v1911_v52, %v12394_v17  ;;  %v4496_v52 = vcombine.low %v14227_v44, %v14146_v22 }
 0x11d   :  { %v1910_v33 = vcombine.low %v1902_v0, %v1909_v28  ;;  %v14267_v28 = vrot.slane %v2683_v48, %v12394_v17 }
 0x11e   :  { %v1927_v35 = vcombine.low %v1919_v4, %v14238_v19  ;;  %v4528_v0 = vpack.c.bf16 %v4497_v11, %v4496_v52  ;;  %v17476_v52 = vld [vmem:[#allocation97_spill] sm:$0xff] }
 0x11f   :  { %4816 = vmatpush1.bf16.msra.mxu0 %v11844_v2  ;;  %v4473_v2 = vrot.slane %v17473_v10, 2  ;;  %v11862_v10 = vld [vmem:[%s16872_s1 + $0x34c] ss:$8 sps:$4 sm:$0xff]   ;;  %v4500_v48 = vcombine.low %v17476_v52, %v13859_v45 }
 0x120   :  { %4817 = vmatprep.subr.bf16.mxu0 %v11852_v31  ;;  %v4474_v31 = vrot.slane %v14240_v26, 7  ;;  %v11865_v11 = vld [vmem:[%s16872_s1 + $0x12c] ss:$8 sps:$4 sm:$0xff]  }
 0x121   :  { %10540 = vmatmul.mubr.msk.bf16.gmra.mrb[4].mxu0 %vm21_vm0, %v4527_v58  ;;  %v17474_v58 = vld [vmem:[#allocation12_spill] sm:$0xff] }
 0x122   :  { %4647 = vmatprep.mubr.bf16.mxu0 %v17227_v32  ;;  %10317 = vmatmul.mubr.msk.bf16.gmra.mrb[16].mxu1 %vm21_vm0, %v1730_v18  ;;  %v1928_v44 = vcombine.low %v12195_v12, %v17474_v58  ;;  %v4808_v18 = vsel %vm526_vm2, %v10557_v60, 0  ;;  %v14271_v4 = vsel %vm12455_vm8, %v4473_v2, %v4474_v31  ;;  %v11857_v60 = vld [vmem:[%s16872_s1 + $0x118] ss:$8 sps:$4 sm:$0xff]   ;;  %v4499_v2 = vcombine.low %v14190_v59, %v14267_v28  ;;  %v11863_v59 = vld [vmem:[%s16872_s1 + $0x128] ss:$8 sps:$4 sm:$0xff]  }
 0x123   :  { %4818 = vmatpush1.bf16.msra.mxu0 %v11850_v23  ;;  %2157 = vmatprep.mubr.bf16.mxu1 %v17227_v32  ;;  %v2056_v23 = vpack.c.bf16 %v1927_v35, %v1910_v33  ;;  %v4501_v31 = vcombine.low %v13865_v46, %v14271_v4  ;;  %v17477_v35 = vld [vmem:[#allocation118_spill] sm:$0xff] }
 0x124   :  { %10559 = vmatprep.subr.msk.bf16.mxu0 %vm526_vm2, %v10558_v7  ;;  %v14274_v41 = vrot.slane %v1928_v44, %v12394_v17  ;;  %v14277_v7 = vrot.slane %v1929_v54, %v12394_v17  ;;  %v4498_v44 = vcombine.low %v14139_v55, %v14187_v21  ;;  %v1963_v12 = vcombine.low %v13280_v1, %v17477_v35  ;;  %v12197_v21 = vld.sshfl [vmem:[#allocation2 + $0xb8] sm:$0x3 pattern:$0x76325410] }
 0x125   :  { %v1979_v54 = vcombine.low %v17478_v15, %v17429_v56  ;;  %v14311_v1 = vrot.slane %v4500_v48, %v12394_v17  ;;  %v14314_v52 = vrot.slane %v4501_v31, %v12394_v17  ;;  %v11869_v48 = vld [vmem:[%s16872_s1 + $0x138] ss:$8 sps:$4 sm:$0xff]  }
 0x126   :  { %v1944_v33 = vcombine.low %v14274_v41, %v14277_v7  ;;  %v1977_v15 = vrot.slane %v1963_v12, %v12394_v17  ;;  %v17482_v12 = vld [vmem:[#allocation74_spill] sm:$0xff] }
 0x127   :  { %4820 = vmatpush1.bf16.msra.mxu0 %v4808_v18  ;;  %v17479_v18 = vld [vmem:[#allocation46_spill] sm:$0xff]  ;;  %17480 = vst [vmem:[#allocation9_spill] sm:$0xff] %v14311_v1  ;;  %17481 = vst [vmem:[#allocation95_spill] sm:$0xff] %v14314_v52  ;;  %v4516_v31 = vcombine.low %v14311_v1, %v14314_v52  ;;  %v17485_v52 = vld [vmem:[#allocation71_spill] sm:$0xff] }
 0x128   :  { %5081 = vmatprep.subr.bf16.mxu0 %v11862_v10  ;;  %v1980_v10 = vcombine.low %v17479_v18, %v12197_v21  ;;  %v2057_v35 = vpack.c.bf16 %v13938_v42, %v1944_v33  ;;  %v1978_v42 = vcombine.low %v13922_v57, %v1977_v15  ;;  %v17483_v18 = vld [vmem:[#allocation50_spill] sm:$0xff] }
 0x129   :  { %10541 = vmatmul.mubr.msk.bf16.gmra.mrb[8].mxu0 %vm21_vm0, %v4528_v0  ;;  %v11871_v0 = vld [vmem:[%s16872_s1 + $0x13c] ss:$8 sps:$4 sm:$0xff]   ;;  %v4530_v15 = vpack.c.bf16 %v4516_v31, %v4516_v31  ;;  %v12200_v31 = vld.sshfl [vmem:[#allocation2 + $0x68] sm:$0x3 pattern:$0x76325410] }
 0x12a   :  { %4657 = vmatprep.mubr.bf16.mxu0 %v17227_v32  ;;  %10334 = vmatmul.mubr.msk.bf16.vlgmr.msra.gmra.mrb[0].mxu1 %vm21_vm0, %v2056_v23  ;;  %v4529_v23 = vpack.c.bf16 %v4499_v2, %v4498_v44  ;;  %v1994_v21 = vrot.slane %v1980_v10, %v12394_v17  ;;  %v1996_v10 = vcombine.low %v17418_v9, %v17483_v18  ;;  %v12202_v18 = vld.sshfl [vmem:[#allocation2 + $0xf8] sm:$0x3 pattern:$0x76325410] }
 0x12b   :  { %2167 = vmatprep.mubr.bf16.mxu1 %v17227_v32  ;;  %2458 = vmatpush1.bf16.msra.mxu1 %v11857_v60  ;;  %v10345_v60 = vld [vmem:[%s16872_s1 + $0x148] sm:$0x11] }
 0x12c   :  { %2459 = vmatprep.subr.bf16.mxu1 %v11865_v11  ;;  %v1987_v11 = vrot.slane %v1979_v54, %v12394_v17  ;;  %v10353_v44 = vcombine.high %v10345_v60, %v10345_v60  ;;  %v10352_v2 = vcombine.low %v10345_v60, %v10345_v60  ;;  %v2014_v54 = vcombine.low %v12831_v24, %v17482_v12  ;;  %v12199_v60 = vld.sshfl [vmem:[#allocation2 + $0xd8] sm:$0x3 pattern:$0x76325410]  ;;  %v11882_v24 = vld [vmem:[%s16872_s1 + $0x154] ss:$8 sps:$4 sm:$0xff]  }
 0x12d   :  { %v2013_v1 = vcombine.low %v17485_v52, %v12199_v60  ;;  %v14348_v9 = vrot.slane %v1996_v10, %v12394_v17  ;;  %v12201_v12 = vld.sshfl [vmem:[#allocation2 + $0xe8] sm:$0x3 pattern:$0x76325410] }
 0x12e   :  { %v1995_v33 = vcombine.low %v1987_v11, %v1994_v21  ;;  %v14345_v21 = vrot.slane %v2014_v54, %v12394_v17 }
 0x12f   :  { %2460 = vmatpush1.bf16.msra.mxu1 %v11863_v59  ;;  %v12198_v59 = vld.sshfl [vmem:[#allocation2 + $0xc8] sm:$0x3 pattern:$0x76325410]  ;;  %v14354_v52 = vrot.slane %v2013_v1, %v12394_v17 }
 0x130   :  { %2461 = vmatprep.subr.bf16.mxu1 %v11871_v0  ;;  %v17484_v0 = vld [vmem:[#allocation64_spill] sm:$0xff]  ;;  %v2058_v11 = vpack.c.bf16 %v1995_v33, %v1978_v42  ;;  %v4697_v42 = vcombine.low %v12200_v31, %v13428_v14  ;;  %v4706_v31 = vcombine.low %v13670_v16, %v14143_v39  ;;  %v11874_v39 = vld [vmem:[%s16872_s1 + $0x36c] ss:$8 sps:$4 sm:$0xff]  }
 0x131   :  { %10542 = vmatmul.mubr.msk.bf16.gmra.mrb[12].mxu0 %vm21_vm0, %v4529_v23  ;;  %v1997_v23 = vcombine.low %v12198_v59, %v17484_v0  ;;  %v2029_v33 = vcombine.low %v14354_v52, %v14345_v21  ;;  %v11866_v16 = vld [vmem:[%s16872_s1 + $0x358] ss:$8 sps:$4 sm:$0xff]  }
 0x132   :  { %4667 = vmatprep.mubr.bf16.mxu0 %v17227_v32  ;;  %10335 = vmatmul.mubr.msk.bf16.gmra.mrb[4].mxu1 %vm21_vm0, %v2057_v35  ;;  %v2452_v35 = vsel %vm526_vm2, %v10352_v2, 0  ;;  %v4695_v2 = vcombine.low %v14277_v7, %v13919_v37  ;;  %v17487_v7 = vld [vmem:[#allocation76_spill] sm:$0xff] }
 0x133   :  { %2177 = vmatprep.mubr.bf16.mxu1 %v17227_v32  ;;  %2462 = vmatpush1.bf16.msra.mxu1 %v11869_v48  ;;  %v14351_v48 = vrot.slane %v1997_v23, %v12394_v17  ;;  %v2031_v10 = vcombine.low %v17487_v7, %v12202_v18  ;;  %v14372_v23 = vrot.slane %v4697_v42, %v12394_v17 }
 0x134   :  { %10354 = vmatprep.subr.msk.bf16.mxu1 %vm526_vm2, %v10353_v44  ;;  %v4694_v44 = vcombine.low %v14238_v19, %v14274_v41  ;;  %v17486_v41 = vld [vmem:[#allocation72_spill] sm:$0xff] }
 0x135   :  { %v2012_v1 = vcombine.low %v14348_v9, %v14351_v48  ;;  %v2030_v54 = vcombine.low %v12201_v12, %v17486_v41  ;;  %17488 = vst [vmem:[#allocation32_spill] sm:$0xff] %v14372_v23 }
 0x136   :  { %v4744_v59 = vpack.c.bf16 %v4695_v2, %v4694_v44  ;;  %v4696_v44 = vcombine.low %v13902_v53, %v13922_v57  ;;  %v4705_v2 = vcombine.low %v13925_v63, %v14372_v23  ;;  %v17493_v57 = vld [vmem:[#allocation13_spill] sm:$0xff]  ;;  %v17524_v23 = vld [vmem:[#allocation135_spill] sm:$0xff] }
 0x137   :  { %2464 = vmatpush1.bf16.msra.mxu1 %v2452_v35  ;;  %v2059_v60 = vpack.c.bf16 %v2029_v33, %v2012_v1  ;;  %v14375_v35 = vrot.slane %v2030_v54, %v12394_v17  ;;  %v17490_v1 = vld [vmem:[#allocation6_spill] sm:$0xff]  ;;  %v17491_v33 = vld [vmem:[#allocation4_spill] sm:$0xff]  ;;  %v2275_v18 = vcombine.low %v17404_v6, %v17493_v57  ;;  %v10571_v6 = vld [vmem:[%s16872_s1 + $0x378] sm:$0x11] }
 0x138   :  { %2777 = vmatprep.subr.bf16.mxu1 %v11882_v24  ;;  %v14378_v24 = vrot.slane %v2031_v10, %v12394_v17  ;;  %v2258_v12 = vcombine.low %v17491_v33, %v17490_v1  ;;  %v17492_v54 = vld [vmem:[#allocation8_spill] sm:$0xff]  ;;  %v4745_v7 = vpack.c.bf16 %v4705_v2, %v4696_v44  ;;  %v14413_v10 = vrot.slane %v4706_v31, %v12394_v17  ;;  %v11872_v44 = vld [vmem:[%s16872_s1 + $0x368] ss:$8 sps:$4 sm:$0xff]  }
 0x139   :  { %10543 = vmatmul.mubr.msk.bf16.gmra.mrb[16].mxu0 %vm21_vm0, %v4530_v15  ;;  %v11860_v15 = vld [vmem:[%s16872_s1 + $0x348] ss:$8 sps:$4 sm:$0xff]   ;;  %v2259_v53 = vcombine.low %v17468_v29, %v17492_v54  ;;  %v10579_v2 = vcombine.high %v10571_v6, %v10571_v6  ;;  %v10578_v31 = vcombine.low %v10571_v6, %v10571_v6  ;;  %v4715_v33 = vcombine.low %v14351_v48, %v14354_v52  ;;  %v17498_v6 = vld [vmem:[#allocation31_spill] sm:$0xff] }
 0x13a   :  { %4845 = vmatprep.mubr.bf16.mxu0 %v17227_v32  ;;  %10336 = vmatmul.mubr.msk.bf16.gmra.mrb[8].mxu1 %vm21_vm0, %v2058_v11  ;;  %v11868_v11 = vld [vmem:[%s16872_s1 + $0x35c] ss:$8 sps:$4 sm:$0xff]   ;;  %v14395_v42 = vcombine.low %v14375_v35, %v14378_v24  ;;  %v4714_v1 = vcombine.low %v14413_v10, %v14348_v9  ;;  %v17497_v52 = vld [vmem:[#allocation25_spill] sm:$0xff] }
 0x13b   :  { %2187 = vmatprep.mubr.bf16.mxu1 %v17227_v32  ;;  %v5076_v48 = vsel %vm526_vm2, %v10578_v31, 0 }
 0x13c   :  { %17489 = vst [vmem:[#allocation96_spill] sm:$0xff] %v14395_v42 }
 0x141   :  { %10560 = vmatmul.mubr.msk.bf16.vlgmr.msra.gmra.mrb[0].mxu0 %vm21_vm0, %v4744_v59  ;;  %v2060_v59 = vpack.c.bf16 %v14395_v42, %v14395_v42 }
 0x142   :  { %4855 = vmatprep.mubr.bf16.mxu0 %v17227_v32  ;;  %10337 = vmatmul.mubr.msk.bf16.gmra.mrb[12].mxu1 %vm21_vm0, %v2059_v60  ;;  %v2266_v60 = vrot.slane %v2258_v12, %v12394_v17  ;;  %v17494_v12 = vld [vmem:[#allocation92_spill] sm:$0xff] }
 0x143   :  { %5082 = vmatpush1.bf16.msra.mxu0 %v11860_v15  ;;  %2197 = vmatprep.mubr.bf16.mxu1 %v17227_v32  ;;  %v2273_v15 = vrot.slane %v2259_v53, %v12394_v17  ;;  %v2933_v53 = vcombine.low %v17431_v25, %v17494_v12  ;;  %v2284_v25 = vcombine.low %v17474_v58, %v17497_v52  ;;  %v17499_v12 = vld [vmem:[#allocation26_spill] sm:$0xff] }
 0x144   :  { %5083 = vmatprep.subr.bf16.mxu0 %v11868_v11  ;;  %v14423_v11 = vrot.slane %v2275_v18, %v12394_v17 }
 0x145   :  { %v2274_v57 = vcombine.low %v2266_v60, %v2273_v15  ;;  %v4746_v60 = vpack.c.bf16 %v4715_v33, %v4714_v1  ;;  %v14452_v15 = vrot.slane %v2933_v53, %v12394_v17  ;;  %v14461_v31 = vrot.slane %v2284_v25, %v12394_v17  ;;  %v11888_v1 = vld [vmem:[%s16872_s1 + $0x164] ss:$8 sps:$4 sm:$0xff]  }
 0x146   :  { %v2283_v18 = vcombine.low %v13821_v47, %v14423_v11  ;;  %v11885_v47 = vld [vmem:[%s16872_s1 + $0x384] ss:$8 sps:$4 sm:$0xff]   ;;  %v4716_v33 = vcombine.low %v14345_v21, %v14375_v35  ;;  %v11886_v35 = vld [vmem:[%s16872_s1 + $0x160] ss:$8 sps:$4 sm:$0xff]  }
 0x147   :  { %5084 = vmatpush1.bf16.msra.mxu0 %v11866_v16  ;;  %v17495_v16 = vld [vmem:[#allocation42_spill] sm:$0xff]  ;;  %v4717_v53 = vcombine.low %v14378_v24, %v14452_v15 }
 0x148   :  { %5085 = vmatprep.subr.bf16.mxu0 %v11874_v39  ;;  %v17496_v39 = vld [vmem:[#allocation30_spill] sm:$0xff] }
 0x149   :  { %10561 = vmatmul.mubr.msk.bf16.gmra.mrb[4].mxu0 %vm21_vm0, %v4745_v7  ;;  %v2294_v7 = vcombine.low %v17496_v39, %v17495_v16 }
 0x14a   :  { %4865 = vmatprep.mubr.bf16.mxu0 %v17227_v32  ;;  %10338 = vmatmul.mubr.msk.bf16.gmra.mrb[16].mxu1 %vm21_vm0, %v2060_v59  ;;  %v2293_v59 = vcombine.low %v17499_v12, %v17498_v6 }
 0x14b   :  { %5086 = vmatpush1.bf16.msra.mxu0 %v11872_v44  ;;  %2489 = vmatprep.mubr.bf16.mxu1 %v17227_v32  ;;  %v2388_v44 = vpack.c.bf16 %v2283_v18, %v2274_v57  ;;  %v14455_v42 = vrot.slane %v2294_v7, %v12394_v17  ;;  %v12203_v57 = vld.sshfl [vmem:[#allocation2 + $0x108] sm:$0x3 pattern:$0x76325410]  ;;  %v4719_v7 = vcombine.low %v13803_v61, %v14240_v26  ;;  %v11894_v61 = vld [vmem:[%s16872_s1 + $0x174] ss:$8 sps:$4 sm:$0xff]  }
 0x14c   :  { %10580 = vmatprep.subr.msk.bf16.mxu0 %vm526_vm2, %v10579_v2  ;;  %v11880_v2 = vld [vmem:[%s16872_s1 + $0x150] ss:$8 sps:$4 sm:$0xff]   ;;  %v2301_v6 = vrot.slane %v2293_v59, %v12394_v17  ;;  %v4718_v18 = vcombine.low %v12203_v57, %v13564_v3  ;;  %v4747_v26 = vpack.c.bf16 %v4717_v53, %v4716_v33  ;;  %v10368_v59 = vld [vmem:[%s16872_s1 + $0x180] sm:$0x11]  ;;  %v17502_v53 = vld [vmem:[#allocation73_spill] sm:$0xff] }
 0x14d   :  { %v14491_v12 = vrot.slane %v4719_v7, %v12394_v17  ;;  %v112_v33 = vld [vmem:[#allocation2 + $0x80] sm:$0xff]  ;;  %v17504_v7 = vld [vmem:[#allocation66_spill] sm:$0xff] }
 0x14e   :  { %v2309_v25 = vcombine.low %v2301_v6, %v14455_v42  ;;  %v14488_v24 = vrot.slane %v4718_v18, %v12394_v17  ;;  %v17503_v57 = vld [vmem:[#allocation68_spill] sm:$0xff] }
 0x14f   :  { %5088 = vmatpush1.bf16.msra.mxu0 %v5076_v48  ;;  %v2292_v48 = vcombine.low %v14461_v31, %v13632_v5  ;;  %17501 = vst [vmem:[#allocation55_spill] sm:$0xff] %v14491_v12  ;;  %v2353_v18 = vcombine.low %v17503_v57, %v17502_v53  ;;  %v14517_v53 = vrot.slane %v112_v33, %v12394_v17 }
 0x150   :  { %5337 = vmatprep.subr.bf16.mxu0 %v11885_v47  ;;  %17500 = vst [vmem:[#allocation33_spill] sm:$0xff] %v14488_v24  ;;  %v4914_v57 = vcombine.high %v112_v33, %v112_v33 }
 0x151   :  { %10562 = vmatmul.mubr.msk.bf16.gmra.mrb[8].mxu0 %vm21_vm0, %v4746_v60  ;;  %v2389_v47 = vpack.c.bf16 %v2309_v25, %v2292_v48  ;;  %v11892_v60 = vld [vmem:[%s16872_s1 + $0x170] ss:$8 sps:$4 sm:$0xff]  }
 0x152   :  { %4875 = vmatprep.mubr.bf16.mxu0 %v17227_v32  ;;  %10355 = vmatmul.mubr.msk.bf16.vlgmr.msra.gmra.mrb[0].mxu1 %vm21_vm0, %v2388_v44  ;;  %v10376_v44 = vcombine.high %v10368_v59, %v10368_v59  ;;  %v17505_v48 = vld [vmem:[#allocation62_spill] sm:$0xff] }
 0x153   :  { %2499 = vmatprep.mubr.bf16.mxu1 %v17227_v32  ;;  %2778 = vmatpush1.bf16.msra.mxu1 %v11880_v2  ;;  %v10375_v2 = vcombine.low %v10368_v59, %v10368_v59  ;;  %v2336_v25 = vcombine.low %v17505_v48, %v17504_v7  ;;  %v11905_v59 = vld [vmem:[%s16872_s1 + $0x18c] ss:$8 sps:$4 sm:$0xff]  }
 0x154   :  { %2779 = vmatprep.subr.bf16.mxu1 %v11888_v1  ;;  %v4734_v1 = vcombine.low %v14488_v24, %v14491_v12  ;;  %v17508_v12 = vld [vmem:[#allocation125_spill] sm:$0xff] }
 0x155   :  { %v2344_v7 = vrot.slane %v2336_v25, %v12394_v17 }
 0x157   :  { %2780 = vmatpush1.bf16.msra.mxu1 %v11886_v35  ;;  %v17506_v35 = vld [vmem:[#allocation67_spill] sm:$0xff] }
 0x158   :  { %2781 = vmatprep.subr.bf16.mxu1 %v11894_v61  ;;  %v2337_v61 = vcombine.low %v17484_v0, %v17506_v35 }
 0x159   :  { %10563 = vmatmul.mubr.msk.bf16.gmra.mrb[12].mxu0 %vm21_vm0, %v4747_v26  ;;  %v2772_v26 = vsel %vm526_vm2, %v10375_v2, 0  ;;  %v4947_v2 = vcombine.low %v13632_v5, %v2301_v6  ;;  %v17509_v5 = vld [vmem:[#allocation87_spill] sm:$0xff] }
 0x15a   :  { %4885 = vmatprep.mubr.bf16.mxu0 %v17227_v32  ;;  %10356 = vmatmul.mubr.msk.bf16.gmra.mrb[4].mxu1 %vm21_vm0, %v2389_v47  ;;  %v4748_v47 = vpack.c.bf16 %v4734_v1, %v4734_v1  ;;  %v2351_v48 = vrot.slane %v2337_v61, %v12394_v17  ;;  %v17507_v1 = vld [vmem:[#allocation129_spill] sm:$0xff] }
 0x15b   :  { %2509 = vmatprep.mubr.bf16.mxu1 %v17227_v32  ;;  %2782 = vmatpush1.bf16.msra.mxu1 %v11892_v60  ;;  %v14520_v60 = vrot.slane %v2353_v18, %v12394_v17  ;;  %v4949_v24 = vcombine.low %v17508_v12, %v17507_v1  ;;  %v4950_v18 = vcombine.low %v13428_v14, %v14517_v53 }
 0x15c   :  { %10377 = vmatprep.subr.msk.bf16.mxu1 %vm526_vm2, %v10376_v44  ;;  %v4946_v44 = vcombine.low %v14423_v11, %v14461_v31  ;;  %v2352_v33 = vcombine.low %v2344_v7, %v2351_v48  ;;  %v14539_v11 = vrot.slane %v4914_v57, %v12394_v17  ;;  %v2362_v31 = vcombine.low %v17486_v41, %v17509_v5  ;;  %v11891_v57 = vld [vmem:[%s16872_s1 + $0x394] ss:$8 sps:$4 sm:$0xff]  }
 0x15d   :  { %v2361_v25 = vcombine.low %v13966_v50, %v14520_v60  ;;  %v4957_v12 = vrot.slane %v4949_v24, %v12394_v17  ;;  %v4964_v61 = vrot.slane %v4950_v18, %v12394_v17  ;;  %v4948_v24 = vcombine.low %v14455_v42, %v13635_v62  ;;  %v11889_v18 = vld [vmem:[%s16872_s1 + $0x390] ss:$8 sps:$4 sm:$0xff]   ;;  %v11898_v62 = vld [vmem:[%s16872_s1 + $0x3a4] ss:$8 sps:$4 sm:$0xff]  }
 0x15e   :  { %v5012_v6 = vpack.c.bf16 %v4947_v2, %v4946_v44 }
 0x15f   :  { %2784 = vmatpush1.bf16.msra.mxu1 %v2772_v26  ;;  %v2391_v26 = vpack.c.bf16 %v2361_v25, %v2352_v33  ;;  %v4965_v44 = vcombine.low %v4957_v12, %v4964_v61  ;;  %v10594_v25 = vld [vmem:[%s16872_s1 + $0x3b0] sm:$0x11]  ;;  %v11896_v12 = vld [vmem:[%s16872_s1 + $0x3a0] ss:$8 sps:$4 sm:$0xff]   ;;  %v4975_v61 = vcombine.low %v2351_v48, %v13966_v50 }
 0x160   :  { %3027 = vmatprep.subr.bf16.mxu1 %v11905_v59  ;;  %v11883_v59 = vld [vmem:[%s16872_s1 + $0x380] ss:$8 sps:$4 sm:$0xff]  }
 0x161   :  { %10564 = vmatmul.mubr.msk.bf16.gmra.mrb[16].mxu0 %vm21_vm0, %v4748_v47  ;;  %v2370_v47 = vrot.slane %v2362_v31, %v12394_v17  ;;  %v5013_v42 = vpack.c.bf16 %v4965_v44, %v4948_v24  ;;  %v17510_v24 = vld [vmem:[#allocation140_spill] sm:$0xff] }
 0x162   :  { %5113 = vmatprep.mubr.bf16.mxu0 %v17227_v32  ;;  %10357 = vmatmul.mubr.msk.bf16.gmra.mrb[8].mxu1 %vm21_vm0, %v14045_v34  ;;  %v14547_v34 = vcombine.high %v14517_v53, %v14517_v53  ;;  %v4977_v44 = vcombine.low %v13535_v51, %v17510_v24 }
 0x163   :  { %2519 = vmatprep.mubr.bf16.mxu1 %v17227_v32  ;;  %v2378_v1 = vcombine.low %v2370_v47, %v14054_v13 }
 0x164   :  { %v4966_v2 = vcombine.low %v14547_v34, %v14539_v11 }
 0x165   :  { %v2392_v31 = vpack.c.bf16 %v2378_v1, %v2378_v1 }
 0x166   :  { %v14572_v33 = vrot.slane %v4966_v2, %v12394_v17 }
 0x169   :  { %10581 = vmatmul.mubr.msk.bf16.vlgmr.msra.gmra.mrb[0].mxu0 %vm21_vm0, %v5012_v6  ;;  %v132_v6 = vld [vmem:[#allocation2 + $0x120] sm:$0xff] }
 0x16a   :  { %5123 = vmatprep.mubr.bf16.mxu0 %v17227_v32  ;;  %10358 = vmatmul.mubr.msk.bf16.gmra.mrb[12].mxu1 %vm21_vm0, %v2391_v26  ;;  %v10602_v26 = vcombine.high %v10594_v25, %v10594_v25  ;;  %v4930_v2 = vcombine.high %v132_v6, %v132_v6  ;;  %v14586_v1 = vrot.slane %v132_v6, %v12394_v17 }
 0x16b   :  { %5338 = vmatpush1.bf16.msra.mxu0 %v11883_v59  ;;  %2529 = vmatprep.mubr.bf16.mxu1 %v17227_v32  ;;  %v10601_v59 = vcombine.low %v10594_v25, %v10594_v25  ;;  %v11903_v25 = vld [vmem:[%s16872_s1 + $0x188] ss:$8 sps:$4 sm:$0xff]   ;;  %v4976_v6 = vcombine.low %v14520_v60, %v2370_v47  ;;  %v11909_v60 = vld [vmem:[%s16872_s1 + $0x198] ss:$8 sps:$4 sm:$0xff]   ;;  %v11917_v47 = vld [vmem:[%s16872_s1 + $0x1ac] ss:$8 sps:$4 sm:$0xff]  }
 0x16c   :  { %5339 = vmatprep.subr.bf16.mxu0 %v11891_v57  ;;  %v4974_v57 = vcombine.low %v14572_v33, %v2344_v7  ;;  %v11908_v7 = vld [vmem:[%s16872_s1 + $0x3bc] ss:$8 sps:$4 sm:$0xff]  }
 0x16d   :  { %v5332_v48 = vsel %vm526_vm2, %v10601_v59, 0  ;;  %v17511_v59 = vld [vmem:[#allocation53_spill] sm:$0xff] }
 0x16e   :  { %v5014_v51 = vpack.c.bf16 %v4975_v61, %v4974_v57  ;;  %v4986_v61 = vcombine.low %v13564_v3, %v14586_v1  ;;  %v17512_v57 = vld [vmem:[#allocation119_spill] sm:$0xff] }
 0x16f   :  { %5340 = vmatpush1.bf16.msra.mxu0 %v11889_v18  ;;  %v4984_v18 = vrot.slane %v4977_v44, %v12394_v17  ;;  %v2631_v24 = vcombine.low %v17512_v57, %v17511_v59  ;;  %v17513_v44 = vld [vmem:[#allocation120_spill] sm:$0xff]  ;;  %v5184_v57 = vrot.slane %v14547_v34, 7 }
 0x170   :  { %5341 = vmatprep.subr.bf16.mxu0 %v11898_v62  ;;  %v14598_v62 = vrot.slane %v4930_v2, %v12394_v17  ;;  %v17514_v2 = vld [vmem:[#allocation54_spill] sm:$0xff] }
 0x171   :  { %10582 = vmatmul.mubr.msk.bf16.gmra.mrb[4].mxu0 %vm21_vm0, %v5013_v42  ;;  %v14602_v42 = vcombine.high %v14586_v1, %v14586_v1 }
 0x172   :  { %5133 = vmatprep.mubr.bf16.mxu0 %v17227_v32  ;;  %10359 = vmatmul.mubr.msk.bf16.gmra.mrb[16].mxu1 %vm21_vm0, %v2392_v31  ;;  %v11911_v31 = vld [vmem:[%s16872_s1 + $0x19c] ss:$8 sps:$4 sm:$0xff]  }
 0x173   :  { %5342 = vmatpush1.bf16.msra.mxu0 %v11896_v12  ;;  %2809 = vmatprep.mubr.bf16.mxu1 %v17227_v32  ;;  %v4985_v12 = vcombine.low %v14054_v13, %v4984_v18  ;;  %v10395_v18 = vld [vmem:[%s16872_s1 + $0x1b8] sm:$0x11] }
 0x174   :  { %10603 = vmatprep.subr.msk.bf16.mxu0 %vm526_vm2, %v10602_v26  ;;  %v4987_v26 = vcombine.low %v14602_v42, %v14598_v62 }
 0x177   :  { %5344 = vmatpush1.bf16.msra.mxu0 %v5332_v48  ;;  %v2647_v48 = vcombine.low %v17514_v2, %v17513_v44  ;;  %v17515_v2 = vld [vmem:[#allocation126_spill] sm:$0xff] }
 0x178   :  { %5555 = vmatprep.subr.bf16.mxu0 %v11908_v7  ;;  %v5015_v7 = vpack.c.bf16 %v4985_v12, %v4976_v6  ;;  %v10403_v6 = vcombine.high %v10395_v18, %v10395_v18  ;;  %v10402_v12 = vcombine.low %v10395_v18, %v10395_v18 }
 0x179   :  { %10583 = vmatmul.mubr.msk.bf16.gmra.mrb[8].mxu0 %vm21_vm0, %v5014_v51  ;;  %v14633_v51 = vrot.slane %v4987_v26, %v12394_v17  ;;  %v2654_v59 = vrot.slane %v2647_v48, %v12394_v17  ;;  %v10586_v26 = vrot.slane %v14517_v53, 9  ;;  %v2673_v48 = vcombine.low %v17515_v2, %v17458_v20 }
 0x17a   :  { %5143 = vmatprep.mubr.bf16.mxu0 %v17227_v32  ;;  %10378 = vmatmul.mubr.msk.bf16.vlgmr.msra.gmra.mrb[0].mxu1 %vm21_vm0, %v14119_v49  ;;  %v4994_v49 = vrot.slane %v4986_v61, %v12394_v17  ;;  %v5187_v20 = vrot.slane %v14539_v11, 7 }
 0x17b   :  { %2819 = vmatprep.mubr.bf16.mxu1 %v17227_v32  ;;  %3028 = vmatpush1.bf16.msra.mxu1 %v11903_v25  ;;  %v2645_v25 = vrot.slane %v2631_v24, %v12394_v17  ;;  %v2655_v44 = vcombine.low %v2654_v59, %v14146_v22  ;;  %v14663_v22 = vcombine.high %v14539_v11, %v14539_v11 }
 0x17c   :  { %3029 = vmatprep.subr.bf16.mxu1 %v11911_v31  ;;  %v11915_v31 = vld [vmem:[%s16872_s1 + $0x1a8] ss:$8 sps:$4 sm:$0xff]   ;;  %v5002_v61 = vcombine.low %v4994_v49, %v14633_v51 }
 0x17d   :  { %v2646_v24 = vcombine.low %v13716_v8, %v2645_v25  ;;  %v14668_v25 = vsel %vm12455_vm8, %v10586_v26, %v5184_v57  ;;  %v5186_v26 = vrot.slane %v5184_v57, 2 }
 0x17e   :  { %v5016_v18 = vpack.c.bf16 %v5002_v61, %v5002_v61  ;;  %v5206_v61 = vcombine.low %v17464_v36, %v14668_v25 }
 0x17f   :  { %3030 = vmatpush1.bf16.msra.mxu1 %v11909_v60  ;;  %v17516_v60 = vld [vmem:[#allocation121_spill] sm:$0xff]  ;;  %v2710_v59 = vpack.c.bf16 %v2655_v44, %v2646_v24  ;;  %v5189_v24 = vrot.slane %v5187_v20, 2  ;;  %v17150_v44 = vrot.slane %v14663_v22, 7 }
 0x180   :  { %3031 = vmatprep.subr.bf16.mxu1 %v11917_v47  ;;  %v2656_v47 = vcombine.low %v17516_v60, %v17446_v30  ;;  %v14671_v30 = vrot.slane %v2673_v48, %v12394_v17  ;;  %v17519_v48 = vld [vmem:[#allocation35_spill] sm:$0xff]  ;;  %v5220_v57 = vrot.slane %v5206_v61, %v12394_v17  ;;  %v17522_v61 = vld [vmem:[#allocation117_spill] sm:$0xff] }
 0x181   :  { %10584 = vmatmul.mubr.msk.bf16.gmra.mrb[12].mxu0 %vm21_vm0, %v5015_v7  ;;  %v17517_v7 = vld [vmem:[#allocation70_spill] sm:$0xff]  ;;  %v17520_v60 = vld [vmem:[#allocation83_spill] sm:$0xff] }
 0x182   :  { %5153 = vmatprep.mubr.bf16.mxu0 %v17227_v32  ;;  %10379 = vmatmul.mubr.msk.bf16.gmra.mrb[4].mxu1 %vm21_vm0, %v14177_v40  ;;  %v2657_v49 = vcombine.low %v17449_v38, %v17517_v7  ;;  %v3022_v40 = vsel %vm526_vm2, %v10402_v12, 0  ;;  %v17518_v38 = vld [vmem:[#allocation132_spill] sm:$0xff]  ;;  %v2681_v2 = vcombine.low %v14139_v55, %v14671_v30  ;;  %v14698_v7 = vsel %vm12455_vm8, %v5186_v26, %v5187_v20  ;;  %v11914_v20 = vld [vmem:[%s16872_s1 + $0x3cc] ss:$8 sps:$4 sm:$0xff]  }
 0x183   :  { %2829 = vmatprep.mubr.bf16.mxu1 %v17227_v32  ;;  %3032 = vmatpush1.bf16.msra.mxu1 %v11915_v31  ;;  %v5205_v31 = vcombine.low %v17518_v38, %v13722_v27  ;;  %v5204_v26 = vcombine.low %v17522_v61, %v13716_v8 }
 0x184   :  { %10404 = vmatprep.subr.msk.bf16.mxu1 %vm526_vm2, %v10403_v6  ;;  %v14676_v6 = vrot.slane %v2656_v47, %v12394_v17  ;;  %v14679_v12 = vrot.slane %v2657_v49, %v12394_v17  ;;  %v2682_v47 = vcombine.low %v17520_v60, %v17519_v48  ;;  %v14704_v49 = vsel %vm12455_vm8, %v5189_v24, %v17150_v44  ;;  %v11912_v48 = vld [vmem:[%s16872_s1 + $0x3c8] ss:$8 sps:$4 sm:$0xff]   ;;  %v11920_v60 = vld [vmem:[%s16872_s1 + $0x3dc] ss:$8 sps:$4 sm:$0xff]  }
 0x185   :  { %v5213_v36 = vrot.slane %v5205_v31, %v12394_v17  ;;  %v17521_v31 = vld [vmem:[#allocation59_spill] sm:$0xff] }
 0x186   :  { %v2672_v27 = vcombine.low %v14676_v6, %v14679_v12  ;;  %v14712_v38 = vrot.slane %v2682_v47, %v12394_v17 }
 0x187   :  { %3034 = vmatpush1.bf16.msra.mxu1 %v3022_v40  ;;  %v5221_v24 = vcombine.low %v5213_v36, %v5220_v57  ;;  %v5194_v36 = vrot.slane %v14602_v42, 7 }
 0x188   :  { %v2711_v40 = vpack.c.bf16 %v2681_v2, %v2672_v27  ;;  %v2698_v27 = vcombine.low %v14712_v38, %v14267_v28  ;;  %v10383_v2 = vcombine.high %v17468_v29, %v17492_v54  ;;  %v5197_v29 = vrot.slane %v14598_v62, 7  ;;  %v10617_v54 = vld [vmem:[%s16872_s1 + $0x3e8] sm:$0x11] }
 0x189   :  { %10585 = vmatmul.mubr.msk.bf16.gmra.mrb[16].mxu0 %vm21_vm0, %v5016_v18  ;;  %v11906_v18 = vld [vmem:[%s16872_s1 + $0x3b8] ss:$8 sps:$4 sm:$0xff]   ;;  %v5269_v47 = vpack.c.bf16 %v5221_v24, %v5204_v26  ;;  %v10625_v61 = vcombine.high %v10617_v54, %v10617_v54  ;;  %v10624_v26 = vcombine.low %v10617_v54, %v10617_v54 }
 0x18a   :  { %5369 = vmatprep.mubr.bf16.mxu0 %v17227_v32  ;;  %10380 = vmatmul.mubr.msk.bf16.gmra.mrb[8].mxu1 %vm21_vm0, %v2710_v59  ;;  %v5222_v59 = vcombine.low %v14698_v7, %v14704_v49  ;;  %v2712_v57 = vpack.c.bf16 %v2698_v27, %v2698_v27  ;;  %v17523_v24 = vld [vmem:[#allocation108_spill] sm:$0xff]  ;;  %v5199_v44 = vrot.slane %v5197_v29, 2 }
 0x18b   :  { %2839 = vmatprep.mubr.bf16.mxu1 %v17227_v32  ;;  %v5233_v27 = vcombine.low %v17523_v24, %v13859_v45  ;;  %v5550_v45 = vsel %vm526_vm2, %v10624_v26, 0  ;;  %v17526_v26 = vld [vmem:[#allocation127_spill] sm:$0xff] }
 0x18c   :  { %v14732_v8 = vrot.slane %v5222_v59, %v12394_v17  ;;  %v11918_v59 = vld [vmem:[%s16872_s1 + $0x3d8] ss:$8 sps:$4 sm:$0xff]  }
 0x191   :  { %10604 = vmatmul.mubr.msk.bf16.vlgmr.msra.gmra.mrb[0].mxu0 %vm21_vm0, %v17521_v31  ;;  %v5231_v31 = vcombine.low %v14679_v12, %v14139_v55 }
 0x192   :  { %5379 = vmatprep.mubr.bf16.mxu0 %v17227_v32  ;;  %10381 = vmatmul.mubr.msk.bf16.gmra.mrb[12].mxu1 %vm21_vm0, %v2711_v40  ;;  %v14744_v40 = vcombine.high %v14598_v62, %v14598_v62 }
 0x193   :  { %5556 = vmatpush1.bf16.msra.mxu0 %v11906_v18  ;;  %2849 = vmatprep.mubr.bf16.mxu1 %v17227_v32  ;;  %v2883_v18 = vrot.slane %v10383_v2, %v12394_v17  ;;  %v10587_v2 = vrot.slane %v14586_v1, 9 }
 0x194   :  { %5557 = vmatprep.subr.bf16.mxu0 %v11914_v20  ;;  %v5230_v20 = vcombine.low %v14732_v8, %v14676_v6  ;;  %v5200_v6 = vrot.slane %v14744_v40, 7 }
 0x195   :  { %v2884_v12 = vcombine.low %v17524_v23, %v2883_v18  ;;  %v11927_v23 = vld [vmem:[%s16872_s1 + $0x3f4] ss:$8 sps:$4 sm:$0xff]  }
 0x196   :  { %v5270_v18 = vpack.c.bf16 %v5231_v31, %v5230_v20 }
 0x197   :  { %5558 = vmatpush1.bf16.msra.mxu0 %v11912_v48  ;;  %v5196_v48 = vrot.slane %v5194_v36, 2 }
 0x198   :  { %5559 = vmatprep.subr.bf16.mxu0 %v11920_v60  ;;  %v17525_v60 = vld [vmem:[#allocation124_spill] sm:$0xff] }
 0x199   :  { %10605 = vmatmul.mubr.msk.bf16.gmra.mrb[4].mxu0 %vm21_vm0, %v5269_v47  ;;  %v2885_v54 = vcombine.low %v14238_v19, %v17525_v60  ;;  %v10385_v47 = vcombine.high %v17496_v39, %v17495_v16  ;;  %v5240_v19 = vrot.slane %v5233_v27, %v12394_v17  ;;  %v14777_v16 = vsel %vm12455_vm8, %v10587_v2, %v5194_v36  ;;  %v17527_v27 = vld [vmem:[#allocation45_spill] sm:$0xff] }
 0x19a   :  { %5389 = vmatprep.mubr.bf16.mxu0 %v17227_v32  ;;  %10382 = vmatmul.mubr.msk.bf16.gmra.mrb[16].mxu1 %vm21_vm0, %v2712_v57  ;;  %v10384_v57 = vcombine.high %v17474_v58, %v17497_v52  ;;  %v14781_v39 = vsel %vm12455_vm8, %v5196_v48, %v5197_v29  ;;  %v14787_v58 = vsel %vm12455_vm8, %v5199_v44, %v5200_v6 }
 0x19b   :  { %5560 = vmatpush1.bf16.msra.mxu0 %v11918_v59  ;;  %3059 = vmatprep.mubr.bf16.mxu1 %v17227_v32  ;;  %v2958_v52 = vpack.c.bf16 %v2885_v54, %v2884_v12  ;;  %v14790_v59 = vrot.slane %v10385_v47, %v12394_v17  ;;  %v5232_v36 = vcombine.low %v14671_v30, %v14712_v38  ;;  %v70_v54 = vld [vmem:[%s16873_s0 + $0x38] sm:$0xff]  ;;  %v17528_v47 = vld [vmem:[#allocation141_spill] sm:$0xff] }
 0x19c   :  { %10626 = vmatprep.subr.msk.bf16.mxu0 %vm526_vm2, %v10625_v61  ;;  %v2893_v20 = vrot.slane %v10384_v57, %v12394_v17  ;;  %v5241_v29 = vcombine.low %v14267_v28, %v5240_v19  ;;  %v5242_v31 = vcombine.low %v13865_v46, %v14777_v16  ;;  %v5243_v44 = vcombine.low %v14781_v39, %v14787_v58 }
 0x19d   :  { %v2903_v24 = vcombine.low %v17526_v26, %v14790_v59  ;;  %v10386_v30 = vcombine.high %v17429_v56, %v17527_v27  ;;  %87 = vst.msk [vmem:[#allocation2 + $0x90] sm:$0xff] %vm21_vm0, %v70_v54  ;;  %v5438_v27 = vcombine.low %v14790_v59, %v13925_v63  ;;  %v78_v59 = vld [vmem:[%s16873_s0 + $0x78] sm:$0xff]  ;;  %v10640_v54 = vld [vmem:[%s16872_s1 + $0x420] sm:$0x11] }
 0x19e   :  { %v2894_v61 = vcombine.low %v2893_v20, %v13919_v37  ;;  %v5271_v38 = vpack.c.bf16 %v5241_v29, %v5232_v36  ;;  %v5250_v46 = vrot.slane %v5242_v31, %v12394_v17  ;;  %v14811_v2 = vrot.slane %v5243_v44, %v12394_v17  ;;  %95 = vst.msk [vmem:[#allocation2 + $0x130] sm:$0xff] %vm21_vm0, %v78_v59  ;;  %v17535_v59 = vld [vmem:[#allocation51_spill] sm:$0xff] }
 0x19f   :  { %5562 = vmatpush1.bf16.msra.mxu0 %v5550_v45  ;;  %v2920_v12 = vrot.slane %v10386_v30, %v12394_v17  ;;  %v2912_v45 = vcombine.low %v13925_v63, %v17528_v47  ;;  %v5436_v36 = vcombine.low %v17525_v60, %v2893_v20  ;;  %v5437_v29 = vcombine.low %v13919_v37, %v17526_v26  ;;  %v11933_v63 = vld [vmem:[%s16872_s1 + $0x414] ss:$8 sps:$4 sm:$0xff]   ;;  %v11931_v47 = vld [vmem:[%s16872_s1 + $0x410] ss:$8 sps:$4 sm:$0xff]  }
 0x1a0   :  { %5795 = vmatprep.subr.bf16.mxu0 %v11927_v23  ;;  %v2959_v48 = vpack.c.bf16 %v2903_v24, %v2894_v61  ;;  %v5258_v56 = vcombine.low %v5250_v46, %v14811_v2  ;;  %v10387_v23 = vcombine.high %v17484_v0, %v17506_v35  ;;  %v10609_v31 = vcombine.high %v13428_v14, %v14517_v53  ;;  %v17530_v35 = vld [vmem:[#allocation138_spill] sm:$0xff]  ;;  %v11930_v24 = vld [vmem:[%s16872_s1 + $0x404] ss:$8 sps:$4 sm:$0xff]   ;;  %v11928_v46 = vld [vmem:[%s16872_s1 + $0x400] ss:$8 sps:$4 sm:$0xff]  }
 0x1a1   :  { %10606 = vmatmul.mubr.msk.bf16.gmra.mrb[8].mxu0 %vm21_vm0, %v5270_v18  ;;  %v2921_v57 = vcombine.low %v2920_v12, %v14348_v9  ;;  %v17529_v9 = vld [vmem:[#allocation133_spill] sm:$0xff]  ;;  %v2931_v44 = vcombine.low %v14345_v21, %v17530_v35  ;;  %v10388_v60 = vcombine.high %v17486_v41, %v17509_v5  ;;  %v5486_v20 = vpack.c.bf16 %v5437_v29, %v5436_v36  ;;  %v11925_v14 = vld [vmem:[%s16872_s1 + $0x3f0] ss:$8 sps:$4 sm:$0xff]  }
 0x1a2   :  { %5399 = vmatprep.mubr.bf16.mxu0 %v17227_v32  ;;  %10405 = vmatmul.mubr.msk.bf16.vlgmr.msra.gmra.mrb[0].mxu1 %vm21_vm0, %v2958_v52  ;;  %v5272_v18 = vpack.c.bf16 %v5258_v56, %v5258_v56  ;;  %v2929_v52 = vrot.slane %v10387_v23, %v12394_v17  ;;  %v5446_v37 = vrot.slane %v10609_v31, %v12394_v17  ;;  %v17531_v41 = vld [vmem:[#allocation61_spill] sm:$0xff]  ;;  %v17532_v31 = vld [vmem:[#allocation28_spill] sm:$0xff] }
 0x1a3   :  { %3069 = vmatprep.mubr.bf16.mxu1 %v17227_v32  ;;  %v2960_v19 = vpack.c.bf16 %v2921_v57, %v2912_v45  ;;  %v2940_v26 = vrot.slane %v10388_v60, %v12394_v17  ;;  %v5448_v30 = vcombine.low %v14539_v11, %v14663_v22  ;;  %v10648_v45 = vcombine.high %v10640_v54, %v10640_v54  ;;  %v11938_v36 = vld [vmem:[%s16872_s1 + $0x42c] ss:$8 sps:$4 sm:$0xff]  }
 0x1a4   :  { %v2930_v0 = vcombine.low %v17529_v9, %v2929_v52  ;;  %v5447_v5 = vcombine.low %v17531_v41, %v5446_v37  ;;  %v10647_v57 = vcombine.low %v10640_v54, %v10640_v54  ;;  %v17537_v54 = vld [vmem:[#allocation56_spill] sm:$0xff] }
 0x1a5   :  { %v14871_v12 = vrot.slane %v5448_v30, %v12394_v17 }
 0x1a6   :  { %v2961_v61 = vpack.c.bf16 %v2931_v44, %v2930_v0  ;;  %v10610_v0 = vcombine.high %v13564_v3, %v14586_v1  ;;  %v5461_v44 = vcombine.low %v14598_v62, %v14744_v40  ;;  %v17533_v3 = vld [vmem:[#allocation11_spill] sm:$0xff] }
 0x1a7   :  { %v5456_v23 = vcombine.low %v14871_v12, %v17529_v9  ;;  %v5459_v9 = vcombine.low %v14452_v15, %v17532_v31 }
 0x1a8   :  { %v14902_v37 = vrot.slane %v5461_v44, %v12394_v17 }
 0x1a9   :  { %10607 = vmatmul.mubr.msk.bf16.gmra.mrb[12].mxu0 %vm21_vm0, %v5271_v38  ;;  %v2948_v38 = vcombine.low %v2940_v26, %v14452_v15 }
 0x1aa   :  { %5409 = vmatprep.mubr.bf16.mxu0 %v17227_v32  ;;  %10406 = vmatmul.mubr.msk.bf16.gmra.mrb[4].mxu1 %vm21_vm0, %v2959_v48  ;;  %v5487_v48 = vpack.c.bf16 %v5447_v5, %v5438_v27 }
 0x1ab   :  { %3079 = vmatprep.mubr.bf16.mxu1 %v17227_v32  ;;  %v2962_v56 = vpack.c.bf16 %v2948_v38, %v2948_v38 }
 0x1b1   :  { %10608 = vmatmul.mubr.msk.bf16.gmra.mrb[16].mxu0 %vm21_vm0, %v5272_v18  ;;  %v5457_v18 = vcombine.low %v2929_v52, %v14345_v21  ;;  %v5458_v52 = vcombine.low %v17530_v35, %v2940_v26  ;;  %v5679_v26 = vcombine.low %v17533_v3, %v14698_v7 }
 0x1b2   :  { %5587 = vmatprep.mubr.bf16.mxu0 %v17227_v32  ;;  %10407 = vmatmul.mubr.msk.bf16.gmra.mrb[8].mxu1 %vm21_vm0, %v2960_v19  ;;  %v5790_v19 = vsel %vm526_vm2, %v10647_v57, 0 }
 0x1b3   :  { %3089 = vmatprep.mubr.bf16.mxu1 %v17227_v32  ;;  %v5488_v29 = vpack.c.bf16 %v5457_v18, %v5456_v23  ;;  %v5489_v60 = vpack.c.bf16 %v5459_v9, %v5458_v52  ;;  %v5686_v30 = vrot.slane %v5679_v26, %v12394_v17  ;;  %v11939_v23 = vld [vmem:[%s16872_s1 + $0x438] ss:$8 sps:$4 sm:$0xff]   ;;  %v11944_v18 = vld [vmem:[%s16872_s1 + $0x44c] ss:$8 sps:$4 sm:$0xff]   ;;  %v11942_v52 = vld [vmem:[%s16872_s1 + $0x448] ss:$8 sps:$4 sm:$0xff]  }
 0x1b4   :  { %v14948_v9 = vld.sshfl [vmem:[#allocation2 + $0x128] sm:$0x3 pattern:$0x76325410]  ;;  %v5673_v26 = vrot.slane %v5200_v6, 2  ;;  %v17542_v6 = vld [vmem:[#allocation99_spill] sm:$0xff] }
 0x1b9   :  { %10627 = vmatmul.mubr.msk.bf16.vlgmr.msra.gmra.mrb[0].mxu0 %vm21_vm0, %v5486_v20  ;;  %v5468_v20 = vrot.slane %v10610_v0, %v12394_v17 }
 0x1ba   :  { %5597 = vmatprep.mubr.bf16.mxu0 %v17227_v32  ;;  %10408 = vmatmul.mubr.msk.bf16.gmra.mrb[12].mxu1 %vm21_vm0, %v2961_v61 }
 0x1bb   :  { %5796 = vmatpush1.bf16.msra.mxu0 %v11925_v14  ;;  %3099 = vmatprep.mubr.bf16.mxu1 %v17227_v32  ;;  %v5476_v35 = vcombine.low %v5468_v20, %v14902_v37  ;;  %v14907_v14 = vld.sshfl [vmem:[#allocation2 + $0x88] sm:$0x3 pattern:$0x76325410] }
 0x1bc   :  { %5797 = vmatprep.subr.bf16.mxu0 %v11930_v24  ;;  %v17534_v24 = vrot.slane %v14663_v22, 7  ;;  %v5671_v5 = vrot.slane %v14907_v14, 7 }
 0x1bd   :  { %v5490_v61 = vpack.c.bf16 %v5476_v35, %v5476_v35  ;;  %v17540_v35 = vld [vmem:[#allocation90_spill] sm:$0xff] }
 0x1be   :  { %v5670_v27 = vrot.slane %v17534_v24, 2  ;;  %v5674_v24 = vrot.slane %v14948_v9, 7 }
 0x1bf   :  { %5798 = vmatpush1.bf16.msra.mxu0 %v11928_v46  ;;  %v11936_v46 = vld [vmem:[%s16872_s1 + $0x428] ss:$8 sps:$4 sm:$0xff]  }
 0x1c0   :  { %5799 = vmatprep.subr.bf16.mxu0 %v11933_v63  ;;  %v14919_v38 = vsel %vm12455_vm8, %v5670_v27, %v5671_v5  ;;  %v11941_v63 = vld [vmem:[%s16872_s1 + $0x43c] ss:$8 sps:$4 sm:$0xff]  }
 0x1c1   :  { %10628 = vmatmul.mubr.msk.bf16.gmra.mrb[4].mxu0 %vm21_vm0, %v5487_v48  ;;  %v17536_v48 = vld [vmem:[#allocation69_spill] sm:$0xff]  ;;  %v5688_v57 = vcombine.low %v14704_v49, %v14919_v38 }
 0x1c2   :  { %5607 = vmatprep.mubr.bf16.mxu0 %v17227_v32  ;;  %10409 = vmatmul.mubr.msk.bf16.gmra.mrb[16].mxu1 %vm21_vm0, %v2962_v56  ;;  %v5678_v56 = vcombine.low %v17537_v54, %v17536_v48  ;;  %v11949_v5 = vld [vmem:[%s16872_s1 + $0x464] ss:$8 sps:$4 sm:$0xff]  }
 0x1c3   :  { %5800 = vmatpush1.bf16.msra.mxu0 %v11931_v47  ;;  %v17538_v47 = vld [vmem:[#allocation36_spill] sm:$0xff]  ;;  %v17545_v54 = vld [vmem:[#allocation101_spill] sm:$0xff] }
 0x1c4   :  { %10649 = vmatprep.subr.msk.bf16.mxu0 %vm526_vm2, %v10648_v45  ;;  %v5687_v45 = vcombine.low %v17538_v47, %v5686_v30  ;;  %v17544_v48 = vld [vmem:[#allocation52_spill] sm:$0xff] }
 0x1c7   :  { %5802 = vmatpush1.bf16.msra.mxu0 %v5790_v19  ;;  %v10661_v19 = vld [vmem:[%s16872_s1 + $0x458] sm:$0x11] }
 0x1c8   :  { %6013 = vmatprep.subr.bf16.mxu0 %v11938_v36  ;;  %v5727_v36 = vpack.c.bf16 %v5687_v45, %v5678_v56  ;;  %v10669_v0 = vcombine.high %v10661_v19, %v10661_v19  ;;  %v10668_v44 = vcombine.low %v10661_v19, %v10661_v19  ;;  %v5699_v56 = vcombine.low %v17545_v54, %v17544_v48 }
 0x1c9   :  { %10629 = vmatmul.mubr.msk.bf16.gmra.mrb[8].mxu0 %vm21_vm0, %v5488_v29  ;;  %v5695_v29 = vrot.slane %v5688_v57, %v12394_v17  ;;  %v5700_v45 = vcombine.low %v14271_v4, %v14781_v39 }
 0x1ca   :  { %5617 = vmatprep.mubr.bf16.mxu0 %v17227_v32  ;;  %v6008_v27 = vsel %vm526_vm2, %v10668_v44, 0  ;;  %v11947_v44 = vld [vmem:[%s16872_s1 + $0x460] ss:$8 sps:$4 sm:$0xff]  }
 0x1d1   :  { %10630 = vmatmul.mubr.msk.bf16.gmra.mrb[12].mxu0 %vm21_vm0, %v5489_v60  ;;  %v17539_v60 = vld [vmem:[#allocation85_spill] sm:$0xff] }
 0x1d2   :  { %5627 = vmatprep.mubr.bf16.mxu0 %v17227_v32  ;;  %v5696_v20 = vcombine.low %v5695_v29, %v17539_v60  ;;  %v11952_v60 = vld [vmem:[%s16872_s1 + $0x474] ss:$8 sps:$4 sm:$0xff]  }
 0x1d9   :  { %10631 = vmatmul.mubr.msk.bf16.gmra.mrb[16].mxu0 %vm21_vm0, %v5490_v61  ;;  %v17541_v61 = vld [vmem:[#allocation89_spill] sm:$0xff] }
 0x1da   :  { %5827 = vmatprep.mubr.bf16.mxu0 %v17227_v32  ;;  %v5697_v3 = vcombine.low %v17541_v61, %v17540_v35  ;;  %v17547_v35 = vld [vmem:[#allocation111_spill] sm:$0xff]  ;;  %v17548_v61 = vld [vmem:[#allocation105_spill] sm:$0xff] }
 0x1dc   :  { %v5728_v30 = vpack.c.bf16 %v5697_v3, %v5696_v20  ;;  %v17546_v20 = vld [vmem:[#allocation102_spill] sm:$0xff]  ;;  %v5896_v3 = vcombine.low %v17548_v61, %v17547_v35  ;;  %v12205_v61 = vld.sshfl [vmem:[#allocation2 + $0x118] sm:$0x3 pattern:$0x76325410] }
 0x1e1   :  { %10650 = vmatmul.mubr.msk.bf16.vlgmr.msra.gmra.mrb[0].mxu0 %vm21_vm0, %v17535_v59 }
 0x1e2   :  { %5837 = vmatprep.mubr.bf16.mxu0 %v17227_v32  ;;  %6014 = vmatpush1.bf16.msra.mxu0 %v11936_v46  ;;  %v14965_v46 = vsel %vm12455_vm8, %v5673_v26, %v5674_v24  ;;  %v17549_v26 = vld [vmem:[#allocation39_spill] sm:$0xff] }
 0x1e3   :  { %6015 = vmatprep.subr.bf16.mxu0 %v11941_v63  ;;  %v17543_v63 = vld [vmem:[#allocation88_spill] sm:$0xff]  ;;  %v5701_v57 = vcombine.low %v14787_v58, %v14965_v46 }
 0x1e4   :  { %v5698_v59 = vcombine.low %v17543_v63, %v17542_v6  ;;  %v10682_v6 = vld [vmem:[%s16872_s1 + $0x490] sm:$0x11] }
 0x1e5   :  { %v5715_v19 = vrot.slane %v5701_v57, %v12394_v17  ;;  %v10690_v54 = vcombine.high %v10682_v6, %v10682_v6 }
 0x1e6   :  { %6016 = vmatpush1.bf16.msra.mxu0 %v11939_v23  ;;  %v5729_v23 = vpack.c.bf16 %v5699_v56, %v5698_v59  ;;  %v10689_v56 = vcombine.low %v10682_v6, %v10682_v6 }
 0x1e7   :  { %6017 = vmatprep.subr.bf16.mxu0 %v11944_v18  ;;  %v5708_v18 = vrot.slane %v5700_v45, %v12394_v17  ;;  %v17550_v45 = vld [vmem:[#allocation44_spill] sm:$0xff] }
 0x1e9   :  { %10651 = vmatmul.mubr.msk.bf16.gmra.mrb[4].mxu0 %vm21_vm0, %v5727_v36  ;;  %v5716_v36 = vcombine.low %v5708_v18, %v5715_v19  ;;  %v17552_v18 = vld [vmem:[#allocation116_spill] sm:$0xff] }
 0x1ea   :  { %5847 = vmatprep.mubr.bf16.mxu0 %v17227_v32  ;;  %6018 = vmatpush1.bf16.msra.mxu0 %v11942_v52  ;;  %v12204_v52 = vld.sshfl [vmem:[#allocation2 + $0x78] sm:$0x3 pattern:$0x76325410] }
 0x1eb   :  { %10670 = vmatprep.subr.msk.bf16.mxu0 %vm526_vm2, %v10669_v0  ;;  %v5730_v29 = vpack.c.bf16 %v5716_v36, %v5716_v36  ;;  %v5897_v4 = vcombine.low %v12204_v52, %v14539_v11  ;;  %v6272_v36 = vsel %vm526_vm2, %v10689_v56, 0 }
 0x1ed   :  { %v5904_v0 = vrot.slane %v5897_v4, %v12394_v17  ;;  %v17553_v4 = vld [vmem:[#allocation43_spill] sm:$0xff] }
 0x1ee   :  { %6020 = vmatpush1.bf16.msra.mxu0 %v6008_v27  ;;  %v5906_v27 = vcombine.low %v14663_v22, %v14907_v14  ;;  %v11953_v22 = vld [vmem:[%s16872_s1 + $0x480] ss:$8 sps:$4 sm:$0xff]  }
 0x1ef   :  { %6277 = vmatprep.subr.bf16.mxu0 %v11949_v5  ;;  %v5905_v24 = vcombine.low %v17549_v26, %v5904_v0  ;;  %v11950_v5 = vld [vmem:[%s16872_s1 + $0x470] ss:$8 sps:$4 sm:$0xff]  }
 0x1f0   :  { %v5913_v59 = vrot.slane %v5906_v27, %v12394_v17  ;;  %v17554_v0 = vld [vmem:[#allocation115_spill] sm:$0xff] }
 0x1f1   :  { %10652 = vmatmul.mubr.msk.bf16.gmra.mrb[8].mxu0 %vm21_vm0, %v5728_v30  ;;  %v11955_v30 = vld [vmem:[%s16872_s1 + $0x484] ss:$8 sps:$4 sm:$0xff]   ;;  %v5945_v63 = vpack.c.bf16 %v5905_v24, %v5896_v3  ;;  %v5918_v3 = vcombine.low %v12205_v61, %v14598_v62  ;;  %v5919_v24 = vcombine.low %v14744_v40, %v14948_v9  ;;  %v134_v61 = vld [vmem:[#allocation2 + $0x130] sm:$0xff] }
 0x1f2   :  { %5857 = vmatprep.mubr.bf16.mxu0 %v17227_v32  ;;  %v5914_v57 = vcombine.low %v5913_v59, %v17550_v45 }
 0x1f9   :  { %10653 = vmatmul.mubr.msk.bf16.gmra.mrb[12].mxu0 %vm21_vm0, %v5729_v23  ;;  %v17551_v23 = vld [vmem:[#allocation24_spill] sm:$0xff] }
 0x1fa   :  { %5867 = vmatprep.mubr.bf16.mxu0 %v17227_v32  ;;  %v5915_v19 = vcombine.low %v17552_v18, %v17551_v23 }
 0x1fc   :  { %v5946_v52 = vpack.c.bf16 %v5915_v19, %v5914_v57  ;;  %v11959_v19 = vld [vmem:[%s16872_s1 + $0x498] ss:$8 sps:$4 sm:$0xff]  }
 0x201   :  { %10654 = vmatmul.mubr.msk.bf16.gmra.mrb[16].mxu0 %vm21_vm0, %v5730_v29  ;;  %v11961_v29 = vld [vmem:[%s16872_s1 + $0x49c] ss:$8 sps:$4 sm:$0xff]  }
 0x202   :  { %6045 = vmatprep.mubr.bf16.mxu0 %v17227_v32 }
 0x209   :  { %10671 = vmatmul.mubr.msk.bf16.vlgmr.msra.gmra.mrb[0].mxu0 %vm21_vm0, %v17546_v20  ;;  %v17556_v20 = vld [vmem:[#allocation29_spill] sm:$0xff] }
 0x20a   :  { %6055 = vmatprep.mubr.bf16.mxu0 %v17227_v32  ;;  %6278 = vmatpush1.bf16.msra.mxu0 %v11947_v44  ;;  %v5916_v44 = vcombine.low %v17554_v0, %v17553_v4  ;;  %v11962_v0 = vld [vmem:[%s16872_s1 + $0x4a8] ss:$8 sps:$4 sm:$0xff]  }
 0x20b   :  { %6279 = vmatprep.subr.bf16.mxu0 %v11952_v60  ;;  %v17555_v60 = vld [vmem:[#allocation122_spill] sm:$0xff] }
 0x20c   :  { %v5917_v35 = vcombine.low %v17556_v20, %v17555_v60  ;;  %v10705_v20 = vld [vmem:[%s16872_s1 + $0x4c8] sm:$0x11] }
 0x20e   :  { %6280 = vmatpush1.bf16.msra.mxu0 %v11950_v5  ;;  %v5947_v27 = vpack.c.bf16 %v5917_v35, %v5916_v44  ;;  %v5926_v5 = vrot.slane %v5918_v3, %v12394_v17  ;;  %v11968_v44 = vld [vmem:[%s16872_s1 + $0x4bc] ss:$8 sps:$4 sm:$0xff]   ;;  %v11966_v3 = vld [vmem:[%s16872_s1 + $0x4b8] ss:$8 sps:$4 sm:$0xff]  }
 0x20f   :  { %6281 = vmatprep.subr.bf16.mxu0 %v11955_v30  ;;  %v5933_v30 = vrot.slane %v5919_v24, %v12394_v17  ;;  %v10713_v24 = vcombine.high %v10705_v20, %v10705_v20 }
 0x211   :  { %10672 = vmatmul.mubr.msk.bf16.gmra.mrb[4].mxu0 %vm21_vm0, %v5945_v63  ;;  %v5934_v6 = vcombine.low %v5926_v5, %v5933_v30  ;;  %v114_v63 = vld [vmem:[#allocation2 + $0x90] sm:$0xff]  ;;  %v17559_v5 = vld [vmem:[#allocation137_spill] sm:$0xff] }
 0x212   :  { %6065 = vmatprep.mubr.bf16.mxu0 %v17227_v32  ;;  %6282 = vmatpush1.bf16.msra.mxu0 %v11953_v22  ;;  %v15036_v22 = vrot.slane %v114_v63, %v12394_v17  ;;  %v6114_v40 = vcombine.high %v114_v63, %v114_v63  ;;  %v6130_v63 = vcombine.high %v134_v61, %v134_v61 }
 0x213   :  { %10691 = vmatprep.subr.msk.bf16.mxu0 %vm526_vm2, %v10690_v54  ;;  %v5948_v59 = vpack.c.bf16 %v5934_v6, %v5934_v6  ;;  %v6148_v54 = vcombine.low %v14517_v53, %v14547_v34  ;;  %v11964_v53 = vld [vmem:[%s16872_s1 + $0x4ac] ss:$8 sps:$4 sm:$0xff]   ;;  %v17557_v34 = vld [vmem:[#allocation131_spill] sm:$0xff]  ;;  %v6175_v6 = vcombine.low %v14586_v1, %v14602_v42 }
 0x214   :  { %v6149_v56 = vcombine.low %v14539_v11, %v15036_v22  ;;  %v15045_v45 = vrot.slane %v6114_v40, %v12394_v17  ;;  %v6129_v18 = vcombine.high %v15036_v22, %v15036_v22  ;;  %v15092_v1 = vrot.slane %v6130_v63, %v12394_v17 }
 0x215   :  { %v6156_v57 = vrot.slane %v6148_v54, %v12394_v17  ;;  %v11973_v54 = vld [vmem:[%s16872_s1 + $0x4d4] ss:$8 sps:$4 sm:$0xff]  }
 0x216   :  { %6284 = vmatpush1.bf16.msra.mxu0 %v6272_v36  ;;  %v6163_v23 = vrot.slane %v6149_v56, %v12394_v17  ;;  %v17558_v36 = vld [vmem:[#allocation128_spill] sm:$0xff]  ;;  %v6165_v4 = vcombine.low %v6129_v18, %v15045_v45  ;;  %v17560_v56 = vld [vmem:[#allocation19_spill] sm:$0xff] }
 0x217   :  { %6529 = vmatprep.subr.bf16.mxu0 %v11961_v29  ;;  %v6147_v29 = vcombine.low %v17558_v36, %v17531_v41 }
 0x218   :  { %v6172_v35 = vrot.slane %v6165_v4, %v12394_v17 }
 0x219   :  { %10673 = vmatmul.mubr.msk.bf16.gmra.mrb[8].mxu0 %vm21_vm0, %v5946_v52  ;;  %v6164_v52 = vcombine.low %v6156_v57, %v6163_v23  ;;  %v6182_v23 = vrot.slane %v6175_v6, %v12394_v17 }
 0x21a   :  { %6075 = vmatprep.mubr.bf16.mxu0 %v17227_v32  ;;  %v6173_v30 = vcombine.low %v6172_v35, %v17559_v5 }
 0x21b   :  { %v6209_v41 = vpack.c.bf16 %v6164_v52, %v6147_v29  ;;  %v6183_v36 = vcombine.low %v17532_v31, %v6182_v23  ;;  %v10697_v31 = vrot.slane %v15036_v22, 9 }
 0x21c   :  { %v6210_v57 = vpack.c.bf16 %v17560_v56, %v6173_v30  ;;  %v17563_v56 = vld [vmem:[#allocation81_spill] sm:$0xff] }
 0x221   :  { %10674 = vmatmul.mubr.msk.bf16.gmra.mrb[12].mxu0 %vm21_vm0, %v5947_v27  ;;  %v10712_v27 = vcombine.low %v10705_v20, %v10705_v20 }
 0x222   :  { %6085 = vmatprep.mubr.bf16.mxu0 %v17227_v32 }
 0x223   :  { %v6524_v40 = vsel %vm526_vm2, %v10712_v27, 0  ;;  %v6400_v27 = vcombine.low %v14668_v25, %v14698_v7  ;;  %v11971_v7 = vld [vmem:[%s16872_s1 + $0x4d0] ss:$8 sps:$4 sm:$0xff]  }
 0x225   :  { %v6408_v63 = vrot.slane %v6400_v27, %v12394_v17 }
 0x229   :  { %10675 = vmatmul.mubr.msk.bf16.gmra.mrb[16].mxu0 %vm21_vm0, %v5948_v59  ;;  %v15081_v59 = vrot.slane %v134_v61, %v12394_v17 }
 0x22a   :  { %6309 = vmatprep.mubr.bf16.mxu0 %v17227_v32 }
 0x22b   :  { %v15096_v42 = vcombine.high %v15081_v59, %v15081_v59  ;;  %v6184_v29 = vcombine.low %v14598_v62, %v15081_v59 }
 0x22d   :  { %v6185_v52 = vcombine.low %v15096_v42, %v15092_v1 }
 0x231   :  { %10692 = vmatmul.mubr.msk.bf16.vlgmr.msra.gmra.mrb[0].mxu0 %vm21_vm0, %v17557_v34 }
 0x232   :  { %6319 = vmatprep.mubr.bf16.mxu0 %v17227_v32  ;;  %6530 = vmatpush1.bf16.msra.mxu0 %v11959_v19  ;;  %v17561_v19 = vld [vmem:[#allocation27_spill] sm:$0xff] }
 0x233   :  { %6531 = vmatprep.subr.bf16.mxu0 %v11964_v53  ;;  %v17562_v53 = vld [vmem:[#allocation139_spill] sm:$0xff] }
 0x234   :  { %v6174_v34 = vcombine.low %v17562_v53, %v17561_v19 }
 0x236   :  { %6532 = vmatpush1.bf16.msra.mxu0 %v11962_v0  ;;  %v6211_v4 = vpack.c.bf16 %v6183_v36, %v6174_v34  ;;  %v6192_v0 = vrot.slane %v6184_v29, %v12394_v17  ;;  %v11974_v34 = vld [vmem:[%s16872_s1 + $0x4e0] ss:$8 sps:$4 sm:$0xff]   ;;  %v11979_v36 = vld [vmem:[%s16872_s1 + $0x4f4] ss:$8 sps:$4 sm:$0xff]  }
 0x237   :  { %6533 = vmatprep.subr.bf16.mxu0 %v11968_v44  ;;  %v6199_v44 = vrot.slane %v6185_v52, %v12394_v17 }
 0x239   :  { %10693 = vmatmul.mubr.msk.bf16.gmra.mrb[4].mxu0 %vm21_vm0, %v6209_v41  ;;  %v6200_v20 = vcombine.low %v6192_v0, %v6199_v44  ;;  %v6380_v41 = vrot.slane %v6129_v18, 7  ;;  %v15163_v0 = vcombine.high %v15092_v1, %v15092_v1  ;;  %v6393_v44 = vrot.slane %v15092_v1, 7 }
 0x23a   :  { %6329 = vmatprep.mubr.bf16.mxu0 %v17227_v32  ;;  %6534 = vmatpush1.bf16.msra.mxu0 %v11966_v3  ;;  %v15116_v3 = vcombine.high %v15045_v45, %v15045_v45 }
 0x23b   :  { %10714 = vmatprep.subr.msk.bf16.mxu0 %vm526_vm2, %v10713_v24  ;;  %v6212_v35 = vpack.c.bf16 %v6200_v20, %v6200_v20  ;;  %v6381_v61 = vsel %vm12455_vm8, %v10697_v31, %v6380_v41  ;;  %v6383_v24 = vrot.slane %v15045_v45, 7  ;;  %v6382_v5 = vrot.slane %v6380_v41, 2  ;;  %v11977_v20 = vld [vmem:[%s16872_s1 + $0x4f0] ss:$8 sps:$4 sm:$0xff]  }
 0x23c   :  { %v6401_v18 = vcombine.low %v14704_v49, %v6381_v61  ;;  %v6386_v6 = vrot.slane %v15116_v3, 7  ;;  %v11976_v49 = vld [vmem:[%s16872_s1 + $0x4e4] ss:$8 sps:$4 sm:$0xff]  }
 0x23d   :  { %v6385_v30 = vrot.slane %v6383_v24, 2 }
 0x23e   :  { %6536 = vmatpush1.bf16.msra.mxu0 %v6524_v40  ;;  %v6415_v40 = vrot.slane %v6401_v18, %v12394_v17  ;;  %v6395_v18 = vrot.slane %v6393_v44, 2 }
 0x23f   :  { %6743 = vmatprep.subr.bf16.mxu0 %v11973_v54  ;;  %v15129_v54 = vsel %vm12455_vm8, %v6382_v5, %v6383_v24  ;;  %v15135_v25 = vsel %vm12455_vm8, %v6385_v30, %v6386_v6  ;;  %v10698_v24 = vrot.slane %v15081_v59, 9  ;;  %v6396_v5 = vrot.slane %v15163_v0, 7 }
 0x240   :  { %v6416_v19 = vcombine.low %v6408_v63, %v6415_v40  ;;  %v6417_v53 = vcombine.low %v15129_v54, %v15135_v25  ;;  %v11984_v63 = vld [vmem:[%s16872_s1 + $0x50c] ss:$8 sps:$4 sm:$0xff]  }
 0x241   :  { %10694 = vmatmul.mubr.msk.bf16.gmra.mrb[8].mxu0 %vm21_vm0, %v6210_v57  ;;  %v17564_v57 = vld [vmem:[#allocation134_spill] sm:$0xff] }
 0x242   :  { %6339 = vmatprep.mubr.bf16.mxu0 %v17227_v32  ;;  %v6399_v23 = vcombine.low %v17564_v57, %v17538_v47  ;;  %v10728_v47 = vld [vmem:[%s16872_s1 + $0x500] sm:$0x11]  ;;  %v6424_v52 = vrot.slane %v6417_v53, %v12394_v17  ;;  %v17566_v40 = vld [vmem:[#allocation130_spill] sm:$0xff]  ;;  %v17567_v57 = vld [vmem:[#allocation109_spill] sm:$0xff] }
 0x243   :  { %v10736_v41 = vcombine.high %v10728_v47, %v10728_v47  ;;  %v10735_v31 = vcombine.low %v10728_v47, %v10728_v47 }
 0x244   :  { %v6461_v29 = vpack.c.bf16 %v6416_v19, %v6399_v23  ;;  %v17568_v23 = vld [vmem:[#allocation34_spill] sm:$0xff] }
 0x245   :  { %v6738_v30 = vsel %vm526_vm2, %v10735_v31, 0  ;;  %v6426_v19 = vcombine.low %v17568_v23, %v17567_v57  ;;  %v10720_v31 = vcombine.high %v14539_v11, %v15036_v22  ;;  %v17569_v11 = vld [vmem:[#allocation98_spill] sm:$0xff] }
 0x246   :  { %v17570_v22 = vld [vmem:[#allocation38_spill] sm:$0xff] }
 0x249   :  { %10695 = vmatmul.mubr.msk.bf16.gmra.mrb[12].mxu0 %vm21_vm0, %v6211_v4  ;;  %v6390_v4 = vrot.slane %v15096_v42, 7  ;;  %v6427_v42 = vcombine.low %v14777_v16, %v14781_v39 }
 0x24a   :  { %6349 = vmatprep.mubr.bf16.mxu0 %v17227_v32 }
 0x24b   :  { %v6392_v27 = vrot.slane %v6390_v4, 2  ;;  %v6434_v16 = vrot.slane %v6427_v42, %v12394_v17  ;;  %v6391_v39 = vsel %vm12455_vm8, %v10698_v24, %v6390_v4  ;;  %v11982_v24 = vld [vmem:[%s16872_s1 + $0x508] ss:$8 sps:$4 sm:$0xff]  }
 0x24d   :  { %v6435_v53 = vcombine.low %v17544_v48, %v6434_v16  ;;  %v11985_v16 = vld [vmem:[%s16872_s1 + $0x518] ss:$8 sps:$4 sm:$0xff]  }
 0x24f   :  { %v6463_v47 = vpack.c.bf16 %v6435_v53, %v6426_v19  ;;  %v11988_v53 = vld [vmem:[%s16872_s1 + $0x528] ss:$8 sps:$4 sm:$0xff]  }
 0x251   :  { %10696 = vmatmul.mubr.msk.bf16.gmra.mrb[16].mxu0 %vm21_vm0, %v6212_v35  ;;  %v17565_v35 = vld [vmem:[#allocation65_spill] sm:$0xff] }
 0x252   :  { %6561 = vmatprep.mubr.bf16.mxu0 %v17227_v32  ;;  %v6425_v61 = vcombine.low %v6424_v52, %v17565_v35  ;;  %v6637_v35 = vrot.slane %v10720_v31, %v12394_v17  ;;  %v17571_v31 = vld [vmem:[#allocation37_spill] sm:$0xff] }
 0x259   :  { %10715 = vmatmul.mubr.msk.bf16.vlgmr.msra.gmra.mrb[0].mxu0 %vm21_vm0, %v17563_v56  ;;  %v15193_v56 = vsel %vm12455_vm8, %v6395_v18, %v6396_v5  ;;  %v11987_v18 = vld [vmem:[%s16872_s1 + $0x51c] ss:$8 sps:$4 sm:$0xff]  }
 0x25a   :  { %6571 = vmatprep.mubr.bf16.mxu0 %v17227_v32  ;;  %6744 = vmatpush1.bf16.msra.mxu0 %v11971_v7  ;;  %v6462_v7 = vpack.c.bf16 %v17566_v40, %v6425_v61  ;;  %v6638_v40 = vcombine.low %v14572_v33, %v6637_v35 }
 0x25b   :  { %6745 = vmatprep.subr.bf16.mxu0 %v11976_v49  ;;  %v15187_v49 = vsel %vm12455_vm8, %v6392_v27, %v6393_v44 }
 0x25e   :  { %6746 = vmatpush1.bf16.msra.mxu0 %v11974_v34  ;;  %v6436_v34 = vcombine.low %v14787_v58, %v6391_v39  ;;  %v11990_v39 = vld [vmem:[%s16872_s1 + $0x52c] ss:$8 sps:$4 sm:$0xff]  }
 0x25f   :  { %6747 = vmatprep.subr.bf16.mxu0 %v11979_v36  ;;  %v6437_v36 = vcombine.low %v15187_v49, %v15193_v56 }
 0x261   :  { %10716 = vmatmul.mubr.msk.bf16.gmra.mrb[4].mxu0 %vm21_vm0, %v6461_v29  ;;  %v6444_v29 = vrot.slane %v6436_v34, %v12394_v17  ;;  %v6451_v52 = vrot.slane %v6437_v36, %v12394_v17 }
 0x262   :  { %6581 = vmatprep.mubr.bf16.mxu0 %v17227_v32  ;;  %6748 = vmatpush1.bf16.msra.mxu0 %v11977_v20 }
 0x263   :  { %10737 = vmatprep.subr.msk.bf16.mxu0 %vm526_vm2, %v10736_v41  ;;  %v6452_v4 = vcombine.low %v6444_v29, %v6451_v52 }
 0x265   :  { %v6464_v44 = vpack.c.bf16 %v6452_v4, %v6452_v4 }
 0x266   :  { %6750 = vmatpush1.bf16.msra.mxu0 %v6738_v30 }
 0x267   :  { %6979 = vmatprep.subr.bf16.mxu0 %v11984_v63  ;;  %v6629_v63 = vcombine.low %v17570_v22, %v17549_v26  ;;  %v10751_v26 = vld [vmem:[%s16872_s1 + $0x538] sm:$0x11] }
 0x268   :  { %v10759_v36 = vcombine.high %v10751_v26, %v10751_v26  ;;  %v17572_v22 = vld [vmem:[#allocation123_spill] sm:$0xff] }
 0x269   :  { %10717 = vmatmul.mubr.msk.bf16.gmra.mrb[8].mxu0 %vm21_vm0, %v6462_v7  ;;  %v6639_v7 = vcombine.low %v15045_v45, %v15116_v3  ;;  %v6675_v33 = vpack.c.bf16 %v6638_v40, %v6629_v63  ;;  %v6648_v63 = vcombine.low %v14054_v13, %v17572_v22  ;;  %v6649_v40 = vcombine.low %v17555_v60, %v14633_v51  ;;  %v15298_v60 = vld.sshfl [vmem:[#allocation2 + $0x98] sm:$0x3 pattern:$0x76325410] }
 0x26a   :  { %6591 = vmatprep.mubr.bf16.mxu0 %v17227_v32 }
 0x26b   :  { %v6646_v57 = vrot.slane %v6639_v7, %v12394_v17  ;;  %v10721_v7 = vcombine.high %v14598_v62, %v15081_v59  ;;  %v6866_v59 = vcombine.low %v14919_v38, %v15129_v54  ;;  %v11998_v38 = vld [vmem:[%s16872_s1 + $0x554] ss:$8 sps:$4 sm:$0xff]  }
 0x26c   :  { %v17573_v54 = vld [vmem:[#allocation23_spill] sm:$0xff] }
 0x26d   :  { %v6647_v52 = vcombine.low %v6646_v57, %v13966_v50 }
 0x26f   :  { %v6676_v35 = vpack.c.bf16 %v17571_v31, %v6647_v52  ;;  %v6859_v52 = vrot.slane %v15298_v60, 7  ;;  %v11993_v31 = vld [vmem:[%s16872_s1 + $0x540] ss:$8 sps:$4 sm:$0xff]  }
 0x271   :  { %10718 = vmatmul.mubr.msk.bf16.gmra.mrb[12].mxu0 %vm21_vm0, %v6463_v47  ;;  %v10758_v47 = vcombine.low %v10751_v26, %v10751_v26  ;;  %v6658_v26 = vrot.slane %v10721_v7, %v12394_v17  ;;  %v11996_v7 = vld [vmem:[%s16872_s1 + $0x550] ss:$8 sps:$4 sm:$0xff]  }
 0x272   :  { %6601 = vmatprep.mubr.bf16.mxu0 %v17227_v32 }
 0x273   :  { %v6974_v4 = vsel %vm526_vm2, %v10758_v47, 0  ;;  %v6858_v47 = vrot.slane %v6386_v6, 2  ;;  %v17575_v6 = vld [vmem:[#allocation10_spill] sm:$0xff] }
 0x275   :  { %v15207_v20 = vpop.f32.mrb[0].mxu1 }
 0x276   :  { %v15209_v48 = vpop.f32.mrb[1].mxu1 }
 0x277   :  { %v15211_v58 = vpop.f32.mrb[2].mxu1 }
 0x278   :  { %v15213_v41 = vpop.f32.mrb[3].mxu1 }
 0x279   :  { %10719 = vmatmul.mubr.msk.bf16.gmra.mrb[16].mxu0 %vm21_vm0, %v6464_v44  ;;  %v11995_v44 = vld [vmem:[%s16872_s1 + $0x544] ss:$8 sps:$4 sm:$0xff]  }
 0x27a   :  { %6775 = vmatprep.mubr.bf16.mxu0 %v17227_v32 }
 0x27d   :  { %v15220_v61 = vpop.f32.mrb[4].mxu1 }
 0x27e   :  { %v15222_v42 = vpop.f32.mrb[5].mxu1 }
 0x27f   :  { %v15227_v27 = vpop.f32.mrb[6].mxu1 }
 0x280   :  { %v15232_v30 = vpop.f32.mrb[7].mxu1 }
 0x281   :  { %10738 = vmatmul.mubr.msk.bf16.vlgmr.msra.gmra.mrb[0].mxu0 %vm21_vm0, %v17569_v11 }
 0x282   :  { %6785 = vmatprep.mubr.bf16.mxu0 %v17227_v32  ;;  %6980 = vmatpush1.bf16.msra.mxu0 %v11982_v24 }
 0x283   :  { %6981 = vmatprep.subr.bf16.mxu0 %v11987_v18 }
 0x285   :  { %v15252_v23 = vpop.f32.mrb[8].mxu1 }
 0x286   :  { %v15254_v19 = vpop.f32.mrb[9].mxu1  ;;  %6982 = vmatpush1.bf16.msra.mxu0 %v11985_v16  ;;  %v6651_v16 = vcombine.low %v15092_v1, %v15163_v0 }
 0x287   :  { %v15259_v34 = vpop.f32.mrb[10].mxu1  ;;  %6983 = vmatprep.subr.bf16.mxu0 %v11990_v39  ;;  %v6677_v39 = vpack.c.bf16 %v6649_v40, %v6648_v63 }
 0x288   :  { %v15261_v29 = vpop.f32.mrb[11].mxu1 }
 0x289   :  { %10739 = vmatmul.mubr.msk.bf16.gmra.mrb[4].mxu0 %vm21_vm0, %v6675_v33  ;;  %v6665_v33 = vrot.slane %v6651_v16, %v12394_v17  ;;  %v12001_v16 = vld [vmem:[%s16872_s1 + $0x564] ss:$8 sps:$4 sm:$0xff]  }
 0x28a   :  { %6795 = vmatprep.mubr.bf16.mxu0 %v17227_v32  ;;  %6984 = vmatpush1.bf16.msra.mxu0 %v11988_v53 }
 0x28b   :  { %10760 = vmatprep.subr.msk.bf16.mxu0 %vm526_vm2, %v10759_v36  ;;  %v6666_v51 = vcombine.low %v6658_v26, %v6665_v33  ;;  %v10744_v33 = vld.sshfl [vmem:[#allocation2 + $0x138] sm:$0x3 pattern:$0x76325410] }
 0x28d   :  { %v15272_v24 = vpop.f32.mrb[12].mxu1  ;;  %v6678_v62 = vpack.c.bf16 %v6666_v51, %v6666_v51 }
 0x28e   :  { %v15274_v18 = vpop.f32.mrb[13].mxu1  ;;  %6986 = vmatpush1.bf16.msra.mxu0 %v6974_v4  ;;  %v6873_v4 = vrot.slane %v6866_v59, %v12394_v17  ;;  %v6862_v59 = vrot.slane %v10744_v33, 7 }
 0x28f   :  { %v15276_v11 = vpop.f32.mrb[14].mxu1  ;;  %7193 = vmatprep.subr.bf16.mxu0 %v11995_v44  ;;  %v6860_v44 = vsel %vm12455_vm8, %v6858_v47, %v6859_v52  ;;  %v17576_v52 = vld [vmem:[#allocation94_spill] sm:$0xff] }
 0x290   :  { %v15278_v50 = vpop.f32.mrb[15].mxu1  ;;  %v6874_v63 = vcombine.low %v14732_v8, %v6873_v4  ;;  %v6875_v40 = vcombine.low %v15135_v25, %v6860_v44  ;;  %v11999_v25 = vld [vmem:[%s16872_s1 + $0x560] ss:$8 sps:$4 sm:$0xff]  }
 0x291   :  { %10740 = vmatmul.mubr.msk.bf16.gmra.mrb[8].mxu0 %vm21_vm0, %v6676_v35  ;;  %v17574_v35 = vld [vmem:[#allocation103_spill] sm:$0xff] }
 0x292   :  { %6805 = vmatprep.mubr.bf16.mxu0 %v17227_v32  ;;  %v6865_v22 = vcombine.low %v17575_v6, %v17574_v35  ;;  %v6882_v8 = vrot.slane %v6875_v40, %v12394_v17 }
 0x294   :  { %v6911_v26 = vpack.c.bf16 %v6874_v63, %v6865_v22  ;;  %v6883_v51 = vcombine.low %v6882_v8, %v14139_v55  ;;  %v17577_v55 = vld [vmem:[#allocation9_spill] sm:$0xff] }
 0x295   :  { %v15292_v57 = vpop.f32.mrb[16].mxu1 }
 0x296   :  { %v15294_v53 = vpop.f32.mrb[17].mxu1  ;;  %v6912_v4 = vpack.c.bf16 %v17576_v52, %v6883_v51  ;;  %v12013_v52 = vld [vmem:[%s16874_s2 + $0xc8] ss:$8 sps:$4 sm:$0xff]  }
 0x297   :  { %v3105_v13 = vpop.f32.mrb[18].mxu1 }
 0x298   :  { %v3106_v36 = vpop.f32.mrb[19].mxu1 }
 0x299   :  { %10741 = vmatmul.mubr.msk.bf16.gmra.mrb[12].mxu0 %vm21_vm0, %v6677_v39  ;;  %v10772_v39 = vld [vmem:[%s16872_s1 + $0x570] sm:$0x11] }
 0x29a   :  { %6815 = vmatprep.mubr.bf16.mxu0 %v17227_v32  ;;  %v10780_v13 = vcombine.high %v10772_v39, %v10772_v39  ;;  %v10779_v36 = vcombine.low %v10772_v39, %v10772_v39 }
 0x29c   :  { %v7188_v47 = vsel %vm526_vm2, %v10779_v36, 0 }
 0x2a1   :  { %10742 = vmatmul.mubr.msk.bf16.gmra.mrb[16].mxu0 %vm21_vm0, %v6678_v62  ;;  %v6861_v62 = vrot.slane %v6396_v5, 2 }
 0x2a2   :  { %7011 = vmatprep.mubr.bf16.mxu0 %v17227_v32 }
 0x2a3   :  { %v6863_v44 = vsel %vm12455_vm8, %v6861_v62, %v6862_v59  ;;  %v12010_v59 = vld [vmem:[%s16874_s2 + $0xb8] ss:$8 sps:$4 sm:$0xff]  }
 0x2a4   :  { %v6887_v35 = vcombine.low %v15193_v56, %v6863_v44  ;;  %v17580_v56 = vld [vmem:[#allocation32_spill] sm:$0xff] }
 0x2a5   :  { %v7079_v40 = vcombine.low %v17580_v56, %v14413_v10  ;;  %v17582_v10 = vld [vmem:[#allocation33_spill] sm:$0xff]  ;;  %v12016_v44 = vld [vmem:[%s16874_s2 + $0xd8] ss:$8 sps:$4 sm:$0xff]  }
 0x2a6   :  { %v6901_v22 = vrot.slane %v6887_v35, %v12394_v17  ;;  %v12024_v35 = vld [vmem:[%s16874_s2 + $0xfc] ss:$8 sps:$4 sm:$0xff]  }
 0x2a9   :  { %10761 = vmatmul.mubr.msk.bf16.vlgmr.msra.gmra.mrb[0].mxu0 %vm21_vm0, %v17573_v54  ;;  %v6886_v54 = vcombine.low %v14965_v46, %v15187_v49  ;;  %v17579_v49 = vld [vmem:[#allocation49_spill] sm:$0xff] }
 0x2aa   :  { %7021 = vmatprep.mubr.bf16.mxu0 %v17227_v32  ;;  %7194 = vmatpush1.bf16.msra.mxu0 %v11993_v31  ;;  %v6884_v31 = vcombine.low %v14267_v28, %v17577_v55  ;;  %v12021_v55 = vld [vmem:[%s16874_s2 + $0xec] ss:$8 sps:$4 sm:$0xff]  }
 0x2ab   :  { %7195 = vmatprep.subr.bf16.mxu0 %v11998_v38  ;;  %v17578_v38 = vld [vmem:[#allocation95_spill] sm:$0xff]  ;;  %v6894_v43 = vrot.slane %v6886_v54, %v12394_v17 }
 0x2ac   :  { %v6885_v5 = vcombine.low %v17578_v38, %v14811_v2  ;;  %v7080_v2 = vcombine.low %v14907_v14, %v15045_v45 }
 0x2ad   :  { %v6902_v63 = vcombine.low %v6894_v43, %v6901_v22  ;;  %v12022_v22 = vld [vmem:[%s16874_s2 + $0xf8] ss:$8 sps:$4 sm:$0xff]  }
 0x2ae   :  { %7196 = vmatpush1.bf16.msra.mxu0 %v11996_v7  ;;  %v6913_v6 = vpack.c.bf16 %v6885_v5, %v6884_v31  ;;  %v7087_v46 = vrot.slane %v7080_v2, %v12394_v17  ;;  %v12019_v31 = vld [vmem:[%s16874_s2 + $0xe8] ss:$8 sps:$4 sm:$0xff]  }
 0x2af   :  { %7197 = vmatprep.subr.bf16.mxu0 %v12001_v16  ;;  %v6914_v28 = vpack.c.bf16 %v6902_v63, %v6902_v63  ;;  %v7089_v16 = vcombine.low %v15116_v3, %v15298_v60  ;;  %v17583_v3 = vld [vmem:[#allocation55_spill] sm:$0xff] }
 0x2b0   :  { %v7088_v7 = vcombine.low %v14871_v12, %v7087_v46  ;;  %v7098_v12 = vcombine.low %v14452_v15, %v17582_v10  ;;  %v7099_v60 = vcombine.low %v17583_v3, %v14902_v37  ;;  %v15391_v37 = vld [vmem:[#allocation3] sm:$0xff]  ;;  %v12025_v46 = vld [vmem:[%s16874_s2 + $0x108] ss:$8 sps:$4 sm:$0xff]  }
 0x2b1   :  { %10762 = vmatmul.mubr.msk.bf16.gmra.mrb[4].mxu0 %vm21_vm0, %v6911_v26  ;;  %v7096_v14 = vrot.slane %v7089_v16, %v12394_v17  ;;  %v17581_v26 = vld [vmem:[#allocation96_spill] sm:$0xff]  ;;  %7431 = vst.msk [vmem:[#allocation3 + $0x8] sm:$0xff] %vm7306_vm9, %v15391_v37  ;;  %7436 = vst.msk [vmem:[#allocation3 + $0x28] sm:$0xff] %vm7306_vm9, %v15391_v37  ;;  %v10805_v10 = vld [vmem:[%s16874_s2 + $0x128] sm:$0x77] }
 0x2b2   :  { %7031 = vmatprep.mubr.bf16.mxu0 %v17227_v32  ;;  %7198 = vmatpush1.bf16.msra.mxu0 %v11999_v25  ;;  %v7125_v39 = vpack.c.bf16 %v7088_v7, %v7079_v40  ;;  %v7100_v25 = vcombine.low %v14948_v9, %v15092_v1  ;;  %7440 = vst.msk [vmem:[#allocation3 + $0x48] sm:$0xff] %vm7306_vm9, %v15391_v37  ;;  %7444 = vst.msk [vmem:[#allocation3 + $0x68] sm:$0xff] %vm7306_vm9, %v15391_v37  ;;  %v12004_v9 = vld [vmem:[%s16874_s2 + $0x98] ss:$8 sps:$4 sm:$0xff]   ;;  %v12009_v1 = vld [vmem:[%s16874_s2 + $0xac] ss:$8 sps:$4 sm:$0xff]  }
 0x2b3   :  { %10781 = vmatprep.subr.msk.bf16.mxu0 %vm526_vm2, %v10780_v13  ;;  %v7097_v45 = vcombine.low %v7096_v14, %v14345_v21  ;;  %v7101_v13 = vcombine.low %v15163_v0, %v10744_v33  ;;  %v7127_v21 = vpack.c.bf16 %v7099_v60, %v7098_v12  ;;  %7448 = vst.msk [vmem:[#allocation3 + $0x88] sm:$0xff] %vm7306_vm9, %v15391_v37  ;;  %7452 = vst.msk [vmem:[#allocation3 + $0xa8] sm:$0xff] %vm7306_vm9, %v15391_v37  ;;  %v12007_v0 = vld [vmem:[%s16874_s2 + $0xa8] ss:$8 sps:$4 sm:$0xff]   ;;  %v12012_v33 = vld [vmem:[%s16874_s2 + $0xbc] ss:$8 sps:$4 sm:$0xff]  }
 0x2b4   :  { %v7108_v36 = vrot.slane %v7100_v25, %v12394_v17  ;;  %7456 = vst.msk [vmem:[#allocation3 + $0xc8] sm:$0xff] %vm7306_vm9, %v15391_v37  ;;  %7460 = vst.msk [vmem:[#allocation3 + $0xe8] sm:$0xff] %vm7306_vm9, %v15391_v37  ;;  %v12030_v16 = vld [vmem:[%s16874_s2 + $0x11c] ss:$8 sps:$4 sm:$0xff]   ;;  %v10825_v25 = vcombine.high %v10805_v10, %v10805_v10 }
 0x2b5   :  { %v7126_v8 = vpack.c.bf16 %v17581_v26, %v7097_v45  ;;  %v7115_v51 = vrot.slane %v7101_v13, %v12394_v17  ;;  %7464 = vst.msk [vmem:[#allocation3 + $0x108] sm:$0xff] %vm7306_vm9, %v15391_v37  ;;  %7468 = vst.msk [vmem:[#allocation3 + $0x128] sm:$0xff] %vm7306_vm9, %v15391_v37  ;;  %v12028_v45 = vld [vmem:[%s16874_s2 + $0x118] ss:$8 sps:$4 sm:$0xff]   ;;  %v10824_v13 = vcombine.low %v10805_v10, %v10805_v10 }
 0x2b6   :  { %7200 = vmatpush1.bf16.msra.mxu0 %v7188_v47  ;;  %7472 = vst.msk [vmem:[#allocation3 + $0x148] sm:$0xff] %vm7306_vm9, %v15391_v37  ;;  %7476 = vst.msk [vmem:[#allocation3 + $0x168] sm:$0xff] %vm7306_vm9, %v15391_v37  ;;  %v12015_v47 = vld [vmem:[%s16874_s2 + $0xcc] ss:$8 sps:$4 sm:$0xff]  }
 0x2b7   :  { %v7116_v62 = vcombine.low %v7108_v36, %v7115_v51  ;;  %7480 = vst.msk [vmem:[#allocation3 + $0x188] sm:$0xff] %vm7306_vm9, %v15391_v37  ;;  %7484 = vst.msk [vmem:[#allocation3 + $0x1a8] sm:$0xff] %vm7306_vm9, %v15391_v37 }
 0x2b8   :  { %7488 = vst.msk [vmem:[#allocation3 + $0x1c8] sm:$0xff] %vm7306_vm9, %v15391_v37  ;;  %7492 = vst.msk [vmem:[#allocation3 + $0x1e8] sm:$0xff] %vm7306_vm9, %v15391_v37  ;;  %v7938_v12 = vld [vmem:[#allocation3 + $0x8] sm:$0xff] }
 0x2b9   :  { %10763 = vmatmul.mubr.msk.bf16.gmra.mrb[8].mxu0 %vm21_vm0, %v6912_v4  ;;  %v7128_v15 = vpack.c.bf16 %v7116_v62, %v7116_v62  ;;  %7496 = vst.msk [vmem:[#allocation3 + $0x208] sm:$0xff] %vm7306_vm9, %v15391_v37  ;;  %7500 = vst.msk [vmem:[#allocation3 + $0x228] sm:$0xff] %vm7306_vm9, %v15391_v37  ;;  %v12018_v4 = vld [vmem:[%s16874_s2 + $0xdc] ss:$8 sps:$4 sm:$0xff]   ;;  %v8112_v62 = vrot.slane %v7938_v12, 1 }
 0x2ba   :  { %7041 = vmatprep.mubr.bf16.mxu0 %v17227_v32  ;;  %7434 = vst.msk [vmem:[#allocation3 + $0x18] sm:$0x1] %vm7433_vm10, %v15391_v37  ;;  %7438 = vst.msk [vmem:[#allocation3 + $0x38] sm:$0x1] %vm7433_vm10, %v15391_v37 }
 0x2bb   :  { %7442 = vst.msk [vmem:[#allocation3 + $0x58] sm:$0x1] %vm7433_vm10, %v15391_v37  ;;  %7446 = vst.msk [vmem:[#allocation3 + $0x78] sm:$0x1] %vm7433_vm10, %v15391_v37 }
 0x2bc   :  { %7450 = vst.msk [vmem:[#allocation3 + $0x98] sm:$0x1] %vm7433_vm10, %v15391_v37  ;;  %7454 = vst.msk [vmem:[#allocation3 + $0xb8] sm:$0x1] %vm7433_vm10, %v15391_v37 }
 0x2bd   :  { %7458 = vst.msk [vmem:[#allocation3 + $0xd8] sm:$0x1] %vm7433_vm10, %v15391_v37  ;;  %7462 = vst.msk [vmem:[#allocation3 + $0xf8] sm:$0x1] %vm7433_vm10, %v15391_v37 }
 0x2be   :  { %7466 = vst.msk [vmem:[#allocation3 + $0x118] sm:$0x1] %vm7433_vm10, %v15391_v37  ;;  %7470 = vst.msk [vmem:[#allocation3 + $0x138] sm:$0x1] %vm7433_vm10, %v15391_v37 }
 0x2bf   :  { %7474 = vst.msk [vmem:[#allocation3 + $0x158] sm:$0x1] %vm7433_vm10, %v15391_v37  ;;  %7478 = vst.msk [vmem:[#allocation3 + $0x178] sm:$0x1] %vm7433_vm10, %v15391_v37 }
 0x2c0   :  { %7482 = vst.msk [vmem:[#allocation3 + $0x198] sm:$0x1] %vm7433_vm10, %v15391_v37  ;;  %7486 = vst.msk [vmem:[#allocation3 + $0x1b8] sm:$0x1] %vm7433_vm10, %v15391_v37 }
 0x2c1   :  { %10764 = vmatmul.mubr.msk.bf16.gmra.mrb[12].mxu0 %vm21_vm0, %v6913_v6  ;;  %7490 = vst.msk [vmem:[#allocation3 + $0x1d8] sm:$0x1] %vm7433_vm10, %v15391_v37  ;;  %7494 = vst.msk [vmem:[#allocation3 + $0x1f8] sm:$0x1] %vm7433_vm10, %v15391_v37 }
 0x2c2   :  { %7051 = vmatprep.mubr.bf16.mxu0 %v17227_v32  ;;  %7498 = vst.msk [vmem:[#allocation3 + $0x218] sm:$0x1] %vm7433_vm10, %v15391_v37  ;;  %7502 = vst.msk [vmem:[#allocation3 + $0x238] sm:$0x1] %vm7433_vm10, %v15391_v37 }
 0x2c9   :  { %10765 = vmatmul.mubr.msk.bf16.gmra.mrb[16].mxu0 %vm21_vm0, %v6914_v28 }
 0x2ca   :  { %7225 = vmatprep.mubr.bf16.mxu0 %v17227_v32 }
 0x2d1   :  { %10782 = vmatmul.mubr.msk.bf16.vlgmr.msra.gmra.mrb[0].mxu0 %vm21_vm0, %v17579_v49 }
 0x2d2   :  { %7235 = vmatprep.mubr.bf16.mxu0 %v17227_v32 }
 0x2d9   :  { %10783 = vmatmul.mubr.msk.bf16.gmra.mrb[4].mxu0 %vm21_vm0, %v7125_v39 }
 0x2da   :  { %7245 = vmatprep.mubr.bf16.mxu0 %v17227_v32 }
 0x2e1   :  { %10784 = vmatmul.mubr.msk.bf16.gmra.mrb[8].mxu0 %vm21_vm0, %v7126_v8 }
 0x2e2   :  { %7255 = vmatprep.mubr.bf16.mxu0 %v17227_v32 }
 0x2e9   :  { %10785 = vmatmul.mubr.msk.bf16.gmra.mrb[12].mxu0 %vm21_vm0, %v7127_v21  ;;  %v7944_v21 = vld [vmem:[#allocation3 + $0x38] sm:$0x1] }
 0x2ea   :  { %7265 = vmatprep.mubr.bf16.mxu0 %v17227_v32  ;;  %v12006_v32 = vld [vmem:[%s16874_s2 + $0x9c] ss:$8 sps:$4 sm:$0xff]  }
 0x2eb   :  { %8399 = vmatprep.subr.bf16.mxu1 %v12006_v32  ;;  %v7943_v32 = vld [vmem:[#allocation3 + $0x30] sm:$0x1] }
 0x2ec   :  { %8400 = vmatpush1.bf16.msra.mxu1 %v12004_v9 }
 0x2ed   :  { %8401 = vmatprep.subr.bf16.mxu1 %v12009_v1 }
 0x2f0   :  { %8402 = vmatpush1.bf16.msra.mxu1 %v12007_v0 }
 0x2f1   :  { %10786 = vmatmul.mubr.msk.bf16.gmra.mrb[16].mxu0 %vm21_vm0, %v7128_v15  ;;  %8403 = vmatprep.subr.bf16.mxu1 %v12012_v33  ;;  %v7939_v15 = vld [vmem:[#allocation3 + $0x10] sm:$0x1] }
 0x2f4   :  { %8404 = vmatpush1.bf16.msra.mxu1 %v12010_v59  ;;  %v8119_v59 = vrot.slane %v7944_v21, 1  ;;  %v12036_v21 = vld [vmem:[%s16874_s2 + $0x10] ss:$8 sps:$4 sm:$0xff]  }
 0x2f5   :  { %8405 = vmatprep.subr.bf16.mxu1 %v12015_v47  ;;  %v15561_v47 = vrot.slane %v15391_v37, 1 }
 0x2f8   :  { %8406 = vmatpush1.bf16.msra.mxu1 %v12013_v52  ;;  %v8110_v52 = vrot.slane %v7939_v15, 1 }
 0x2f9   :  { %8407 = vmatprep.subr.bf16.mxu1 %v12018_v4 }
 0x2fc   :  { %8408 = vmatpush1.bf16.msra.mxu1 %v12016_v44 }
 0x2fd   :  { %8409 = vmatprep.subr.bf16.mxu1 %v12021_v55  ;;  %v8116_v55 = vrot.slane %v7943_v32, 1 }
 0x300   :  { %8410 = vmatpush1.bf16.msra.mxu1 %v12019_v31 }
 0x301   :  { %8411 = vmatprep.subr.bf16.mxu1 %v12024_v35  ;;  %v8111_v35 = vsel %vm8108_vm12, %v15561_v47, %v8110_v52 }
 0x304   :  { %8412 = vmatpush1.bf16.msra.mxu1 %v12022_v22 }
 0x3a4   :  { %v7227_v38 = vpop.f32.mrb[0].mxu0 }
 0x3a5   :  { %v15466_v5 = vadd.f32 %v7227_v38, %v15207_v20  ;;  %v7229_v54 = vpop.f32.mrb[1].mxu0 }
 0x3a6   :  { %v15472_v6 = vadd.f32 %v7229_v54, %v15209_v48  ;;  %v7231_v43 = vpop.f32.mrb[2].mxu0  ;;  %v12027_v48 = vld [vmem:[%s16874_s2 + $0x10c] ss:$8 sps:$4 sm:$0xff]  }
 0x3a7   :  { %v15478_v63 = vadd.f32 %v7231_v43, %v15211_v58  ;;  %v7233_v28 = vpop.f32.mrb[3].mxu0  ;;  %8413 = vmatprep.subr.bf16.mxu1 %v12027_v48 }
 0x3a8   :  { %v15481_v20 = vadd.f32 %v7233_v28, %v15213_v41  ;;  %v7307_v58 = vsel %vm7306_vm9, %v15472_v6, 0.0  ;;  %8414 = vmatpush1.bf16.msra.mxu1 %v12025_v46  ;;  %v15578_v28 = vsel %vm8108_vm12, %v15561_v47, %v8116_v55 }
 0x3a9   :  { %v7292_v2 = vadd.f32 %v15478_v63, %v15466_v5  ;;  %8415 = vmatprep.subr.bf16.mxu1 %v12030_v16 }
 0x3aa   :  { %v7308_v41 = vsel %vm7306_vm9, %v15481_v20, 0.0 }
 0x3ab   :  { %v7309_v49 = vadd.f32 %v7308_v41, %v7307_v58  ;;  %v8237_v58 = vpack.c.bf16 %v15578_v28, %v8111_v35 }
 0x3ac   :  { %v7237_v56 = vpop.f32.mrb[4].mxu0  ;;  %8416 = vmatpush1.bf16.msra.mxu1 %v12028_v45 }
 0x3ad   :  { %v15532_v40 = vadd.f32 %v7237_v56, %v15220_v61  ;;  %v7239_v7 = vpop.f32.mrb[5].mxu0  ;;  %10826 = vmatprep.subr.msk.bf16.mxu1 %vm8392_vm11, %v10825_v25 }
 0x3ae   :  { %v15538_v39 = vadd.f32 %v7239_v7, %v15222_v42  ;;  %v7241_v14 = vpop.f32.mrb[6].mxu0  ;;  %v7942_v42 = vld [vmem:[#allocation3 + $0x28] sm:$0xff] }
 0x3af   :  { %v7293_v26 = vadd.f32 %v15532_v40, %v7292_v2  ;;  %v15545_v8 = vadd.f32 %v7241_v14, %v15227_v27  ;;  %v7243_v61 = vpop.f32.mrb[7].mxu0  ;;  %v7940_v27 = vld [vmem:[#allocation3 + $0x18] sm:$0x1]  ;;  %v8118_v0 = vrot.slane %v7942_v42, 1 }
 0x3b0   :  { %v7310_v3 = vsel %vm7306_vm9, %v15538_v39, 0.0  ;;  %v15553_v60 = vadd.f32 %v7243_v61, %v15232_v30  ;;  %v8394_v30 = vsel %vm8392_vm11, %v10824_v13, 0  ;;  %v8113_v1 = vrot.slane %v7940_v27, 1  ;;  %v12038_v13 = vld [vmem:[%s16874_s2 + $0x14] ss:$8 sps:$4 sm:$0xff]  }
 0x3b1   :  { %v7311_v36 = vadd.f32 %v7310_v3, %v7309_v49  ;;  %v7294_v51 = vadd.f32 %v15545_v8, %v7293_v26  ;;  %8418 = vmatpush1.bf16.msra.mxu1 %v8394_v30  ;;  %v15568_v54 = vsel %vm8108_vm12, %v8118_v0, %v8119_v59 }
 0x3b2   :  { %v7312_v9 = vsel %vm7306_vm9, %v15553_v60, 0.0  ;;  %v8114_v44 = vsel %vm8108_vm12, %v8112_v62, %v8113_v1 }
 0x3b3   :  { %v7313_v33 = vadd.f32 %v7312_v9, %v7311_v36  ;;  %v8238_v22 = vpack.c.bf16 %v15568_v54, %v8114_v44 }
 0x3b4   :  { %v7247_v4 = vpop.f32.mrb[8].mxu0 }
 0x3b5   :  { %v15565_v31 = vadd.f32 %v7247_v4, %v15252_v23  ;;  %v7249_v38 = vpop.f32.mrb[9].mxu0  ;;  %10827 = vmatprep.mubr.msk.bf16.mxu1 %vm7306_vm9, %v8238_v22  ;;  %v12042_v4 = vld [vmem:[%s16874_s2 + $0x30] ss:$8 sps:$4 sm:$0xff]  }
 0x3b6   :  { %v15573_v43 = vadd.f32 %v7249_v38, %v15254_v19  ;;  %v7251_v37 = vpop.f32.mrb[10].mxu0  ;;  %8432 = vmatmul.mubr.bf16.vlgmr.msra.gmra.mrb[20].mxu1 %v8237_v58  ;;  %v12050_v58 = vld [vmem:[%s16874_s2 + $0x54] ss:$8 sps:$4 sm:$0xff]  }
 0x3b7   :  { %v7295_v23 = vadd.f32 %v15565_v31, %v7294_v51  ;;  %v15582_v2 = vadd.f32 %v7251_v37, %v15259_v34  ;;  %v7253_v48 = vpop.f32.mrb[11].mxu0 }
 0x3b8   :  { %v7314_v41 = vsel %vm7306_vm9, %v15573_v43, 0.0  ;;  %v15588_v19 = vadd.f32 %v7253_v48, %v15261_v29  ;;  %v12047_v48 = vld [vmem:[%s16874_s2 + $0x44] ss:$8 sps:$4 sm:$0xff]  }
 0x3b9   :  { %v7315_v46 = vadd.f32 %v7314_v41, %v7313_v33  ;;  %v7296_v49 = vadd.f32 %v15582_v2, %v7295_v23  ;;  %v12039_v33 = vld [vmem:[%s16874_s2 + $0x20] ss:$8 sps:$4 sm:$0xff]  }
 0x3ba   :  { %v7316_v56 = vsel %vm7306_vm9, %v15588_v19, 0.0  ;;  %v12045_v23 = vld [vmem:[%s16874_s2 + $0x40] ss:$8 sps:$4 sm:$0xff]  }
 0x3bb   :  { %v7317_v34 = vadd.f32 %v7316_v56, %v7315_v46 }
 0x3bc   :  { %v7257_v7 = vpop.f32.mrb[12].mxu0 }
 0x3bd   :  { %v15595_v16 = vadd.f32 %v7257_v7, %v15272_v24  ;;  %v7259_v14 = vpop.f32.mrb[13].mxu0  ;;  %v12033_v24 = vld [vmem:[%s16874_s2] ss:$8 sps:$4 sm:$0xff]  }
 0x3be   :  { %v15598_v45 = vadd.f32 %v7259_v14, %v15274_v18  ;;  %v7261_v29 = vpop.f32.mrb[14].mxu0  ;;  %v12035_v18 = vld [vmem:[%s16874_s2 + $0x4] ss:$8 sps:$4 sm:$0xff]  }
 0x3bf   :  { %v7297_v26 = vadd.f32 %v15595_v16, %v7296_v49  ;;  %v11135_v61 = vadd.f32 %v7261_v29, %v15276_v11  ;;  %v7263_v10 = vpop.f32.mrb[15].mxu0  ;;  %8637 = vmatprep.subr.bf16.mxu1 %v12035_v18  ;;  %v12048_v49 = vld [vmem:[%s16874_s2 + $0x50] ss:$8 sps:$4 sm:$0xff]  }
 0x3c0   :  { %v7318_v12 = vsel %vm7306_vm9, %v15598_v45, 0.0  ;;  %v15605_v42 = vadd.f32 %v7263_v10, %v15278_v50  ;;  %8638 = vmatpush1.bf16.msra.mxu1 %v12033_v24 }
 0x3c1   :  { %v7319_v3 = vadd.f32 %v7318_v12, %v7317_v34  ;;  %v7298_v25 = vadd.f32 %v11135_v61, %v7297_v26  ;;  %8639 = vmatprep.subr.bf16.mxu1 %v12038_v13  ;;  %v12054_v13 = vld [vmem:[%s16874_s2 + $0x70] ss:$8 sps:$4 sm:$0xff]  }
 0x3c2   :  { %v7320_v11 = vsel %vm7306_vm9, %v15605_v42, 0.0 }
 0x3c3   :  { %v7321_v27 = vadd.f32 %v7320_v11, %v7319_v3 }
 0x3c4   :  { %v7267_v50 = vpop.f32.mrb[16].mxu0  ;;  %8640 = vmatpush1.bf16.msra.mxu1 %v12036_v21 }
 0x3c5   :  { %v11137_v36 = vadd.f32 %v7267_v50, %v15292_v57  ;;  %v7269_v51 = vpop.f32.mrb[17].mxu0  ;;  %v12041_v57 = vld [vmem:[%s16874_s2 + $0x24] ss:$8 sps:$4 sm:$0xff]  }
 0x3c6   :  { %v15623_v62 = vadd.f32 %v7269_v51, %v15294_v53  ;;  %v7271_v15 = vpop.f32.mrb[18].mxu0  ;;  %v12044_v53 = vld [vmem:[%s16874_s2 + $0x34] ss:$8 sps:$4 sm:$0xff]   ;;  %8641 = vmatprep.subr.bf16.mxu1 %v12041_v57 }
 0x3c7   :  { %v7299_v32 = vadd.f32 %v11137_v36, %v7298_v25  ;;  %v7272_v9 = vpop.f32.mrb[19].mxu0  ;;  %v8043_v57 = vld [vmem:[%s16874_s2 + $0x90] sm:$0x77] }
 0x3c8   :  { %v7322_v30 = vsel %vm7306_vm9, %v15623_v62, 0.0  ;;  %8642 = vmatpush1.bf16.msra.mxu1 %v12039_v33 }
 0x3c9   :  { %v7300_v1 = vrot.slane %v7299_v32, 4  ;;  %v7323_v0 = vadd.f32 %v7322_v30, %v7321_v27  ;;  %8643 = vmatprep.subr.bf16.mxu1 %v12044_v53 }
 0x3cb   :  { %v7301_v59 = vadd.f32 %v7300_v1, %v7299_v32  ;;  %v7324_v52 = vrot.slane %v7323_v0, 4 }
 0x3cc   :  { %8644 = vmatpush1.bf16.msra.mxu1 %v12042_v4 }
 0x3cd   :  { %v7302_v44 = vrot.slane %v7301_v59, 2  ;;  %v7325_v55 = vadd.f32 %v7324_v52, %v7323_v0  ;;  %8645 = vmatprep.subr.bf16.mxu1 %v12047_v48 }
 0x3cf   :  { %v7303_v38 = vadd.f32 %v7302_v44, %v7301_v59  ;;  %v7326_v35 = vrot.slane %v7325_v55, 2 }
 0x3d0   :  { %8646 = vmatpush1.bf16.msra.mxu1 %v12045_v23 }
 0x3d1   :  { %v7304_v37 = vrot.slane %v7303_v38, 1  ;;  %v7327_v22 = vadd.f32 %v7326_v35, %v7325_v55  ;;  %8647 = vmatprep.subr.bf16.mxu1 %v12050_v58 }
 0x3d3   :  { %v7305_v41 = vadd.f32 %v7304_v37, %v7303_v38  ;;  %v7328_v46 = vrot.slane %v7327_v22, 1  ;;  %v10854_v37 = vcombine.high %v8043_v57, %v8043_v57 }
 0x3d4   :  { %8648 = vmatpush1.bf16.msra.mxu1 %v12048_v49 }
 0x3d5   :  { %v7331_v56 = vmul.f32 0.013888889, %v7305_v41  ;;  %v7329_v34 = vadd.f32 %v7328_v46, %v7327_v22  ;;  %v10853_v22 = vcombine.low %v8043_v57, %v8043_v57 }
 0x3d7   :  { %v15652_v7 = vsub.f32 %v15466_v5, %v7331_v56  ;;  %v15655_v14 = vsub.f32 %v15478_v63, %v7331_v56  ;;  %v15658_v29 = vsub.f32 %v15532_v40, %v7331_v56  ;;  %v15661_v26 = vsub.f32 %v15545_v8, %v7331_v56 }
 0x3d8   :  { %v15664_v10 = vsub.f32 %v15565_v31, %v7331_v56  ;;  %v15667_v12 = vsub.f32 %v15582_v2, %v7331_v56  ;;  %v15670_v3 = vsub.f32 %v15595_v16, %v7331_v56  ;;  %v15672_v5 = vsub.f32 %v11135_v61, %v7331_v56  ;;  %v12051_v31 = vld [vmem:[%s16874_s2 + $0x60] ss:$8 sps:$4 sm:$0xff]   ;;  %v12053_v2 = vld [vmem:[%s16874_s2 + $0x64] ss:$8 sps:$4 sm:$0xff]   ;;  %v12056_v16 = vld [vmem:[%s16874_s2 + $0x74] ss:$8 sps:$4 sm:$0xff]  }
 0x3d9   :  { %v15674_v63 = vsub.f32 %v11137_v36, %v7331_v56  ;;  %v7351_v40 = vmul.f32 %v15652_v7, %v15652_v7  ;;  %v7353_v8 = vmul.f32 %v15655_v14, %v15655_v14  ;;  %v7355_v61 = vmul.f32 %v15658_v29, %v15658_v29  ;;  %8649 = vmatprep.subr.bf16.mxu1 %v12053_v2 }
 0x3da   :  { %v7332_v24 = vmul.f32 0.013888889, %v7329_v34  ;;  %v7357_v18 = vmul.f32 %v15661_v26, %v15661_v26  ;;  %v7359_v11 = vmul.f32 %v15664_v10, %v15664_v10  ;;  %8650 = vmatpush1.bf16.msra.mxu1 %v12051_v31  ;;  %v7363_v53 = vmul.f32 %v15670_v3, %v15670_v3 }
 0x3db   :  { %v7369_v25 = vadd.f32 %v7353_v8, %v7351_v40  ;;  %8651 = vmatprep.subr.bf16.mxu1 %v12056_v16  ;;  %v7365_v4 = vmul.f32 %v15672_v5, %v15672_v5  ;;  %v7367_v58 = vmul.f32 %v15674_v63, %v15674_v63  ;;  %v8632_v49 = vsel %vm8392_vm11, %v10853_v22, 0 }
 0x3dc   :  { %v15699_v50 = vsub.f32 %v15472_v6, %v7332_v24  ;;  %v15702_v21 = vsub.f32 %v15481_v20, %v7332_v24  ;;  %v15705_v36 = vsub.f32 %v15538_v39, %v7332_v24  ;;  %v15708_v51 = vsub.f32 %v15553_v60, %v7332_v24 }
 0x3dd   :  { %v7370_v27 = vadd.f32 %v7369_v25, %v7355_v61  ;;  %v15711_v15 = vsub.f32 %v15573_v43, %v7332_v24  ;;  %v15714_v32 = vsub.f32 %v15588_v19, %v7332_v24  ;;  %v15717_v9 = vsub.f32 %v15598_v45, %v7332_v24 }
 0x3de   :  { %v15720_v20 = vsub.f32 %v15605_v42, %v7332_v24  ;;  %v15723_v39 = vsub.f32 %v15623_v62, %v7332_v24  ;;  %v7352_v60 = vmul.f32 %v15699_v50, %v15699_v50  ;;  %v7354_v43 = vmul.f32 %v15702_v21, %v15702_v21  ;;  %8652 = vmatpush1.bf16.msra.mxu1 %v12054_v13  ;;  %v12057_v42 = vld [vmem:[%s16874_s2 + $0x80] ss:$8 sps:$4 sm:$0xff]   ;;  %v12059_v62 = vld [vmem:[%s16874_s2 + $0x84] ss:$8 sps:$4 sm:$0xff]  }
 0x3df   :  { %v7371_v6 = vadd.f32 %v7370_v27, %v7357_v18  ;;  %v7356_v19 = vmul.f32 %v15705_v36, %v15705_v36  ;;  %v7361_v45 = vmul.f32 %v15667_v12, %v15667_v12  ;;  %v7358_v1 = vmul.f32 %v15708_v51, %v15708_v51  ;;  %8653 = vmatprep.subr.bf16.mxu1 %v12059_v62 }
 0x3e0   :  { %v7383_v0 = vsel %vm7306_vm9, %v7352_v60, 0.0  ;;  %v7384_v33 = vsel %vm7306_vm9, %v7354_v43, 0.0  ;;  %v7360_v44 = vmul.f32 %v15711_v15, %v15711_v15  ;;  %v7362_v23 = vmul.f32 %v15714_v32, %v15714_v32 }
 0x3e1   :  { %v7372_v30 = vadd.f32 %v7371_v6, %v7359_v11  ;;  %v7385_v52 = vadd.f32 %v7384_v33, %v7383_v0  ;;  %v7386_v55 = vsel %vm7306_vm9, %v7356_v19, 0.0  ;;  %v7388_v48 = vsel %vm7306_vm9, %v7358_v1, 0.0 }
 0x3e2   :  { %8654 = vmatpush1.bf16.msra.mxu1 %v12057_v42  ;;  %v7364_v56 = vmul.f32 %v15717_v9, %v15717_v9  ;;  %v7390_v34 = vsel %vm7306_vm9, %v7360_v44, 0.0  ;;  %v7366_v31 = vmul.f32 %v15720_v20, %v15720_v20  ;;  %v7392_v2 = vsel %vm7306_vm9, %v7362_v23, 0.0  ;;  %v12064_v44 = vld [vmem:[%s16874_s2 + $0x134] ss:$8 sps:$4 sm:$0xff]   ;;  %v7947_v23 = vld [vmem:[#allocation3 + $0x50] sm:$0x1] }
 0x3e3   :  { %v7373_v59 = vadd.f32 %v7372_v30, %v7361_v45  ;;  %v7387_v35 = vadd.f32 %v7386_v55, %v7385_v52  ;;  %10855 = vmatprep.subr.msk.bf16.mxu1 %vm8392_vm11, %v10854_v37  ;;  %v7368_v25 = vmul.f32 %v15723_v39, %v15723_v39  ;;  %v15774_v55 = vld [vmem:[#allocation3 + $0x48] sm:$0xff] }
 0x3e4   :  { %v7394_v24 = vsel %vm7306_vm9, %v7364_v56, 0.0  ;;  %v7396_v13 = vsel %vm7306_vm9, %v7366_v31, 0.0  ;;  %v8124_v37 = vrot.slane %v15774_v55, 1  ;;  %v15806_v31 = vld [vmem:[#allocation3 + $0xb0] sm:$0x1] }
 0x3e5   :  { %v7374_v38 = vadd.f32 %v7373_v59, %v7363_v53  ;;  %v7389_v46 = vadd.f32 %v7388_v48, %v7387_v35  ;;  %v7398_v60 = vsel %vm7306_vm9, %v7368_v25, 0.0 }
 0x3e6   :  { %8656 = vmatpush1.bf16.msra.mxu1 %v8632_v49 }
 0x3e7   :  { %v7375_v41 = vadd.f32 %v7374_v38, %v7365_v4  ;;  %v7391_v8 = vadd.f32 %v7390_v34, %v7389_v46  ;;  %v7948_v38 = vld [vmem:[#allocation3 + $0x58] sm:$0x1]  ;;  %8911 = vmatprep.subr.bf16.mxu1 %v12064_v44 }
 0x3e8   :  { %v8125_v22 = vrot.slane %v7948_v38, 1 }
 0x3e9   :  { %v7376_v40 = vadd.f32 %v7375_v41, %v7367_v58  ;;  %v7393_v61 = vadd.f32 %v7392_v2, %v7391_v8  ;;  %v15793_v8 = vld [vmem:[#allocation3 + $0x78] sm:$0x1]  ;;  %v15812_v2 = vld [vmem:[#allocation3 + $0xd0] sm:$0x1] }
 0x3eb   :  { %v7377_v16 = vrot.slane %v7376_v40, 4  ;;  %v7395_v11 = vadd.f32 %v7394_v24, %v7393_v61 }
 0x3ed   :  { %v7378_v18 = vadd.f32 %v7377_v16, %v7376_v40  ;;  %v7397_v6 = vadd.f32 %v7396_v13, %v7395_v11  ;;  %v8131_v16 = vrot.slane %v15793_v8, 1  ;;  %v7976_v8 = vld [vmem:[#allocation3 + $0x138] sm:$0x1] }
 0x3ef   :  { %v7379_v27 = vrot.slane %v7378_v18, 2  ;;  %v7399_v19 = vadd.f32 %v7398_v60, %v7397_v6 }
 0x3f1   :  { %v7380_v43 = vadd.f32 %v7379_v27, %v7378_v18  ;;  %v7400_v30 = vrot.slane %v7399_v19, 4 }
 0x3f3   :  { %v7381_v45 = vrot.slane %v7380_v43, 1  ;;  %v7401_v62 = vadd.f32 %v7400_v30, %v7399_v19 }
 0x3f5   :  { %v7382_v42 = vadd.f32 %v7381_v45, %v7380_v43  ;;  %v7402_v0 = vrot.slane %v7401_v62, 2 }
 0x3f7   :  { %v7406_v1 = vmul.f32 0.013888889, %v7382_v42  ;;  %v7403_v57 = vadd.f32 %v7402_v0, %v7401_v62 }
 0x3f9   :  { %v7408_v33 = vadd.f32 1e-05, %v7406_v1  ;;  %v7404_v53 = vrot.slane %v7403_v57, 1 }
 0x3fb   :  { %12124 = vrsqrt.f32 %v7408_v33  ;;  %v7405_v59 = vadd.f32 %v7404_v53, %v7403_v57 }
 0x3fd   :  { %v7407_v52 = vmul.f32 0.013888889, %v7405_v59 }
 0x3ff   :  { %v7409_v4 = vadd.f32 1e-05, %v7407_v52 }
 0x401   :  { %12126 = vrsqrt.f32 %v7409_v4 }
 0x405   :  { %v12125_v35 = vpop.eup %12124 }
 0x406   :  { %v7412_v48 = vmul.f32 %v12125_v35, %v15652_v7  ;;  %v7414_v58 = vmul.f32 %v12125_v35, %v15655_v14  ;;  %v7416_v41 = vmul.f32 %v12125_v35, %v15658_v29  ;;  %v7418_v46 = vmul.f32 %v12125_v35, %v15661_v26  ;;  %v15798_v14 = vld [vmem:[#allocation3 + $0x70] sm:$0x1]  ;;  %v15800_v26 = vld [vmem:[#allocation3 + $0x98] sm:$0x1] }
 0x407   :  { %v15782_v49 = vmul.f32 %v12125_v35, %v15664_v10  ;;  %v15785_v56 = vmul.f32 %v12125_v35, %v15667_v12  ;;  %v15788_v34 = vmul.f32 %v12125_v35, %v15670_v3  ;;  %v15791_v40 = vmul.f32 %v12125_v35, %v15672_v5  ;;  %v15802_v10 = vld [vmem:[#allocation3 + $0xb8] sm:$0x1]  ;;  %v15804_v12 = vld [vmem:[#allocation3 + $0x90] sm:$0x1] }
 0x408   :  { %v15796_v7 = vmul.f32 %v12125_v35, %v15674_v63  ;;  %v8122_v29 = vrot.slane %v7947_v23, 1  ;;  %v15808_v3 = vld [vmem:[#allocation3 + $0xd8] sm:$0x1]  ;;  %v15815_v63 = vsel %vm8108_vm12, %v8124_v37, %v8125_v22 }
 0x409   :  { %v15810_v5 = vld [vmem:[#allocation3 + $0xf8] sm:$0x1] }
 0x40a   :  { %v15821_v25 = vsel %vm8108_vm12, %v15561_v47, %v8122_v29 }
 0x40b   :  { %17584 = vst [vmem:[#allocation110_spill] sm:$0xff] %v15821_v25  ;;  %v12127_v13 = vpop.eup %12126 }
 0x40c   :  { %v7413_v19 = vmul.f32 %v12127_v13, %v15699_v50  ;;  %v7415_v45 = vmul.f32 %v12127_v13, %v15702_v21  ;;  %v7417_v30 = vmul.f32 %v12127_v13, %v15705_v36  ;;  %v7419_v42 = vmul.f32 %v12127_v13, %v15708_v51 }
 0x40d   :  { %v7421_v62 = vmul.f32 %v12127_v13, %v15711_v15  ;;  %v7423_v1 = vmul.f32 %v12127_v13, %v15714_v32  ;;  %v7425_v0 = vmul.f32 %v12127_v13, %v15717_v9  ;;  %v7427_v33 = vmul.f32 %v12127_v13, %v15720_v20 }
 0x40e   :  { %v7429_v57 = vmul.f32 %v12127_v13, %v15723_v39  ;;  %v7521_v53 = vcombine.low %v7412_v48, %v7413_v19  ;;  %v7522_v59 = vcombine.high %v7412_v48, %v7413_v19  ;;  %v7539_v52 = vcombine.low %v7414_v58, %v7415_v45 }
 0x40f   :  { %v7540_v50 = vcombine.high %v7414_v58, %v7415_v45  ;;  %v7557_v4 = vcombine.low %v7416_v41, %v7417_v30  ;;  %v7558_v21 = vcombine.high %v7416_v41, %v7417_v30  ;;  %v7575_v44 = vcombine.low %v7418_v46, %v7419_v42 }
 0x410   :  { %v7529_v36 = vrot.slane %v7521_v53, %v12394_v17  ;;  %v7536_v51 = vrot.slane %v7522_v59, %v12394_v17  ;;  %v7547_v15 = vrot.slane %v7539_v52, %v12394_v17  ;;  %v7576_v32 = vcombine.high %v7418_v46, %v7419_v42 }
 0x411   :  { %v7554_v9 = vrot.slane %v7540_v50, %v12394_v17  ;;  %v7565_v20 = vrot.slane %v7557_v4, %v12394_v17  ;;  %v7572_v39 = vrot.slane %v7558_v21, %v12394_v17  ;;  %v7583_v38 = vrot.slane %v7575_v44, %v12394_v17 }
 0x412   :  { %v7537_v35 = vcombine.high %v7529_v36, %v7529_v36  ;;  %v7538_v37 = vcombine.high %v7536_v51, %v7536_v51  ;;  %v7555_v22 = vcombine.high %v7547_v15, %v7547_v15  ;;  %v7590_v23 = vrot.slane %v7576_v32, %v12394_v17 }
 0x413   :  { %v7556_v48 = vcombine.high %v7554_v9, %v7554_v9  ;;  %v7573_v58 = vcombine.high %v7565_v20, %v7565_v20  ;;  %v7574_v41 = vcombine.high %v7572_v39, %v7572_v39  ;;  %v7591_v29 = vcombine.high %v7583_v38, %v7583_v38 }
 0x414   :  { %v7592_v13 = vcombine.high %v7590_v23, %v7590_v23  ;;  %v7593_v46 = vcombine.low %v15782_v49, %v7421_v62  ;;  %v7594_v19 = vcombine.high %v15782_v49, %v7421_v62  ;;  %v7611_v45 = vcombine.low %v15785_v56, %v7423_v1 }
 0x415   :  { %v7612_v30 = vcombine.high %v15785_v56, %v7423_v1  ;;  %v7629_v42 = vcombine.low %v15788_v34, %v7425_v0  ;;  %v7630_v53 = vcombine.high %v15788_v34, %v7425_v0  ;;  %v7647_v59 = vcombine.low %v15791_v40, %v7427_v33 }
 0x416   :  { %v7601_v52 = vrot.slane %v7593_v46, %v12394_v17  ;;  %v7608_v50 = vrot.slane %v7594_v19, %v12394_v17  ;;  %v7619_v4 = vrot.slane %v7611_v45, %v12394_v17  ;;  %v7648_v21 = vcombine.high %v15791_v40, %v7427_v33 }
 0x417   :  { %v7626_v49 = vrot.slane %v7612_v30, %v12394_v17  ;;  %v7637_v62 = vrot.slane %v7629_v42, %v12394_v17  ;;  %v15861_v56 = vrot.slane %v7630_v53, %v12394_v17  ;;  %v15864_v34 = vrot.slane %v7647_v59, %v12394_v17 }
 0x418   :  { %v7609_v1 = vcombine.high %v7601_v52, %v7601_v52  ;;  %v7610_v0 = vcombine.high %v7608_v50, %v7608_v50  ;;  %v7627_v44 = vcombine.high %v7619_v4, %v7619_v4  ;;  %v15867_v32 = vrot.slane %v7648_v21, %v12394_v17 }
 0x419   :  { %v7628_v46 = vcombine.high %v7626_v49, %v7626_v49  ;;  %v7645_v19 = vcombine.high %v7637_v62, %v7637_v62  ;;  %v7646_v40 = vcombine.high %v15861_v56, %v15861_v56  ;;  %v7663_v33 = vcombine.high %v15864_v34, %v15864_v34 }
 0x41a   :  { %v7664_v45 = vcombine.high %v15867_v32, %v15867_v32  ;;  %v7665_v30 = vcombine.low %v15796_v7, %v7429_v57  ;;  %v7666_v42 = vcombine.high %v15796_v7, %v7429_v57  ;;  %v7683_v53 = vcombine.low %v7529_v36, %v7537_v35 }
 0x41b   :  { %v7697_v59 = vrot.slane %v7536_v51, %v12394_v17  ;;  %v7700_v21 = vcombine.low %v7538_v37, %v7547_v15  ;;  %v7714_v43 = vrot.slane %v7555_v22, %v12394_v17  ;;  %v7717_v60 = vcombine.low %v7554_v9, %v7556_v48 }
 0x41c   :  { %v7673_v6 = vrot.slane %v7665_v30, %v12394_v17  ;;  %v7680_v27 = vrot.slane %v7666_v42, %v12394_v17  ;;  %v7690_v11 = vrot.slane %v7683_v53, %v12394_v17  ;;  %v7731_v18 = vrot.slane %v7565_v20, %v12394_v17 }
 0x41d   :  { %v7707_v24 = vrot.slane %v7700_v21, %v12394_v17  ;;  %v7724_v61 = vrot.slane %v7717_v60, %v12394_v17  ;;  %v7734_v7 = vcombine.low %v7573_v58, %v7572_v39  ;;  %v7748_v57 = vrot.slane %v7574_v41, %v12394_v17 }
 0x41e   :  { %v7681_v36 = vcombine.high %v7673_v6, %v7673_v6  ;;  %v7682_v51 = vcombine.high %v7680_v27, %v7680_v27  ;;  %v7698_v15 = vcombine.low %v7690_v11, %v7697_v59  ;;  %v7699_v35 = vcombine.high %v7690_v11, %v7697_v59 }
 0x41f   :  { %v7715_v9 = vcombine.low %v7707_v24, %v7714_v43  ;;  %v7716_v37 = vcombine.high %v7707_v24, %v7714_v43  ;;  %v7732_v22 = vcombine.low %v7724_v61, %v7731_v18  ;;  %v7733_v48 = vcombine.high %v7724_v61, %v7731_v18 }
 0x420   :  { %v7741_v30 = vrot.slane %v7734_v7, %v12394_v17  ;;  %v7751_v42 = vcombine.low %v7583_v38, %v7591_v29  ;;  %v7765_v20 = vrot.slane %v7590_v23, %v12394_v17  ;;  %v7768_v53 = vcombine.low %v7592_v13, %v7601_v52  ;;  %7912 = vst [vmem:[#allocation3 + $0x60] sm:$0x3f] %v7698_v15 }
 0x421   :  { %7914 = vst.msk [vmem:[#allocation3 + $0x68] sm:$0x3f] %vm7913_vm13, %v7699_v35  ;;  %v7782_v60 = vrot.slane %v7609_v1, %v12394_v17  ;;  %v7785_v39 = vcombine.low %v7608_v50, %v7610_v0  ;;  %v7799_v58 = vrot.slane %v7619_v4, %v12394_v17  ;;  %v7802_v41 = vcombine.low %v7627_v44, %v7626_v49 }
 0x422   :  { %7915 = vst [vmem:[#allocation3 + $0x80] sm:$0x3f] %v7715_v9  ;;  %7916 = vst.msk [vmem:[#allocation3 + $0x88] sm:$0x3f] %vm7913_vm13, %v7716_v37  ;;  %v7749_v61 = vcombine.low %v7741_v30, %v7748_v57  ;;  %v7750_v24 = vcombine.high %v7741_v30, %v7748_v57  ;;  %v7758_v18 = vrot.slane %v7751_v42, %v12394_v17  ;;  %v15935_v42 = vld [vmem:[#allocation3 + $0xf0] sm:$0x1] }
 0x423   :  { %7917 = vst [vmem:[#allocation3 + $0xa0] sm:$0x3f] %v7732_v22  ;;  %7918 = vst.msk [vmem:[#allocation3 + $0xa8] sm:$0x3f] %vm7913_vm13, %v7733_v48  ;;  %v7775_v11 = vrot.slane %v7768_v53, %v12394_v17  ;;  %v7792_v43 = vrot.slane %v7785_v39, %v12394_v17  ;;  %v7809_v38 = vrot.slane %v7802_v41, %v12394_v17 }
 0x424   :  { %v7816_v23 = vrot.slane %v7628_v46, %v12394_v17  ;;  %v7819_v29 = vcombine.low %v7637_v62, %v7645_v19  ;;  %v7766_v13 = vcombine.low %v7758_v18, %v7765_v20  ;;  %v7767_v52 = vcombine.high %v7758_v18, %v7765_v20  ;;  %7919 = vst [vmem:[#allocation3 + $0xc0] sm:$0x3f] %v7749_v61  ;;  %v15937_v20 = vld [vmem:[#allocation3 + $0x128] sm:$0xff] }
 0x425   :  { %v7783_v50 = vcombine.low %v7775_v11, %v7782_v60  ;;  %v7784_v4 = vcombine.high %v7775_v11, %v7782_v60  ;;  %7920 = vst.msk [vmem:[#allocation3 + $0xc8] sm:$0x3f] %vm7913_vm13, %v7750_v24  ;;  %v7800_v49 = vcombine.low %v7792_v43, %v7799_v58  ;;  %v7801_v1 = vcombine.high %v7792_v43, %v7799_v58  ;;  %v15945_v24 = vld [vmem:[#allocation3 + $0x178] sm:$0x1] }
 0x426   :  { %v7817_v0 = vcombine.low %v7809_v38, %v7816_v23  ;;  %v7818_v44 = vcombine.high %v7809_v38, %v7816_v23  ;;  %v7826_v59 = vrot.slane %v7819_v29, %v12394_v17  ;;  %v7833_v21 = vrot.slane %v15861_v56, %v12394_v17  ;;  %7921 = vst [vmem:[#allocation3 + $0xe0] sm:$0x3f] %v7766_v13 }
 0x427   :  { %v7836_v7 = vcombine.low %v7646_v40, %v15864_v34  ;;  %v7850_v62 = vrot.slane %v7663_v33, %v12394_v17  ;;  %7922 = vst.msk [vmem:[#allocation3 + $0xe8] sm:$0x3f] %vm7913_vm13, %v7767_v52  ;;  %7923 = vst [vmem:[#allocation3 + $0x100] sm:$0x3f] %v7783_v50  ;;  %v7853_v46 = vcombine.low %v15867_v32, %v7664_v45  ;;  %v15916_v40 = vld [vmem:[#allocation3 + $0x60] sm:$0xff]  ;;  %v17585_v11 = vrot.slane %v15798_v14, 1 }
 0x428   :  { %7924 = vst.msk [vmem:[#allocation3 + $0x108] sm:$0x3f] %vm7913_vm13, %v7784_v4  ;;  %v7867_v19 = vrot.slane %v7673_v6, %v12394_v17  ;;  %v7870_v57 = vcombine.low %v7681_v36, %v7680_v27  ;;  %v7884_v56 = vrot.slane %v7682_v51, %v12394_v17  ;;  %7925 = vst [vmem:[#allocation3 + $0x180] sm:$0x3f] %v7800_v49  ;;  %v15914_v34 = vld [vmem:[#allocation3 + $0x68] sm:$0xff]  ;;  %v8127_v51 = vrot.slane %v15916_v40, 1 }
 0x429   :  { %7926 = vst.msk [vmem:[#allocation3 + $0x188] sm:$0x3f] %vm7913_vm13, %v7801_v1  ;;  %7927 = vst [vmem:[#allocation3 + $0x1a0] sm:$0x3f] %v7817_v0  ;;  %v7834_v33 = vcombine.low %v7826_v59, %v7833_v21  ;;  %v7835_v15 = vcombine.high %v7826_v59, %v7833_v21  ;;  %v7843_v35 = vrot.slane %v7836_v7, %v12394_v17  ;;  %v8130_v32 = vrot.slane %v15914_v34, 1  ;;  %v15920_v6 = vld [vmem:[#allocation3 + $0x88] sm:$0xff] }
 0x42a   :  { %7928 = vst.msk [vmem:[#allocation3 + $0x1a8] sm:$0x3f] %vm7913_vm13, %v7818_v44  ;;  %v15922_v27 = vld [vmem:[#allocation3 + $0xa8] sm:$0xff]  ;;  %v7860_v45 = vrot.slane %v7853_v46, %v12394_v17  ;;  %v7877_v36 = vrot.slane %v7870_v57, %v12394_v17  ;;  %v8136_v9 = vrot.slane %v15920_v6, 1  ;;  %v15941_v41 = vld [vmem:[#allocation3 + $0x80] sm:$0xff]  ;;  %v15955_v43 = vsel %vm8108_vm12, %v8127_v51, %v17585_v11 }
 0x42b   :  { %v7851_v37 = vcombine.low %v7843_v35, %v7850_v62  ;;  %v7852_v22 = vcombine.high %v7843_v35, %v7850_v62  ;;  %7929 = vst [vmem:[#allocation3 + $0x1c0] sm:$0x3f] %v7834_v33  ;;  %7930 = vst.msk [vmem:[#allocation3 + $0x1c8] sm:$0x3f] %vm7913_vm13, %v7835_v15  ;;  %v15932_v48 = vsel %vm8108_vm12, %v8130_v32, %v8131_v16  ;;  %v8142_v30 = vrot.slane %v15922_v27, 1  ;;  %v15939_v17 = vld [vmem:[#allocation3 + $0x168] sm:$0xff] }
 0x42c   :  { %v7868_v53 = vcombine.low %v7860_v45, %v7867_v19  ;;  %v7869_v60 = vcombine.high %v7860_v45, %v7867_v19  ;;  %v7885_v39 = vcombine.low %v7877_v36, %v7884_v56  ;;  %v7886_v58 = vcombine.high %v7877_v36, %v7884_v56  ;;  %v15943_v61 = vld [vmem:[#allocation3 + $0xa0] sm:$0xff]  ;;  %v15947_v16 = vld [vmem:[#allocation3 + $0x198] sm:$0x1]  ;;  %v15967_v52 = vld [vmem:[#allocation3 + $0xc8] sm:$0xff] }
 0x42d   :  { %7931 = vst [vmem:[#allocation3 + $0x1e0] sm:$0x3f] %v7851_v37  ;;  %7932 = vst.msk [vmem:[#allocation3 + $0x1e8] sm:$0x3f] %vm7913_vm13, %v7852_v22  ;;  %v8240_v18 = vpack.c.bf16 %v15932_v48, %v15815_v63  ;;  %v17586_v38 = vrot.slane %v15800_v26, 1  ;;  %v17587_v29 = vrot.slane %v15802_v10, 1  ;;  %v8239_v14 = vpack.c.bf16 %v15955_v43, %v15821_v25 }
 0x42e   :  { %v15969_v50 = vld [vmem:[#allocation3 + $0x148] sm:$0xff]  ;;  %v7980_v4 = vld [vmem:[#allocation3 + $0x158] sm:$0x1]  ;;  %7933 = vst [vmem:[#allocation3 + $0x200] sm:$0x3f] %v7868_v53  ;;  %v8152_v10 = vrot.slane %v15935_v42, 1 }
 0x42f   :  { %v15960_v23 = vsel %vm8108_vm12, %v8136_v9, %v17586_v38  ;;  %v15965_v13 = vsel %vm8108_vm12, %v8142_v30, %v17587_v29  ;;  %7934 = vst.msk [vmem:[#allocation3 + $0x208] sm:$0x3f] %vm7913_vm13, %v7869_v60  ;;  %7935 = vst [vmem:[#allocation3 + $0x220] sm:$0x3f] %v7885_v39  ;;  %v15975_v26 = vld [vmem:[#allocation3 + $0xe8] sm:$0xff]  ;;  %v8160_v49 = vrot.slane %v15937_v20, 1  ;;  %10828 = vmatprep.mubr.msk.bf16.mxu1 %vm7306_vm9, %v8240_v18 }
 0x430   :  { %7936 = vst.msk [vmem:[#allocation3 + $0x228] sm:$0x3f] %vm7913_vm13, %v7886_v58  ;;  %v15980_v0 = vld [vmem:[#allocation3 + $0x190] sm:$0x1]  ;;  %v8242_v44 = vpack.c.bf16 %v15965_v13, %v15960_v23  ;;  %v8133_v59 = vrot.slane %v15941_v41, 1  ;;  %v8139_v21 = vrot.slane %v15943_v61, 1  ;;  %8442 = vmatmul.mubr.bf16.gmra.mrb[24].mxu1 %v8239_v14 }
 0x431   :  { %v8161_v7 = vrot.slane %v7976_v8, 1  ;;  %v15987_v62 = vld [vmem:[#allocation3 + $0x1b8] sm:$0x1]  ;;  %v8148_v46 = vrot.slane %v15967_v52, 1  ;;  %v8154_v19 = vrot.slane %v15975_v26, 1  ;;  %v8166_v57 = vrot.slane %v15969_v50, 1 }
 0x432   :  { %v8167_v56 = vrot.slane %v7980_v4, 1  ;;  %10829 = vmatprep.mubr.msk.bf16.mxu1 %vm7306_vm9, %v8242_v44  ;;  %v15993_v33 = vld [vmem:[#allocation3 + $0xc0] sm:$0xff]  ;;  %v8179_v35 = vrot.slane %v15947_v16, 1  ;;  %v15998_v45 = vld [vmem:[#allocation3 + $0x1d8] sm:$0x1]  ;;  %v17588_v22 = vrot.slane %v15804_v12, 1 }
 0x433   :  { %v16000_v36 = vld [vmem:[#allocation3 + $0xe0] sm:$0xff]  ;;  %v16003_v9 = vld [vmem:[#allocation3 + $0x1b0] sm:$0x1]  ;;  %v17589_v53 = vrot.slane %v15806_v31, 1  ;;  %v16018_v39 = vsel %vm8108_vm12, %v8160_v49, %v8161_v7  ;;  %v16024_v16 = vld [vmem:[#allocation3 + $0x1f8] sm:$0x1] }
 0x434   :  { %v16005_v37 = vld [vmem:[#allocation3 + $0x1d0] sm:$0x1]  ;;  %v16010_v30 = vsel %vm8108_vm12, %v8133_v59, %v17588_v22  ;;  %v17590_v18 = vrot.slane %v15808_v3, 1  ;;  %v17591_v11 = vrot.slane %v15810_v5, 1  ;;  %v8145_v38 = vrot.slane %v15993_v33, 1  ;;  %v16040_v4 = vld [vmem:[#allocation3 + $0x188] sm:$0xff] }
 0x435   :  { %v16015_v60 = vsel %vm8108_vm12, %v8139_v21, %v17589_v53  ;;  %v16020_v58 = vld [vmem:[#allocation3 + $0x130] sm:$0x1]  ;;  %v16038_v29 = vsel %vm8108_vm12, %v8166_v57, %v8167_v56  ;;  %v8151_v49 = vrot.slane %v16000_v36, 1  ;;  %v16043_v44 = vld [vmem:[#allocation3 + $0x180] sm:$0xff]  ;;  %v8191_v3 = vrot.slane %v15998_v45, 1  ;;  %v16062_v22 = vld [vmem:[#allocation3 + $0x1c8] sm:$0xff] }
 0x436   :  { %v16022_v8 = vld [vmem:[#allocation3 + $0x150] sm:$0x1]  ;;  %v16029_v12 = vsel %vm8108_vm12, %v8148_v46, %v17590_v18  ;;  %v16034_v31 = vsel %vm8108_vm12, %v8154_v19, %v17591_v11  ;;  %17593 = vst [vmem:[#allocation48_spill] sm:$0xff] %v16038_v29  ;;  %v8182_v59 = vrot.slane %v16003_v9, 1  ;;  %v8188_v5 = vrot.slane %v16005_v37, 1  ;;  %v16052_v19 = vld [vmem:[#allocation3 + $0x1a8] sm:$0xff] }
 0x437   :  { %17592 = vst [vmem:[#allocation47_spill] sm:$0xff] %v16034_v31  ;;  %v7999_v14 = vld [vmem:[#allocation3 + $0x1f0] sm:$0x1]  ;;  %v8241_v21 = vpack.c.bf16 %v16015_v60, %v16010_v30  ;;  %v8158_v7 = vrot.slane %v16020_v58, 1  ;;  %v8164_v46 = vrot.slane %v16022_v8, 1  ;;  %v16054_v57 = vld [vmem:[#allocation3 + $0x1a0] sm:$0xff]  ;;  %v8244_v45 = vpack.c.bf16 %v16034_v31, %v16029_v12 }
 0x438   :  { %v8197_v56 = vrot.slane %v16024_v16, 1  ;;  %v8246_v9 = vpack.c.bf16 %v16038_v29, %v16018_v39  ;;  %v8178_v37 = vrot.slane %v16040_v4, 1  ;;  %v16064_v53 = vld [vmem:[#allocation3 + $0x1c0] sm:$0xff]  ;;  %v16066_v58 = vld [vmem:[#allocation3 + $0x1e8] sm:$0xff]  ;;  %v8194_v8 = vrot.slane %v7999_v14, 1 }
 0x439   :  { %8452 = vmatmul.mubr.bf16.gmra.mrb[28].mxu1 %v8241_v21  ;;  %v17594_v18 = vrot.slane %v15812_v2, 1  ;;  %v8175_v11 = vrot.slane %v16043_v44, 1  ;;  %v16074_v1 = vld [vmem:[#allocation3 + $0x208] sm:$0xff]  ;;  %v16076_v39 = vld [vmem:[#allocation3 + $0x1e0] sm:$0xff]  ;;  %v16088_v2 = vsel %vm8108_vm12, %v8151_v49, %v8152_v10  ;;  %v8190_v51 = vrot.slane %v16062_v22, 1 }
 0x43a   :  { %v16078_v15 = vld [vmem:[#allocation3 + $0x200] sm:$0xff]  ;;  %10830 = vmatprep.mubr.msk.bf16.mxu1 %vm7306_vm9, %v8244_v45  ;;  %17595 = vst [vmem:[#allocation41_spill] sm:$0xff] %v16088_v2  ;;  %v8181_v32 = vrot.slane %v16054_v57, 1  ;;  %v16102_v10 = vsel %vm8108_vm12, %v8178_v37, %v8179_v35  ;;  %v8187_v49 = vrot.slane %v16064_v53, 1  ;;  %v8196_v14 = vrot.slane %v16066_v58, 1 }
 0x43b   :  { %v16071_v16 = vsel %vm8108_vm12, %v8145_v38, %v17594_v18  ;;  %v8184_v38 = vrot.slane %v16052_v19, 1  ;;  %v8193_v29 = vrot.slane %v16076_v39, 1  ;;  %v17596_v37 = vrot.slane %v15980_v0, 1 }
 0x43c   :  { %v8243_v35 = vpack.c.bf16 %v16088_v2, %v16071_v16  ;;  %v8755_v18 = vpack.c.bf16 %v15967_v52, %v15922_v27  ;;  %v8754_v31 = vpack.c.bf16 %v15993_v33, %v15943_v61  ;;  %v17597_v25 = vrot.slane %v15987_v62, 1 }
 0x43d   :  { %v16120_v21 = vsel %vm8108_vm12, %v8175_v11, %v17596_v37  ;;  %v16132_v42 = vsel %vm8108_vm12, %v8190_v51, %v8191_v3  ;;  %v16135_v2 = vsel %vm8108_vm12, %v8181_v32, %v8182_v59  ;;  %v8761_v0 = vpack.c.bf16 %v16052_v19, %v16040_v4  ;;  %v12209_v3 = vld [vmem:[#allocation3] sm:$0xff] }
 0x43e   :  { %v16129_v45 = vsel %vm8108_vm12, %v8184_v38, %v17597_v25  ;;  %v16140_v11 = vsel %vm8108_vm12, %v8187_v49, %v8188_v5  ;;  %v8760_v37 = vpack.c.bf16 %v16054_v57, %v16043_v44  ;;  %v8763_v62 = vpack.c.bf16 %v16066_v58, %v16062_v22 }
 0x43f   :  { %v16149_v51 = vsel %vm8108_vm12, %v8196_v14, %v8197_v56  ;;  %v16152_v32 = vsel %vm8108_vm12, %v8193_v29, %v8194_v8  ;;  %v8159_v5 = vsel %vm8108_vm12, %v15561_v47, %v8158_v7  ;;  %v16163_v38 = vsel %vm8108_vm12, %v15561_v47, %v8164_v46  ;;  %v7983_v56 = vld [vmem:[#allocation3 + $0x170] sm:$0x1] }
 0x440   :  { %v8245_v46 = vpack.c.bf16 %v16163_v38, %v8159_v5  ;;  %v17598_v49 = vrot.slane %v15945_v24, 1  ;;  %v8170_v14 = vrot.slane %v7983_v56, 1  ;;  %v8004_v5 = vld [vmem:[#allocation3 + $0x218] sm:$0x1]  ;;  %v16216_v25 = vpack.c.bf16 %v12209_v3, %v12209_v3 }
 0x441   :  { %8462 = vmatmul.mubr.bf16.gmra.mrb[32].mxu1 %v8243_v35  ;;  %v17599_v35 = vrot.slane %v15939_v17, 1 }
 0x442   :  { %10831 = vmatprep.mubr.msk.bf16.mxu1 %vm7306_vm9, %v8246_v9  ;;  %v16190_v7 = vsel %vm8108_vm12, %v15561_v47, %v8170_v14  ;;  %v8203_v9 = vrot.slane %v8004_v5, 1  ;;  %v8249_v47 = vpack.c.bf16 %v16140_v11, %v16135_v2 }
 0x443   :  { %v16183_v29 = vsel %vm8108_vm12, %v17599_v35, %v17598_v49  ;;  %v8247_v24 = vpack.c.bf16 %v16120_v21, %v16190_v7  ;;  %v8250_v49 = vpack.c.bf16 %v16132_v42, %v16129_v45  ;;  %v8202_v35 = vrot.slane %v16074_v1, 1 }
 0x444   :  { %v8248_v8 = vpack.c.bf16 %v16102_v10, %v16183_v29 }
 0x445   :  { %v16199_v56 = vsel %vm8108_vm12, %v8202_v35, %v8203_v9 }
 0x446   :  { %v8252_v14 = vpack.c.bf16 %v16199_v56, %v16149_v51 }
 0x449   :  { %8472 = vmatmul.mubr.bf16.gmra.mrb[36].mxu1 %v8245_v46  ;;  %v8199_v46 = vrot.slane %v16078_v15, 1 }
 0x44a   :  { %10832 = vmatprep.mubr.msk.bf16.mxu1 %vm7306_vm9, %v8248_v8  ;;  %v8003_v8 = vld [vmem:[#allocation3 + $0x210] sm:$0x1] }
 0x44b   :  { %v8200_v59 = vrot.slane %v8003_v8, 1  ;;  %v12062_v8 = vld [vmem:[%s16874_s2 + $0x130] ss:$8 sps:$4 sm:$0xff]  }
 0x44d   :  { %v16208_v5 = vsel %vm8108_vm12, %v8199_v46, %v8200_v59  ;;  %v12067_v59 = vld [vmem:[%s16874_s2 + $0x144] ss:$8 sps:$4 sm:$0xff]   ;;  %v12070_v46 = vld [vmem:[%s16874_s2 + $0x154] ss:$8 sps:$4 sm:$0xff]  }
 0x44e   :  { %v8251_v35 = vpack.c.bf16 %v16208_v5, %v16152_v32 }
 0x451   :  { %8482 = vmatmul.mubr.bf16.gmra.mrb[40].mxu1 %v8247_v24  ;;  %v12207_v24 = vld [vmem:[#allocation3 + $0x8] sm:$0xff] }
 0x452   :  { %10833 = vmatprep.mubr.msk.bf16.mxu1 %vm7306_vm9, %v8250_v49  ;;  %v16210_v49 = vld [vmem:[#allocation3 + $0x28] sm:$0xff] }
 0x453   :  { %v8010_v9 = vpack.c.bf16 %v16210_v49, %v12207_v24  ;;  %v12068_v24 = vld [vmem:[%s16874_s2 + $0x150] ss:$8 sps:$4 sm:$0xff]  }
 0x459   :  { %8492 = vmatmul.mubr.bf16.gmra.mrb[44].mxu1 %v8249_v47  ;;  %v8012_v47 = vpack.c.bf16 %v15914_v34, %v15774_v55 }
 0x45a   :  { %10834 = vmatprep.mubr.msk.bf16.mxu1 %vm7306_vm9, %v8252_v14  ;;  %v12065_v14 = vld [vmem:[%s16874_s2 + $0x140] ss:$8 sps:$4 sm:$0xff]  }
 0x461   :  { %8502 = vmatmul.mubr.bf16.gmra.mrb[48].mxu1 %v8251_v35  ;;  %v12073_v35 = vld [vmem:[%s16874_s2 + $0x164] ss:$8 sps:$4 sm:$0xff]  }
 0x462   :  { %10856 = vmatprep.mubr.msk.bf16.mxu1 %vm7306_vm9, %v8010_v9  ;;  %v8011_v9 = vpack.c.bf16 %v15916_v40, %v12209_v3 }
 0x469   :  { %8670 = vmatmul.mubr.bf16.vlgmr.msra.gmra.mrb[20].mxu1 %v16216_v25 }
 0x46a   :  { %10857 = vmatprep.mubr.msk.bf16.mxu1 %vm7306_vm9, %v8012_v47  ;;  %8912 = vmatpush1.bf16.msra.mxu1 %v12062_v8  ;;  %v17600_v8 = vpack.c.bf16 %v15922_v27, %v15920_v6  ;;  %v12076_v47 = vld [vmem:[%s16874_s2 + $0x174] ss:$8 sps:$4 sm:$0xff]  }
 0x46b   :  { %8913 = vmatprep.subr.bf16.mxu1 %v12067_v59  ;;  %v12071_v59 = vld [vmem:[%s16874_s2 + $0x160] ss:$8 sps:$4 sm:$0xff]   ;;  %v12108_v27 = vld [vmem:[%s16874_s2 + $0x21c] ss:$8 sps:$4 sm:$0xff]  }
 0x46e   :  { %8914 = vmatpush1.bf16.msra.mxu1 %v12065_v14  ;;  %v12074_v14 = vld [vmem:[%s16874_s2 + $0x170] ss:$8 sps:$4 sm:$0xff]  }
 0x46f   :  { %8915 = vmatprep.subr.bf16.mxu1 %v12070_v46  ;;  %v12079_v46 = vld [vmem:[%s16874_s2 + $0x184] ss:$8 sps:$4 sm:$0xff]  }
 0x471   :  { %8680 = vmatmul.mubr.bf16.gmra.mrb[24].mxu1 %v8011_v9  ;;  %v17602_v9 = vpack.c.bf16 %v15975_v26, %v15967_v52  ;;  %v12106_v52 = vld [vmem:[%s16874_s2 + $0x218] ss:$8 sps:$4 sm:$0xff]  }
 0x472   :  { %10858 = vmatprep.mubr.msk.bf16.mxu1 %vm7306_vm9, %v17600_v8  ;;  %8916 = vmatpush1.bf16.msra.mxu1 %v12068_v24  ;;  %v17601_v24 = vpack.c.bf16 %v15943_v61, %v15941_v41  ;;  %v12082_v8 = vld [vmem:[%s16874_s2 + $0x194] ss:$8 sps:$4 sm:$0xff]   ;;  %v12109_v61 = vld [vmem:[%s16874_s2 + $0x228] ss:$8 sps:$4 sm:$0xff]  }
 0x473   :  { %8917 = vmatprep.subr.bf16.mxu1 %v12073_v35  ;;  %v12077_v35 = vld [vmem:[%s16874_s2 + $0x180] ss:$8 sps:$4 sm:$0xff]  }
 0x476   :  { %8918 = vmatpush1.bf16.msra.mxu1 %v12071_v59  ;;  %v8018_v59 = vpack.c.bf16 %v15969_v50, %v15937_v20  ;;  %v12083_v20 = vld [vmem:[%s16874_s2 + $0x1a0] ss:$8 sps:$4 sm:$0xff]  }
 0x477   :  { %8919 = vmatprep.subr.bf16.mxu1 %v12076_v47  ;;  %v12080_v47 = vld [vmem:[%s16874_s2 + $0x190] ss:$8 sps:$4 sm:$0xff]  }
 0x479   :  { %8690 = vmatmul.mubr.bf16.gmra.mrb[28].mxu1 %v17601_v24  ;;  %v12088_v24 = vld [vmem:[%s16874_s2 + $0x1b4] ss:$8 sps:$4 sm:$0xff]  }
 0x47a   :  { %10859 = vmatprep.mubr.msk.bf16.mxu1 %vm7306_vm9, %v17602_v9  ;;  %8920 = vmatpush1.bf16.msra.mxu1 %v12074_v14  ;;  %v12085_v14 = vld [vmem:[%s16874_s2 + $0x1a4] ss:$8 sps:$4 sm:$0xff]  }
 0x47b   :  { %8921 = vmatprep.subr.bf16.mxu1 %v12079_v46  ;;  %v17603_v46 = vpack.c.bf16 %v16000_v36, %v15993_v33  ;;  %v10882_v9 = vld [vmem:[%s16874_s2 + $0x1c0] sm:$0x77] }
 0x47e   :  { %8922 = vmatpush1.bf16.msra.mxu1 %v12077_v35  ;;  %v12086_v35 = vld [vmem:[%s16874_s2 + $0x1b0] ss:$8 sps:$4 sm:$0xff]  }
 0x47f   :  { %8923 = vmatprep.subr.bf16.mxu1 %v12082_v8  ;;  %v10902_v8 = vcombine.high %v10882_v9, %v10882_v9 }
 0x481   :  { %8700 = vmatmul.mubr.bf16.gmra.mrb[32].mxu1 %v17603_v46  ;;  %v12093_v46 = vld [vmem:[%s16874_s2 + $0x1cc] ss:$8 sps:$4 sm:$0xff]  }
 0x482   :  { %10860 = vmatprep.mubr.msk.bf16.mxu1 %vm7306_vm9, %v8018_v59  ;;  %8924 = vmatpush1.bf16.msra.mxu1 %v12080_v47  ;;  %v10901_v59 = vcombine.low %v10882_v9, %v10882_v9  ;;  %v8020_v47 = vpack.c.bf16 %v16040_v4, %v15939_v17  ;;  %v17605_v9 = vpack.c.bf16 %v16064_v53, %v16054_v57  ;;  %v17611_v57 = vld [vmem:[#allocation110_spill] sm:$0xff] }
 0x483   :  { %8925 = vmatprep.subr.bf16.mxu1 %v12085_v14 }
 0x484   :  { %v8906_v14 = vsel %vm8392_vm11, %v10901_v59, 0  ;;  %v12091_v59 = vld [vmem:[%s16874_s2 + $0x1c8] ss:$8 sps:$4 sm:$0xff]  }
 0x486   :  { %8926 = vmatpush1.bf16.msra.mxu1 %v12083_v20  ;;  %v8019_v20 = vpack.c.bf16 %v16043_v44, %v12209_v3  ;;  %v17607_v3 = vpack.c.bf16 %v16078_v15, %v16076_v39 }
 0x487   :  { %8927 = vmatprep.subr.bf16.mxu1 %v12088_v24  ;;  %v17604_v24 = vpack.c.bf16 %v16062_v22, %v16052_v19  ;;  %v17610_v19 = vpack.c.bf16 %v16076_v39, %v16064_v53  ;;  %v9080_v22 = vpack.c.bf16 %v17611_v57, %v15578_v28  ;;  %v7972_v53 = vld [vmem:[#allocation3 + $0x118] sm:$0x1]  ;;  %v17613_v39 = vpack.c.bf16 %v16010_v30, %v15955_v43  ;;  %v17617_v30 = vld [vmem:[#allocation48_spill] sm:$0xff] }
 0x489   :  { %8710 = vmatmul.mubr.bf16.gmra.mrb[36].mxu1 %v16216_v25 }
 0x48a   :  { %10861 = vmatprep.mubr.msk.bf16.mxu1 %vm7306_vm9, %v8020_v47  ;;  %8928 = vmatpush1.bf16.msra.mxu1 %v12086_v35  ;;  %v17606_v35 = vpack.c.bf16 %v16074_v1, %v16066_v58  ;;  %v12096_v47 = vld [vmem:[%s16874_s2 + $0x1dc] ss:$8 sps:$4 sm:$0xff]  }
 0x48b   :  { %10903 = vmatprep.subr.msk.bf16.mxu1 %vm8392_vm11, %v10902_v8  ;;  %v8751_v8 = vpack.c.bf16 %v15774_v55, %v16210_v49  ;;  %v12094_v55 = vld [vmem:[%s16874_s2 + $0x1d8] ss:$8 sps:$4 sm:$0xff]   ;;  %v12099_v49 = vld [vmem:[%s16874_s2 + $0x1ec] ss:$8 sps:$4 sm:$0xff]  }
 0x48e   :  { %8930 = vmatpush1.bf16.msra.mxu1 %v8906_v14  ;;  %v17608_v14 = vpack.c.bf16 %v15920_v6, %v15914_v34  ;;  %v12102_v34 = vld [vmem:[%s16874_s2 + $0x1fc] ss:$8 sps:$4 sm:$0xff]   ;;  %v17609_v6 = vpack.c.bf16 %v15941_v41, %v15916_v40  ;;  %v12103_v40 = vld [vmem:[%s16874_s2 + $0x208] ss:$8 sps:$4 sm:$0xff]  }
 0x48f   :  { %9241 = vmatprep.subr.bf16.mxu1 %v12093_v46  ;;  %v12097_v46 = vld [vmem:[%s16874_s2 + $0x1e8] ss:$8 sps:$4 sm:$0xff]  }
 0x491   :  { %8720 = vmatmul.mubr.bf16.gmra.mrb[40].mxu1 %v8019_v20  ;;  %v12100_v20 = vld [vmem:[%s16874_s2 + $0x1f8] ss:$8 sps:$4 sm:$0xff]  }
 0x492   :  { %10862 = vmatprep.mubr.msk.bf16.mxu1 %vm7306_vm9, %v17604_v24  ;;  %v12105_v24 = vld [vmem:[%s16874_s2 + $0x20c] ss:$8 sps:$4 sm:$0xff]  }
 0x499   :  { %8730 = vmatmul.mubr.bf16.gmra.mrb[44].mxu1 %v17605_v9  ;;  %v7970_v9 = vld [vmem:[#allocation3 + $0x108] sm:$0xff] }
 0x49a   :  { %10863 = vmatprep.mubr.msk.bf16.mxu1 %vm7306_vm9, %v17606_v35  ;;  %v8757_v41 = vpack.c.bf16 %v7970_v9, %v15975_v26  ;;  %v7969_v35 = vld [vmem:[#allocation3 + $0x100] sm:$0xff]  ;;  %v8759_v26 = vpack.c.bf16 %v15939_v17, %v15969_v50  ;;  %v12117_v50 = vld [vmem:[%s16874_s2 + $0x24c] ss:$8 sps:$4 sm:$0xff]   ;;  %v9067_v58 = vrot.slane %v7970_v9, 1  ;;  %v17622_v9 = vpack.c.bf16 %v16152_v32, %v16140_v11 }
 0x49b   :  { %v8756_v33 = vpack.c.bf16 %v7969_v35, %v16000_v36  ;;  %v12112_v17 = vld [vmem:[%s16874_s2 + $0x238] ss:$8 sps:$4 sm:$0xff]  }
 0x49c   :  { %v10930_v36 = vld [vmem:[%s16874_s2 + $0x258] sm:$0x77] }
 0x4a1   :  { %8740 = vmatmul.mubr.bf16.gmra.mrb[48].mxu1 %v17607_v3  ;;  %v10950_v3 = vcombine.high %v10930_v36, %v10930_v36 }
 0x4a2   :  { %10904 = vmatprep.mubr.msk.bf16.mxu1 %vm7306_vm9, %v8751_v8  ;;  %v12115_v8 = vld [vmem:[%s16874_s2 + $0x248] ss:$8 sps:$4 sm:$0xff]  }
 0x4a9   :  { %8944 = vmatmul.mubr.bf16.vlgmr.msra.gmra.mrb[20].mxu1 %v16216_v25 }
 0x4aa   :  { %10905 = vmatprep.mubr.msk.bf16.mxu1 %vm7306_vm9, %v17608_v14  ;;  %9242 = vmatpush1.bf16.msra.mxu1 %v12091_v59  ;;  %v10949_v59 = vcombine.low %v10930_v36, %v10930_v36  ;;  %v9081_v14 = vpack.c.bf16 %v15815_v63, %v15568_v54  ;;  %v9068_v54 = vrot.slane %v7972_v53, 1  ;;  %v17614_v63 = vpack.c.bf16 %v16029_v12, %v15965_v13  ;;  %v17618_v12 = vld [vmem:[#allocation41_spill] sm:$0xff] }
 0x4ab   :  { %9243 = vmatprep.subr.bf16.mxu1 %v12096_v47  ;;  %v9089_v13 = vpack.c.bf16 %v16183_v29, %v17617_v30 }
 0x4ac   :  { %v9236_v47 = vsel %vm8392_vm11, %v10949_v59, 0  ;;  %v9069_v28 = vsel %vm8108_vm12, %v9067_v58, %v9068_v54 }
 0x4ae   :  { %9244 = vmatpush1.bf16.msra.mxu1 %v12094_v55  ;;  %v17616_v55 = vpack.c.bf16 %v16071_v16, %v16015_v60  ;;  %v17619_v60 = vpack.c.bf16 %v16129_v45, %v16102_v10  ;;  %v8008_v16 = vld [vmem:[#allocation3 + $0x238] sm:$0x1] }
 0x4af   :  { %9245 = vmatprep.subr.bf16.mxu1 %v12099_v49  ;;  %v9074_v29 = vrot.slane %v8008_v16, 1 }
 0x4b1   :  { %8954 = vmatmul.mubr.bf16.gmra.mrb[24].mxu1 %v17609_v6  ;;  %v17620_v6 = vpack.c.bf16 %v16135_v2, %v16120_v21 }
 0x4b2   :  { %10906 = vmatprep.mubr.msk.bf16.mxu1 %vm7306_vm9, %v8755_v18  ;;  %9246 = vmatpush1.bf16.msra.mxu1 %v12097_v46  ;;  %v12111_v18 = vld [vmem:[%s16874_s2 + $0x22c] ss:$8 sps:$4 sm:$0xff]   ;;  %v9088_v46 = vpack.c.bf16 %v16190_v7, %v16163_v38  ;;  %v8007_v7 = vld [vmem:[#allocation3 + $0x230] sm:$0x1] }
 0x4b3   :  { %9247 = vmatprep.subr.bf16.mxu1 %v12102_v34  ;;  %v9071_v10 = vrot.slane %v8007_v7, 1 }
 0x4b6   :  { %9248 = vmatpush1.bf16.msra.mxu1 %v12100_v20  ;;  %v17621_v20 = vpack.c.bf16 %v16149_v51, %v16132_v42 }
 0x4b7   :  { %9249 = vmatprep.subr.bf16.mxu1 %v12105_v24 }
 0x4b9   :  { %8964 = vmatmul.mubr.bf16.gmra.mrb[28].mxu1 %v8754_v31  ;;  %v12114_v31 = vld [vmem:[%s16874_s2 + $0x23c] ss:$8 sps:$4 sm:$0xff]   ;;  %s12213_s2 = smov 78  }
 0x4ba   :  { %10907 = vmatprep.mubr.msk.bf16.mxu1 %vm7306_vm9, %v8757_v41  ;;  %9250 = vmatpush1.bf16.msra.mxu1 %v12103_v40 }
 0x4bb   :  { %9251 = vmatprep.subr.bf16.mxu1 %v12108_v27 }
 0x4be   :  { %9252 = vmatpush1.bf16.msra.mxu1 %v12106_v52 }
 0x4bf   :  { %9253 = vmatprep.subr.bf16.mxu1 %v12111_v18 }
 0x4c1   :  { %8974 = vmatmul.mubr.bf16.gmra.mrb[32].mxu1 %v8756_v33 }
 0x4c2   :  { %10908 = vmatprep.mubr.msk.bf16.mxu1 %vm7306_vm9, %v8759_v26  ;;  %9254 = vmatpush1.bf16.msra.mxu1 %v12109_v61 }
 0x4c3   :  { %9255 = vmatprep.subr.bf16.mxu1 %v12114_v31 }
 0x4c6   :  { %9256 = vmatpush1.bf16.msra.mxu1 %v12112_v17 }
 0x4c7   :  { %9257 = vmatprep.subr.bf16.mxu1 %v12117_v50 }
 0x4c9   :  { %8984 = vmatmul.mubr.bf16.gmra.mrb[36].mxu1 %v16216_v25  ;;  %v8006_v25 = vld [vmem:[#allocation3 + $0x228] sm:$0xff] }
 0x4ca   :  { %10909 = vmatprep.mubr.msk.bf16.mxu1 %vm7306_vm9, %v8761_v0  ;;  %9258 = vmatpush1.bf16.msra.mxu1 %v12115_v8  ;;  %v8765_v4 = vpack.c.bf16 %v8006_v25, %v16074_v1  ;;  %v8005_v0 = vld [vmem:[#allocation3 + $0x220] sm:$0xff]  ;;  %v17612_v1 = vpack.c.bf16 %v15960_v23, %v15932_v48  ;;  %v9073_v34 = vrot.slane %v8006_v25, 1 }
 0x4cb   :  { %10951 = vmatprep.subr.msk.bf16.mxu1 %vm8392_vm11, %v10950_v3  ;;  %v8764_v44 = vpack.c.bf16 %v8005_v0, %v16078_v15  ;;  %v7971_v15 = vld [vmem:[#allocation3 + $0x110] sm:$0x1]  ;;  %v9070_v24 = vrot.slane %v8005_v0, 1 }
 0x4cc   :  { %v9065_v23 = vrot.slane %v7971_v15, 1  ;;  %v9075_v38 = vsel %vm8108_vm12, %v9073_v34, %v9074_v29 }
 0x4cd   :  { %v9095_v45 = vpack.c.bf16 %v9075_v38, %v16199_v56  ;;  %v9072_v2 = vsel %vm8108_vm12, %v9070_v24, %v9071_v10 }
 0x4ce   :  { %9260 = vmatpush1.bf16.msra.mxu1 %v9236_v47  ;;  %v9094_v21 = vpack.c.bf16 %v9072_v2, %v16208_v5 }
 0x4d1   :  { %8994 = vmatmul.mubr.bf16.gmra.mrb[40].mxu1 %v8760_v37  ;;  %v9064_v37 = vrot.slane %v7969_v35, 1 }
 0x4d2   :  { %10910 = vmatprep.mubr.msk.bf16.mxu1 %vm7306_vm9, %v8763_v62  ;;  %v17615_v62 = vld [vmem:[#allocation47_spill] sm:$0xff] }
 0x4d3   :  { %v9087_v48 = vpack.c.bf16 %v9069_v28, %v17615_v62  ;;  %v9066_v43 = vsel %vm8108_vm12, %v9064_v37, %v9065_v23 }
 0x4d4   :  { %v9086_v49 = vpack.c.bf16 %v9066_v43, %v17618_v12 }
 0x4d9   :  { %9004 = vmatmul.mubr.bf16.gmra.mrb[44].mxu1 %v17610_v19 }
 0x4da   :  { %10911 = vmatprep.mubr.msk.bf16.mxu1 %vm7306_vm9, %v8765_v4 }
 0x4e1   :  { %9014 = vmatmul.mubr.bf16.gmra.mrb[48].mxu1 %v8764_v44 }
 0x4e2   :  { %10952 = vmatprep.mubr.msk.bf16.mxu1 %vm7306_vm9, %v9081_v14 }
 0x4e9   :  { %9274 = vmatmul.mubr.bf16.vlgmr.msra.gmra.mrb[20].mxu1 %v9080_v22 }
 0x4ea   :  { %10953 = vmatprep.mubr.msk.bf16.mxu1 %vm7306_vm9, %v17612_v1 }
 0x4f1   :  { %9284 = vmatmul.mubr.bf16.gmra.mrb[24].mxu1 %v17613_v39 }
 0x4f2   :  { %10954 = vmatprep.mubr.msk.bf16.mxu1 %vm7306_vm9, %v17614_v63 }
 0x4f9   :  { %9294 = vmatmul.mubr.bf16.gmra.mrb[28].mxu1 %v17616_v55 }
 0x4fa   :  { %10955 = vmatprep.mubr.msk.bf16.mxu1 %vm7306_vm9, %v9087_v48 }
 0x501   :  { %9304 = vmatmul.mubr.bf16.gmra.mrb[32].mxu1 %v9086_v49 }
 0x502   :  { %10956 = vmatprep.mubr.msk.bf16.mxu1 %vm7306_vm9, %v9089_v13 }
 0x509   :  { %9314 = vmatmul.mubr.bf16.gmra.mrb[36].mxu1 %v9088_v46 }
 0x50a   :  { %10957 = vmatprep.mubr.msk.bf16.mxu1 %vm7306_vm9, %v17619_v60 }
 0x511   :  { %9324 = vmatmul.mubr.bf16.gmra.mrb[40].mxu1 %v17620_v6 }
 0x512   :  { %10958 = vmatprep.mubr.msk.bf16.mxu1 %vm7306_vm9, %v17621_v20 }
 0x519   :  { %9334 = vmatmul.mubr.bf16.gmra.mrb[44].mxu1 %v17622_v9 }
 0x51a   :  { %10959 = vmatprep.mubr.msk.bf16.mxu1 %vm7306_vm9, %v9095_v45 }
 0x521   :  { %9344 = vmatmul.mubr.bf16.gmra.mrb[48].mxu1 %v9094_v21 }
 0x5bc   :  { %v9275_v42 = vpop.f32.mrb[20].mxu1 }
 0x5bd   :  { %v16464_v51 = vpop.f32.mrb[21].mxu1  ;;  %v9386_v27 = vmul.f32 0.14142136, %v9275_v42 }
 0x5be   :  { %v9279_v40 = vpop.f32.mrb[22].mxu1 }
 0x5bf   :  { %v9387_v41 = vmul.f32 0.14142136, %v9279_v40  ;;  %v16466_v52 = vpop.f32.mrb[23].mxu1  ;;  %v16468_v56 = vpack.c.bf16 %v9279_v40, %v9275_v42 }
 0x5c0   :  { %v9418_v11 = vpack.c.bf16 %v16466_v52, %v16464_v51 }
 0x5c1   :  { %v9402_v32 = vpack.c.bf16 %v9387_v41, %v9386_v27  ;;  %9430 = vrot.lane.b32.xlu0 %v16468_v56, %s12213_s2 }
 0x5c3   :  { %11041 = vmatprep.mubr.msk.bf16.mxu1 %vm21_vm0, %v9402_v32 }
 0x5c4   :  { %v9285_v5 = vpop.f32.mrb[24].mxu1 }
 0x5c5   :  { %v16475_v18 = vpop.f32.mrb[25].mxu1  ;;  %v16477_v26 = vmul.f32 0.14142136, %v9285_v5 }
 0x5c6   :  { %v9289_v35 = vpop.f32.mrb[26].mxu1 }
 0x5c7   :  { %v16479_v61 = vmul.f32 0.14142136, %v9289_v35  ;;  %v16481_v33 = vpack.c.bf16 %v9289_v35, %v9285_v5  ;;  %v16483_v31 = vpop.f32.mrb[27].mxu1 }
 0x5c8   :  { %v9419_v17 = vpack.c.bf16 %v16483_v31, %v16475_v18 }
 0x5c9   :  { %v9403_v50 = vpack.c.bf16 %v16479_v61, %v16477_v26  ;;  %9432 = vrot.lane.b32.xlu0 %v16481_v33, %s12213_s2 }
 0x5cc   :  { %v9295_v36 = vpop.f32.mrb[28].mxu1 }
 0x5cd   :  { %v16491_v8 = vpop.f32.mrb[29].mxu1  ;;  %v16493_v59 = vmul.f32 0.14142136, %v9295_v36 }
 0x5ce   :  { %v9299_v3 = vpop.f32.mrb[30].mxu1 }
 0x5cf   :  { %v16495_v47 = vmul.f32 0.14142136, %v9299_v3  ;;  %v16497_v25 = vpop.f32.mrb[31].mxu1  ;;  %v9412_v4 = vpack.c.bf16 %v9299_v3, %v9295_v36 }
 0x5d0   :  { %v9420_v19 = vpack.c.bf16 %v16497_v25, %v16491_v8 }
 0x5d1   :  { %v9404_v0 = vpack.c.bf16 %v16495_v47, %v16493_v59  ;;  %9434 = vrot.lane.b32.xlu1 %v9412_v4, %s12213_s2 }
 0x5d4   :  { %v9305_v14 = vpop.f32.mrb[32].mxu1 }
 0x5d5   :  { %v9307_v44 = vpop.f32.mrb[33].mxu1  ;;  %v16504_v22 = vmul.f32 0.14142136, %v9305_v14 }
 0x5d6   :  { %v9309_v57 = vpop.f32.mrb[34].mxu1 }
 0x5d7   :  { %v16506_v1 = vmul.f32 0.14142136, %v9309_v57  ;;  %v9413_v53 = vpack.c.bf16 %v9309_v57, %v9305_v14  ;;  %v9311_v58 = vpop.f32.mrb[35].mxu1 }
 0x5d8   :  { %v9421_v39 = vpack.c.bf16 %v9311_v58, %v9307_v44 }
 0x5d9   :  { %v9405_v54 = vpack.c.bf16 %v16506_v1, %v16504_v22  ;;  %9436 = vrot.lane.b32.xlu1 %v9413_v53, %s12213_s2 }
 0x5dc   :  { %v9315_v63 = vpop.f32.mrb[36].mxu1 }
 0x5dd   :  { %v9317_v28 = vpop.f32.mrb[37].mxu1  ;;  %v16511_v37 = vmul.f32 0.14142136, %v9315_v63 }
 0x5de   :  { %v9319_v15 = vpop.f32.mrb[38].mxu1 }
 0x5df   :  { %v16513_v62 = vmul.f32 0.14142136, %v9319_v15  ;;  %v9414_v48 = vpack.c.bf16 %v9319_v15, %v9315_v63  ;;  %v9321_v23 = vpop.f32.mrb[39].mxu1 }
 0x5e0   :  { %v9422_v55 = vpack.c.bf16 %v9321_v23, %v9317_v28 }
 0x5e1   :  { %v9406_v43 = vpack.c.bf16 %v16513_v62, %v16511_v37  ;;  %9531 = vrot.lane.b32.xlu0 %v9414_v48, %s12213_s2 }
 0x5e4   :  { %v9325_v30 = vpop.f32.mrb[40].mxu1 }
 0x5e5   :  { %v9327_v13 = vpop.f32.mrb[41].mxu1  ;;  %v16518_v49 = vmul.f32 0.14142136, %v9325_v30 }
 0x5e6   :  { %v9329_v12 = vpop.f32.mrb[42].mxu1 }
 0x5e7   :  { %v16520_v46 = vmul.f32 0.14142136, %v9329_v12  ;;  %v9415_v60 = vpack.c.bf16 %v9329_v12, %v9325_v30  ;;  %v9331_v16 = vpop.f32.mrb[43].mxu1 }
 0x5e8   :  { %v9423_v34 = vpack.c.bf16 %v9331_v16, %v9327_v13 }
 0x5e9   :  { %v9407_v6 = vpack.c.bf16 %v16520_v46, %v16518_v49  ;;  %9533 = vrot.lane.b32.xlu1 %v9415_v60, %s12213_s2 }
 0x5ec   :  { %v9335_v29 = vpop.f32.mrb[44].mxu1 }
 0x5ed   :  { %v16525_v20 = vpop.f32.mrb[45].mxu1  ;;  %v16527_v7 = vmul.f32 0.14142136, %v9335_v29 }
 0x5ee   :  { %v9339_v38 = vpop.f32.mrb[46].mxu1 }
 0x5ef   :  { %v16529_v24 = vmul.f32 0.14142136, %v9339_v38  ;;  %v16531_v45 = vpack.c.bf16 %v9339_v38, %v9335_v29  ;;  %v16533_v10 = vpop.f32.mrb[47].mxu1 }
 0x5f0   :  { %v9424_v9 = vpack.c.bf16 %v16533_v10, %v16525_v20 }
 0x5f1   :  { %v9408_v2 = vpack.c.bf16 %v16529_v24, %v16527_v7  ;;  %9535 = vrot.lane.b32.xlu0 %v16531_v45, %s12213_s2 }
 0x5f4   :  { %v9345_v21 = vpop.f32.mrb[48].mxu1 }
 0x5f5   :  { %9819 = vrot.lane.b32.xlu0 %v9418_v11, %s12214_s12  ;;  %v16545_v42 = vpop.f32.mrb[49].mxu1  ;;  %v16547_v27 = vmul.f32 0.14142136, %v9345_v21 }
 0x5f6   :  { %v9349_v40 = vpop.f32.mrb[50].mxu1 }
 0x5f7   :  { %v16549_v41 = vmul.f32 0.14142136, %v9349_v40  ;;  %v16551_v32 = vpack.c.bf16 %v9349_v40, %v9345_v21  ;;  %v16553_v5 = vpop.f32.mrb[51].mxu1 }
 0x5f8   :  { %v9425_v35 = vpack.c.bf16 %v16553_v5, %v16545_v42 }
 0x5f9   :  { %v9409_v36 = vpack.c.bf16 %v16549_v41, %v16547_v27  ;;  %9823 = vrot.lane.b32.xlu0 %v9419_v17, %s12214_s12  ;;  %9537 = vrot.lane.b32.xlu1 %v16551_v32, %s12213_s2 }
 0x5fd   :  { %9831 = vrot.lane.b32.xlu0 %v9421_v39, %s12214_s12  ;;  %9817 = vrot.lane.b32.xlu1 %v16468_v56, %s12214_s12 }
 0x601   :  { %9927 = vrot.lane.b32.xlu0 %v9415_v60, %s12214_s12  ;;  %9821 = vrot.lane.b32.xlu1 %v16481_v33, %s12214_s12 }
 0x605   :  { %9825 = vrot.lane.b32.xlu1 %v9412_v4, %s12214_s12 }
 0x609   :  { %9827 = vrot.lane.b32.xlu1 %v9420_v19, %s12214_s12 }
 0x60d   :  { %9829 = vrot.lane.b32.xlu1 %v9413_v53, %s12214_s12 }
 0x611   :  { %9923 = vrot.lane.b32.xlu1 %v9414_v48, %s12214_s12 }
 0x615   :  { %9925 = vrot.lane.b32.xlu1 %v9422_v55, %s12214_s12 }
 0x619   :  { %9929 = vrot.lane.b32.xlu1 %v9423_v34, %s12214_s12 }
 0x633   :  { %v9431_v51 = vpop.permute.xlu0 %9430 }
 0x634   :  { %v9451_v52 = vsel %vm21_vm0, %v9431_v51, 0  ;;  %11695 = vmatprep.subr.msk.bf16.mxu1 %vm21_vm0, %v9431_v51 }
 0x635   :  { %11034 = vmatpush3.bf16.xpose.msra.mxu1 %v9451_v52 }
 0x63b   :  { %v9433_v56 = vpop.permute.xlu0 %9432 }
 0x63c   :  { %v9454_v11 = vsel %vm21_vm0, %v9433_v56, 0  ;;  %11696 = vmatprep.subr.msk.bf16.mxu1 %vm21_vm0, %v9433_v56 }
 0x63d   :  { %11036 = vmatpush3.bf16.xpose.msra.mxu1 %v9454_v11 }
 0x643   :  { %v9435_v18 = vpop.permute.xlu1 %9434 }
 0x644   :  { %v9457_v33 = vsel %vm21_vm0, %v9435_v18, 0  ;;  %11697 = vmatprep.subr.msk.bf16.mxu1 %vm21_vm0, %v9435_v18 }
 0x645   :  { %11038 = vmatpush3.bf16.xpose.msra.mxu1 %v9457_v33 }
 0x64b   :  { %v9437_v31 = vpop.permute.xlu1 %9436 }
 0x64c   :  { %v9460_v17 = vsel %vm21_vm0, %v9437_v31, 0  ;;  %11698 = vmatprep.subr.msk.bf16.mxu1 %vm21_vm0, %v9437_v31 }
 0x64d   :  { %11040 = vmatpush3.bf16.xpose.msra.mxu1 %v9460_v17 }
 0x653   :  { %v9532_v8 = vpop.permute.xlu0 %9531 }
 0x654   :  { %v9552_v3 = vsel %vm21_vm0, %v9532_v8, 0  ;;  %11042 = vmatmul.mubr.msk.bf16.vlgmr.msra.gmra.mrb[52].mxu1 %vm21_vm0, %v9403_v50  ;;  %11699 = vmatprep.subr.msk.bf16.mxu1 %vm21_vm0, %v9532_v8 }
 0x655   :  { %11045 = vmatprep.mubr.msk.bf16.mxu1 %vm21_vm0, %v9404_v0  ;;  %11050 = vmatpush3.bf16.xpose.msra.mxu1 %v9552_v3 }
 0x65b   :  { %v9534_v25 = vpop.permute.xlu1 %9533 }
 0x65c   :  { %v9555_v4 = vsel %vm21_vm0, %v9534_v25, 0  ;;  %11046 = vmatmul.mubr.msk.bf16.gmra.mrb[56].mxu1 %vm21_vm0, %v9405_v54  ;;  %11700 = vmatprep.subr.msk.bf16.mxu1 %vm21_vm0, %v9534_v25 }
 0x65d   :  { %11052 = vmatpush3.bf16.xpose.msra.mxu1 %v9555_v4  ;;  %11057 = vmatprep.mubr.msk.bf16.mxu1 %vm21_vm0, %v9406_v43 }
 0x663   :  { %v9536_v26 = vpop.permute.xlu0 %9535 }
 0x664   :  { %v9558_v61 = vsel %vm21_vm0, %v9536_v26, 0  ;;  %11701 = vmatprep.subr.msk.bf16.mxu1 %vm21_vm0, %v9536_v26 }
 0x665   :  { %11054 = vmatpush3.bf16.xpose.msra.mxu1 %v9558_v61 }
 0x667   :  { %v9820_v47 = vpop.permute.xlu0 %9819 }
 0x66b   :  { %v9538_v50 = vpop.permute.xlu1 %9537  ;;  %v9824_v14 = vpop.permute.xlu0 %9823 }
 0x66c   :  { %v9561_v59 = vsel %vm21_vm0, %v9538_v50, 0  ;;  %11702 = vmatprep.subr.msk.bf16.mxu1 %vm21_vm0, %v9538_v50 }
 0x66d   :  { %11056 = vmatpush3.bf16.xpose.msra.mxu1 %v9561_v59 }
 0x66f   :  { %v9818_v19 = vpop.permute.xlu1 %9817  ;;  %v9832_v58 = vpop.permute.xlu0 %9831 }
 0x670   :  { %v9834_v0 = vsel %vm9833_vm14, %v9818_v19, %v9820_v47 }
 0x671   :  { %11065 = vmatprep.subr.bf16.mxu1 %v9834_v0 }
 0x673   :  { %v9822_v44 = vpop.permute.xlu1 %9821  ;;  %v16684_v17 = vpop.permute.xlu0 %9927 }
 0x674   :  { %11058 = vmatmul.mubr.msk.bf16.vlgmr.msra.gmra.mrb[60].mxu1 %vm21_vm0, %v9407_v6  ;;  %v9835_v57 = vsel %vm9833_vm14, %v9822_v44, %v9824_v14 }
 0x675   :  { %11061 = vmatprep.mubr.msk.bf16.mxu1 %vm21_vm0, %v9408_v2  ;;  %11066 = vmatpush3.bf16.msra.mxu1 %v9834_v0 }
 0x676   :  { %11067 = vmatprep.subr.bf16.mxu1 %v9835_v57 }
 0x677   :  { %v9826_v22 = vpop.permute.xlu1 %9825 }
 0x679   :  { %11068 = vmatpush3.bf16.msra.mxu1 %v9835_v57 }
 0x67b   :  { %v9828_v1 = vpop.permute.xlu1 %9827 }
 0x67c   :  { %11062 = vmatmul.mubr.msk.bf16.gmra.mrb[64].mxu1 %vm21_vm0, %v9409_v36  ;;  %v9836_v53 = vsel %vm9833_vm14, %v9826_v22, %v9828_v1 }
 0x67d   :  { %11069 = vmatprep.subr.bf16.mxu1 %v9836_v53 }
 0x67e   :  { %11070 = vmatpush3.bf16.msra.mxu1 %v9836_v53 }
 0x67f   :  { %v9830_v39 = vpop.permute.xlu1 %9829 }
 0x680   :  { %v9837_v54 = vsel %vm9833_vm14, %v9830_v39, %v9832_v58 }
 0x681   :  { %11071 = vmatprep.subr.bf16.mxu1 %v9837_v54 }
 0x682   :  { %11072 = vmatpush3.bf16.msra.mxu1 %v9837_v54 }
 0x683   :  { %v9924_v63 = vpop.permute.xlu1 %9923 }
 0x687   :  { %v9926_v28 = vpop.permute.xlu1 %9925 }
 0x688   :  { %v16626_v15 = vsel %vm9833_vm14, %v9924_v63, %v9926_v28 }
 0x689   :  { %11081 = vmatprep.subr.bf16.mxu1 %v16626_v15 }
 0x68b   :  { %v16686_v8 = vpop.permute.xlu1 %9929 }
 0x727   :  { %v11043_v37 = vpop.f32.mrb[52].mxu1 }
 0x728   :  { %v9496_v62 = vpop.f32.mrb[53].mxu1  ;;  %v9635_v48 = vsel %vm9628_vm15, %v11043_v37, -inf }
 0x729   :  { %9636 = vmax.xlane.f32.xlu0 %v9635_v48  ;;  %v16630_v23 = vpop.f32.mrb[54].mxu1  ;;  %v9629_v30 = vsel %vm9628_vm15, %v9496_v62, -inf }
 0x72a   :  { %v9499_v55 = vpop.f32.mrb[55].mxu1  ;;  %v9638_v49 = vsel %vm9628_vm15, %v16630_v23, -inf }
 0x72b   :  { %v9632_v43 = vsel %vm9628_vm15, %v9499_v55, -inf }
 0x72c   :  { %9633 = vmax.xlane.f32.xlu1 %v9632_v43 }
 0x72d   :  { %9630 = vmax.xlane.f32.xlu0 %v9629_v30 }
 0x72f   :  { %v11047_v13 = vpop.f32.mrb[56].mxu1 }
 0x730   :  { %v16634_v12 = vpop.f32.mrb[57].mxu1  ;;  %v9647_v46 = vsel %vm9628_vm15, %v11047_v13, -inf }
 0x731   :  { %9639 = vmax.xlane.f32.xlu0 %v9638_v49  ;;  %9648 = vmax.xlane.f32.xlu1 %v9647_v46  ;;  %v11048_v60 = vpop.f32.mrb[58].mxu1  ;;  %v9641_v34 = vsel %vm9628_vm15, %v16634_v12, -inf }
 0x732   :  { %v16639_v16 = vpop.f32.mrb[59].mxu1  ;;  %v9650_v6 = vsel %vm9628_vm15, %v11048_v60, -inf }
 0x733   :  { %v9644_v29 = vsel %vm9628_vm15, %v16639_v16, -inf }
 0x735   :  { %9642 = vmax.xlane.f32.xlu1 %v9641_v34  ;;  %9651 = vmax.xlane.f32.xlu0 %v9650_v6 }
 0x739   :  { %9645 = vmax.xlane.f32.xlu0 %v9644_v29 }
 0x747   :  { %v16646_v38 = vpop.f32.mrb[60].mxu1 }
 0x748   :  { %v16648_v7 = vpop.f32.mrb[61].mxu1  ;;  %v9659_v24 = vsel %vm9628_vm15, %v16646_v38, -inf }
 0x749   :  { %9660 = vmax.xlane.f32.xlu1 %v9659_v24  ;;  %v16652_v2 = vpop.f32.mrb[62].mxu1  ;;  %v9653_v27 = vsel %vm9628_vm15, %v16648_v7, -inf }
 0x74a   :  { %v16654_v21 = vpop.f32.mrb[63].mxu1  ;;  %v9662_v40 = vsel %vm9628_vm15, %v16652_v2, -inf }
 0x74b   :  { %9663 = vmax.xlane.f32.xlu0 %v9662_v40  ;;  %v9656_v41 = vsel %vm9628_vm15, %v16654_v21, -inf }
 0x74d   :  { %9654 = vmax.xlane.f32.xlu1 %v9653_v27 }
 0x74f   :  { %9657 = vmax.xlane.f32.xlu0 %v9656_v41  ;;  %v16662_v36 = vpop.f32.mrb[64].mxu1 }
 0x750   :  { %v16664_v51 = vpop.f32.mrb[65].mxu1  ;;  %v9671_v52 = vsel %vm9628_vm15, %v16662_v36, -inf }
 0x751   :  { %9672 = vmax.xlane.f32.xlu1 %v9671_v52  ;;  %v16668_v56 = vpop.f32.mrb[66].mxu1  ;;  %v9665_v33 = vsel %vm9628_vm15, %v16664_v51, -inf }
 0x752   :  { %v16670_v11 = vpop.f32.mrb[67].mxu1  ;;  %v9674_v18 = vsel %vm9628_vm15, %v16668_v56, -inf }
 0x753   :  { %9675 = vmax.xlane.f32.xlu0 %v9674_v18  ;;  %v9668_v31 = vsel %vm9628_vm15, %v16670_v11, -inf }
 0x755   :  { %9666 = vmax.xlane.f32.xlu1 %v9665_v33 }
 0x757   :  { %9669 = vmax.xlane.f32.xlu0 %v9668_v31 }
 0x766   :  { %9933 = vrot.lane.b32.xlu1 %v9424_v9, %s12214_s12 }
 0x76d   :  { %9931 = vrot.lane.b32.xlu0 %v16531_v45, %s12214_s12 }
 0x7b6   :  { %v9637_v3 = vpop.xlane.xlu0 %9636 }
 0x7b7   :  { %v9679_v25 = vsub.f32 %v11043_v37, %v9637_v3 }
 0x7b9   :  { %v9697_v4 = vmul.f32 1.442695, %v9679_v25  ;;  %v9634_v26 = vpop.xlane.xlu1 %9633 }
 0x7ba   :  { %v9631_v61 = vpop.xlane.xlu0 %9630  ;;  %v9678_v59 = vsub.f32 %v9499_v55, %v9634_v26 }
 0x7bb   :  { %12128 = vpow2.f32 %v9697_v4  ;;  %v9677_v50 = vsub.f32 %v9496_v62, %v9631_v61 }
 0x7bc   :  { %v9695_v45 = vmul.f32 1.442695, %v9678_v59 }
 0x7bd   :  { %v9693_v47 = vmul.f32 1.442695, %v9677_v50 }
 0x7be   :  { %v9640_v19 = vpop.xlane.xlu0 %9639  ;;  %v9649_v0 = vpop.xlane.xlu1 %9648 }
 0x7bf   :  { %12130 = vpow2.f32 %v9693_v47  ;;  %v9680_v20 = vsub.f32 %v16630_v23, %v9640_v19  ;;  %v9683_v10 = vsub.f32 %v11047_v13, %v9649_v0 }
 0x7c1   :  { %v9699_v9 = vmul.f32 1.442695, %v9680_v20  ;;  %v9705_v14 = vmul.f32 1.442695, %v9683_v10 }
 0x7c2   :  { %v9643_v44 = vpop.xlane.xlu1 %9642  ;;  %v9652_v57 = vpop.xlane.xlu0 %9651 }
 0x7c3   :  { %12132 = vpow2.f32 %v9699_v9  ;;  %v9681_v22 = vsub.f32 %v16634_v12, %v9643_v44  ;;  %v9684_v1 = vsub.f32 %v11048_v60, %v9652_v57 }
 0x7c4   :  { %12134 = vpow2.f32 %v9705_v14 }
 0x7c5   :  { %v16690_v53 = vpop.eup %12128  ;;  %12136 = vpow2.f32 %v9695_v45  ;;  %v9701_v58 = vmul.f32 1.442695, %v9681_v22  ;;  %v9707_v39 = vmul.f32 1.442695, %v9684_v1 }
 0x7c6   :  { %v9646_v54 = vpop.xlane.xlu0 %9645  ;;  %v9731_v63 = vsel %vm9628_vm15, %v16690_v53, 0.0 }
 0x7c7   :  { %12138 = vpow2.f32 %v9701_v58  ;;  %v9682_v28 = vsub.f32 %v16639_v16, %v9646_v54  ;;  %9732 = vadd.xlane.f32.xlu1 %v9731_v63 }
 0x7c8   :  { %12140 = vpow2.f32 %v9707_v39 }
 0x7c9   :  { %v16695_v37 = vpop.eup %12130  ;;  %v9703_v62 = vmul.f32 1.442695, %v9682_v28 }
 0x7ca   :  { %v9725_v48 = vsel %vm9628_vm15, %v16695_v37, 0.0 }
 0x7cb   :  { %9726 = vadd.xlane.f32.xlu1 %v9725_v48  ;;  %12142 = vpow2.f32 %v9703_v62 }
 0x7cd   :  { %v16699_v23 = vpop.eup %12132 }
 0x7ce   :  { %v16701_v55 = vpop.eup %12134  ;;  %v9734_v43 = vsel %vm9628_vm15, %v16699_v23, 0.0 }
 0x7cf   :  { %v16705_v30 = vpop.eup %12136  ;;  %v9743_v13 = vsel %vm9628_vm15, %v16701_v55, 0.0  ;;  %9735 = vadd.xlane.f32.xlu0 %v9734_v43 }
 0x7d0   :  { %9744 = vadd.xlane.f32.xlu1 %v9743_v13  ;;  %v9728_v46 = vsel %vm9628_vm15, %v16705_v30, 0.0 }
 0x7d1   :  { %v16709_v12 = vpop.eup %12138 }
 0x7d2   :  { %v9737_v49 = vsel %vm9628_vm15, %v16709_v12, 0.0  ;;  %v16715_v60 = vpop.eup %12140 }
 0x7d3   :  { %9729 = vadd.xlane.f32.xlu0 %v9728_v46  ;;  %v9746_v34 = vsel %vm9628_vm15, %v16715_v60, 0.0 }
 0x7d4   :  { %9738 = vadd.xlane.f32.xlu1 %v9737_v49 }
 0x7d5   :  { %v16719_v6 = vpop.eup %12142 }
 0x7d6   :  { %v9661_v16 = vpop.xlane.xlu1 %9660  ;;  %v9740_v52 = vsel %vm9628_vm15, %v16719_v6, 0.0 }
 0x7d7   :  { %v9687_v29 = vsub.f32 %v16646_v38, %v9661_v16  ;;  %9747 = vadd.xlane.f32.xlu0 %v9746_v34 }
 0x7d8   :  { %v9664_v24 = vpop.xlane.xlu0 %9663 }
 0x7d9   :  { %v9713_v40 = vmul.f32 1.442695, %v9687_v29  ;;  %v9688_v27 = vsub.f32 %v16652_v2, %v9664_v24 }
 0x7da   :  { %v9655_v41 = vpop.xlane.xlu1 %9654 }
 0x7db   :  { %12144 = vpow2.f32 %v9713_v40  ;;  %v9715_v18 = vmul.f32 1.442695, %v9688_v27  ;;  %v9685_v33 = vsub.f32 %v16648_v7, %v9655_v41  ;;  %9741 = vadd.xlane.f32.xlu0 %v9740_v52 }
 0x7dc   :  { %v9658_v31 = vpop.xlane.xlu0 %9657 }
 0x7dd   :  { %12146 = vpow2.f32 %v9715_v18  ;;  %v9709_v3 = vmul.f32 1.442695, %v9685_v33  ;;  %v9686_v25 = vsub.f32 %v16654_v21, %v9658_v31 }
 0x7de   :  { %v9673_v38 = vpop.xlane.xlu1 %9672 }
 0x7df   :  { %12148 = vpow2.f32 %v9709_v3  ;;  %v9711_v4 = vmul.f32 1.442695, %v9686_v25  ;;  %v9691_v26 = vsub.f32 %v16662_v36, %v9673_v38 }
 0x7e0   :  { %v9676_v2 = vpop.xlane.xlu0 %9675 }
 0x7e1   :  { %12150 = vpow2.f32 %v9711_v4  ;;  %v9721_v61 = vmul.f32 1.442695, %v9691_v26  ;;  %v9692_v59 = vsub.f32 %v16668_v56, %v9676_v2 }
 0x7e2   :  { %v9667_v50 = vpop.xlane.xlu1 %9666 }
 0x7e3   :  { %12152 = vpow2.f32 %v9721_v61  ;;  %v9689_v7 = vsub.f32 %v16664_v51, %v9667_v50  ;;  %v9723_v36 = vmul.f32 1.442695, %v9692_v59 }
 0x7e4   :  { %v9670_v47 = vpop.xlane.xlu0 %9669 }
 0x7e5   :  { %v16730_v19 = vpop.eup %12144  ;;  %v9717_v0 = vmul.f32 1.442695, %v9689_v7  ;;  %v9690_v21 = vsub.f32 %v16670_v11, %v9670_v47 }
 0x7e6   :  { %v9755_v20 = vsel %vm9628_vm15, %v16730_v19, 0.0  ;;  %v9934_v28 = vpop.permute.xlu1 %9933 }
 0x7e7   :  { %v16735_v10 = vpop.eup %12146  ;;  %12154 = vpow2.f32 %v9717_v0  ;;  %v9719_v45 = vmul.f32 1.442695, %v9690_v21  ;;  %9756 = vadd.xlane.f32.xlu1 %v9755_v20 }
 0x7e8   :  { %v9758_v56 = vsel %vm9628_vm15, %v16735_v10, 0.0  ;;  %v9932_v48 = vpop.permute.xlu0 %9931 }
 0x7e9   :  { %v16739_v9 = vpop.eup %12148  ;;  %12156 = vpow2.f32 %v9719_v45  ;;  %9759 = vadd.xlane.f32.xlu0 %v9758_v56  ;;  %v9941_v26 = vsel %vm9833_vm14, %v9932_v48, %v9934_v28 }
 0x7ea   :  { %v9749_v51 = vsel %vm9628_vm15, %v16739_v9, 0.0  ;;  %12158 = vpow2.f32 %v9723_v36 }
 0x7eb   :  { %v16743_v11 = vpop.eup %12150  ;;  %9750 = vadd.xlane.f32.xlu1 %v9749_v51  ;;  %v12120_v51 = vld [vmem:[%s16875_s3] sm:$0xff]  }
 0x7ec   :  { %v9752_v14 = vsel %vm9628_vm15, %v16743_v11, 0.0 }
 0x7ed   :  { %v16747_v44 = vpop.eup %12152  ;;  %9753 = vadd.xlane.f32.xlu0 %v9752_v14 }
 0x7ee   :  { %v9767_v57 = vsel %vm9628_vm15, %v16747_v44, 0.0 }
 0x7f1   :  { %v16751_v22 = vpop.eup %12154  ;;  %9768 = vadd.xlane.f32.xlu0 %v9767_v57 }
 0x7f2   :  { %v9761_v58 = vsel %vm9628_vm15, %v16751_v22, 0.0 }
 0x7f3   :  { %v16753_v1 = vpop.eup %12156 }
 0x7f4   :  { %v9764_v39 = vsel %vm9628_vm15, %v16753_v1, 0.0  ;;  %v16759_v54 = vpop.eup %12158 }
 0x7f5   :  { %9762 = vadd.xlane.f32.xlu0 %v9761_v58  ;;  %9765 = vadd.xlane.f32.xlu1 %v9764_v39  ;;  %v9770_v63 = vsel %vm9628_vm15, %v16759_v54, 0.0 }
 0x7f9   :  { %9771 = vadd.xlane.f32.xlu0 %v9770_v63 }
 0x806   :  { %9937 = vrot.lane.b32.xlu1 %v9425_v35, %s12214_s12 }
 0x80f   :  { %9935 = vrot.lane.b32.xlu0 %v16551_v32, %s12214_s12 }
 0x854   :  { %v9733_v62 = vpop.xlane.xlu1 %9732 }
 0x858   :  { %v9727_v43 = vpop.xlane.xlu1 %9726 }
 0x85c   :  { %v9736_v13 = vpop.xlane.xlu0 %9735 }
 0x85d   :  { %v9745_v49 = vpop.xlane.xlu1 %9744  ;;  %12160 = vrcp.f32 %v9736_v13 }
 0x85e   :  { %12162 = vrcp.f32 %v9727_v43 }
 0x85f   :  { %12164 = vrcp.f32 %v9733_v62 }
 0x860   :  { %v9730_v46 = vpop.xlane.xlu0 %9729 }
 0x861   :  { %12166 = vrcp.f32 %v9730_v46  ;;  %v9739_v16 = vpop.xlane.xlu1 %9738 }
 0x864   :  { %v9748_v34 = vpop.xlane.xlu0 %9747 }
 0x865   :  { %12168 = vrcp.f32 %v9748_v34 }
 0x866   :  { %12170 = vrcp.f32 %v9739_v16 }
 0x867   :  { %v12161_v42 = vpop.eup %12160  ;;  %12172 = vrcp.f32 %v9745_v49 }
 0x868   :  { %v9742_v5 = vpop.xlane.xlu0 %9741  ;;  %v12163_v35 = vpop.eup %12162  ;;  %v9792_v24 = vmul.f32 %v12161_v42, %v16699_v23  ;;  %v9940_v23 = vsel %vm9833_vm14, %v16684_v17, %v16686_v8 }
 0x869   :  { %12174 = vrcp.f32 %v9742_v5  ;;  %v12165_v32 = vpop.eup %12164  ;;  %v9789_v40 = vmul.f32 %v12163_v35, %v16695_v37 }
 0x86a   :  { %v9791_v41 = vmul.f32 %v12165_v32, %v16690_v53 }
 0x86b   :  { %v12167_v29 = vpop.eup %12166 }
 0x86c   :  { %v9790_v27 = vmul.f32 %v12167_v29, %v16705_v30  ;;  %v9806_v18 = vpack.c.bf16 %v9792_v24, %v9791_v41 }
 0x86e   :  { %v9805_v52 = vpack.c.bf16 %v9790_v27, %v9789_v40 }
 0x86f   :  { %v12169_v33 = vpop.eup %12168 }
 0x870   :  { %11073 = vmatprep.mubr.msk.bf16.mxu1 %vm9628_vm15, %v9805_v52  ;;  %v12171_v31 = vpop.eup %12170  ;;  %v9796_v30 = vmul.f32 %v12169_v33, %v16715_v60 }
 0x871   :  { %11074 = vmatmul.mubr.msk.bf16.vlgmr.msra.gmra.mrb[68].mxu1 %vm9628_vm15, %v9806_v18  ;;  %v12173_v3 = vpop.eup %12172  ;;  %v9793_v25 = vmul.f32 %v12171_v31, %v16709_v12 }
 0x872   :  { %11082 = vmatpush3.bf16.msra.mxu1 %v16626_v15  ;;  %v9795_v4 = vmul.f32 %v12173_v3, %v16701_v55 }
 0x873   :  { %v12175_v37 = vpop.eup %12174  ;;  %11083 = vmatprep.subr.bf16.mxu1 %v9940_v23 }
 0x874   :  { %v9757_v53 = vpop.xlane.xlu1 %9756  ;;  %v9794_v38 = vmul.f32 %v12175_v37, %v16719_v6  ;;  %v9808_v61 = vpack.c.bf16 %v9796_v30, %v9795_v4 }
 0x876   :  { %11084 = vmatpush3.bf16.msra.mxu1 %v9940_v23  ;;  %v9760_v2 = vpop.xlane.xlu0 %9759  ;;  %v9807_v15 = vpack.c.bf16 %v9794_v38, %v9793_v25  ;;  %v10976_v38 = vld [vmem:[%s16876_s4] ss:$0 sm:$0xff] }
 0x877   :  { %11085 = vmatprep.subr.bf16.mxu1 %v9941_v26 }
 0x878   :  { %v9751_v50 = vpop.xlane.xlu1 %9750  ;;  %11077 = vmatprep.mubr.msk.bf16.mxu1 %vm9628_vm15, %v9807_v15 }
 0x879   :  { %12176 = vrcp.f32 %v9751_v50  ;;  %11078 = vmatmul.mubr.msk.bf16.gmra.mrb[72].mxu1 %vm9628_vm15, %v9808_v61 }
 0x87a   :  { %11086 = vmatpush3.bf16.msra.mxu1 %v9941_v26  ;;  %v9754_v17 = vpop.xlane.xlu0 %9753 }
 0x87b   :  { %12178 = vrcp.f32 %v9754_v17 }
 0x87c   :  { %12180 = vrcp.f32 %v9760_v2 }
 0x87d   :  { %12182 = vrcp.f32 %v9757_v53 }
 0x87e   :  { %v9769_v8 = vpop.xlane.xlu0 %9768 }
 0x882   :  { %v9766_v55 = vpop.xlane.xlu1 %9765  ;;  %v9763_v12 = vpop.xlane.xlu0 %9762 }
 0x883   :  { %v12177_v60 = vpop.eup %12176  ;;  %12184 = vrcp.f32 %v9766_v55 }
 0x884   :  { %12186 = vrcp.f32 %v9763_v12  ;;  %v9797_v7 = vmul.f32 %v12177_v60, %v16739_v9 }
 0x885   :  { %v12179_v6 = vpop.eup %12178  ;;  %12188 = vrcp.f32 %v9769_v8 }
 0x886   :  { %v9772_v59 = vpop.xlane.xlu0 %9771  ;;  %v9798_v47 = vmul.f32 %v12179_v6, %v16743_v11  ;;  %v12181_v0 = vpop.eup %12180 }
 0x887   :  { %12190 = vrcp.f32 %v9772_v59  ;;  %v12183_v20 = vpop.eup %12182  ;;  %v9800_v36 = vmul.f32 %v12181_v0, %v16735_v10  ;;  %v9938_v45 = vpop.permute.xlu1 %9937  ;;  %v12121_v10 = vld [vmem:[%s16875_s3 + $0x8] sm:$0xff]  }
 0x888   :  { %v9809_v21 = vpack.c.bf16 %v9798_v47, %v9797_v7  ;;  %v9799_v9 = vmul.f32 %v12183_v20, %v16730_v19 }
 0x88a   :  { %11089 = vmatprep.mubr.msk.bf16.mxu1 %vm9628_vm15, %v9809_v21  ;;  %v9936_v56 = vpop.permute.xlu0 %9935  ;;  %v9810_v58 = vpack.c.bf16 %v9800_v36, %v9799_v9 }
 0x88b   :  { %v9942_v14 = vsel %vm9833_vm14, %v9936_v56, %v9938_v45 }
 0x88c   :  { %11087 = vmatprep.subr.bf16.mxu1 %v9942_v14 }
 0x88d   :  { %v12185_v11 = vpop.eup %12184  ;;  %11088 = vmatpush3.bf16.msra.mxu1 %v9942_v14 }
 0x88e   :  { %v12187_v57 = vpop.eup %12186  ;;  %v9802_v39 = vmul.f32 %v12185_v11, %v16753_v1  ;;  %11097 = vmatprep.subr.bf16.mxu1 %v12120_v51  ;;  %v12122_v1 = vld [vmem:[%s16875_s3 + $0x10] sm:$0xff]  }
 0x88f   :  { %v9801_v63 = vmul.f32 %v12187_v57, %v16751_v22  ;;  %v12189_v28 = vpop.eup %12188  ;;  %v12123_v22 = vld [vmem:[%s16875_s3 + $0x18] ss:$0 sps:$4 sm:$0x11]  }
 0x890   :  { %11090 = vmatmul.mubr.msk.bf16.vlgmr.msra.gmra.mrb[76].mxu1 %vm9628_vm15, %v9810_v58  ;;  %v9803_v43 = vmul.f32 %v12189_v28, %v16747_v44 }
 0x891   :  { %v12191_v62 = vpop.eup %12190  ;;  %v9811_v48 = vpack.c.bf16 %v9802_v39, %v9801_v63  ;;  %11098 = vmatpush3.bf16.msra.mxu1 %v12120_v51 }
 0x892   :  { %v9804_v19 = vmul.f32 %v12191_v62, %v16759_v54  ;;  %11099 = vmatprep.subr.bf16.mxu1 %v12121_v10  ;;  %v10092_v54 = vsel %vm526_vm2, %v12123_v22, 0 }
 0x893   :  { %11093 = vmatprep.mubr.msk.bf16.mxu1 %vm9628_vm15, %v9811_v48 }
 0x894   :  { %v9812_v13 = vpack.c.bf16 %v9804_v19, %v9803_v43 }
 0x895   :  { %11100 = vmatpush3.bf16.msra.mxu1 %v12121_v10 }
 0x896   :  { %11101 = vmatprep.subr.bf16.mxu1 %v12122_v1 }
 0x898   :  { %11094 = vmatmul.mubr.msk.bf16.gmra.mrb[80].mxu1 %vm9628_vm15, %v9812_v13 }
 0x899   :  { %11102 = vmatpush3.bf16.msra.mxu1 %v12122_v1 }
 0x89a   :  { %11703 = vmatprep.subr.msk.bf16.mxu1 %vm526_vm2, %v12123_v22 }
 0x89d   :  { %11104 = vmatpush3.bf16.msra.mxu1 %v10092_v54 }
 0x944   :  { %v11075_v49 = vpop.f32.mrb[68].mxu1 }
 0x945   :  { %v9888_v46 = vpop.f32.mrb[69].mxu1 }
 0x946   :  { %v11076_v16 = vpop.f32.mrb[70].mxu1 }
 0x947   :  { %v10025_v34 = vpack.c.bf16 %v11076_v16, %v11075_v49  ;;  %v9891_v44 = vpop.f32.mrb[71].mxu1 }
 0x948   :  { %v10024_v42 = vpack.c.bf16 %v9891_v44, %v9888_v46 }
 0x94a   :  { %11105 = vmatprep.mubr.msk.bf16.mxu1 %vm21_vm0, %v10024_v42 }
 0x94b   :  { %11106 = vmatmul.mubr.msk.bf16.vlgmr.msra.gmra.mrb[84].mxu1 %vm21_vm0, %v10025_v34 }
 0x94c   :  { %v11079_v5 = vpop.f32.mrb[72].mxu1 }
 0x94d   :  { %v9904_v35 = vpop.f32.mrb[73].mxu1 }
 0x94e   :  { %v11080_v32 = vpop.f32.mrb[74].mxu1 }
 0x94f   :  { %v10027_v29 = vpack.c.bf16 %v11080_v32, %v11079_v5  ;;  %v9907_v24 = vpop.f32.mrb[75].mxu1 }
 0x950   :  { %v10026_v40 = vpack.c.bf16 %v9907_v24, %v9904_v35 }
 0x952   :  { %11109 = vmatprep.mubr.msk.bf16.mxu1 %vm21_vm0, %v10026_v40 }
 0x953   :  { %11110 = vmatmul.mubr.msk.bf16.gmra.mrb[88].mxu1 %vm21_vm0, %v10027_v29 }
 0x963   :  { %v11091_v27 = vpop.f32.mrb[76].mxu1 }
 0x964   :  { %v9993_v41 = vpop.f32.mrb[77].mxu1 }
 0x965   :  { %v11092_v52 = vpop.f32.mrb[78].mxu1 }
 0x966   :  { %v10029_v18 = vpack.c.bf16 %v11092_v52, %v11091_v27  ;;  %v9996_v33 = vpop.f32.mrb[79].mxu1 }
 0x967   :  { %v10028_v31 = vpack.c.bf16 %v9996_v33, %v9993_v41 }
 0x969   :  { %11113 = vmatprep.mubr.msk.bf16.mxu1 %vm21_vm0, %v10028_v31 }
 0x96a   :  { %11114 = vmatmul.mubr.msk.bf16.gmra.mrb[92].mxu1 %vm21_vm0, %v10029_v18 }
 0x96b   :  { %v11095_v3 = vpop.f32.mrb[80].mxu1 }
 0x96c   :  { %v10009_v23 = vpop.f32.mrb[81].mxu1 }
 0x96d   :  { %v11096_v37 = vpop.f32.mrb[82].mxu1 }
 0x96e   :  { %v10031_v30 = vpack.c.bf16 %v11096_v37, %v11095_v3  ;;  %v10012_v53 = vpop.f32.mrb[83].mxu1 }
 0x96f   :  { %v10030_v25 = vpack.c.bf16 %v10012_v53, %v10009_v23 }
 0x971   :  { %11117 = vmatprep.mubr.msk.bf16.mxu1 %vm21_vm0, %v10030_v25 }
 0x972   :  { %11118 = vmatmul.mubr.msk.bf16.gmra.mrb[96].mxu1 %vm21_vm0, %v10031_v30 }
 0xa1e   :  { %v11107_v4 = vpop.f32.mrb[84].mxu1 }
 0xa1f   :  { %v10137_v26 = vadd.f32 %v11107_v4, %v10976_v38  ;;  %v10128_v2 = vpop.f32.mrb[85].mxu1 }
 0xa20   :  { %v10129_v15 = vadd.f32 %v10976_v38, %v10128_v2  ;;  %v11108_v61 = vpop.f32.mrb[86].mxu1 }
 0xa21   :  { %10193 = vst [vmem:[%s16877_s5 + $0x10] sm:$0xff] %v10137_v26  ;;  %v10140_v50 = vadd.f32 %v11108_v61, %v10976_v38  ;;  %v10131_v17 = vpop.f32.mrb[87].mxu1 }
 0xa22   :  { %10191 = vst [vmem:[%s16877_s5] sm:$0xff] %v10129_v15  ;;  %v10132_v8 = vadd.f32 %v10976_v38, %v10131_v17 }
 0xa23   :  { %10194 = vst [vmem:[%s16877_s5 + $0x18] sm:$0xff] %v10140_v50 }
 0xa24   :  { %10192 = vst [vmem:[%s16877_s5 + $0x8] sm:$0xff] %v10132_v8 }
 0xa26   :  { %v11111_v55 = vpop.f32.mrb[88].mxu1 }
 0xa27   :  { %v10153_v12 = vadd.f32 %v11111_v55, %v10976_v38  ;;  %v10144_v60 = vpop.f32.mrb[89].mxu1 }
 0xa28   :  { %v10145_v6 = vadd.f32 %v10976_v38, %v10144_v60  ;;  %v11112_v59 = vpop.f32.mrb[90].mxu1 }
 0xa29   :  { %10197 = vst [vmem:[%s16877_s5 + $0x30] sm:$0xff] %v10153_v12  ;;  %v10156_v7 = vadd.f32 %v11112_v59, %v10976_v38  ;;  %v10147_v47 = vpop.f32.mrb[91].mxu1 }
 0xa2a   :  { %10195 = vst [vmem:[%s16877_s5 + $0x20] sm:$0xff] %v10145_v6  ;;  %v10148_v0 = vadd.f32 %v10976_v38, %v10147_v47 }
 0xa2b   :  { %10198 = vst [vmem:[%s16877_s5 + $0x38] sm:$0xff] %v10156_v7 }
 0xa2c   :  { %10196 = vst [vmem:[%s16877_s5 + $0x28] sm:$0xff] %v10148_v0 }
 0xa3d   :  { %v11115_v21 = vpop.f32.mrb[92].mxu1 }
 0xa3e   :  { %v10169_v20 = vadd.f32 %v11115_v21, %v10976_v38  ;;  %v10160_v36 = vpop.f32.mrb[93].mxu1 }
 0xa3f   :  { %v10161_v45 = vadd.f32 %v10976_v38, %v10160_v36  ;;  %v11116_v56 = vpop.f32.mrb[94].mxu1 }
 0xa40   :  { %10201 = vst [vmem:[%s16877_s5 + $0x50] sm:$0xff] %v10169_v20  ;;  %v10172_v51 = vadd.f32 %v11116_v56, %v10976_v38  ;;  %v10163_v14 = vpop.f32.mrb[95].mxu1 }
 0xa41   :  { %10199 = vst [vmem:[%s16877_s5 + $0x40] sm:$0xff] %v10161_v45  ;;  %v10164_v9 = vadd.f32 %v10976_v38, %v10163_v14 }
 0xa42   :  { %10202 = vst [vmem:[%s16877_s5 + $0x58] sm:$0xff] %v10172_v51 }
 0xa43   :  { %10200 = vst [vmem:[%s16877_s5 + $0x48] sm:$0xff] %v10164_v9 }
 0xa45   :  { %v11119_v11 = vpop.f32.mrb[96].mxu1 }
 0xa46   :  { %v10185_v57 = vadd.f32 %v11119_v11, %v10976_v38  ;;  %v10176_v58 = vpop.f32.mrb[97].mxu1 }
 0xa47   :  { %v10177_v39 = vadd.f32 %v10976_v38, %v10176_v58  ;;  %v11120_v10 = vpop.f32.mrb[98].mxu1 }
 0xa48   :  { %10205 = vst [vmem:[%s16877_s5 + $0x70] sm:$0xff] %v10185_v57  ;;  %v10188_v63 = vadd.f32 %v11120_v10, %v10976_v38  ;;  %v10179_v28 = vpop.f32.mrb[99].mxu1 }
 0xa49   :  { %10203 = vst [vmem:[%s16877_s5 + $0x60] sm:$0xff] %v10177_v39  ;;  %v10180_v62 = vadd.f32 %v10976_v38, %v10179_v28 }
 0xa4a   :  { %10206 = vst [vmem:[%s16877_s5 + $0x78] sm:$0xff] %v10188_v63 }
 0xa4b   :  { %10204 = vst [vmem:[%s16877_s5 + $0x68] sm:$0xff] %v10180_v62 }

</bundles_post_ra>
